<compile_context>
chip_gen: v7x
topology: tpu7x:2x2x1
jax: 0.10.0
libtpu: 0.0.40
codegen_flags: <defaults>
</compile_context>

<pallas_src>
import functools

import numpy as np

import jax
import jax.numpy as jnp
from jax.experimental import pallas as pl
from jax.experimental.pallas import tpu as pltpu  # noqa: F401  (TPU backend)

BN_EPS = 1e-5
COMPUTE_DTYPE = jnp.bfloat16  # MXU operand dtype; set to jnp.float32 for exact f32 matmuls

TAPS_3x3 = tuple((di, dj) for di in (-1, 0, 1) for dj in (-1, 0, 1))


# --------------------------------------------------------------------------
# Shared in-kernel helpers
# --------------------------------------------------------------------------
def _fold_cols(v, fold):
    """Sum `fold` equal column blocks of a [1, fold*c] row -> [1, c]."""
    c = v.shape[1] // fold
    out = v[:, :c]
    for i in range(1, fold):
        out = out + v[:, i * c:(i + 1) * c]
    return out


def _bn_norm(y, gamma, beta, inv_n, fold, eps):
    """Training-mode BatchNorm (biased variance, two-pass form) over rows; when fold > 1
    the statistics are shared across `fold` phase column blocks."""
    mean = jnp.sum(y, axis=0, keepdims=True) * inv_n
    if fold > 1:
        mean = jnp.concatenate([_fold_cols(mean, fold)] * fold, axis=1)
    d = y - mean
    var = jnp.sum(d * d, axis=0, keepdims=True) * inv_n
    if fold > 1:
        var = jnp.concatenate([_fold_cols(var, fold)] * fold, axis=1)
    return d * jax.lax.rsqrt(var + eps) * gamma + beta


def _cost(flops, transcendentals, arrays, out_bytes):
    b = int(out_bytes)
    for a in arrays:
        b += int(np.prod(a.shape)) * int(np.dtype(a.dtype).itemsize)
    return pl.CostEstimate(flops=int(flops), transcendentals=int(transcendentals),
                           bytes_accessed=b)


# --------------------------------------------------------------------------
# Kernel 1: single wide-K matmul + bias + BatchNorm + ReLU (stem / transposed convs)
# --------------------------------------------------------------------------
def _mm_bn_kernel(*refs, has_bias, has_bn, relu_out, fold, inv_n, eps):
    it = iter(refs)
    a_ref = next(it)                       # [M, K]     COMPUTE_DTYPE (im2col slab)
    w_ref = next(it)                       # [K, Cout]  COMPUTE_DTYPE
    bias_ref = next(it) if has_bias else None
    g_ref = next(it) if has_bn else None
    b_ref = next(it) if has_bn else None
    o_ref = next(it)                       # [M, Cout]  f32

    y = jnp.dot(a_ref[...], w_ref[...], preferred_element_type=jnp.float32)
    if has_bias:
        y = y + bias_ref[...]
    if has_bn:
        y = _bn_norm(y, g_ref[...], b_ref[...], inv_n, fold, eps)
    if relu_out:
        y = jnp.maximum(y, 0.0)
    o_ref[...] = y


def _mm_bn_call(a, w, bias=None, gamma=None, beta=None, *, relu_out=False, fold=1):
    M, K = a.shape
    cout = w.shape[1]
    has_bias = bias is not None
    has_bn = gamma is not None
    inv_n = 1.0 / float(M * fold)

    inputs = [a, w]
    if has_bias:
        inputs.append(jnp.asarray(bias, jnp.float32).reshape(1, cout))
    if has_bn:
        inputs.append(jnp.asarray(gamma, jnp.float32).reshape(1, cout))
        inputs.append(jnp.asarray(beta, jnp.float32).reshape(1, cout))

    kernel = functools.partial(_mm_bn_kernel, has_bias=has_bias, has_bn=has_bn,
                               relu_out=relu_out, fold=fold, inv_n=inv_n, eps=BN_EPS)
    return pl.pallas_call(
        kernel,
        out_shape=jax.ShapeDtypeStruct((M, cout), jnp.float32),
        cost_estimate=_cost(2 * M * K * cout, cout if has_bn else 0,
                            inputs, M * cout * 4),
    )(*inputs)


# --------------------------------------------------------------------------
# Kernel 2: fused 3-ResBlock chain (weights, taps and intermediates stay in VMEM)
# --------------------------------------------------------------------------
def _resblock_chain_kernel(x_ref, smats_ref, w1s_ref, g1s_ref, b1s_ref,
                           w2s_ref, g2s_ref, b2s_ref, o_ref,
                           *, inv_n, final_relu, eps):
    x = x_ref[...]                                   # [M, C] f32
    n_taps = smats_ref.shape[0]
    n_blocks = w1s_ref.shape[0]
    for r in range(n_blocks):
        # nn.ReLU(inplace=True) mutates x in eager PyTorch, so the residual is relu(x).
        h0 = jnp.maximum(x, 0.0)
        # 3x3 taps via constant shift+mask matrices (MXU): slab_t = S_t @ relu(x).
        slabs = [jnp.dot(smats_ref[t], h0, preferred_element_type=jnp.float32)
                 for t in range(n_taps)]
        a_cat = jnp.concatenate(slabs, axis=1).astype(COMPUTE_DTYPE)   # [M, 9C]
        y = jnp.dot(a_cat, w1s_ref[r], preferred_element_type=jnp.float32)
        y = _bn_norm(y, g1s_ref[r], b1s_ref[r], inv_n, 1, eps)
        y = jnp.maximum(y, 0.0)
        y2 = jnp.dot(y.astype(COMPUTE_DTYPE), w2s_ref[r],
                     preferred_element_type=jnp.float32)
        y2 = _bn_norm(y2, g2s_ref[r], b2s_ref[r], inv_n, 1, eps)
        x = h0 + y2
    if final_relu:                                   # decoder's ReLU before ConvTranspose
        x = jnp.maximum(x, 0.0)
    o_ref[...] = x


def _make_shift_mats(n, h, w):
    """Constant [9, M, M] matrices: (S_t @ x)[r] = x[3x3-neighbour t of row r], 0 at borders."""
    m = n * h * w
    s = np.zeros((len(TAPS_3x3), m, m), np.float32)
    for t, (di, dj) in enumerate(TAPS_3x3):
        for b in range(n):
            for i in range(h):
                for j in range(w):
                    if 0 <= i + di < h and 0 <= j + dj < w:
                        s[t, b * h * w + i * w + j,
                          b * h * w + (i + di) * w + (j + dj)] = 1.0
    return jnp.asarray(s)


def resblock_chain(x, rb_params, *, final_relu):
    """relu(x) + BN(Conv1x1(ReLU(BN(Conv3x3(ReLU(x)))))), chained R times in ONE pallas_call."""
    N, H, W, C = x.shape
    M = N * H * W
    chid = rb_params[0]["w1"].shape[0]
    smats = _make_shift_mats(N, H, W)
    w1s = jnp.stack(
        [jnp.concatenate([p["w1"][:, :, di + 1, dj + 1].T for (di, dj) in TAPS_3x3], axis=0)
         for p in rb_params], axis=0).astype(COMPUTE_DTYPE)            # [R, 9C, Chid]
    g1s = jnp.stack([jnp.asarray(p["g1"], jnp.float32).reshape(1, chid) for p in rb_params], 0)
    b1s = jnp.stack([jnp.asarray(p["b1"], jnp.float32).reshape(1, chid) for p in rb_params], 0)
    w2s = jnp.stack([p["w2"][:, :, 0, 0].T for p in rb_params], 0).astype(COMPUTE_DTYPE)
    g2s = jnp.stack([jnp.asarray(p["g2"], jnp.float32).reshape(1, C) for p in rb_params], 0)
    b2s = jnp.stack([jnp.asarray(p["b2"], jnp.float32).reshape(1, C) for p in rb_params], 0)

    R = len(rb_params)
    flops = R * (2 * M * M * C * len(TAPS_3x3) + 2 * M * 9 * C * chid + 2 * M * chid * C)
    inputs = (x.reshape(M, C), smats, w1s, g1s, b1s, w2s, g2s, b2s)
    kernel = functools.partial(_resblock_chain_kernel, inv_n=1.0 / M,
                               final_relu=final_relu, eps=BN_EPS)
    y = pl.pallas_call(
        kernel,
        out_shape=jax.ShapeDtypeStruct((M, C), jnp.float32),
        cost_estimate=_cost(flops, R * (chid + C), inputs, M * C * 4),
    )(*inputs)
    return y.reshape(N, H, W, C)


# --------------------------------------------------------------------------
# Kernel 3: VQ — single tile, resident codebook, fused distances/argmin/gather/loss
# --------------------------------------------------------------------------
def _vq_kernel(z_ref, wsq_ref, cb_ref, q_ref, idx_ref, loss_ref, *, scale):
    z = z_ref[...]                                   # [M, D] f32
    w = cb_ref[...]                                  # [K, D] f32
    m = z.shape[0]
    k = w.shape[0]

    z_sq = jnp.sum(z * z, axis=1, keepdims=True)     # [M, 1]
    cross = jax.lax.dot_general(z, w, (((1,), (1,)), ((), ())),
                                preferred_element_type=jnp.float32)    # [M, K]
    d = z_sq + wsq_ref[...] - 2.0 * cross

    iota = jax.lax.broadcasted_iota(jnp.int32, (m, k), 1)
    dmin = jnp.min(d, axis=1, keepdims=True)
    idx = jnp.min(jnp.where(d == dmin, iota, k), axis=1, keepdims=True)   # first-match argmin

    onehot = (iota == idx).astype(jnp.float32)
    q = jnp.dot(onehot, w, preferred_element_type=jnp.float32)

    q_ref[...] = q
    idx_ref[...] = idx.astype(jnp.int32)

    diff = q - z
    loss_ref[...] = jnp.sum(jnp.sum(diff * diff, axis=1, keepdims=True),
                            axis=0, keepdims=True) * scale


def pallas_vq(z_flat, codebook, commitment_cost):
    # TODO(synk): for large M, row-tile with a grid; at these sizes one tile is fastest.
    M, D = z_flat.shape
    K = codebook.shape[0]
    wsq = jnp.sum(codebook * codebook, axis=1).reshape(1, K)
    scale = (1.0 + commitment_cost) / float(M * D)   # q_latent + cc * e_latent (equal values)
    inputs = (z_flat, wsq, codebook)
    return pl.pallas_call(
        functools.partial(_vq_kernel, scale=scale),
        out_shape=(jax.ShapeDtypeStruct((M, D), jnp.float32),
                   jax.ShapeDtypeStruct((M, 1), jnp.int32),
                   jax.ShapeDtypeStruct((1, 1), jnp.float32)),
        cost_estimate=_cost(4 * M * K * D, 0, inputs, (M * D + M) * 4 + 4),
    )(*inputs)


# --------------------------------------------------------------------------
# JAX glue: bf16 im2col slabs, weight re-layouts, stage wrappers
# --------------------------------------------------------------------------
def _gather_taps_concat(x, k, stride, pad):
    """x: [N,H,W,C] -> im2col slab [N*oh*ow, k*k*C] in COMPUTE_DTYPE (taps row-major)."""
    x = x.astype(COMPUTE_DTYPE)
    if pad:
        x = jnp.pad(x, ((0, 0), (pad, pad), (pad, pad), (0, 0)))
    N, Hp, Wp, C = x.shape
    oh = (Hp - k) // stride + 1
    ow = (Wp - k) // stride + 1
    slabs = [x[:, i:i + stride * (oh - 1) + 1:stride,
               j:j + stride * (ow - 1) + 1:stride, :].reshape(N * oh * ow, C)
             for i in range(k) for j in range(k)]
    return jnp.concatenate(slabs, axis=1), oh, ow


def _conv_weight_concat(w_oihw):
    """PyTorch Conv2d weight [Cout,Cin,KH,KW] -> [KH*KW*Cin, Cout] matching the im2col order."""
    kh, kw = w_oihw.shape[2], w_oihw.shape[3]
    return jnp.concatenate([w_oihw[:, :, i, j].T for i in range(kh) for j in range(kw)],
                           axis=0).astype(COMPUTE_DTYPE)


def conv_bn(x, w, b, gamma, beta, *, k, stride, pad, relu_out):
    """Conv2d(k,stride,pad) + bias + training BatchNorm (+ReLU), one pallas_call."""
    a, oh, ow = _gather_taps_concat(x, k, stride, pad)
    y = _mm_bn_call(a, _conv_weight_concat(w), bias=b, gamma=gamma, beta=beta,
                    relu_out=relu_out)
    return y.reshape(x.shape[0], oh, ow, w.shape[0])


_KSEL = ((3, 1), (2, 0))  # ConvTranspose(k=4,s=2,p=1): kernel index per (phase, tap offset)


def _convt_fold_weights(w_iohw):
    """ConvTranspose2d weight [Cin,Cout,4,4] -> sub-pixel 3x3 conv weight [9*Cin, 4*Cout]
    (the 4 output phases folded into the channel axis)."""
    cin, cout = w_iohw.shape[:2]
    w9 = jnp.zeros((3, 3, cin, 4 * cout), jnp.float32)
    for r in (0, 1):
        for c in (0, 1):
            p = r * 2 + c
            for a in (0, 1):
                for b in (0, 1):
                    w9 = w9.at[r + a, c + b, :, p * cout:(p + 1) * cout].set(
                        w_iohw[:, :, _KSEL[r][a], _KSEL[c][b]])
    return w9.reshape(9 * cin, 4 * cout).astype(COMPUTE_DTYPE)


def conv_transpose_bn(x, w_t, b, gamma=None, beta=None, *, relu_out=False):
    """ConvTranspose2d(k=4,s=2,p=1) (+BatchNorm +ReLU) via sub-pixel decomposition."""
    N, H, W, _ = x.shape
    cout = w_t.shape[1]
    a, _, _ = _gather_taps_concat(x, 3, 1, 1)
    b4 = jnp.tile(jnp.asarray(b, jnp.float32).reshape(1, cout), (1, 4))
    g4 = (jnp.tile(jnp.asarray(gamma, jnp.float32).reshape(1, cout), (1, 4))
          if gamma is not None else None)
    be4 = (jnp.tile(jnp.asarray(beta, jnp.float32).reshape(1, cout), (1, 4))
           if beta is not None else None)
    y = _mm_bn_call(a, _convt_fold_weights(w_t), bias=b4, gamma=g4, beta=be4,
                    relu_out=relu_out, fold=4)
    y = y.reshape(N, H, W, 2, 2, cout)
    y = jnp.transpose(y, (0, 1, 3, 2, 4, 5)).reshape(N, 2 * H, 2 * W, cout)
    return y


# --------------------------------------------------------------------------
# Full forward
# --------------------------------------------------------------------------
def vqvae_forward(params, x_nchw, commitment_cost=0.25):
    x = jnp.transpose(x_nchw, (0, 2, 3, 1))          # NCHW -> NHWC
    # --- encoder ---
    z = conv_bn(x, params["enc_c1_w"], params["enc_c1_b"],
                params["enc_bn1"]["g"], params["enc_bn1"]["b"],
                k=4, stride=2, pad=1, relu_out=True)
    z = conv_bn(z, params["enc_c2_w"], params["enc_c2_b"],
                params["enc_bn2"]["g"], params["enc_bn2"]["b"],
                k=4, stride=2, pad=1, relu_out=False)
    z = resblock_chain(z, params["enc_rb"], final_relu=False)
    # --- vector quantiser ---
    N, Hs, Ws, D = z.shape
    q_flat, idx_flat, loss = pallas_vq(z.reshape(-1, D), params["codebook"],
                                       commitment_cost)
    quantized = q_flat.reshape(N, Hs, Ws, D)
    indices = idx_flat.reshape(N, Hs, Ws)[:, None, :, :]     # [N,1,Hs,Ws]
    # --- decoder ---
    h = resblock_chain(quantized, params["dec_rb"], final_relu=True)
    h = conv_transpose_bn(h, params["dec_t1_w"], params["dec_t1_b"],
                          params["dec_bn1"]["g"], params["dec_bn1"]["b"],
                          relu_out=True)
    x_recon = conv_transpose_bn(h, params["dec_t2_w"], params["dec_t2_b"])
    x_recon = jnp.transpose(x_recon, (0, 3, 1, 2))           # back to NCHW
    quantized_nchw = jnp.transpose(quantized, (0, 3, 1, 2))
    return x_recon, quantized_nchw, indices, loss[0, 0]


# --------------------------------------------------------------------------
# Deterministic parameter initialisation (shapes follow the nn.Module)
# --------------------------------------------------------------------------
def init_params(key, in_channels, num_embeddings, embedding_size, res_hidden):
    h = embedding_size
    keys = iter(jax.random.split(key, 64))

    def conv_w(shape):
        return jax.random.normal(next(keys), shape, jnp.float32) * 0.05

    def bias(shape):
        return jax.random.normal(next(keys), shape, jnp.float32) * 0.01

    def bn(c):
        return {"g": jnp.ones((c,), jnp.float32), "b": jnp.zeros((c,), jnp.float32)}

    def rb(c, hc):
        return {
            "w1": conv_w((hc, c, 3, 3)),
            "g1": jnp.ones((hc,), jnp.float32),
            "b1": jnp.zeros((hc,), jnp.float32),
            "w2": conv_w((c, hc, 1, 1)),
            "g2": jnp.ones((c,), jnp.float32),
            "b2": jnp.zeros((c,), jnp.float32),
        }

    return {
        "enc_c1_w": conv_w((h, in_channels, 4, 4)),
        "enc_c1_b": bias((h,)),
        "enc_bn1": bn(h),
        "enc_c2_w": conv_w((h, h, 4, 4)),
        "enc_c2_b": bias((h,)),
        "enc_bn2": bn(h),
        "enc_rb": [rb(h, res_hidden) for _ in range(3)],
        "codebook": jax.random.uniform(
            next(keys), (num_embeddings, embedding_size), jnp.float32,
            -1.0 / num_embeddings, 1.0 / num_embeddings),
        "dec_rb": [rb(h, res_hidden) for _ in range(3)],
        "dec_t1_w": conv_w((h, h, 4, 4)),        # ConvTranspose2d weight: [Cin,Cout,KH,KW]
        "dec_t1_b": bias((h,)),
        "dec_bn1": bn(h),
        "dec_t2_w": conv_w((h, in_channels, 4, 4)),
        "dec_t2_b": bias((in_channels,)),
    }


if __name__ == "__main__":
    key = jax.random.PRNGKey(0)
    kp, kx = jax.random.split(key)

    in_channels, num_embeddings, embedding_size, res_hidden = 3, 64, 32, 32
    params = init_params(kp, in_channels, num_embeddings, embedding_size, res_hidden)
    x = jax.random.normal(kx, (2, in_channels, 16, 16), jnp.float32)

    fwd = jax.jit(functools.partial(vqvae_forward, commitment_cost=0.25))
    x_recon, quantized, indices, vq_loss = fwd(params, x)
    jax.block_until_ready((x_recon, quantized, indices, vq_loss))

    assert x_recon.shape == (2, in_channels, 16, 16)
    assert quantized.shape == (2, embedding_size, 4, 4)
    assert indices.shape == (2, 1, 4, 4)
    assert vq_loss.shape == ()
    assert bool(jnp.isfinite(x_recon).all()) and bool(jnp.isfinite(vq_loss))
    print("KERNEL_OK")
</pallas_src>

<mosaic_0001>
module attributes {stable_mosaic.version = 11 : i64} {
  func.func @_mm_bn_kernel(%arg0: memref<128x48xbf16, #tpu.memory_space<vmem>>, %arg1: memref<48x32xbf16, #tpu.memory_space<vmem>>, %arg2: memref<1x32xf32, #tpu.memory_space<vmem>>, %arg3: memref<1x32xf32, #tpu.memory_space<vmem>>, %arg4: memref<1x32xf32, #tpu.memory_space<vmem>>, %arg5: memref<128x32xf32, #tpu.memory_space<vmem>>) attributes {dimension_semantics = [], scalar_prefetch = 0 : i64, scratch_operands = 0 : i64, tpu.core_type = #tpu.core_type<tc>} {
    %c0 = arith.constant 0 : index
    %c0_0 = arith.constant 0 : index
    %0 = vector.load %arg0[%c0, %c0_0] : memref<128x48xbf16, #tpu.memory_space<vmem>>, vector<128x48xbf16>
    %c0_1 = arith.constant 0 : index
    %c0_2 = arith.constant 0 : index
    %1 = vector.load %arg1[%c0_1, %c0_2] : memref<48x32xbf16, #tpu.memory_space<vmem>>, vector<48x32xbf16>
    %cst = arith.constant dense<0.000000e+00> : vector<128x32xf32>
    %2 = tpu.matmul %0, %1, %cst {dimension_numbers = #tpu.dot_dimension_numbers<[1], [0], [0], [1], [0, 0, 1, 1], [], []>} : vector<128x48xbf16>, vector<48x32xbf16>, vector<128x32xf32> -> vector<128x32xf32>
    %c0_3 = arith.constant 0 : index
    %c0_4 = arith.constant 0 : index
    %3 = vector.load %arg2[%c0_3, %c0_4] : memref<1x32xf32, #tpu.memory_space<vmem>>, vector<1x32xf32>
    %4 = vector.broadcast %3 : vector<1x32xf32> to vector<128x32xf32>
    %5 = arith.addf %2, %4 : vector<128x32xf32>
    %c0_5 = arith.constant 0 : index
    %c0_6 = arith.constant 0 : index
    %6 = vector.load %arg3[%c0_5, %c0_6] : memref<1x32xf32, #tpu.memory_space<vmem>>, vector<1x32xf32>
    %c0_7 = arith.constant 0 : index
    %c0_8 = arith.constant 0 : index
    %7 = vector.load %arg4[%c0_7, %c0_8] : memref<1x32xf32, #tpu.memory_space<vmem>>, vector<1x32xf32>
    %cst_9 = arith.constant dense<0.000000e+00> : vector<32xf32>
    %8 = vector.multi_reduction <add>, %5, %cst_9 [0] : vector<128x32xf32> to vector<32xf32>
    %9 = vector.shape_cast %8 : vector<32xf32> to vector<1x32xf32>
    %cst_10 = arith.constant 7.812500e-03 : f32
    %10 = vector.broadcast %cst_10 : f32 to vector<1x32xf32>
    %11 = arith.mulf %9, %10 : vector<1x32xf32>
    %12 = vector.broadcast %11 : vector<1x32xf32> to vector<128x32xf32>
    %13 = arith.subf %5, %12 : vector<128x32xf32>
    %14 = arith.mulf %13, %13 : vector<128x32xf32>
    %cst_11 = arith.constant dense<0.000000e+00> : vector<32xf32>
    %15 = vector.multi_reduction <add>, %14, %cst_11 [0] : vector<128x32xf32> to vector<32xf32>
    %16 = vector.shape_cast %15 : vector<32xf32> to vector<1x32xf32>
    %cst_12 = arith.constant 7.812500e-03 : f32
    %17 = vector.broadcast %cst_12 : f32 to vector<1x32xf32>
    %18 = arith.mulf %16, %17 : vector<1x32xf32>
    %cst_13 = arith.constant 9.99999974E-6 : f32
    %19 = vector.broadcast %cst_13 : f32 to vector<1x32xf32>
    %20 = arith.addf %18, %19 : vector<1x32xf32>
    %21 = math.rsqrt %20 : vector<1x32xf32>
    %22 = vector.broadcast %21 : vector<1x32xf32> to vector<128x32xf32>
    %23 = arith.mulf %13, %22 : vector<128x32xf32>
    %24 = vector.broadcast %6 : vector<1x32xf32> to vector<128x32xf32>
    %25 = arith.mulf %23, %24 : vector<128x32xf32>
    %26 = vector.broadcast %7 : vector<1x32xf32> to vector<128x32xf32>
    %27 = arith.addf %25, %26 : vector<128x32xf32>
    %cst_14 = arith.constant 0.000000e+00 : f32
    %28 = vector.broadcast %cst_14 : f32 to vector<128x32xf32>
    %29 = arith.maximumf %27, %28 : vector<128x32xf32>
    %c0_15 = arith.constant 0 : index
    %c0_16 = arith.constant 0 : index
    %30 = vector.load %arg5[%c0_15, %c0_16] : memref<128x32xf32, #tpu.memory_space<vmem>>, vector<128x32xf32>
    tpu.vector_store %arg5[%c0_15, %c0_16], %29 {strides = array<i32>} : memref<128x32xf32, #tpu.memory_space<vmem>>, vector<128x32xf32>,
    return
  }
}

module attributes {stable_mosaic.version = 11 : i64} {
  func.func @_mm_bn_kernel(%arg0: memref<32x512xbf16, #tpu.memory_space<vmem>>, %arg1: memref<512x32xbf16, #tpu.memory_space<vmem>>, %arg2: memref<1x32xf32, #tpu.memory_space<vmem>>, %arg3: memref<1x32xf32, #tpu.memory_space<vmem>>, %arg4: memref<1x32xf32, #tpu.memory_space<vmem>>, %arg5: memref<32x32xf32, #tpu.memory_space<vmem>>) attributes {dimension_semantics = [], scalar_prefetch = 0 : i64, scratch_operands = 0 : i64, tpu.core_type = #tpu.core_type<tc>} {
    %c0 = arith.constant 0 : index
    %c0_0 = arith.constant 0 : index
    %0 = vector.load %arg0[%c0, %c0_0] : memref<32x512xbf16, #tpu.memory_space<vmem>>, vector<32x512xbf16>
    %c0_1 = arith.constant 0 : index
    %c0_2 = arith.constant 0 : index
    %1 = vector.load %arg1[%c0_1, %c0_2] : memref<512x32xbf16, #tpu.memory_space<vmem>>, vector<512x32xbf16>
    %cst = arith.constant dense<0.000000e+00> : vector<32x32xf32>
    %2 = tpu.matmul %0, %1, %cst {dimension_numbers = #tpu.dot_dimension_numbers<[1], [0], [0], [1], [0, 0, 1, 1], [], []>} : vector<32x512xbf16>, vector<512x32xbf16>, vector<32x32xf32> -> vector<32x32xf32>
    %c0_3 = arith.constant 0 : index
    %c0_4 = arith.constant 0 : index
    %3 = vector.load %arg2[%c0_3, %c0_4] : memref<1x32xf32, #tpu.memory_space<vmem>>, vector<1x32xf32>
    %4 = vector.broadcast %3 : vector<1x32xf32> to vector<32x32xf32>
    %5 = arith.addf %2, %4 : vector<32x32xf32>
    %c0_5 = arith.constant 0 : index
    %c0_6 = arith.constant 0 : index
    %6 = vector.load %arg3[%c0_5, %c0_6] : memref<1x32xf32, #tpu.memory_space<vmem>>, vector<1x32xf32>
    %c0_7 = arith.constant 0 : index
    %c0_8 = arith.constant 0 : index
    %7 = vector.load %arg4[%c0_7, %c0_8] : memref<1x32xf32, #tpu.memory_space<vmem>>, vector<1x32xf32>
    %cst_9 = arith.constant dense<0.000000e+00> : vector<32xf32>
    %8 = vector.multi_reduction <add>, %5, %cst_9 [0] : vector<32x32xf32> to vector<32xf32>
    %9 = vector.shape_cast %8 : vector<32xf32> to vector<1x32xf32>
    %cst_10 = arith.constant 3.125000e-02 : f32
    %10 = vector.broadcast %cst_10 : f32 to vector<1x32xf32>
    %11 = arith.mulf %9, %10 : vector<1x32xf32>
    %12 = vector.broadcast %11 : vector<1x32xf32> to vector<32x32xf32>
    %13 = arith.subf %5, %12 : vector<32x32xf32>
    %14 = arith.mulf %13, %13 : vector<32x32xf32>
    %cst_11 = arith.constant dense<0.000000e+00> : vector<32xf32>
    %15 = vector.multi_reduction <add>, %14, %cst_11 [0] : vector<32x32xf32> to vector<32xf32>
    %16 = vector.shape_cast %15 : vector<32xf32> to vector<1x32xf32>
    %cst_12 = arith.constant 3.125000e-02 : f32
    %17 = vector.broadcast %cst_12 : f32 to vector<1x32xf32>
    %18 = arith.mulf %16, %17 : vector<1x32xf32>
    %cst_13 = arith.constant 9.99999974E-6 : f32
    %19 = vector.broadcast %cst_13 : f32 to vector<1x32xf32>
    %20 = arith.addf %18, %19 : vector<1x32xf32>
    %21 = math.rsqrt %20 : vector<1x32xf32>
    %22 = vector.broadcast %21 : vector<1x32xf32> to vector<32x32xf32>
    %23 = arith.mulf %13, %22 : vector<32x32xf32>
    %24 = vector.broadcast %6 : vector<1x32xf32> to vector<32x32xf32>
    %25 = arith.mulf %23, %24 : vector<32x32xf32>
    %26 = vector.broadcast %7 : vector<1x32xf32> to vector<32x32xf32>
    %27 = arith.addf %25, %26 : vector<32x32xf32>
    %c0_14 = arith.constant 0 : index
    %c0_15 = arith.constant 0 : index
    %28 = vector.load %arg5[%c0_14, %c0_15] : memref<32x32xf32, #tpu.memory_space<vmem>>, vector<32x32xf32>
    tpu.vector_store %arg5[%c0_14, %c0_15], %27 {strides = array<i32>} : memref<32x32xf32, #tpu.memory_space<vmem>>, vector<32x32xf32>,
    return
  }
}

module attributes {stable_mosaic.version = 11 : i64} {
  func.func @_resblock_chain_kernel(%arg0: memref<32x32xf32, #tpu.memory_space<vmem>>, %arg1: memref<9x32x32xf32, #tpu.memory_space<vmem>>, %arg2: memref<3x288x32xbf16, #tpu.memory_space<vmem>>, %arg3: memref<3x1x32xf32, #tpu.memory_space<vmem>>, %arg4: memref<3x1x32xf32, #tpu.memory_space<vmem>>, %arg5: memref<3x32x32xbf16, #tpu.memory_space<vmem>>, %arg6: memref<3x1x32xf32, #tpu.memory_space<vmem>>, %arg7: memref<3x1x32xf32, #tpu.memory_space<vmem>>, %arg8: memref<32x32xf32, #tpu.memory_space<vmem>>) attributes {dimension_semantics = [], scalar_prefetch = 0 : i64, scratch_operands = 0 : i64, tpu.core_type = #tpu.core_type<tc>} {
    %c0 = arith.constant 0 : index
    %c0_0 = arith.constant 0 : index
    %0 = vector.load %arg0[%c0, %c0_0] : memref<32x32xf32, #tpu.memory_space<vmem>>, vector<32x32xf32>
    %cst = arith.constant 0.000000e+00 : f32
    %1 = vector.broadcast %cst : f32 to vector<32x32xf32>
    %2 = arith.maximumf %0, %1 : vector<32x32xf32>
    %c0_1 = arith.constant 0 : index
    %c0_2 = arith.constant 0 : index
    %c0_3 = arith.constant 0 : index
    %3 = vector.load %arg1[%c0_1, %c0_2, %c0_3] : memref<9x32x32xf32, #tpu.memory_space<vmem>>, vector<1x32x32xf32>
    %4 = vector.shape_cast %3 : vector<1x32x32xf32> to vector<32x32xf32>
    %cst_4 = arith.constant dense<0.000000e+00> : vector<32x32xf32>
    %5 = tpu.matmul %4, %2, %cst_4 {dimension_numbers = #tpu.dot_dimension_numbers<[1], [0], [0], [1], [0, 0, 1, 1], [], []>} : vector<32x32xf32>, vector<32x32xf32>, vector<32x32xf32> -> vector<32x32xf32>
    %c1 = arith.constant 1 : index
    %c0_5 = arith.constant 0 : index
    %c0_6 = arith.constant 0 : index
    %6 = vector.load %arg1[%c1, %c0_5, %c0_6] : memref<9x32x32xf32, #tpu.memory_space<vmem>>, vector<1x32x32xf32>
    %7 = vector.shape_cast %6 : vector<1x32x32xf32> to vector<32x32xf32>
    %cst_7 = arith.constant dense<0.000000e+00> : vector<32x32xf32>
    %8 = tpu.matmul %7, %2, %cst_7 {dimension_numbers = #tpu.dot_dimension_numbers<[1], [0], [0], [1], [0, 0, 1, 1], [], []>} : vector<32x32xf32>, vector<32x32xf32>, vector<32x32xf32> -> vector<32x32xf32>
    %c2 = arith.constant 2 : index
    %c0_8 = arith.constant 0 : index
    %c0_9 = arith.constant 0 : index
    %9 = vector.load %arg1[%c2, %c0_8, %c0_9] : memref<9x32x32xf32, #tpu.memory_space<vmem>>, vector<1x32x32xf32>
    %10 = vector.shape_cast %9 : vector<1x32x32xf32> to vector<32x32xf32>
    %cst_10 = arith.constant dense<0.000000e+00> : vector<32x32xf32>
    %11 = tpu.matmul %10, %2, %cst_10 {dimension_numbers = #tpu.dot_dimension_numbers<[1], [0], [0], [1], [0, 0, 1, 1], [], []>} : vector<32x32xf32>, vector<32x32xf32>, vector<32x32xf32> -> vector<32x32xf32>
    %c3 = arith.constant 3 : index
    %c0_11 = arith.constant 0 : index
    %c0_12 = arith.constant 0 : index
    %12 = vector.load %arg1[%c3, %c0_11, %c0_12] : memref<9x32x32xf32, #tpu.memory_space<vmem>>, vector<1x32x32xf32>
    %13 = vector.shape_cast %12 : vector<1x32x32xf32> to vector<32x32xf32>
    %cst_13 = arith.constant dense<0.000000e+00> : vector<32x32xf32>
    %14 = tpu.matmul %13, %2, %cst_13 {dimension_numbers = #tpu.dot_dimension_numbers<[1], [0], [0], [1], [0, 0, 1, 1], [], []>} : vector<32x32xf32>, vector<32x32xf32>, vector<32x32xf32> -> vector<32x32xf32>
    %c4 = arith.constant 4 : index
    %c0_14 = arith.constant 0 : index
    %c0_15 = arith.constant 0 : index
    %15 = vector.load %arg1[%c4, %c0_14, %c0_15] : memref<9x32x32xf32, #tpu.memory_space<vmem>>, vector<1x32x32xf32>
    %16 = vector.shape_cast %15 : vector<1x32x32xf32> to vector<32x32xf32>
    %cst_16 = arith.constant dense<0.000000e+00> : vector<32x32xf32>
    %17 = tpu.matmul %16, %2, %cst_16 {dimension_numbers = #tpu.dot_dimension_numbers<[1], [0], [0], [1], [0, 0, 1, 1], [], []>} : vector<32x32xf32>, vector<32x32xf32>, vector<32x32xf32> -> vector<32x32xf32>
    %c5 = arith.constant 5 : index
    %c0_17 = arith.constant 0 : index
    %c0_18 = arith.constant 0 : index
    %18 = vector.load %arg1[%c5, %c0_17, %c0_18] : memref<9x32x32xf32, #tpu.memory_space<vmem>>, vector<1x32x32xf32>
    %19 = vector.shape_cast %18 : vector<1x32x32xf32> to vector<32x32xf32>
    %cst_19 = arith.constant dense<0.000000e+00> : vector<32x32xf32>
    %20 = tpu.matmul %19, %2, %cst_19 {dimension_numbers = #tpu.dot_dimension_numbers<[1], [0], [0], [1], [0, 0, 1, 1], [], []>} : vector<32x32xf32>, vector<32x32xf32>, vector<32x32xf32> -> vector<32x32xf32>
    %c6 = arith.constant 6 : index
    %c0_20 = arith.constant 0 : index
    %c0_21 = arith.constant 0 : index
    %21 = vector.load %arg1[%c6, %c0_20, %c0_21] : memref<9x32x32xf32, #tpu.memory_space<vmem>>, vector<1x32x32xf32>
    %22 = vector.shape_cast %21 : vector<1x32x32xf32> to vector<32x32xf32>
    %cst_22 = arith.constant dense<0.000000e+00> : vector<32x32xf32>
    %23 = tpu.matmul %22, %2, %cst_22 {dimension_numbers = #tpu.dot_dimension_numbers<[1], [0], [0], [1], [0, 0, 1, 1], [], []>} : vector<32x32xf32>, vector<32x32xf32>, vector<32x32xf32> -> vector<32x32xf32>
    %c7 = arith.constant 7 : index
    %c0_23 = arith.constant 0 : index
    %c0_24 = arith.constant 0 : index
    %24 = vector.load %arg1[%c7, %c0_23, %c0_24] : memref<9x32x32xf32, #tpu.memory_space<vmem>>, vector<1x32x32xf32>
    %25 = vector.shape_cast %24 : vector<1x32x32xf32> to vector<32x32xf32>
    %cst_25 = arith.constant dense<0.000000e+00> : vector<32x32xf32>
    %26 = tpu.matmul %25, %2, %cst_25 {dimension_numbers = #tpu.dot_dimension_numbers<[1], [0], [0], [1], [0, 0, 1, 1], [], []>} : vector<32x32xf32>, vector<32x32xf32>, vector<32x32xf32> -> vector<32x32xf32>
    %c8 = arith.constant 8 : index
    %c0_26 = arith.constant 0 : index
    %c0_27 = arith.constant 0 : index
    %27 = vector.load %arg1[%c8, %c0_26, %c0_27] : memref<9x32x32xf32, #tpu.memory_space<vmem>>, vector<1x32x32xf32>
    %28 = vector.shape_cast %27 : vector<1x32x32xf32> to vector<32x32xf32>
    %cst_28 = arith.constant dense<0.000000e+00> : vector<32x32xf32>
    %29 = tpu.matmul %28, %2, %cst_28 {dimension_numbers = #tpu.dot_dimension_numbers<[1], [0], [0], [1], [0, 0, 1, 1], [], []>} : vector<32x32xf32>, vector<32x32xf32>, vector<32x32xf32> -> vector<32x32xf32>
    %30 = tpu.concatenate %5, %8, %11, %14, %17, %20, %23, %26, %29 in 1 : vector<32x32xf32>, vector<32x32xf32>, vector<32x32xf32>, vector<32x32xf32>, vector<32x32xf32>, vector<32x32xf32>, vector<32x32xf32>, vector<32x32xf32>, vector<32x32xf32> -> vector<32x288xf32>
    %31 = arith.truncf %30 : vector<32x288xf32> to vector<32x288xbf16>
    %c0_29 = arith.constant 0 : index
    %c0_30 = arith.constant 0 : index
    %c0_31 = arith.constant 0 : index
    %32 = vector.load %arg2[%c0_29, %c0_30, %c0_31] : memref<3x288x32xbf16, #tpu.memory_space<vmem>>, vector<1x288x32xbf16>
    %33 = vector.shape_cast %32 : vector<1x288x32xbf16> to vector<288x32xbf16>
    %cst_32 = arith.constant dense<0.000000e+00> : vector<32x32xf32>
    %34 = tpu.matmul %31, %33, %cst_32 {dimension_numbers = #tpu.dot_dimension_numbers<[1], [0], [0], [1], [0, 0, 1, 1], [], []>} : vector<32x288xbf16>, vector<288x32xbf16>, vector<32x32xf32> -> vector<32x32xf32>
    %c0_33 = arith.constant 0 : index
    %c0_34 = arith.constant 0 : index
    %c0_35 = arith.constant 0 : index
    %35 = vector.load %arg3[%c0_33, %c0_34, %c0_35] : memref<3x1x32xf32, #tpu.memory_space<vmem>>, vector<1x1x32xf32>
    %36 = vector.shape_cast %35 : vector<1x1x32xf32> to vector<1x32xf32>
    %c0_36 = arith.constant 0 : index
    %c0_37 = arith.constant 0 : index
    %c0_38 = arith.constant 0 : index
    %37 = vector.load %arg4[%c0_36, %c0_37, %c0_38] : memref<3x1x32xf32, #tpu.memory_space<vmem>>, vector<1x1x32xf32>
    %38 = vector.shape_cast %37 : vector<1x1x32xf32> to vector<1x32xf32>
    %cst_39 = arith.constant dense<0.000000e+00> : vector<32xf32>
    %39 = vector.multi_reduction <add>, %34, %cst_39 [0] : vector<32x32xf32> to vector<32xf32>
    %40 = vector.shape_cast %39 : vector<32xf32> to vector<1x32xf32>
    %cst_40 = arith.constant 3.125000e-02 : f32
    %41 = vector.broadcast %cst_40 : f32 to vector<1x32xf32>
    %42 = arith.mulf %40, %41 : vector<1x32xf32>
    %43 = vector.broadcast %42 : vector<1x32xf32> to vector<32x32xf32>
    %44 = arith.subf %34, %43 : vector<32x32xf32>
    %45 = arith.mulf %44, %44 : vector<32x32xf32>
    %cst_41 = arith.constant dense<0.000000e+00> : vector<32xf32>
    %46 = vector.multi_reduction <add>, %45, %cst_41 [0] : vector<32x32xf32> to vector<32xf32>
    %47 = vector.shape_cast %46 : vector<32xf32> to vector<1x32xf32>
    %cst_42 = arith.constant 3.125000e-02 : f32
    %48 = vector.broadcast %cst_42 : f32 to vector<1x32xf32>
    %49 = arith.mulf %47, %48 : vector<1x32xf32>
    %cst_43 = arith.constant 9.99999974E-6 : f32
    %50 = vector.broadcast %cst_43 : f32 to vector<1x32xf32>
    %51 = arith.addf %49, %50 : vector<1x32xf32>
    %52 = math.rsqrt %51 : vector<1x32xf32>
    %53 = vector.broadcast %52 : vector<1x32xf32> to vector<32x32xf32>
    %54 = arith.mulf %44, %53 : vector<32x32xf32>
    %55 = vector.broadcast %36 : vector<1x32xf32> to vector<32x32xf32>
    %56 = arith.mulf %54, %55 : vector<32x32xf32>
    %57 = vector.broadcast %38 : vector<1x32xf32> to vector<32x32xf32>
    %58 = arith.addf %56, %57 : vector<32x32xf32>
    %cst_44 = arith.constant 0.000000e+00 : f32
    %59 = vector.broadcast %cst_44 : f32 to vector<32x32xf32>
    %60 = arith.maximumf %58, %59 : vector<32x32xf32>
    %61 = arith.truncf %60 : vector<32x32xf32> to vector<32x32xbf16>
    %c0_45 = arith.constant 0 : index
    %c0_46 = arith.constant 0 : index
    %c0_47 = arith.constant 0 : index
    %62 = vector.load %arg5[%c0_45, %c0_46, %c0_47] : memref<3x32x32xbf16, #tpu.memory_space<vmem>>, vector<1x32x32xbf16>
    %63 = vector.shape_cast %62 : vector<1x32x32xbf16> to vector<32x32xbf16>
    %cst_48 = arith.constant dense<0.000000e+00> : vector<32x32xf32>
    %64 = tpu.matmul %61, %63, %cst_48 {dimension_numbers = #tpu.dot_dimension_numbers<[1], [0], [0], [1], [0, 0, 1, 1], [], []>} : vector<32x32xbf16>, vector<32x32xbf16>, vector<32x32xf32> -> vector<32x32xf32>
    %c0_49 = arith.constant 0 : index
    %c0_50 = arith.constant 0 : index
    %c0_51 = arith.constant 0 : index
    %65 = vector.load %arg6[%c0_49, %c0_50, %c0_51] : memref<3x1x32xf32, #tpu.memory_space<vmem>>, vector<1x1x32xf32>
    %66 = vector.shape_cast %65 : vector<1x1x32xf32> to vector<1x32xf32>
    %c0_52 = arith.constant 0 : index
    %c0_53 = arith.constant 0 : index
    %c0_54 = arith.constant 0 : index
    %67 = vector.load %arg7[%c0_52, %c0_53, %c0_54] : memref<3x1x32xf32, #tpu.memory_space<vmem>>, vector<1x1x32xf32>
    %68 = vector.shape_cast %67 : vector<1x1x32xf32> to vector<1x32xf32>
    %cst_55 = arith.constant dense<0.000000e+00> : vector<32xf32>
    %69 = vector.multi_reduction <add>, %64, %cst_55 [0] : vector<32x32xf32> to vector<32xf32>
    %70 = vector.shape_cast %69 : vector<32xf32> to vector<1x32xf32>
    %cst_56 = arith.constant 3.125000e-02 : f32
    %71 = vector.broadcast %cst_56 : f32 to vector<1x32xf32>
    %72 = arith.mulf %70, %71 : vector<1x32xf32>
    %73 = vector.broadcast %72 : vector<1x32xf32> to vector<32x32xf32>
    %74 = arith.subf %64, %73 : vector<32x32xf32>
    %75 = arith.mulf %74, %74 : vector<32x32xf32>
    %cst_57 = arith.constant dense<0.000000e+00> : vector<32xf32>
    %76 = vector.multi_reduction <add>, %75, %cst_57 [0] : vector<32x32xf32> to vector<32xf32>
    %77 = vector.shape_cast %76 : vector<32xf32> to vector<1x32xf32>
    %cst_58 = arith.constant 3.125000e-02 : f32
    %78 = vector.broadcast %cst_58 : f32 to vector<1x32xf32>
    %79 = arith.mulf %77, %78 : vector<1x32xf32>
    %cst_59 = arith.constant 9.99999974E-6 : f32
    %80 = vector.broadcast %cst_59 : f32 to vector<1x32xf32>
    %81 = arith.addf %79, %80 : vector<1x32xf32>
    %82 = math.rsqrt %81 : vector<1x32xf32>
    %83 = vector.broadcast %82 : vector<1x32xf32> to vector<32x32xf32>
    %84 = arith.mulf %74, %83 : vector<32x32xf32>
    %85 = vector.broadcast %66 : vector<1x32xf32> to vector<32x32xf32>
    %86 = arith.mulf %84, %85 : vector<32x32xf32>
    %87 = vector.broadcast %68 : vector<1x32xf32> to vector<32x32xf32>
    %88 = arith.addf %86, %87 : vector<32x32xf32>
    %89 = arith.addf %2, %88 : vector<32x32xf32>
    %cst_60 = arith.constant 0.000000e+00 : f32
    %90 = vector.broadcast %cst_60 : f32 to vector<32x32xf32>
    %91 = arith.maximumf %89, %90 : vector<32x32xf32>
    %c0_61 = arith.constant 0 : index
    %c0_62 = arith.constant 0 : index
    %c0_63 = arith.constant 0 : index
    %92 = vector.load %arg1[%c0_61, %c0_62, %c0_63] : memref<9x32x32xf32, #tpu.memory_space<vmem>>, vector<1x32x32xf32>
    %93 = vector.shape_cast %92 : vector<1x32x32xf32> to vector<32x32xf32>
    %cst_64 = arith.constant dense<0.000000e+00> : vector<32x32xf32>
    %94 = tpu.matmul %93, %91, %cst_64 {dimension_numbers = #tpu.dot_dimension_numbers<[1], [0], [0], [1], [0, 0, 1, 1], [], []>} : vector<32x32xf32>, vector<32x32xf32>, vector<32x32xf32> -> vector<32x32xf32>
    %c1_65 = arith.constant 1 : index
    %c0_66 = arith.constant 0 : index
    %c0_67 = arith.constant 0 : index
    %95 = vector.load %arg1[%c1_65, %c0_66, %c0_67] : memref<9x32x32xf32, #tpu.memory_space<vmem>>, vector<1x32x32xf32>
    %96 = vector.shape_cast %95 : vector<1x32x32xf32> to vector<32x32xf32>
    %cst_68 = arith.constant dense<0.000000e+00> : vector<32x32xf32>
    %97 = tpu.matmul %96, %91, %cst_68 {dimension_numbers = #tpu.dot_dimension_numbers<[1], [0], [0], [1], [0, 0, 1, 1], [], []>} : vector<32x32xf32>, vector<32x32xf32>, vector<32x32xf32> -> vector<32x32xf32>
    %c2_69 = arith.constant 2 : index
    %c0_70 = arith.constant 0 : index
    %c0_71 = arith.constant 0 : index
    %98 = vector.load %arg1[%c2_69, %c0_70, %c0_71] : memref<9x32x32xf32, #tpu.memory_space<vmem>>, vector<1x32x32xf32>
    %99 = vector.shape_cast %98 : vector<1x32x32xf32> to vector<32x32xf32>
    %cst_72 = arith.constant dense<0.000000e+00> : vector<32x32xf32>
    %100 = tpu.matmul %99, %91, %cst_72 {dimension_numbers = #tpu.dot_dimension_numbers<[1], [0], [0], [1], [0, 0, 1, 1], [], []>} : vector<32x32xf32>, vector<32x32xf32>, vector<32x32xf32> -> vector<32x32xf32>
    %c3_73 = arith.constant 3 : index
    %c0_74 = arith.constant 0 : index
    %c0_75 = arith.constant 0 : index
    %101 = vector.load %arg1[%c3_73, %c0_74, %c0_75] : memref<9x32x32xf32, #tpu.memory_space<vmem>>, vector<1x32x32xf32>
    %102 = vector.shape_cast %101 : vector<1x32x32xf32> to vector<32x32xf32>
    %cst_76 = arith.constant dense<0.000000e+00> : vector<32x32xf32>
    %103 = tpu.matmul %102, %91, %cst_76 {dimension_numbers = #tpu.dot_dimension_numbers<[1], [0], [0], [1], [0, 0, 1, 1], [], []>} : vector<32x32xf32>, vector<32x32xf32>, vector<32x32xf32> -> vector<32x32xf32>
    %c4_77 = arith.constant 4 : index
    %c0_78 = arith.constant 0 : index
    %c0_79 = arith.constant 0 : index
    %104 = vector.load %arg1[%c4_77, %c0_78, %c0_79] : memref<9x32x32xf32, #tpu.memory_space<vmem>>, vector<1x32x32xf32>
    %105 = vector.shape_cast %104 : vector<1x32x32xf32> to vector<32x32xf32>
    %cst_80 = arith.constant dense<0.000000e+00> : vector<32x32xf32>
    %106 = tpu.matmul %105, %91, %cst_80 {dimension_numbers = #tpu.dot_dimension_numbers<[1], [0], [0], [1], [0, 0, 1, 1], [], []>} : vector<32x32xf32>, vector<32x32xf32>, vector<32x32xf32> -> vector<32x32xf32>
    %c5_81 = arith.constant 5 : index
    %c0_82 = arith.constant 0 : index
    %c0_83 = arith.constant 0 : index
    %107 = vector.load %arg1[%c5_81, %c0_82, %c0_83] : memref<9x32x32xf32, #tpu.memory_space<vmem>>, vector<1x32x32xf32>
    %108 = vector.shape_cast %107 : vector<1x32x32xf32> to vector<32x32xf32>
    %cst_84 = arith.constant dense<0.000000e+00> : vector<32x32xf32>
    %109 = tpu.matmul %108, %91, %cst_84 {dimension_numbers = #tpu.dot_dimension_numbers<[1], [0], [0], [1], [0, 0, 1, 1], [], []>} : vector<32x32xf32>, vector<32x32xf32>, vector<32x32xf32> -> vector<32x32xf32>
    %c6_85 = arith.constant 6 : index
    %c0_86 = arith.constant 0 : index
    %c0_87 = arith.constant 0 : index
    %110 = vector.load %arg1[%c6_85, %c0_86, %c0_87] : memref<9x32x32xf32, #tpu.memory_space<vmem>>, vector<1x32x32xf32>
    %111 = vector.shape_cast %110 : vector<1x32x32xf32> to vector<32x32xf32>
    %cst_88 = arith.constant dense<0.000000e+00> : vector<32x32xf32>
    %112 = tpu.matmul %111, %91, %cst_88 {dimension_numbers = #tpu.dot_dimension_numbers<[1], [0], [0], [1], [0, 0, 1, 1], [], []>} : vector<32x32xf32>, vector<32x32xf32>, vector<32x32xf32> -> vector<32x32xf32>
    %c7_89 = arith.constant 7 : index
    %c0_90 = arith.constant 0 : index
    %c0_91 = arith.constant 0 : index
    %113 = vector.load %arg1[%c7_89, %c0_90, %c0_91] : memref<9x32x32xf32, #tpu.memory_space<vmem>>, vector<1x32x32xf32>
    %114 = vector.shape_cast %113 : vector<1x32x32xf32> to vector<32x32xf32>
    %cst_92 = arith.constant dense<0.000000e+00> : vector<32x32xf32>
    %115 = tpu.matmul %114, %91, %cst_92 {dimension_numbers = #tpu.dot_dimension_numbers<[1], [0], [0], [1], [0, 0, 1, 1], [], []>} : vector<32x32xf32>, vector<32x32xf32>, vector<32x32xf32> -> vector<32x32xf32>
    %c8_93 = arith.constant 8 : index
    %c0_94 = arith.constant 0 : index
    %c0_95 = arith.constant 0 : index
    %116 = vector.load %arg1[%c8_93, %c0_94, %c0_95] : memref<9x32x32xf32, #tpu.memory_space<vmem>>, vector<1x32x32xf32>
    %117 = vector.shape_cast %116 : vector<1x32x32xf32> to vector<32x32xf32>
    %cst_96 = arith.constant dense<0.000000e+00> : vector<32x32xf32>
    %118 = tpu.matmul %117, %91, %cst_96 {dimension_numbers = #tpu.dot_dimension_numbers<[1], [0], [0], [1], [0, 0, 1, 1], [], []>} : vector<32x32xf32>, vector<32x32xf32>, vector<32x32xf32> -> vector<32x32xf32>
    %119 = tpu.concatenate %94, %97, %100, %103, %106, %109, %112, %115, %118 in 1 : vector<32x32xf32>, vector<32x32xf32>, vector<32x32xf32>, vector<32x32xf32>, vector<32x32xf32>, vector<32x32xf32>, vector<32x32xf32>, vector<32x32xf32>, vector<32x32xf32> -> vector<32x288xf32>
    %120 = arith.truncf %119 : vector<32x288xf32> to vector<32x288xbf16>
    %c1_97 = arith.constant 1 : index
    %c0_98 = arith.constant 0 : index
    %c0_99 = arith.constant 0 : index
    %121 = vector.load %arg2[%c1_97, %c0_98, %c0_99] : memref<3x288x32xbf16, #tpu.memory_space<vmem>>, vector<1x288x32xbf16>
    %122 = vector.shape_cast %121 : vector<1x288x32xbf16> to vector<288x32xbf16>
    %cst_100 = arith.constant dense<0.000000e+00> : vector<32x32xf32>
    %123 = tpu.matmul %120, %122, %cst_100 {dimension_numbers = #tpu.dot_dimension_numbers<[1], [0], [0], [1], [0, 0, 1, 1], [], []>} : vector<32x288xbf16>, vector<288x32xbf16>, vector<32x32xf32> -> vector<32x32xf32>
    %c1_101 = arith.constant 1 : index
    %c0_102 = arith.constant 0 : index
    %c0_103 = arith.constant 0 : index
    %124 = vector.load %arg3[%c1_101, %c0_102, %c0_103] : memref<3x1x32xf32, #tpu.memory_space<vmem>>, vector<1x1x32xf32>
    %125 = vector.shape_cast %124 : vector<1x1x32xf32> to vector<1x32xf32>
    %c1_104 = arith.constant 1 : index
    %c0_105 = arith.constant 0 : index
    %c0_106 = arith.constant 0 : index
    %126 = vector.load %arg4[%c1_104, %c0_105, %c0_106] : memref<3x1x32xf32, #tpu.memory_space<vmem>>, vector<1x1x32xf32>
    %127 = vector.shape_cast %126 : vector<1x1x32xf32> to vector<1x32xf32>
    %cst_107 = arith.constant dense<0.000000e+00> : vector<32xf32>
    %128 = vector.multi_reduction <add>, %123, %cst_107 [0] : vector<32x32xf32> to vector<32xf32>
    %129 = vector.shape_cast %128 : vector<32xf32> to vector<1x32xf32>
    %cst_108 = arith.constant 3.125000e-02 : f32
    %130 = vector.broadcast %cst_108 : f32 to vector<1x32xf32>
    %131 = arith.mulf %129, %130 : vector<1x32xf32>
    %132 = vector.broadcast %131 : vector<1x32xf32> to vector<32x32xf32>
    %133 = arith.subf %123, %132 : vector<32x32xf32>
    %134 = arith.mulf %133, %133 : vector<32x32xf32>
    %cst_109 = arith.constant dense<0.000000e+00> : vector<32xf32>
    %135 = vector.multi_reduction <add>, %134, %cst_109 [0] : vector<32x32xf32> to vector<32xf32>
    %136 = vector.shape_cast %135 : vector<32xf32> to vector<1x32xf32>
    %cst_110 = arith.constant 3.125000e-02 : f32
    %137 = vector.broadcast %cst_110 : f32 to vector<1x32xf32>
    %138 = arith.mulf %136, %137 : vector<1x32xf32>
    %cst_111 = arith.constant 9.99999974E-6 : f32
    %139 = vector.broadcast %cst_111 : f32 to vector<1x32xf32>
    %140 = arith.addf %138, %139 : vector<1x32xf32>
    %141 = math.rsqrt %140 : vector<1x32xf32>
    %142 = vector.broadcast %141 : vector<1x32xf32> to vector<32x32xf32>
    %143 = arith.mulf %133, %142 : vector<32x32xf32>
    %144 = vector.broadcast %125 : vector<1x32xf32> to vector<32x32xf32>
    %145 = arith.mulf %143, %144 : vector<32x32xf32>
    %146 = vector.broadcast %127 : vector<1x32xf32> to vector<32x32xf32>
    %147 = arith.addf %145, %146 : vector<32x32xf32>
    %cst_112 = arith.constant 0.000000e+00 : f32
    %148 = vector.broadcast %cst_112 : f32 to vector<32x32xf32>
    %149 = arith.maximumf %147, %148 : vector<32x32xf32>
    %150 = arith.truncf %149 : vector<32x32xf32> to vector<32x32xbf16>
    %c1_113 = arith.constant 1 : index
    %c0_114 = arith.constant 0 : index
    %c0_115 = arith.constant 0 : index
    %151 = vector.load %arg5[%c1_113, %c0_114, %c0_115] : memref<3x32x32xbf16, #tpu.memory_space<vmem>>, vector<1x32x32xbf16>
    %152 = vector.shape_cast %151 : vector<1x32x32xbf16> to vector<32x32xbf16>
    %cst_116 = arith.constant dense<0.000000e+00> : vector<32x32xf32>
    %153 = tpu.matmul %150, %152, %cst_116 {dimension_numbers = #tpu.dot_dimension_numbers<[1], [0], [0], [1], [0, 0, 1, 1], [], []>} : vector<32x32xbf16>, vector<32x32xbf16>, vector<32x32xf32> -> vector<32x32xf32>
    %c1_117 = arith.constant 1 : index
    %c0_118 = arith.constant 0 : index
    %c0_119 = arith.constant 0 : index
    %154 = vector.load %arg6[%c1_117, %c0_118, %c0_119] : memref<3x1x32xf32, #tpu.memory_space<vmem>>, vector<1x1x32xf32>
    %155 = vector.shape_cast %154 : vector<1x1x32xf32> to vector<1x32xf32>
    %c1_120 = arith.constant 1 : index
    %c0_121 = arith.constant 0 : index
    %c0_122 = arith.constant 0 : index
    %156 = vector.load %arg7[%c1_120, %c0_121, %c0_122] : memref<3x1x32xf32, #tpu.memory_space<vmem>>, vector<1x1x32xf32>
    %157 = vector.shape_cast %156 : vector<1x1x32xf32> to vector<1x32xf32>
    %cst_123 = arith.constant dense<0.000000e+00> : vector<32xf32>
    %158 = vector.multi_reduction <add>, %153, %cst_123 [0] : vector<32x32xf32> to vector<32xf32>
    %159 = vector.shape_cast %158 : vector<32xf32> to vector<1x32xf32>
    %cst_124 = arith.constant 3.125000e-02 : f32
    %160 = vector.broadcast %cst_124 : f32 to vector<1x32xf32>
    %161 = arith.mulf %159, %160 : vector<1x32xf32>
    %162 = vector.broadcast %161 : vector<1x32xf32> to vector<32x32xf32>
    %163 = arith.subf %153, %162 : vector<32x32xf32>
    %164 = arith.mulf %163, %163 : vector<32x32xf32>
    %cst_125 = arith.constant dense<0.000000e+00> : vector<32xf32>
    %165 = vector.multi_reduction <add>, %164, %cst_125 [0] : vector<32x32xf32> to vector<32xf32>
    %166 = vector.shape_cast %165 : vector<32xf32> to vector<1x32xf32>
    %cst_126 = arith.constant 3.125000e-02 : f32
    %167 = vector.broadcast %cst_126 : f32 to vector<1x32xf32>
    %168 = arith.mulf %166, %167 : vector<1x32xf32>
    %cst_127 = arith.constant 9.99999974E-6 : f32
    %169 = vector.broadcast %cst_127 : f32 to vector<1x32xf32>
    %170 = arith.addf %168, %169 : vector<1x32xf32>
    %171 = math.rsqrt %170 : vector<1x32xf32>
    %172 = vector.broadcast %171 : vector<1x32xf32> to vector<32x32xf32>
    %173 = arith.mulf %163, %172 : vector<32x32xf32>
    %174 = vector.broadcast %155 : vector<1x32xf32> to vector<32x32xf32>
    %175 = arith.mulf %173, %174 : vector<32x32xf32>
    %176 = vector.broadcast %157 : vector<1x32xf32> to vector<32x32xf32>
    %177 = arith.addf %175, %176 : vector<32x32xf32>
    %178 = arith.addf %91, %177 : vector<32x32xf32>
    %cst_128 = arith.constant 0.000000e+00 : f32
    %179 = vector.broadcast %cst_128 : f32 to vector<32x32xf32>
    %180 = arith.maximumf %178, %179 : vector<32x32xf32>
    %c0_129 = arith.constant 0 : index
    %c0_130 = arith.constant 0 : index
    %c0_131 = arith.constant 0 : index
    %181 = vector.load %arg1[%c0_129, %c0_130, %c0_131] : memref<9x32x32xf32, #tpu.memory_space<vmem>>, vector<1x32x32xf32>
    %182 = vector.shape_cast %181 : vector<1x32x32xf32> to vector<32x32xf32>
    %cst_132 = arith.constant dense<0.000000e+00> : vector<32x32xf32>
    %183 = tpu.matmul %182, %180, %cst_132 {dimension_numbers = #tpu.dot_dimension_numbers<[1], [0], [0], [1], [0, 0, 1, 1], [], []>} : vector<32x32xf32>, vector<32x32xf32>, vector<32x32xf32> -> vector<32x32xf32>
    %c1_133 = arith.constant 1 : index
    %c0_134 = arith.constant 0 : index
    %c0_135 = arith.constant 0 : index
    %184 = vector.load %arg1[%c1_133, %c0_134, %c0_135] : memref<9x32x32xf32, #tpu.memory_space<vmem>>, vector<1x32x32xf32>
    %185 = vector.shape_cast %184 : vector<1x32x32xf32> to vector<32x32xf32>
    %cst_136 = arith.constant dense<0.000000e+00> : vector<32x32xf32>
    %186 = tpu.matmul %185, %180, %cst_136 {dimension_numbers = #tpu.dot_dimension_numbers<[1], [0], [0], [1], [0, 0, 1, 1], [], []>} : vector<32x32xf32>, vector<32x32xf32>, vector<32x32xf32> -> vector<32x32xf32>
    %c2_137 = arith.constant 2 : index
    %c0_138 = arith.constant 0 : index
    %c0_139 = arith.constant 0 : index
    %187 = vector.load %arg1[%c2_137, %c0_138, %c0_139] : memref<9x32x32xf32, #tpu.memory_space<vmem>>, vector<1x32x32xf32>
    %188 = vector.shape_cast %187 : vector<1x32x32xf32> to vector<32x32xf32>
    %cst_140 = arith.constant dense<0.000000e+00> : vector<32x32xf32>
    %189 = tpu.matmul %188, %180, %cst_140 {dimension_numbers = #tpu.dot_dimension_numbers<[1], [0], [0], [1], [0, 0, 1, 1], [], []>} : vector<32x32xf32>, vector<32x32xf32>, vector<32x32xf32> -> vector<32x32xf32>
    %c3_141 = arith.constant 3 : index
    %c0_142 = arith.constant 0 : index
    %c0_143 = arith.constant 0 : index
    %190 = vector.load %arg1[%c3_141, %c0_142, %c0_143] : memref<9x32x32xf32, #tpu.memory_space<vmem>>, vector<1x32x32xf32>
    %191 = vector.shape_cast %190 : vector<1x32x32xf32> to vector<32x32xf32>
    %cst_144 = arith.constant dense<0.000000e+00> : vector<32x32xf32>
    %192 = tpu.matmul %191, %180, %cst_144 {dimension_numbers = #tpu.dot_dimension_numbers<[1], [0], [0], [1], [0, 0, 1, 1], [], []>} : vector<32x32xf32>, vector<32x32xf32>, vector<32x32xf32> -> vector<32x32xf32>
    %c4_145 = arith.constant 4 : index
    %c0_146 = arith.constant 0 : index
    %c0_147 = arith.constant 0 : index
    %193 = vector.load %arg1[%c4_145, %c0_146, %c0_147] : memref<9x32x32xf32, #tpu.memory_space<vmem>>, vector<1x32x32xf32>
    %194 = vector.shape_cast %193 : vector<1x32x32xf32> to vector<32x32xf32>
    %cst_148 = arith.constant dense<0.000000e+00> : vector<32x32xf32>
    %195 = tpu.matmul %194, %180, %cst_148 {dimension_numbers = #tpu.dot_dimension_numbers<[1], [0], [0], [1], [0, 0, 1, 1], [], []>} : vector<32x32xf32>, vector<32x32xf32>, vector<32x32xf32> -> vector<32x32xf32>
    %c5_149 = arith.constant 5 : index
    %c0_150 = arith.constant 0 : index
    %c0_151 = arith.constant 0 : index
    %196 = vector.load %arg1[%c5_149, %c0_150, %c0_151] : memref<9x32x32xf32, #tpu.memory_space<vmem>>, vector<1x32x32xf32>
    %197 = vector.shape_cast %196 : vector<1x32x32xf32> to vector<32x32xf32>
    %cst_152 = arith.constant dense<0.000000e+00> : vector<32x32xf32>
    %198 = tpu.matmul %197, %180, %cst_152 {dimension_numbers = #tpu.dot_dimension_numbers<[1], [0], [0], [1], [0, 0, 1, 1], [], []>} : vector<32x32xf32>, vector<32x32xf32>, vector<32x32xf32> -> vector<32x32xf32>
    %c6_153 = arith.constant 6 : index
    %c0_154 = arith.constant 0 : index
    %c0_155 = arith.constant 0 : index
    %199 = vector.load %arg1[%c6_153, %c0_154, %c0_155] : memref<9x32x32xf32, #tpu.memory_space<vmem>>, vector<1x32x32xf32>
    %200 = vector.shape_cast %199 : vector<1x32x32xf32> to vector<32x32xf32>
    %cst_156 = arith.constant dense<0.000000e+00> : vector<32x32xf32>
    %201 = tpu.matmul %200, %180, %cst_156 {dimension_numbers = #tpu.dot_dimension_numbers<[1], [0], [0], [1], [0, 0, 1, 1], [], []>} : vector<32x32xf32>, vector<32x32xf32>, vector<32x32xf32> -> vector<32x32xf32>
    %c7_157 = arith.constant 7 : index
    %c0_158 = arith.constant 0 : index
    %c0_159 = arith.constant 0 : index
    %202 = vector.load %arg1[%c7_157, %c0_158, %c0_159] : memref<9x32x32xf32, #tpu.memory_space<vmem>>, vector<1x32x32xf32>
    %203 = vector.shape_cast %202 : vector<1x32x32xf32> to vector<32x32xf32>
    %cst_160 = arith.constant dense<0.000000e+00> : vector<32x32xf32>
    %204 = tpu.matmul %203, %180, %cst_160 {dimension_numbers = #tpu.dot_dimension_numbers<[1], [0], [0], [1], [0, 0, 1, 1], [], []>} : vector<32x32xf32>, vector<32x32xf32>, vector<32x32xf32> -> vector<32x32xf32>
    %c8_161 = arith.constant 8 : index
    %c0_162 = arith.constant 0 : index
    %c0_163 = arith.constant 0 : index
    %205 = vector.load %arg1[%c8_161, %c0_162, %c0_163] : memref<9x32x32xf32, #tpu.memory_space<vmem>>, vector<1x32x32xf32>
    %206 = vector.shape_cast %205 : vector<1x32x32xf32> to vector<32x32xf32>
    %cst_164 = arith.constant dense<0.000000e+00> : vector<32x32xf32>
    %207 = tpu.matmul %206, %180, %cst_164 {dimension_numbers = #tpu.dot_dimension_numbers<[1], [0], [0], [1], [0, 0, 1, 1], [], []>} : vector<32x32xf32>, vector<32x32xf32>, vector<32x32xf32> -> vector<32x32xf32>
    %208 = tpu.concatenate %183, %186, %189, %192, %195, %198, %201, %204, %207 in 1 : vector<32x32xf32>, vector<32x32xf32>, vector<32x32xf32>, vector<32x32xf32>, vector<32x32xf32>, vector<32x32xf32>, vector<32x32xf32>, vector<32x32xf32>, vector<32x32xf32> -> vector<32x288xf32>
    %209 = arith.truncf %208 : vector<32x288xf32> to vector<32x288xbf16>
    %c2_165 = arith.constant 2 : index
    %c0_166 = arith.constant 0 : index
    %c0_167 = arith.constant 0 : index
    %210 = vector.load %arg2[%c2_165, %c0_166, %c0_167] : memref<3x288x32xbf16, #tpu.memory_space<vmem>>, vector<1x288x32xbf16>
    %211 = vector.shape_cast %210 : vector<1x288x32xbf16> to vector<288x32xbf16>
    %cst_168 = arith.constant dense<0.000000e+00> : vector<32x32xf32>
    %212 = tpu.matmul %209, %211, %cst_168 {dimension_numbers = #tpu.dot_dimension_numbers<[1], [0], [0], [1], [0, 0, 1, 1], [], []>} : vector<32x288xbf16>, vector<288x32xbf16>, vector<32x32xf32> -> vector<32x32xf32>
    %c2_169 = arith.constant 2 : index
    %c0_170 = arith.constant 0 : index
    %c0_171 = arith.constant 0 : index
    %213 = vector.load %arg3[%c2_169, %c0_170, %c0_171] : memref<3x1x32xf32, #tpu.memory_space<vmem>>, vector<1x1x32xf32>
    %214 = vector.shape_cast %213 : vector<1x1x32xf32> to vector<1x32xf32>
    %c2_172 = arith.constant 2 : index
    %c0_173 = arith.constant 0 : index
    %c0_174 = arith.constant 0 : index
    %215 = vector.load %arg4[%c2_172, %c0_173, %c0_174] : memref<3x1x32xf32, #tpu.memory_space<vmem>>, vector<1x1x32xf32>
    %216 = vector.shape_cast %215 : vector<1x1x32xf32> to vector<1x32xf32>
    %cst_175 = arith.constant dense<0.000000e+00> : vector<32xf32>
    %217 = vector.multi_reduction <add>, %212, %cst_175 [0] : vector<32x32xf32> to vector<32xf32>
    %218 = vector.shape_cast %217 : vector<32xf32> to vector<1x32xf32>
    %cst_176 = arith.constant 3.125000e-02 : f32
    %219 = vector.broadcast %cst_176 : f32 to vector<1x32xf32>
    %220 = arith.mulf %218, %219 : vector<1x32xf32>
    %221 = vector.broadcast %220 : vector<1x32xf32> to vector<32x32xf32>
    %222 = arith.subf %212, %221 : vector<32x32xf32>
    %223 = arith.mulf %222, %222 : vector<32x32xf32>
    %cst_177 = arith.constant dense<0.000000e+00> : vector<32xf32>
    %224 = vector.multi_reduction <add>, %223, %cst_177 [0] : vector<32x32xf32> to vector<32xf32>
    %225 = vector.shape_cast %224 : vector<32xf32> to vector<1x32xf32>
    %cst_178 = arith.constant 3.125000e-02 : f32
    %226 = vector.broadcast %cst_178 : f32 to vector<1x32xf32>
    %227 = arith.mulf %225, %226 : vector<1x32xf32>
    %cst_179 = arith.constant 9.99999974E-6 : f32
    %228 = vector.broadcast %cst_179 : f32 to vector<1x32xf32>
    %229 = arith.addf %227, %228 : vector<1x32xf32>
    %230 = math.rsqrt %229 : vector<1x32xf32>
    %231 = vector.broadcast %230 : vector<1x32xf32> to vector<32x32xf32>
    %232 = arith.mulf %222, %231 : vector<32x32xf32>
    %233 = vector.broadcast %214 : vector<1x32xf32> to vector<32x32xf32>
    %234 = arith.mulf %232, %233 : vector<32x32xf32>
    %235 = vector.broadcast %216 : vector<1x32xf32> to vector<32x32xf32>
    %236 = arith.addf %234, %235 : vector<32x32xf32>
    %cst_180 = arith.constant 0.000000e+00 : f32
    %237 = vector.broadcast %cst_180 : f32 to vector<32x32xf32>
    %238 = arith.maximumf %236, %237 : vector<32x32xf32>
    %239 = arith.truncf %238 : vector<32x32xf32> to vector<32x32xbf16>
    %c2_181 = arith.constant 2 : index
    %c0_182 = arith.constant 0 : index
    %c0_183 = arith.constant 0 : index
    %240 = vector.load %arg5[%c2_181, %c0_182, %c0_183] : memref<3x32x32xbf16, #tpu.memory_space<vmem>>, vector<1x32x32xbf16>
    %241 = vector.shape_cast %240 : vector<1x32x32xbf16> to vector<32x32xbf16>
    %cst_184 = arith.constant dense<0.000000e+00> : vector<32x32xf32>
    %242 = tpu.matmul %239, %241, %cst_184 {dimension_numbers = #tpu.dot_dimension_numbers<[1], [0], [0], [1], [0, 0, 1, 1], [], []>} : vector<32x32xbf16>, vector<32x32xbf16>, vector<32x32xf32> -> vector<32x32xf32>
    %c2_185 = arith.constant 2 : index
    %c0_186 = arith.constant 0 : index
    %c0_187 = arith.constant 0 : index
    %243 = vector.load %arg6[%c2_185, %c0_186, %c0_187] : memref<3x1x32xf32, #tpu.memory_space<vmem>>, vector<1x1x32xf32>
    %244 = vector.shape_cast %243 : vector<1x1x32xf32> to vector<1x32xf32>
    %c2_188 = arith.constant 2 : index
    %c0_189 = arith.constant 0 : index
    %c0_190 = arith.constant 0 : index
    %245 = vector.load %arg7[%c2_188, %c0_189, %c0_190] : memref<3x1x32xf32, #tpu.memory_space<vmem>>, vector<1x1x32xf32>
    %246 = vector.shape_cast %245 : vector<1x1x32xf32> to vector<1x32xf32>
    %cst_191 = arith.constant dense<0.000000e+00> : vector<32xf32>
    %247 = vector.multi_reduction <add>, %242, %cst_191 [0] : vector<32x32xf32> to vector<32xf32>
    %248 = vector.shape_cast %247 : vector<32xf32> to vector<1x32xf32>
    %cst_192 = arith.constant 3.125000e-02 : f32
    %249 = vector.broadcast %cst_192 : f32 to vector<1x32xf32>
    %250 = arith.mulf %248, %249 : vector<1x32xf32>
    %251 = vector.broadcast %250 : vector<1x32xf32> to vector<32x32xf32>
    %252 = arith.subf %242, %251 : vector<32x32xf32>
    %253 = arith.mulf %252, %252 : vector<32x32xf32>
    %cst_193 = arith.constant dense<0.000000e+00> : vector<32xf32>
    %254 = vector.multi_reduction <add>, %253, %cst_193 [0] : vector<32x32xf32> to vector<32xf32>
    %255 = vector.shape_cast %254 : vector<32xf32> to vector<1x32xf32>
    %cst_194 = arith.constant 3.125000e-02 : f32
    %256 = vector.broadcast %cst_194 : f32 to vector<1x32xf32>
    %257 = arith.mulf %255, %256 : vector<1x32xf32>
    %cst_195 = arith.constant 9.99999974E-6 : f32
    %258 = vector.broadcast %cst_195 : f32 to vector<1x32xf32>
    %259 = arith.addf %257, %258 : vector<1x32xf32>
    %260 = math.rsqrt %259 : vector<1x32xf32>
    %261 = vector.broadcast %260 : vector<1x32xf32> to vector<32x32xf32>
    %262 = arith.mulf %252, %261 : vector<32x32xf32>
    %263 = vector.broadcast %244 : vector<1x32xf32> to vector<32x32xf32>
    %264 = arith.mulf %262, %263 : vector<32x32xf32>
    %265 = vector.broadcast %246 : vector<1x32xf32> to vector<32x32xf32>
    %266 = arith.addf %264, %265 : vector<32x32xf32>
    %267 = arith.addf %180, %266 : vector<32x32xf32>
    %cst_196 = arith.constant 0.000000e+00 : f32
    %268 = vector.broadcast %cst_196 : f32 to vector<32x32xf32>
    %269 = arith.maximumf %267, %268 : vector<32x32xf32>
    %c0_197 = arith.constant 0 : index
    %c0_198 = arith.constant 0 : index
    %270 = vector.load %arg8[%c0_197, %c0_198] : memref<32x32xf32, #tpu.memory_space<vmem>>, vector<32x32xf32>
    tpu.vector_store %arg8[%c0_197, %c0_198], %269 {strides = array<i32>} : memref<32x32xf32, #tpu.memory_space<vmem>>, vector<32x32xf32>,
    return
  }
}

module attributes {stable_mosaic.version = 11 : i64} {
  func.func @_resblock_chain_kernel(%arg0: memref<32x32xf32, #tpu.memory_space<vmem>>, %arg1: memref<9x32x32xf32, #tpu.memory_space<vmem>>, %arg2: memref<3x288x32xbf16, #tpu.memory_space<vmem>>, %arg3: memref<3x1x32xf32, #tpu.memory_space<vmem>>, %arg4: memref<3x1x32xf32, #tpu.memory_space<vmem>>, %arg5: memref<3x32x32xbf16, #tpu.memory_space<vmem>>, %arg6: memref<3x1x32xf32, #tpu.memory_space<vmem>>, %arg7: memref<3x1x32xf32, #tpu.memory_space<vmem>>, %arg8: memref<32x32xf32, #tpu.memory_space<vmem>>) attributes {dimension_semantics = [], scalar_prefetch = 0 : i64, scratch_operands = 0 : i64, tpu.core_type = #tpu.core_type<tc>} {
    %c0 = arith.constant 0 : index
    %c0_0 = arith.constant 0 : index
    %0 = vector.load %arg0[%c0, %c0_0] : memref<32x32xf32, #tpu.memory_space<vmem>>, vector<32x32xf32>
    %cst = arith.constant 0.000000e+00 : f32
    %1 = vector.broadcast %cst : f32 to vector<32x32xf32>
    %2 = arith.maximumf %0, %1 : vector<32x32xf32>
    %c0_1 = arith.constant 0 : index
    %c0_2 = arith.constant 0 : index
    %c0_3 = arith.constant 0 : index
    %3 = vector.load %arg1[%c0_1, %c0_2, %c0_3] : memref<9x32x32xf32, #tpu.memory_space<vmem>>, vector<1x32x32xf32>
    %4 = vector.shape_cast %3 : vector<1x32x32xf32> to vector<32x32xf32>
    %cst_4 = arith.constant dense<0.000000e+00> : vector<32x32xf32>
    %5 = tpu.matmul %4, %2, %cst_4 {dimension_numbers = #tpu.dot_dimension_numbers<[1], [0], [0], [1], [0, 0, 1, 1], [], []>} : vector<32x32xf32>, vector<32x32xf32>, vector<32x32xf32> -> vector<32x32xf32>
    %c1 = arith.constant 1 : index
    %c0_5 = arith.constant 0 : index
    %c0_6 = arith.constant 0 : index
    %6 = vector.load %arg1[%c1, %c0_5, %c0_6] : memref<9x32x32xf32, #tpu.memory_space<vmem>>, vector<1x32x32xf32>
    %7 = vector.shape_cast %6 : vector<1x32x32xf32> to vector<32x32xf32>
    %cst_7 = arith.constant dense<0.000000e+00> : vector<32x32xf32>
    %8 = tpu.matmul %7, %2, %cst_7 {dimension_numbers = #tpu.dot_dimension_numbers<[1], [0], [0], [1], [0, 0, 1, 1], [], []>} : vector<32x32xf32>, vector<32x32xf32>, vector<32x32xf32> -> vector<32x32xf32>
    %c2 = arith.constant 2 : index
    %c0_8 = arith.constant 0 : index
    %c0_9 = arith.constant 0 : index
    %9 = vector.load %arg1[%c2, %c0_8, %c0_9] : memref<9x32x32xf32, #tpu.memory_space<vmem>>, vector<1x32x32xf32>
    %10 = vector.shape_cast %9 : vector<1x32x32xf32> to vector<32x32xf32>
    %cst_10 = arith.constant dense<0.000000e+00> : vector<32x32xf32>
    %11 = tpu.matmul %10, %2, %cst_10 {dimension_numbers = #tpu.dot_dimension_numbers<[1], [0], [0], [1], [0, 0, 1, 1], [], []>} : vector<32x32xf32>, vector<32x32xf32>, vector<32x32xf32> -> vector<32x32xf32>
    %c3 = arith.constant 3 : index
    %c0_11 = arith.constant 0 : index
    %c0_12 = arith.constant 0 : index
    %12 = vector.load %arg1[%c3, %c0_11, %c0_12] : memref<9x32x32xf32, #tpu.memory_space<vmem>>, vector<1x32x32xf32>
    %13 = vector.shape_cast %12 : vector<1x32x32xf32> to vector<32x32xf32>
    %cst_13 = arith.constant dense<0.000000e+00> : vector<32x32xf32>
    %14 = tpu.matmul %13, %2, %cst_13 {dimension_numbers = #tpu.dot_dimension_numbers<[1], [0], [0], [1], [0, 0, 1, 1], [], []>} : vector<32x32xf32>, vector<32x32xf32>, vector<32x32xf32> -> vector<32x32xf32>
    %c4 = arith.constant 4 : index
    %c0_14 = arith.constant 0 : index
    %c0_15 = arith.constant 0 : index
    %15 = vector.load %arg1[%c4, %c0_14, %c0_15] : memref<9x32x32xf32, #tpu.memory_space<vmem>>, vector<1x32x32xf32>
    %16 = vector.shape_cast %15 : vector<1x32x32xf32> to vector<32x32xf32>
    %cst_16 = arith.constant dense<0.000000e+00> : vector<32x32xf32>
    %17 = tpu.matmul %16, %2, %cst_16 {dimension_numbers = #tpu.dot_dimension_numbers<[1], [0], [0], [1], [0, 0, 1, 1], [], []>} : vector<32x32xf32>, vector<32x32xf32>, vector<32x32xf32> -> vector<32x32xf32>
    %c5 = arith.constant 5 : index
    %c0_17 = arith.constant 0 : index
    %c0_18 = arith.constant 0 : index
    %18 = vector.load %arg1[%c5, %c0_17, %c0_18] : memref<9x32x32xf32, #tpu.memory_space<vmem>>, vector<1x32x32xf32>
    %19 = vector.shape_cast %18 : vector<1x32x32xf32> to vector<32x32xf32>
    %cst_19 = arith.constant dense<0.000000e+00> : vector<32x32xf32>
    %20 = tpu.matmul %19, %2, %cst_19 {dimension_numbers = #tpu.dot_dimension_numbers<[1], [0], [0], [1], [0, 0, 1, 1], [], []>} : vector<32x32xf32>, vector<32x32xf32>, vector<32x32xf32> -> vector<32x32xf32>
    %c6 = arith.constant 6 : index
    %c0_20 = arith.constant 0 : index
    %c0_21 = arith.constant 0 : index
    %21 = vector.load %arg1[%c6, %c0_20, %c0_21] : memref<9x32x32xf32, #tpu.memory_space<vmem>>, vector<1x32x32xf32>
    %22 = vector.shape_cast %21 : vector<1x32x32xf32> to vector<32x32xf32>
    %cst_22 = arith.constant dense<0.000000e+00> : vector<32x32xf32>
    %23 = tpu.matmul %22, %2, %cst_22 {dimension_numbers = #tpu.dot_dimension_numbers<[1], [0], [0], [1], [0, 0, 1, 1], [], []>} : vector<32x32xf32>, vector<32x32xf32>, vector<32x32xf32> -> vector<32x32xf32>
    %c7 = arith.constant 7 : index
    %c0_23 = arith.constant 0 : index
    %c0_24 = arith.constant 0 : index
    %24 = vector.load %arg1[%c7, %c0_23, %c0_24] : memref<9x32x32xf32, #tpu.memory_space<vmem>>, vector<1x32x32xf32>
    %25 = vector.shape_cast %24 : vector<1x32x32xf32> to vector<32x32xf32>
    %cst_25 = arith.constant dense<0.000000e+00> : vector<32x32xf32>
    %26 = tpu.matmul %25, %2, %cst_25 {dimension_numbers = #tpu.dot_dimension_numbers<[1], [0], [0], [1], [0, 0, 1, 1], [], []>} : vector<32x32xf32>, vector<32x32xf32>, vector<32x32xf32> -> vector<32x32xf32>
    %c8 = arith.constant 8 : index
    %c0_26 = arith.constant 0 : index
    %c0_27 = arith.constant 0 : index
    %27 = vector.load %arg1[%c8, %c0_26, %c0_27] : memref<9x32x32xf32, #tpu.memory_space<vmem>>, vector<1x32x32xf32>
    %28 = vector.shape_cast %27 : vector<1x32x32xf32> to vector<32x32xf32>
    %cst_28 = arith.constant dense<0.000000e+00> : vector<32x32xf32>
    %29 = tpu.matmul %28, %2, %cst_28 {dimension_numbers = #tpu.dot_dimension_numbers<[1], [0], [0], [1], [0, 0, 1, 1], [], []>} : vector<32x32xf32>, vector<32x32xf32>, vector<32x32xf32> -> vector<32x32xf32>
    %30 = tpu.concatenate %5, %8, %11, %14, %17, %20, %23, %26, %29 in 1 : vector<32x32xf32>, vector<32x32xf32>, vector<32x32xf32>, vector<32x32xf32>, vector<32x32xf32>, vector<32x32xf32>, vector<32x32xf32>, vector<32x32xf32>, vector<32x32xf32> -> vector<32x288xf32>
    %31 = arith.truncf %30 : vector<32x288xf32> to vector<32x288xbf16>
    %c0_29 = arith.constant 0 : index
    %c0_30 = arith.constant 0 : index
    %c0_31 = arith.constant 0 : index
    %32 = vector.load %arg2[%c0_29, %c0_30, %c0_31] : memref<3x288x32xbf16, #tpu.memory_space<vmem>>, vector<1x288x32xbf16>
    %33 = vector.shape_cast %32 : vector<1x288x32xbf16> to vector<288x32xbf16>
    %cst_32 = arith.constant dense<0.000000e+00> : vector<32x32xf32>
    %34 = tpu.matmul %31, %33, %cst_32 {dimension_numbers = #tpu.dot_dimension_numbers<[1], [0], [0], [1], [0, 0, 1, 1], [], []>} : vector<32x288xbf16>, vector<288x32xbf16>, vector<32x32xf32> -> vector<32x32xf32>
    %c0_33 = arith.constant 0 : index
    %c0_34 = arith.constant 0 : index
    %c0_35 = arith.constant 0 : index
    %35 = vector.load %arg3[%c0_33, %c0_34, %c0_35] : memref<3x1x32xf32, #tpu.memory_space<vmem>>, vector<1x1x32xf32>
    %36 = vector.shape_cast %35 : vector<1x1x32xf32> to vector<1x32xf32>
    %c0_36 = arith.constant 0 : index
    %c0_37 = arith.constant 0 : index
    %c0_38 = arith.constant 0 : index
    %37 = vector.load %arg4[%c0_36, %c0_37, %c0_38] : memref<3x1x32xf32, #tpu.memory_space<vmem>>, vector<1x1x32xf32>
    %38 = vector.shape_cast %37 : vector<1x1x32xf32> to vector<1x32xf32>
    %cst_39 = arith.constant dense<0.000000e+00> : vector<32xf32>
    %39 = vector.multi_reduction <add>, %34, %cst_39 [0] : vector<32x32xf32> to vector<32xf32>
    %40 = vector.shape_cast %39 : vector<32xf32> to vector<1x32xf32>
    %cst_40 = arith.constant 3.125000e-02 : f32
    %41 = vector.broadcast %cst_40 : f32 to vector<1x32xf32>
    %42 = arith.mulf %40, %41 : vector<1x32xf32>
    %43 = vector.broadcast %42 : vector<1x32xf32> to vector<32x32xf32>
    %44 = arith.subf %34, %43 : vector<32x32xf32>
    %45 = arith.mulf %44, %44 : vector<32x32xf32>
    %cst_41 = arith.constant dense<0.000000e+00> : vector<32xf32>
    %46 = vector.multi_reduction <add>, %45, %cst_41 [0] : vector<32x32xf32> to vector<32xf32>
    %47 = vector.shape_cast %46 : vector<32xf32> to vector<1x32xf32>
    %cst_42 = arith.constant 3.125000e-02 : f32
    %48 = vector.broadcast %cst_42 : f32 to vector<1x32xf32>
    %49 = arith.mulf %47, %48 : vector<1x32xf32>
    %cst_43 = arith.constant 9.99999974E-6 : f32
    %50 = vector.broadcast %cst_43 : f32 to vector<1x32xf32>
    %51 = arith.addf %49, %50 : vector<1x32xf32>
    %52 = math.rsqrt %51 : vector<1x32xf32>
    %53 = vector.broadcast %52 : vector<1x32xf32> to vector<32x32xf32>
    %54 = arith.mulf %44, %53 : vector<32x32xf32>
    %55 = vector.broadcast %36 : vector<1x32xf32> to vector<32x32xf32>
    %56 = arith.mulf %54, %55 : vector<32x32xf32>
    %57 = vector.broadcast %38 : vector<1x32xf32> to vector<32x32xf32>
    %58 = arith.addf %56, %57 : vector<32x32xf32>
    %cst_44 = arith.constant 0.000000e+00 : f32
    %59 = vector.broadcast %cst_44 : f32 to vector<32x32xf32>
    %60 = arith.maximumf %58, %59 : vector<32x32xf32>
    %61 = arith.truncf %60 : vector<32x32xf32> to vector<32x32xbf16>
    %c0_45 = arith.constant 0 : index
    %c0_46 = arith.constant 0 : index
    %c0_47 = arith.constant 0 : index
    %62 = vector.load %arg5[%c0_45, %c0_46, %c0_47] : memref<3x32x32xbf16, #tpu.memory_space<vmem>>, vector<1x32x32xbf16>
    %63 = vector.shape_cast %62 : vector<1x32x32xbf16> to vector<32x32xbf16>
    %cst_48 = arith.constant dense<0.000000e+00> : vector<32x32xf32>
    %64 = tpu.matmul %61, %63, %cst_48 {dimension_numbers = #tpu.dot_dimension_numbers<[1], [0], [0], [1], [0, 0, 1, 1], [], []>} : vector<32x32xbf16>, vector<32x32xbf16>, vector<32x32xf32> -> vector<32x32xf32>
    %c0_49 = arith.constant 0 : index
    %c0_50 = arith.constant 0 : index
    %c0_51 = arith.constant 0 : index
    %65 = vector.load %arg6[%c0_49, %c0_50, %c0_51] : memref<3x1x32xf32, #tpu.memory_space<vmem>>, vector<1x1x32xf32>
    %66 = vector.shape_cast %65 : vector<1x1x32xf32> to vector<1x32xf32>
    %c0_52 = arith.constant 0 : index
    %c0_53 = arith.constant 0 : index
    %c0_54 = arith.constant 0 : index
    %67 = vector.load %arg7[%c0_52, %c0_53, %c0_54] : memref<3x1x32xf32, #tpu.memory_space<vmem>>, vector<1x1x32xf32>
    %68 = vector.shape_cast %67 : vector<1x1x32xf32> to vector<1x32xf32>
    %cst_55 = arith.constant dense<0.000000e+00> : vector<32xf32>
    %69 = vector.multi_reduction <add>, %64, %cst_55 [0] : vector<32x32xf32> to vector<32xf32>
    %70 = vector.shape_cast %69 : vector<32xf32> to vector<1x32xf32>
    %cst_56 = arith.constant 3.125000e-02 : f32
    %71 = vector.broadcast %cst_56 : f32 to vector<1x32xf32>
    %72 = arith.mulf %70, %71 : vector<1x32xf32>
    %73 = vector.broadcast %72 : vector<1x32xf32> to vector<32x32xf32>
    %74 = arith.subf %64, %73 : vector<32x32xf32>
    %75 = arith.mulf %74, %74 : vector<32x32xf32>
    %cst_57 = arith.constant dense<0.000000e+00> : vector<32xf32>
    %76 = vector.multi_reduction <add>, %75, %cst_57 [0] : vector<32x32xf32> to vector<32xf32>
    %77 = vector.shape_cast %76 : vector<32xf32> to vector<1x32xf32>
    %cst_58 = arith.constant 3.125000e-02 : f32
    %78 = vector.broadcast %cst_58 : f32 to vector<1x32xf32>
    %79 = arith.mulf %77, %78 : vector<1x32xf32>
    %cst_59 = arith.constant 9.99999974E-6 : f32
    %80 = vector.broadcast %cst_59 : f32 to vector<1x32xf32>
    %81 = arith.addf %79, %80 : vector<1x32xf32>
    %82 = math.rsqrt %81 : vector<1x32xf32>
    %83 = vector.broadcast %82 : vector<1x32xf32> to vector<32x32xf32>
    %84 = arith.mulf %74, %83 : vector<32x32xf32>
    %85 = vector.broadcast %66 : vector<1x32xf32> to vector<32x32xf32>
    %86 = arith.mulf %84, %85 : vector<32x32xf32>
    %87 = vector.broadcast %68 : vector<1x32xf32> to vector<32x32xf32>
    %88 = arith.addf %86, %87 : vector<32x32xf32>
    %89 = arith.addf %2, %88 : vector<32x32xf32>
    %cst_60 = arith.constant 0.000000e+00 : f32
    %90 = vector.broadcast %cst_60 : f32 to vector<32x32xf32>
    %91 = arith.maximumf %89, %90 : vector<32x32xf32>
    %c0_61 = arith.constant 0 : index
    %c0_62 = arith.constant 0 : index
    %c0_63 = arith.constant 0 : index
    %92 = vector.load %arg1[%c0_61, %c0_62, %c0_63] : memref<9x32x32xf32, #tpu.memory_space<vmem>>, vector<1x32x32xf32>
    %93 = vector.shape_cast %92 : vector<1x32x32xf32> to vector<32x32xf32>
    %cst_64 = arith.constant dense<0.000000e+00> : vector<32x32xf32>
    %94 = tpu.matmul %93, %91, %cst_64 {dimension_numbers = #tpu.dot_dimension_numbers<[1], [0], [0], [1], [0, 0, 1, 1], [], []>} : vector<32x32xf32>, vector<32x32xf32>, vector<32x32xf32> -> vector<32x32xf32>
    %c1_65 = arith.constant 1 : index
    %c0_66 = arith.constant 0 : index
    %c0_67 = arith.constant 0 : index
    %95 = vector.load %arg1[%c1_65, %c0_66, %c0_67] : memref<9x32x32xf32, #tpu.memory_space<vmem>>, vector<1x32x32xf32>
    %96 = vector.shape_cast %95 : vector<1x32x32xf32> to vector<32x32xf32>
    %cst_68 = arith.constant dense<0.000000e+00> : vector<32x32xf32>
    %97 = tpu.matmul %96, %91, %cst_68 {dimension_numbers = #tpu.dot_dimension_numbers<[1], [0], [0], [1], [0, 0, 1, 1], [], []>} : vector<32x32xf32>, vector<32x32xf32>, vector<32x32xf32> -> vector<32x32xf32>
    %c2_69 = arith.constant 2 : index
    %c0_70 = arith.constant 0 : index
    %c0_71 = arith.constant 0 : index
    %98 = vector.load %arg1[%c2_69, %c0_70, %c0_71] : memref<9x32x32xf32, #tpu.memory_space<vmem>>, vector<1x32x32xf32>
    %99 = vector.shape_cast %98 : vector<1x32x32xf32> to vector<32x32xf32>
    %cst_72 = arith.constant dense<0.000000e+00> : vector<32x32xf32>
    %100 = tpu.matmul %99, %91, %cst_72 {dimension_numbers = #tpu.dot_dimension_numbers<[1], [0], [0], [1], [0, 0, 1, 1], [], []>} : vector<32x32xf32>, vector<32x32xf32>, vector<32x32xf32> -> vector<32x32xf32>
    %c3_73 = arith.constant 3 : index
    %c0_74 = arith.constant 0 : index
    %c0_75 = arith.constant 0 : index
    %101 = vector.load %arg1[%c3_73, %c0_74, %c0_75] : memref<9x32x32xf32, #tpu.memory_space<vmem>>, vector<1x32x32xf32>
    %102 = vector.shape_cast %101 : vector<1x32x32xf32> to vector<32x32xf32>
    %cst_76 = arith.constant dense<0.000000e+00> : vector<32x32xf32>
    %103 = tpu.matmul %102, %91, %cst_76 {dimension_numbers = #tpu.dot_dimension_numbers<[1], [0], [0], [1], [0, 0, 1, 1], [], []>} : vector<32x32xf32>, vector<32x32xf32>, vector<32x32xf32> -> vector<32x32xf32>
    %c4_77 = arith.constant 4 : index
    %c0_78 = arith.constant 0 : index
    %c0_79 = arith.constant 0 : index
    %104 = vector.load %arg1[%c4_77, %c0_78, %c0_79] : memref<9x32x32xf32, #tpu.memory_space<vmem>>, vector<1x32x32xf32>
    %105 = vector.shape_cast %104 : vector<1x32x32xf32> to vector<32x32xf32>
    %cst_80 = arith.constant dense<0.000000e+00> : vector<32x32xf32>
    %106 = tpu.matmul %105, %91, %cst_80 {dimension_numbers = #tpu.dot_dimension_numbers<[1], [0], [0], [1], [0, 0, 1, 1], [], []>} : vector<32x32xf32>, vector<32x32xf32>, vector<32x32xf32> -> vector<32x32xf32>
    %c5_81 = arith.constant 5 : index
    %c0_82 = arith.constant 0 : index
    %c0_83 = arith.constant 0 : index
    %107 = vector.load %arg1[%c5_81, %c0_82, %c0_83] : memref<9x32x32xf32, #tpu.memory_space<vmem>>, vector<1x32x32xf32>
    %108 = vector.shape_cast %107 : vector<1x32x32xf32> to vector<32x32xf32>
    %cst_84 = arith.constant dense<0.000000e+00> : vector<32x32xf32>
    %109 = tpu.matmul %108, %91, %cst_84 {dimension_numbers = #tpu.dot_dimension_numbers<[1], [0], [0], [1], [0, 0, 1, 1], [], []>} : vector<32x32xf32>, vector<32x32xf32>, vector<32x32xf32> -> vector<32x32xf32>
    %c6_85 = arith.constant 6 : index
    %c0_86 = arith.constant 0 : index
    %c0_87 = arith.constant 0 : index
    %110 = vector.load %arg1[%c6_85, %c0_86, %c0_87] : memref<9x32x32xf32, #tpu.memory_space<vmem>>, vector<1x32x32xf32>
    %111 = vector.shape_cast %110 : vector<1x32x32xf32> to vector<32x32xf32>
    %cst_88 = arith.constant dense<0.000000e+00> : vector<32x32xf32>
    %112 = tpu.matmul %111, %91, %cst_88 {dimension_numbers = #tpu.dot_dimension_numbers<[1], [0], [0], [1], [0, 0, 1, 1], [], []>} : vector<32x32xf32>, vector<32x32xf32>, vector<32x32xf32> -> vector<32x32xf32>
    %c7_89 = arith.constant 7 : index
    %c0_90 = arith.constant 0 : index
    %c0_91 = arith.constant 0 : index
    %113 = vector.load %arg1[%c7_89, %c0_90, %c0_91] : memref<9x32x32xf32, #tpu.memory_space<vmem>>, vector<1x32x32xf32>
    %114 = vector.shape_cast %113 : vector<1x32x32xf32> to vector<32x32xf32>
    %cst_92 = arith.constant dense<0.000000e+00> : vector<32x32xf32>
    %115 = tpu.matmul %114, %91, %cst_92 {dimension_numbers = #tpu.dot_dimension_numbers<[1], [0], [0], [1], [0, 0, 1, 1], [], []>} : vector<32x32xf32>, vector<32x32xf32>, vector<32x32xf32> -> vector<32x32xf32>
    %c8_93 = arith.constant 8 : index
    %c0_94 = arith.constant 0 : index
    %c0_95 = arith.constant 0 : index
    %116 = vector.load %arg1[%c8_93, %c0_94, %c0_95] : memref<9x32x32xf32, #tpu.memory_space<vmem>>, vector<1x32x32xf32>
    %117 = vector.shape_cast %116 : vector<1x32x32xf32> to vector<32x32xf32>
    %cst_96 = arith.constant dense<0.000000e+00> : vector<32x32xf32>
    %118 = tpu.matmul %117, %91, %cst_96 {dimension_numbers = #tpu.dot_dimension_numbers<[1], [0], [0], [1], [0, 0, 1, 1], [], []>} : vector<32x32xf32>, vector<32x32xf32>, vector<32x32xf32> -> vector<32x32xf32>
    %119 = tpu.concatenate %94, %97, %100, %103, %106, %109, %112, %115, %118 in 1 : vector<32x32xf32>, vector<32x32xf32>, vector<32x32xf32>, vector<32x32xf32>, vector<32x32xf32>, vector<32x32xf32>, vector<32x32xf32>, vector<32x32xf32>, vector<32x32xf32> -> vector<32x288xf32>
    %120 = arith.truncf %119 : vector<32x288xf32> to vector<32x288xbf16>
    %c1_97 = arith.constant 1 : index
    %c0_98 = arith.constant 0 : index
    %c0_99 = arith.constant 0 : index
    %121 = vector.load %arg2[%c1_97, %c0_98, %c0_99] : memref<3x288x32xbf16, #tpu.memory_space<vmem>>, vector<1x288x32xbf16>
    %122 = vector.shape_cast %121 : vector<1x288x32xbf16> to vector<288x32xbf16>
    %cst_100 = arith.constant dense<0.000000e+00> : vector<32x32xf32>
    %123 = tpu.matmul %120, %122, %cst_100 {dimension_numbers = #tpu.dot_dimension_numbers<[1], [0], [0], [1], [0, 0, 1, 1], [], []>} : vector<32x288xbf16>, vector<288x32xbf16>, vector<32x32xf32> -> vector<32x32xf32>
    %c1_101 = arith.constant 1 : index
    %c0_102 = arith.constant 0 : index
    %c0_103 = arith.constant 0 : index
    %124 = vector.load %arg3[%c1_101, %c0_102, %c0_103] : memref<3x1x32xf32, #tpu.memory_space<vmem>>, vector<1x1x32xf32>
    %125 = vector.shape_cast %124 : vector<1x1x32xf32> to vector<1x32xf32>
    %c1_104 = arith.constant 1 : index
    %c0_105 = arith.constant 0 : index
    %c0_106 = arith.constant 0 : index
    %126 = vector.load %arg4[%c1_104, %c0_105, %c0_106] : memref<3x1x32xf32, #tpu.memory_space<vmem>>, vector<1x1x32xf32>
    %127 = vector.shape_cast %126 : vector<1x1x32xf32> to vector<1x32xf32>
    %cst_107 = arith.constant dense<0.000000e+00> : vector<32xf32>
    %128 = vector.multi_reduction <add>, %123, %cst_107 [0] : vector<32x32xf32> to vector<32xf32>
    %129 = vector.shape_cast %128 : vector<32xf32> to vector<1x32xf32>
    %cst_108 = arith.constant 3.125000e-02 : f32
    %130 = vector.broadcast %cst_108 : f32 to vector<1x32xf32>
    %131 = arith.mulf %129, %130 : vector<1x32xf32>
    %132 = vector.broadcast %131 : vector<1x32xf32> to vector<32x32xf32>
    %133 = arith.subf %123, %132 : vector<32x32xf32>
    %134 = arith.mulf %133, %133 : vector<32x32xf32>
    %cst_109 = arith.constant dense<0.000000e+00> : vector<32xf32>
    %135 = vector.multi_reduction <add>, %134, %cst_109 [0] : vector<32x32xf32> to vector<32xf32>
    %136 = vector.shape_cast %135 : vector<32xf32> to vector<1x32xf32>
    %cst_110 = arith.constant 3.125000e-02 : f32
    %137 = vector.broadcast %cst_110 : f32 to vector<1x32xf32>
    %138 = arith.mulf %136, %137 : vector<1x32xf32>
    %cst_111 = arith.constant 9.99999974E-6 : f32
    %139 = vector.broadcast %cst_111 : f32 to vector<1x32xf32>
    %140 = arith.addf %138, %139 : vector<1x32xf32>
    %141 = math.rsqrt %140 : vector<1x32xf32>
    %142 = vector.broadcast %141 : vector<1x32xf32> to vector<32x32xf32>
    %143 = arith.mulf %133, %142 : vector<32x32xf32>
    %144 = vector.broadcast %125 : vector<1x32xf32> to vector<32x32xf32>
    %145 = arith.mulf %143, %144 : vector<32x32xf32>
    %146 = vector.broadcast %127 : vector<1x32xf32> to vector<32x32xf32>
    %147 = arith.addf %145, %146 : vector<32x32xf32>
    %cst_112 = arith.constant 0.000000e+00 : f32
    %148 = vector.broadcast %cst_112 : f32 to vector<32x32xf32>
    %149 = arith.maximumf %147, %148 : vector<32x32xf32>
    %150 = arith.truncf %149 : vector<32x32xf32> to vector<32x32xbf16>
    %c1_113 = arith.constant 1 : index
    %c0_114 = arith.constant 0 : index
    %c0_115 = arith.constant 0 : index
    %151 = vector.load %arg5[%c1_113, %c0_114, %c0_115] : memref<3x32x32xbf16, #tpu.memory_space<vmem>>, vector<1x32x32xbf16>
    %152 = vector.shape_cast %151 : vector<1x32x32xbf16> to vector<32x32xbf16>
    %cst_116 = arith.constant dense<0.000000e+00> : vector<32x32xf32>
    %153 = tpu.matmul %150, %152, %cst_116 {dimension_numbers = #tpu.dot_dimension_numbers<[1], [0], [0], [1], [0, 0, 1, 1], [], []>} : vector<32x32xbf16>, vector<32x32xbf16>, vector<32x32xf32> -> vector<32x32xf32>
    %c1_117 = arith.constant 1 : index
    %c0_118 = arith.constant 0 : index
    %c0_119 = arith.constant 0 : index
    %154 = vector.load %arg6[%c1_117, %c0_118, %c0_119] : memref<3x1x32xf32, #tpu.memory_space<vmem>>, vector<1x1x32xf32>
    %155 = vector.shape_cast %154 : vector<1x1x32xf32> to vector<1x32xf32>
    %c1_120 = arith.constant 1 : index
    %c0_121 = arith.constant 0 : index
    %c0_122 = arith.constant 0 : index
    %156 = vector.load %arg7[%c1_120, %c0_121, %c0_122] : memref<3x1x32xf32, #tpu.memory_space<vmem>>, vector<1x1x32xf32>
    %157 = vector.shape_cast %156 : vector<1x1x32xf32> to vector<1x32xf32>
    %cst_123 = arith.constant dense<0.000000e+00> : vector<32xf32>
    %158 = vector.multi_reduction <add>, %153, %cst_123 [0] : vector<32x32xf32> to vector<32xf32>
    %159 = vector.shape_cast %158 : vector<32xf32> to vector<1x32xf32>
    %cst_124 = arith.constant 3.125000e-02 : f32
    %160 = vector.broadcast %cst_124 : f32 to vector<1x32xf32>
    %161 = arith.mulf %159, %160 : vector<1x32xf32>
    %162 = vector.broadcast %161 : vector<1x32xf32> to vector<32x32xf32>
    %163 = arith.subf %153, %162 : vector<32x32xf32>
    %164 = arith.mulf %163, %163 : vector<32x32xf32>
    %cst_125 = arith.constant dense<0.000000e+00> : vector<32xf32>
    %165 = vector.multi_reduction <add>, %164, %cst_125 [0] : vector<32x32xf32> to vector<32xf32>
    %166 = vector.shape_cast %165 : vector<32xf32> to vector<1x32xf32>
    %cst_126 = arith.constant 3.125000e-02 : f32
    %167 = vector.broadcast %cst_126 : f32 to vector<1x32xf32>
    %168 = arith.mulf %166, %167 : vector<1x32xf32>
    %cst_127 = arith.constant 9.99999974E-6 : f32
    %169 = vector.broadcast %cst_127 : f32 to vector<1x32xf32>
    %170 = arith.addf %168, %169 : vector<1x32xf32>
    %171 = math.rsqrt %170 : vector<1x32xf32>
    %172 = vector.broadcast %171 : vector<1x32xf32> to vector<32x32xf32>
    %173 = arith.mulf %163, %172 : vector<32x32xf32>
    %174 = vector.broadcast %155 : vector<1x32xf32> to vector<32x32xf32>
    %175 = arith.mulf %173, %174 : vector<32x32xf32>
    %176 = vector.broadcast %157 : vector<1x32xf32> to vector<32x32xf32>
    %177 = arith.addf %175, %176 : vector<32x32xf32>
    %178 = arith.addf %91, %177 : vector<32x32xf32>
    %cst_128 = arith.constant 0.000000e+00 : f32
    %179 = vector.broadcast %cst_128 : f32 to vector<32x32xf32>
    %180 = arith.maximumf %178, %179 : vector<32x32xf32>
    %c0_129 = arith.constant 0 : index
    %c0_130 = arith.constant 0 : index
    %c0_131 = arith.constant 0 : index
    %181 = vector.load %arg1[%c0_129, %c0_130, %c0_131] : memref<9x32x32xf32, #tpu.memory_space<vmem>>, vector<1x32x32xf32>
    %182 = vector.shape_cast %181 : vector<1x32x32xf32> to vector<32x32xf32>
    %cst_132 = arith.constant dense<0.000000e+00> : vector<32x32xf32>
    %183 = tpu.matmul %182, %180, %cst_132 {dimension_numbers = #tpu.dot_dimension_numbers<[1], [0], [0], [1], [0, 0, 1, 1], [], []>} : vector<32x32xf32>, vector<32x32xf32>, vector<32x32xf32> -> vector<32x32xf32>
    %c1_133 = arith.constant 1 : index
    %c0_134 = arith.constant 0 : index
    %c0_135 = arith.constant 0 : index
    %184 = vector.load %arg1[%c1_133, %c0_134, %c0_135] : memref<9x32x32xf32, #tpu.memory_space<vmem>>, vector<1x32x32xf32>
    %185 = vector.shape_cast %184 : vector<1x32x32xf32> to vector<32x32xf32>
    %cst_136 = arith.constant dense<0.000000e+00> : vector<32x32xf32>
    %186 = tpu.matmul %185, %180, %cst_136 {dimension_numbers = #tpu.dot_dimension_numbers<[1], [0], [0], [1], [0, 0, 1, 1], [], []>} : vector<32x32xf32>, vector<32x32xf32>, vector<32x32xf32> -> vector<32x32xf32>
    %c2_137 = arith.constant 2 : index
    %c0_138 = arith.constant 0 : index
    %c0_139 = arith.constant 0 : index
    %187 = vector.load %arg1[%c2_137, %c0_138, %c0_139] : memref<9x32x32xf32, #tpu.memory_space<vmem>>, vector<1x32x32xf32>
    %188 = vector.shape_cast %187 : vector<1x32x32xf32> to vector<32x32xf32>
    %cst_140 = arith.constant dense<0.000000e+00> : vector<32x32xf32>
    %189 = tpu.matmul %188, %180, %cst_140 {dimension_numbers = #tpu.dot_dimension_numbers<[1], [0], [0], [1], [0, 0, 1, 1], [], []>} : vector<32x32xf32>, vector<32x32xf32>, vector<32x32xf32> -> vector<32x32xf32>
    %c3_141 = arith.constant 3 : index
    %c0_142 = arith.constant 0 : index
    %c0_143 = arith.constant 0 : index
    %190 = vector.load %arg1[%c3_141, %c0_142, %c0_143] : memref<9x32x32xf32, #tpu.memory_space<vmem>>, vector<1x32x32xf32>
    %191 = vector.shape_cast %190 : vector<1x32x32xf32> to vector<32x32xf32>
    %cst_144 = arith.constant dense<0.000000e+00> : vector<32x32xf32>
    %192 = tpu.matmul %191, %180, %cst_144 {dimension_numbers = #tpu.dot_dimension_numbers<[1], [0], [0], [1], [0, 0, 1, 1], [], []>} : vector<32x32xf32>, vector<32x32xf32>, vector<32x32xf32> -> vector<32x32xf32>
    %c4_145 = arith.constant 4 : index
    %c0_146 = arith.constant 0 : index
    %c0_147 = arith.constant 0 : index
    %193 = vector.load %arg1[%c4_145, %c0_146, %c0_147] : memref<9x32x32xf32, #tpu.memory_space<vmem>>, vector<1x32x32xf32>
    %194 = vector.shape_cast %193 : vector<1x32x32xf32> to vector<32x32xf32>
    %cst_148 = arith.constant dense<0.000000e+00> : vector<32x32xf32>
    %195 = tpu.matmul %194, %180, %cst_148 {dimension_numbers = #tpu.dot_dimension_numbers<[1], [0], [0], [1], [0, 0, 1, 1], [], []>} : vector<32x32xf32>, vector<32x32xf32>, vector<32x32xf32> -> vector<32x32xf32>
    %c5_149 = arith.constant 5 : index
    %c0_150 = arith.constant 0 : index
    %c0_151 = arith.constant 0 : index
    %196 = vector.load %arg1[%c5_149, %c0_150, %c0_151] : memref<9x32x32xf32, #tpu.memory_space<vmem>>, vector<1x32x32xf32>
    %197 = vector.shape_cast %196 : vector<1x32x32xf32> to vector<32x32xf32>
    %cst_152 = arith.constant dense<0.000000e+00> : vector<32x32xf32>
    %198 = tpu.matmul %197, %180, %cst_152 {dimension_numbers = #tpu.dot_dimension_numbers<[1], [0], [0], [1], [0, 0, 1, 1], [], []>} : vector<32x32xf32>, vector<32x32xf32>, vector<32x32xf32> -> vector<32x32xf32>
    %c6_153 = arith.constant 6 : index
    %c0_154 = arith.constant 0 : index
    %c0_155 = arith.constant 0 : index
    %199 = vector.load %arg1[%c6_153, %c0_154, %c0_155] : memref<9x32x32xf32, #tpu.memory_space<vmem>>, vector<1x32x32xf32>
    %200 = vector.shape_cast %199 : vector<1x32x32xf32> to vector<32x32xf32>
    %cst_156 = arith.constant dense<0.000000e+00> : vector<32x32xf32>
    %201 = tpu.matmul %200, %180, %cst_156 {dimension_numbers = #tpu.dot_dimension_numbers<[1], [0], [0], [1], [0, 0, 1, 1], [], []>} : vector<32x32xf32>, vector<32x32xf32>, vector<32x32xf32> -> vector<32x32xf32>
    %c7_157 = arith.constant 7 : index
    %c0_158 = arith.constant 0 : index
    %c0_159 = arith.constant 0 : index
    %202 = vector.load %arg1[%c7_157, %c0_158, %c0_159] : memref<9x32x32xf32, #tpu.memory_space<vmem>>, vector<1x32x32xf32>
    %203 = vector.shape_cast %202 : vector<1x32x32xf32> to vector<32x32xf32>
    %cst_160 = arith.constant dense<0.000000e+00> : vector<32x32xf32>
    %204 = tpu.matmul %203, %180, %cst_160 {dimension_numbers = #tpu.dot_dimension_numbers<[1], [0], [0], [1], [0, 0, 1, 1], [], []>} : vector<32x32xf32>, vector<32x32xf32>, vector<32x32xf32> -> vector<32x32xf32>
    %c8_161 = arith.constant 8 : index
    %c0_162 = arith.constant 0 : index
    %c0_163 = arith.constant 0 : index
    %205 = vector.load %arg1[%c8_161, %c0_162, %c0_163] : memref<9x32x32xf32, #tpu.memory_space<vmem>>, vector<1x32x32xf32>
    %206 = vector.shape_cast %205 : vector<1x32x32xf32> to vector<32x32xf32>
    %cst_164 = arith.constant dense<0.000000e+00> : vector<32x32xf32>
    %207 = tpu.matmul %206, %180, %cst_164 {dimension_numbers = #tpu.dot_dimension_numbers<[1], [0], [0], [1], [0, 0, 1, 1], [], []>} : vector<32x32xf32>, vector<32x32xf32>, vector<32x32xf32> -> vector<32x32xf32>
    %208 = tpu.concatenate %183, %186, %189, %192, %195, %198, %201, %204, %207 in 1 : vector<32x32xf32>, vector<32x32xf32>, vector<32x32xf32>, vector<32x32xf32>, vector<32x32xf32>, vector<32x32xf32>, vector<32x32xf32>, vector<32x32xf32>, vector<32x32xf32> -> vector<32x288xf32>
    %209 = arith.truncf %208 : vector<32x288xf32> to vector<32x288xbf16>
    %c2_165 = arith.constant 2 : index
    %c0_166 = arith.constant 0 : index
    %c0_167 = arith.constant 0 : index
    %210 = vector.load %arg2[%c2_165, %c0_166, %c0_167] : memref<3x288x32xbf16, #tpu.memory_space<vmem>>, vector<1x288x32xbf16>
    %211 = vector.shape_cast %210 : vector<1x288x32xbf16> to vector<288x32xbf16>
    %cst_168 = arith.constant dense<0.000000e+00> : vector<32x32xf32>
    %212 = tpu.matmul %209, %211, %cst_168 {dimension_numbers = #tpu.dot_dimension_numbers<[1], [0], [0], [1], [0, 0, 1, 1], [], []>} : vector<32x288xbf16>, vector<288x32xbf16>, vector<32x32xf32> -> vector<32x32xf32>
    %c2_169 = arith.constant 2 : index
    %c0_170 = arith.constant 0 : index
    %c0_171 = arith.constant 0 : index
    %213 = vector.load %arg3[%c2_169, %c0_170, %c0_171] : memref<3x1x32xf32, #tpu.memory_space<vmem>>, vector<1x1x32xf32>
    %214 = vector.shape_cast %213 : vector<1x1x32xf32> to vector<1x32xf32>
    %c2_172 = arith.constant 2 : index
    %c0_173 = arith.constant 0 : index
    %c0_174 = arith.constant 0 : index
    %215 = vector.load %arg4[%c2_172, %c0_173, %c0_174] : memref<3x1x32xf32, #tpu.memory_space<vmem>>, vector<1x1x32xf32>
    %216 = vector.shape_cast %215 : vector<1x1x32xf32> to vector<1x32xf32>
    %cst_175 = arith.constant dense<0.000000e+00> : vector<32xf32>
    %217 = vector.multi_reduction <add>, %212, %cst_175 [0] : vector<32x32xf32> to vector<32xf32>
    %218 = vector.shape_cast %217 : vector<32xf32> to vector<1x32xf32>
    %cst_176 = arith.constant 3.125000e-02 : f32
    %219 = vector.broadcast %cst_176 : f32 to vector<1x32xf32>
    %220 = arith.mulf %218, %219 : vector<1x32xf32>
    %221 = vector.broadcast %220 : vector<1x32xf32> to vector<32x32xf32>
    %222 = arith.subf %212, %221 : vector<32x32xf32>
    %223 = arith.mulf %222, %222 : vector<32x32xf32>
    %cst_177 = arith.constant dense<0.000000e+00> : vector<32xf32>
    %224 = vector.multi_reduction <add>, %223, %cst_177 [0] : vector<32x32xf32> to vector<32xf32>
    %225 = vector.shape_cast %224 : vector<32xf32> to vector<1x32xf32>
    %cst_178 = arith.constant 3.125000e-02 : f32
    %226 = vector.broadcast %cst_178 : f32 to vector<1x32xf32>
    %227 = arith.mulf %225, %226 : vector<1x32xf32>
    %cst_179 = arith.constant 9.99999974E-6 : f32
    %228 = vector.broadcast %cst_179 : f32 to vector<1x32xf32>
    %229 = arith.addf %227, %228 : vector<1x32xf32>
    %230 = math.rsqrt %229 : vector<1x32xf32>
    %231 = vector.broadcast %230 : vector<1x32xf32> to vector<32x32xf32>
    %232 = arith.mulf %222, %231 : vector<32x32xf32>
    %233 = vector.broadcast %214 : vector<1x32xf32> to vector<32x32xf32>
    %234 = arith.mulf %232, %233 : vector<32x32xf32>
    %235 = vector.broadcast %216 : vector<1x32xf32> to vector<32x32xf32>
    %236 = arith.addf %234, %235 : vector<32x32xf32>
    %cst_180 = arith.constant 0.000000e+00 : f32
    %237 = vector.broadcast %cst_180 : f32 to vector<32x32xf32>
    %238 = arith.maximumf %236, %237 : vector<32x32xf32>
    %239 = arith.truncf %238 : vector<32x32xf32> to vector<32x32xbf16>
    %c2_181 = arith.constant 2 : index
    %c0_182 = arith.constant 0 : index
    %c0_183 = arith.constant 0 : index
    %240 = vector.load %arg5[%c2_181, %c0_182, %c0_183] : memref<3x32x32xbf16, #tpu.memory_space<vmem>>, vector<1x32x32xbf16>
    %241 = vector.shape_cast %240 : vector<1x32x32xbf16> to vector<32x32xbf16>
    %cst_184 = arith.constant dense<0.000000e+00> : vector<32x32xf32>
    %242 = tpu.matmul %239, %241, %cst_184 {dimension_numbers = #tpu.dot_dimension_numbers<[1], [0], [0], [1], [0, 0, 1, 1], [], []>} : vector<32x32xbf16>, vector<32x32xbf16>, vector<32x32xf32> -> vector<32x32xf32>
    %c2_185 = arith.constant 2 : index
    %c0_186 = arith.constant 0 : index
    %c0_187 = arith.constant 0 : index
    %243 = vector.load %arg6[%c2_185, %c0_186, %c0_187] : memref<3x1x32xf32, #tpu.memory_space<vmem>>, vector<1x1x32xf32>
    %244 = vector.shape_cast %243 : vector<1x1x32xf32> to vector<1x32xf32>
    %c2_188 = arith.constant 2 : index
    %c0_189 = arith.constant 0 : index
    %c0_190 = arith.constant 0 : index
    %245 = vector.load %arg7[%c2_188, %c0_189, %c0_190] : memref<3x1x32xf32, #tpu.memory_space<vmem>>, vector<1x1x32xf32>
    %246 = vector.shape_cast %245 : vector<1x1x32xf32> to vector<1x32xf32>
    %cst_191 = arith.constant dense<0.000000e+00> : vector<32xf32>
    %247 = vector.multi_reduction <add>, %242, %cst_191 [0] : vector<32x32xf32> to vector<32xf32>
    %248 = vector.shape_cast %247 : vector<32xf32> to vector<1x32xf32>
    %cst_192 = arith.constant 3.125000e-02 : f32
    %249 = vector.broadcast %cst_192 : f32 to vector<1x32xf32>
    %250 = arith.mulf %248, %249 : vector<1x32xf32>
    %251 = vector.broadcast %250 : vector<1x32xf32> to vector<32x32xf32>
    %252 = arith.subf %242, %251 : vector<32x32xf32>
    %253 = arith.mulf %252, %252 : vector<32x32xf32>
    %cst_193 = arith.constant dense<0.000000e+00> : vector<32xf32>
    %254 = vector.multi_reduction <add>, %253, %cst_193 [0] : vector<32x32xf32> to vector<32xf32>
    %255 = vector.shape_cast %254 : vector<32xf32> to vector<1x32xf32>
    %cst_194 = arith.constant 3.125000e-02 : f32
    %256 = vector.broadcast %cst_194 : f32 to vector<1x32xf32>
    %257 = arith.mulf %255, %256 : vector<1x32xf32>
    %cst_195 = arith.constant 9.99999974E-6 : f32
    %258 = vector.broadcast %cst_195 : f32 to vector<1x32xf32>
    %259 = arith.addf %257, %258 : vector<1x32xf32>
    %260 = math.rsqrt %259 : vector<1x32xf32>
    %261 = vector.broadcast %260 : vector<1x32xf32> to vector<32x32xf32>
    %262 = arith.mulf %252, %261 : vector<32x32xf32>
    %263 = vector.broadcast %244 : vector<1x32xf32> to vector<32x32xf32>
    %264 = arith.mulf %262, %263 : vector<32x32xf32>
    %265 = vector.broadcast %246 : vector<1x32xf32> to vector<32x32xf32>
    %266 = arith.addf %264, %265 : vector<32x32xf32>
    %267 = arith.addf %180, %266 : vector<32x32xf32>
    %c0_196 = arith.constant 0 : index
    %c0_197 = arith.constant 0 : index
    %268 = vector.load %arg8[%c0_196, %c0_197] : memref<32x32xf32, #tpu.memory_space<vmem>>, vector<32x32xf32>
    tpu.vector_store %arg8[%c0_196, %c0_197], %267 {strides = array<i32>} : memref<32x32xf32, #tpu.memory_space<vmem>>, vector<32x32xf32>,
    return
  }
}

module attributes {stable_mosaic.version = 11 : i64} {
  func.func @_vq_kernel(%arg0: memref<32x32xf32, #tpu.memory_space<vmem>>, %arg1: memref<1x64xf32, #tpu.memory_space<vmem>>, %arg2: memref<64x32xf32, #tpu.memory_space<vmem>>, %arg3: memref<32x32xf32, #tpu.memory_space<vmem>>, %arg4: memref<32x1xi32, #tpu.memory_space<vmem>>, %arg5: memref<1x1xf32, #tpu.memory_space<vmem>>) attributes {dimension_semantics = [], scalar_prefetch = 0 : i64, scratch_operands = 0 : i64, tpu.core_type = #tpu.core_type<tc>} {
    %c0 = arith.constant 0 : index
    %c0_0 = arith.constant 0 : index
    %0 = vector.load %arg0[%c0, %c0_0] : memref<32x32xf32, #tpu.memory_space<vmem>>, vector<32x32xf32>
    %c0_1 = arith.constant 0 : index
    %c0_2 = arith.constant 0 : index
    %1 = vector.load %arg2[%c0_1, %c0_2] : memref<64x32xf32, #tpu.memory_space<vmem>>, vector<64x32xf32>
    %2 = arith.mulf %0, %0 : vector<32x32xf32>
    %cst = arith.constant dense<0.000000e+00> : vector<32xf32>
    %3 = vector.multi_reduction <add>, %2, %cst [1] : vector<32x32xf32> to vector<32xf32>
    %4 = vector.shape_cast %3 : vector<32xf32> to vector<32x1xf32>
    %cst_3 = arith.constant dense<0.000000e+00> : vector<32x64xf32>
    %5 = tpu.matmul %0, %1, %cst_3 {dimension_numbers = #tpu.dot_dimension_numbers<[1], [1], [0], [0], [0, 0, 1, 0], [], []>} : vector<32x32xf32>, vector<64x32xf32>, vector<32x64xf32> -> vector<32x64xf32>
    %c0_4 = arith.constant 0 : index
    %c0_5 = arith.constant 0 : index
    %6 = vector.load %arg1[%c0_4, %c0_5] : memref<1x64xf32, #tpu.memory_space<vmem>>, vector<1x64xf32>
    %7 = vector.broadcast %4 : vector<32x1xf32> to vector<32x64xf32>
    %8 = vector.broadcast %6 : vector<1x64xf32> to vector<32x64xf32>
    %9 = arith.addf %7, %8 : vector<32x64xf32>
    %cst_6 = arith.constant 2.000000e+00 : f32
    %10 = vector.broadcast %cst_6 : f32 to vector<32x64xf32>
    %11 = arith.mulf %10, %5 : vector<32x64xf32>
    %12 = arith.subf %9, %11 : vector<32x64xf32>
    %13 = tpu.iota {dimensions = array<i32: 1>} : vector<32x64xi32>
    %cst_7 = arith.constant dense<0x7F800000> : vector<32xf32>
    %14 = vector.multi_reduction <minimumf>, %12, %cst_7 [1] : vector<32x64xf32> to vector<32xf32>
    %15 = vector.shape_cast %14 : vector<32xf32> to vector<32x1xf32>
    %16 = vector.broadcast %15 : vector<32x1xf32> to vector<32x64xf32>
    %17 = arith.cmpf oeq, %12, %16 : vector<32x64xf32>
    %c64_i32 = arith.constant 64 : i32
    %18 = vector.broadcast %c64_i32 : i32 to vector<32x64xi32>
    %19 = arith.select %17, %13, %18 : vector<32x64xi1>, vector<32x64xi32>
    %cst_8 = arith.constant dense<2147483647> : vector<32xi32>
    %20 = vector.multi_reduction <minsi>, %19, %cst_8 [1] : vector<32x64xi32> to vector<32xi32>
    %21 = vector.shape_cast %20 : vector<32xi32> to vector<32x1xi32>
    %22 = vector.broadcast %21 : vector<32x1xi32> to vector<32x64xi32>
    %23 = arith.cmpi eq, %13, %22 : vector<32x64xi32>
    %24 = arith.extui %23 : vector<32x64xi1> to vector<32x64xi32>
    %25 = arith.sitofp %24 : vector<32x64xi32> to vector<32x64xf32>
    %cst_9 = arith.constant dense<0.000000e+00> : vector<32x32xf32>
    %26 = tpu.matmul %25, %1, %cst_9 {dimension_numbers = #tpu.dot_dimension_numbers<[1], [0], [0], [1], [0, 0, 1, 1], [], []>} : vector<32x64xf32>, vector<64x32xf32>, vector<32x32xf32> -> vector<32x32xf32>
    %c0_10 = arith.constant 0 : index
    %c0_11 = arith.constant 0 : index
    %27 = vector.load %arg3[%c0_10, %c0_11] : memref<32x32xf32, #tpu.memory_space<vmem>>, vector<32x32xf32>
    tpu.vector_store %arg3[%c0_10, %c0_11], %26 {strides = array<i32>} : memref<32x32xf32, #tpu.memory_space<vmem>>, vector<32x32xf32>,
    %c0_12 = arith.constant 0 : index
    %c0_13 = arith.constant 0 : index
    %28 = vector.load %arg4[%c0_12, %c0_13] : memref<32x1xi32, #tpu.memory_space<vmem>>, vector<32x1xi32>
    tpu.vector_store %arg4[%c0_12, %c0_13], %21 {strides = array<i32>} : memref<32x1xi32, #tpu.memory_space<vmem>>, vector<32x1xi32>,
    %29 = arith.subf %26, %0 : vector<32x32xf32>
    %30 = arith.mulf %29, %29 : vector<32x32xf32>
    %cst_14 = arith.constant dense<0.000000e+00> : vector<32xf32>
    %31 = vector.multi_reduction <add>, %30, %cst_14 [1] : vector<32x32xf32> to vector<32xf32>
    %32 = vector.shape_cast %31 : vector<32xf32> to vector<32x1xf32>
    %cst_15 = arith.constant dense<0.000000e+00> : vector<1xf32>
    %33 = vector.multi_reduction <add>, %32, %cst_15 [0] : vector<32x1xf32> to vector<1xf32>
    %34 = vector.shape_cast %33 : vector<1xf32> to vector<1x1xf32>
    %cst_16 = arith.constant 0.00122070313 : f32
    %35 = vector.broadcast %cst_16 : f32 to vector<1x1xf32>
    %36 = arith.mulf %34, %35 : vector<1x1xf32>
    %c0_17 = arith.constant 0 : index
    %c0_18 = arith.constant 0 : index
    %37 = vector.load %arg5[%c0_17, %c0_18] : memref<1x1xf32, #tpu.memory_space<vmem>>, vector<1x1xf32>
    tpu.vector_store %arg5[%c0_17, %c0_18], %36 {strides = array<i32>} : memref<1x1xf32, #tpu.memory_space<vmem>>, vector<1x1xf32>,
    return
  }
}

module attributes {stable_mosaic.version = 11 : i64} {
  func.func @_mm_bn_kernel(%arg0: memref<32x288xbf16, #tpu.memory_space<vmem>>, %arg1: memref<288x128xbf16, #tpu.memory_space<vmem>>, %arg2: memref<1x128xf32, #tpu.memory_space<vmem>>, %arg3: memref<1x128xf32, #tpu.memory_space<vmem>>, %arg4: memref<1x128xf32, #tpu.memory_space<vmem>>, %arg5: memref<32x128xf32, #tpu.memory_space<vmem>>) attributes {dimension_semantics = [], scalar_prefetch = 0 : i64, scratch_operands = 0 : i64, tpu.core_type = #tpu.core_type<tc>} {
    %c0 = arith.constant 0 : index
    %c0_0 = arith.constant 0 : index
    %0 = vector.load %arg0[%c0, %c0_0] : memref<32x288xbf16, #tpu.memory_space<vmem>>, vector<32x288xbf16>
    %c0_1 = arith.constant 0 : index
    %c0_2 = arith.constant 0 : index
    %1 = vector.load %arg1[%c0_1, %c0_2] : memref<288x128xbf16, #tpu.memory_space<vmem>>, vector<288x128xbf16>
    %cst = arith.constant dense<0.000000e+00> : vector<32x128xf32>
    %2 = tpu.matmul %0, %1, %cst {dimension_numbers = #tpu.dot_dimension_numbers<[1], [0], [0], [1], [0, 0, 1, 1], [], []>} : vector<32x288xbf16>, vector<288x128xbf16>, vector<32x128xf32> -> vector<32x128xf32>
    %c0_3 = arith.constant 0 : index
    %c0_4 = arith.constant 0 : index
    %3 = vector.load %arg2[%c0_3, %c0_4] : memref<1x128xf32, #tpu.memory_space<vmem>>, vector<1x128xf32>
    %4 = vector.broadcast %3 : vector<1x128xf32> to vector<32x128xf32>
    %5 = arith.addf %2, %4 : vector<32x128xf32>
    %c0_5 = arith.constant 0 : index
    %c0_6 = arith.constant 0 : index
    %6 = vector.load %arg3[%c0_5, %c0_6] : memref<1x128xf32, #tpu.memory_space<vmem>>, vector<1x128xf32>
    %c0_7 = arith.constant 0 : index
    %c0_8 = arith.constant 0 : index
    %7 = vector.load %arg4[%c0_7, %c0_8] : memref<1x128xf32, #tpu.memory_space<vmem>>, vector<1x128xf32>
    %cst_9 = arith.constant dense<0.000000e+00> : vector<128xf32>
    %8 = vector.multi_reduction <add>, %5, %cst_9 [0] : vector<32x128xf32> to vector<128xf32>
    %9 = vector.shape_cast %8 : vector<128xf32> to vector<1x128xf32>
    %cst_10 = arith.constant 7.812500e-03 : f32
    %10 = vector.broadcast %cst_10 : f32 to vector<1x128xf32>
    %11 = arith.mulf %9, %10 : vector<1x128xf32>
    %12 = vector.extract_strided_slice %11 {offsets = [0, 0], sizes = [1, 32], strides = [1, 1]} : vector<1x128xf32> to vector<1x32xf32>
    %13 = vector.extract_strided_slice %11 {offsets = [0, 32], sizes = [1, 32], strides = [1, 1]} : vector<1x128xf32> to vector<1x32xf32>
    %14 = arith.addf %12, %13 : vector<1x32xf32>
    %15 = vector.extract_strided_slice %11 {offsets = [0, 64], sizes = [1, 32], strides = [1, 1]} : vector<1x128xf32> to vector<1x32xf32>
    %16 = arith.addf %14, %15 : vector<1x32xf32>
    %17 = vector.extract_strided_slice %11 {offsets = [0, 96], sizes = [1, 32], strides = [1, 1]} : vector<1x128xf32> to vector<1x32xf32>
    %18 = arith.addf %16, %17 : vector<1x32xf32>
    %19 = tpu.concatenate %18, %18, %18, %18 in 1 : vector<1x32xf32>, vector<1x32xf32>, vector<1x32xf32>, vector<1x32xf32> -> vector<1x128xf32>
    %20 = vector.broadcast %19 : vector<1x128xf32> to vector<32x128xf32>
    %21 = arith.subf %5, %20 : vector<32x128xf32>
    %22 = arith.mulf %21, %21 : vector<32x128xf32>
    %cst_11 = arith.constant dense<0.000000e+00> : vector<128xf32>
    %23 = vector.multi_reduction <add>, %22, %cst_11 [0] : vector<32x128xf32> to vector<128xf32>
    %24 = vector.shape_cast %23 : vector<128xf32> to vector<1x128xf32>
    %cst_12 = arith.constant 7.812500e-03 : f32
    %25 = vector.broadcast %cst_12 : f32 to vector<1x128xf32>
    %26 = arith.mulf %24, %25 : vector<1x128xf32>
    %27 = vector.extract_strided_slice %26 {offsets = [0, 0], sizes = [1, 32], strides = [1, 1]} : vector<1x128xf32> to vector<1x32xf32>
    %28 = vector.extract_strided_slice %26 {offsets = [0, 32], sizes = [1, 32], strides = [1, 1]} : vector<1x128xf32> to vector<1x32xf32>
    %29 = arith.addf %27, %28 : vector<1x32xf32>
    %30 = vector.extract_strided_slice %26 {offsets = [0, 64], sizes = [1, 32], strides = [1, 1]} : vector<1x128xf32> to vector<1x32xf32>
    %31 = arith.addf %29, %30 : vector<1x32xf32>
    %32 = vector.extract_strided_slice %26 {offsets = [0, 96], sizes = [1, 32], strides = [1, 1]} : vector<1x128xf32> to vector<1x32xf32>
    %33 = arith.addf %31, %32 : vector<1x32xf32>
    %34 = tpu.concatenate %33, %33, %33, %33 in 1 : vector<1x32xf32>, vector<1x32xf32>, vector<1x32xf32>, vector<1x32xf32> -> vector<1x128xf32>
    %cst_13 = arith.constant 9.99999974E-6 : f32
    %35 = vector.broadcast %cst_13 : f32 to vector<1x128xf32>
    %36 = arith.addf %34, %35 : vector<1x128xf32>
    %37 = math.rsqrt %36 : vector<1x128xf32>
    %38 = vector.broadcast %37 : vector<1x128xf32> to vector<32x128xf32>
    %39 = arith.mulf %21, %38 : vector<32x128xf32>
    %40 = vector.broadcast %6 : vector<1x128xf32> to vector<32x128xf32>
    %41 = arith.mulf %39, %40 : vector<32x128xf32>
    %42 = vector.broadcast %7 : vector<1x128xf32> to vector<32x128xf32>
    %43 = arith.addf %41, %42 : vector<32x128xf32>
    %cst_14 = arith.constant 0.000000e+00 : f32
    %44 = vector.broadcast %cst_14 : f32 to vector<32x128xf32>
    %45 = arith.maximumf %43, %44 : vector<32x128xf32>
    %c0_15 = arith.constant 0 : index
    %c0_16 = arith.constant 0 : index
    %46 = vector.load %arg5[%c0_15, %c0_16] : memref<32x128xf32, #tpu.memory_space<vmem>>, vector<32x128xf32>
    tpu.vector_store %arg5[%c0_15, %c0_16], %45 {strides = array<i32>} : memref<32x128xf32, #tpu.memory_space<vmem>>, vector<32x128xf32>,
    return
  }
}

module attributes {stable_mosaic.version = 11 : i64} {
  func.func @_mm_bn_kernel(%arg0: memref<128x288xbf16, #tpu.memory_space<vmem>>, %arg1: memref<288x12xbf16, #tpu.memory_space<vmem>>, %arg2: memref<1x12xf32, #tpu.memory_space<vmem>>, %arg3: memref<128x12xf32, #tpu.memory_space<vmem>>) attributes {dimension_semantics = [], scalar_prefetch = 0 : i64, scratch_operands = 0 : i64, tpu.core_type = #tpu.core_type<tc>} {
    %c0 = arith.constant 0 : index
    %c0_0 = arith.constant 0 : index
    %0 = vector.load %arg0[%c0, %c0_0] : memref<128x288xbf16, #tpu.memory_space<vmem>>, vector<128x288xbf16>
    %c0_1 = arith.constant 0 : index
    %c0_2 = arith.constant 0 : index
    %1 = vector.load %arg1[%c0_1, %c0_2] : memref<288x12xbf16, #tpu.memory_space<vmem>>, vector<288x12xbf16>
    %cst = arith.constant dense<0.000000e+00> : vector<128x12xf32>
    %2 = tpu.matmul %0, %1, %cst {dimension_numbers = #tpu.dot_dimension_numbers<[1], [0], [0], [1], [0, 0, 1, 1], [], []>} : vector<128x288xbf16>, vector<288x12xbf16>, vector<128x12xf32> -> vector<128x12xf32>
    %c0_3 = arith.constant 0 : index
    %c0_4 = arith.constant 0 : index
    %3 = vector.load %arg2[%c0_3, %c0_4] : memref<1x12xf32, #tpu.memory_space<vmem>>, vector<1x12xf32>
    %4 = vector.broadcast %3 : vector<1x12xf32> to vector<128x12xf32>
    %5 = arith.addf %2, %4 : vector<128x12xf32>
    %c0_5 = arith.constant 0 : index
    %c0_6 = arith.constant 0 : index
    %6 = vector.load %arg3[%c0_5, %c0_6] : memref<128x12xf32, #tpu.memory_space<vmem>>, vector<128x12xf32>
    tpu.vector_store %arg3[%c0_5, %c0_6], %5 {strides = array<i32>} : memref<128x12xf32, #tpu.memory_space<vmem>>, vector<128x12xf32>,
    return
  }
}

</mosaic_0001>

<bundles_post_ra>
// kernel: vqvae_forward.7
= control target key start
LH: loop header
LB: loop body
LE: loop exit
PB: predicated region body
PF: predicated region fallthrough
CT: control target
= control target key end

     0   :  { %vm108_vm0 = vcmask 392192   ;;  %vm232_vm1 = vcmask 261120   ;;  %s777_s1 = inlined_call_operand.vmem [shape: bf16[48,32], index: 1, kind: input, shape index: {}]   ;;  %s778_s0 = inlined_call_operand.vmem [shape: bf16[128,48], index: 0, kind: input, shape index: {}]   ;;  %s779_s2 = inlined_call_operand.vmem [shape: f32[1,32], index: 2, kind: input, shape index: {}]   ;;  %s780_s3 = inlined_call_operand.vmem [shape: f32[1,32], index: 3, kind: input, shape index: {}]   ;;  %s781_s4 = inlined_call_operand.vmem [shape: f32[1,32], index: 4, kind: input, shape index: {}]   ;;  %s782_s5 = inlined_call_operand.vmem [shape: f32[128,32], index: 5, kind: output, shape index: {}]  }
   0x1   :  { %v500_v0 = vld [vmem:[%s777_s1] sm:$0xff]   ;;  %v501_v1 = vld [vmem:[%s777_s1 + $0x8] sm:$0xff]   ;;  %v502_v3 = vld [vmem:[%s777_s1 + $0x10] sm:$0xff]  }
   0x2   :  { %472 = vmatprep.subr.bf16.mxu0 %v500_v0  ;;  %494 = vmatprep.subr.bf16.mxu1 %v500_v0  ;;  %v503_v2 = vld [vmem:[%s778_s0] sm:$0xff]   ;;  %v504_v5 = vld [vmem:[%s778_s0 + $0x8] sm:$0xff]   ;;  %v505_v7 = vld [vmem:[%s778_s0 + $0x10] sm:$0xff]  }
   0x3   :  { %473 = vmatpush3.bf16.msra.mxu0 %v500_v0  ;;  %497 = vmatpush3.bf16.msra.mxu1 %v500_v0  ;;  %v507_v4 = vld [vmem:[%s778_s0 + $0x20] sm:$0xff]   ;;  %v508_v6 = vld [vmem:[%s778_s0 + $0x28] sm:$0xff]   ;;  %v509_v8 = vld [vmem:[%s778_s0 + $0x30] sm:$0xff]  }
   0x4   :  { %474 = vmatprep.subr.bf16.mxu0 %v501_v1  ;;  %495 = vmatprep.subr.bf16.mxu1 %v501_v1  ;;  %v506_v9 = vld [vmem:[%s778_s0 + $0x18] sm:$0xff]   ;;  %v439_v11 = vld [vmem:[%s779_s2] ss:$0 sm:$0xff] }
   0x5   :  { %478 = vmatprep.mubr.msk.bf16.mxu0 %vm108_vm0, %v503_v2  ;;  %486 = vmatprep.mubr.msk.bf16.mxu1 %vm108_vm0, %v507_v4  ;;  %v510_v10 = vld [vmem:[%s778_s0 + $0x38] sm:$0xff]  }
   0x7   :  { %475 = vmatpush3.bf16.msra.mxu0 %v501_v1  ;;  %498 = vmatpush3.bf16.msra.mxu1 %v501_v1 }
   0x8   :  { %476 = vmatprep.subr.bf16.mxu0 %v502_v3  ;;  %496 = vmatprep.subr.bf16.mxu1 %v502_v3 }
   0xb   :  { %477 = vmatpush3.bf16.msra.mxu0 %v502_v3  ;;  %499 = vmatpush3.bf16.msra.mxu1 %v502_v3 }
   0xe   :  { %479 = vmatmul.mubr.msk.bf16.vlgmr.msra.gmra.mrb[0].mxu0 %vm108_vm0, %v504_v5  ;;  %487 = vmatmul.mubr.msk.bf16.vlgmr.msra.gmra.mrb[0].mxu1 %vm108_vm0, %v508_v6 }
   0xf   :  { %482 = vmatprep.mubr.msk.bf16.mxu0 %vm108_vm0, %v505_v7  ;;  %490 = vmatprep.mubr.msk.bf16.mxu1 %vm108_vm0, %v509_v8 }
  0x16   :  { %483 = vmatmul.mubr.msk.bf16.gmra.mrb[4].mxu0 %vm108_vm0, %v506_v9  ;;  %491 = vmatmul.mubr.msk.bf16.gmra.mrb[4].mxu1 %vm108_vm0, %v510_v10 }
  0xe1   :  { %v480_v12 = vpop.f32.mrb[0].mxu0  ;;  %v488_v13 = vpop.f32.mrb[0].mxu1 }
  0xe2   :  { %v167_v14 = vpop.f32.mrb[1].mxu0  ;;  %v199_v15 = vpop.f32.mrb[1].mxu1  ;;  %v589_v21 = vadd.f32 %v480_v12, %v439_v11  ;;  %v208_v54 = vadd.f32 %v488_v13, %v439_v11 }
  0xe3   :  { %v587_v16 = vadd.f32 %v439_v11, %v167_v14  ;;  %v481_v17 = vpop.f32.mrb[2].mxu0  ;;  %v489_v18 = vpop.f32.mrb[2].mxu1  ;;  %v200_v46 = vadd.f32 %v439_v11, %v199_v15 }
  0xe4   :  { %v170_v19 = vpop.f32.mrb[3].mxu0  ;;  %v202_v20 = vpop.f32.mrb[3].mxu1  ;;  %v179_v24 = vadd.f32 %v481_v17, %v439_v11  ;;  %v236_v27 = vsel %vm232_vm1, %v589_v21, 0.0  ;;  %v211_v56 = vadd.f32 %v489_v18, %v439_v11  ;;  %v252_v60 = vsel %vm232_vm1, %v208_v54, 0.0 }
  0xe5   :  { %v171_v22 = vadd.f32 %v439_v11, %v170_v19  ;;  %v233_v23 = vsel %vm232_vm1, %v587_v16, 0.0  ;;  %v248_v51 = vsel %vm232_vm1, %v200_v46, 0.0  ;;  %v203_v52 = vadd.f32 %v439_v11, %v202_v20 }
  0xe6   :  { %v238_v33 = vsel %vm232_vm1, %v179_v24, 0.0  ;;  %v254_v62 = vsel %vm232_vm1, %v211_v56, 0.0 }
  0xe7   :  { %v234_v25 = vsel %vm232_vm1, %v171_v22, 0.0  ;;  %v250_v57 = vsel %vm232_vm1, %v203_v52, 0.0 }
  0xe8   :  { %v235_v26 = vadd.f32 %v234_v25, %v233_v23 }
  0xe9   :  { %v484_v28 = vpop.f32.mrb[4].mxu0  ;;  %v492_v29 = vpop.f32.mrb[4].mxu1 }
  0xea   :  { %v237_v30 = vadd.f32 %v236_v27, %v235_v26  ;;  %v183_v31 = vpop.f32.mrb[5].mxu0  ;;  %v215_v32 = vpop.f32.mrb[5].mxu1  ;;  %v192_v40 = vadd.f32 %v484_v28, %v439_v11  ;;  %v224_v2 = vadd.f32 %v492_v29, %v439_v11 }
  0xeb   :  { %v184_v34 = vadd.f32 %v439_v11, %v183_v31  ;;  %v485_v35 = vpop.f32.mrb[6].mxu0  ;;  %v493_v36 = vpop.f32.mrb[6].mxu1  ;;  %v216_v58 = vadd.f32 %v439_v11, %v215_v32 }
  0xec   :  { %v239_v37 = vadd.f32 %v238_v33, %v237_v30  ;;  %v186_v38 = vpop.f32.mrb[7].mxu0  ;;  %v218_v39 = vpop.f32.mrb[7].mxu1  ;;  %v195_v44 = vadd.f32 %v485_v35, %v439_v11  ;;  %v244_v48 = vsel %vm232_vm1, %v192_v40, 0.0  ;;  %v227_v4 = vadd.f32 %v493_v36, %v439_v11 }
  0xed   :  { %v240_v41 = vsel %vm232_vm1, %v184_v34, 0.0  ;;  %v187_v42 = vadd.f32 %v439_v11, %v186_v38  ;;  %v256_v63 = vsel %vm232_vm1, %v216_v58, 0.0  ;;  %v219_v0 = vadd.f32 %v439_v11, %v218_v39 }
  0xee   :  { %v241_v43 = vadd.f32 %v240_v41, %v239_v37  ;;  %v246_v50 = vsel %vm232_vm1, %v195_v44, 0.0  ;;  %v260_v7 = vsel %vm232_vm1, %v224_v2, 0.0  ;;  %v262_v9 = vsel %vm232_vm1, %v227_v4, 0.0 }
  0xef   :  { %v242_v45 = vsel %vm232_vm1, %v187_v42, 0.0  ;;  %v258_v5 = vsel %vm232_vm1, %v219_v0, 0.0 }
  0xf0   :  { %v243_v47 = vadd.f32 %v242_v45, %v241_v43 }
  0xf2   :  { %v245_v49 = vadd.f32 %v244_v48, %v243_v47 }
  0xf4   :  { %v247_v53 = vadd.f32 %v246_v50, %v245_v49 }
  0xf6   :  { %v249_v55 = vadd.f32 %v248_v51, %v247_v53 }
  0xf8   :  { %v251_v59 = vadd.f32 %v250_v57, %v249_v55 }
  0xfa   :  { %v253_v61 = vadd.f32 %v252_v60, %v251_v59 }
  0xfc   :  { %v255_v1 = vadd.f32 %v254_v62, %v253_v61 }
  0xfe   :  { %v257_v3 = vadd.f32 %v256_v63, %v255_v1 }
 0x100   :  { %v259_v6 = vadd.f32 %v258_v5, %v257_v3 }
 0x102   :  { %v261_v8 = vadd.f32 %v260_v7, %v259_v6 }
 0x104   :  { %v263_v10 = vadd.f32 %v262_v9, %v261_v8 }
 0x106   :  { %v264_v12 = vrot.slane %v263_v10, 4 }
 0x108   :  { %v265_v13 = vadd.f32 %v264_v12, %v263_v10 }
 0x10a   :  { %v266_v14 = vrot.slane %v265_v13, 2 }
 0x10c   :  { %v267_v15 = vadd.f32 %v266_v14, %v265_v13 }
 0x10e   :  { %v268_v17 = vrot.slane %v267_v15, 1 }
 0x110   :  { %v269_v18 = vadd.f32 %v268_v17, %v267_v15 }
 0x112   :  { %v270_v19 = vmul.f32 0.0078125, %v269_v18 }
 0x114   :  { %v610_v20 = vsub.f32 %v587_v16, %v270_v19  ;;  %v612_v11 = vsub.f32 %v171_v22, %v270_v19  ;;  %v615_v23 = vsub.f32 %v589_v21, %v270_v19  ;;  %v617_v25 = vsub.f32 %v179_v24, %v270_v19 }
 0x115   :  { %v619_v26 = vsub.f32 %v184_v34, %v270_v19  ;;  %v621_v27 = vsub.f32 %v187_v42, %v270_v19  ;;  %v623_v28 = vsub.f32 %v192_v40, %v270_v19  ;;  %v625_v29 = vsub.f32 %v195_v44, %v270_v19 }
 0x116   :  { %v627_v30 = vsub.f32 %v200_v46, %v270_v19  ;;  %v629_v31 = vsub.f32 %v203_v52, %v270_v19  ;;  %v631_v16 = vsub.f32 %v208_v54, %v270_v19  ;;  %v633_v22 = vsub.f32 %v211_v56, %v270_v19 }
 0x117   :  { %v635_v21 = vsub.f32 %v216_v58, %v270_v19  ;;  %v637_v24 = vsub.f32 %v219_v0, %v270_v19  ;;  %v639_v32 = vsub.f32 %v224_v2, %v270_v19  ;;  %v641_v33 = vsub.f32 %v227_v4, %v270_v19 }
 0x118   :  { %v287_v34 = vmul.f32 %v610_v20, %v610_v20  ;;  %v288_v35 = vmul.f32 %v612_v11, %v612_v11  ;;  %v289_v36 = vmul.f32 %v615_v23, %v615_v23  ;;  %v290_v37 = vmul.f32 %v617_v25, %v617_v25 }
 0x119   :  { %v291_v41 = vmul.f32 %v619_v26, %v619_v26  ;;  %v292_v44 = vmul.f32 %v621_v27, %v621_v27  ;;  %v293_v47 = vmul.f32 %v623_v28, %v623_v28  ;;  %v294_v50 = vmul.f32 %v625_v29, %v625_v29 }
 0x11a   :  { %v303_v38 = vsel %vm232_vm1, %v287_v34, 0.0  ;;  %v304_v39 = vsel %vm232_vm1, %v288_v35, 0.0  ;;  %v306_v42 = vsel %vm232_vm1, %v289_v36, 0.0  ;;  %v308_v45 = vsel %vm232_vm1, %v290_v37, 0.0 }
 0x11b   :  { %v305_v40 = vadd.f32 %v304_v39, %v303_v38  ;;  %v310_v48 = vsel %vm232_vm1, %v291_v41, 0.0  ;;  %v312_v51 = vsel %vm232_vm1, %v292_v44, 0.0  ;;  %v295_v53 = vmul.f32 %v627_v30, %v627_v30 }
 0x11c   :  { %v314_v54 = vsel %vm232_vm1, %v293_v47, 0.0  ;;  %v296_v56 = vmul.f32 %v629_v31, %v629_v31  ;;  %v316_v57 = vsel %vm232_vm1, %v294_v50, 0.0  ;;  %v297_v59 = vmul.f32 %v631_v16, %v631_v16 }
 0x11d   :  { %v307_v43 = vadd.f32 %v306_v42, %v305_v40  ;;  %v318_v60 = vsel %vm232_vm1, %v295_v53, 0.0  ;;  %v298_v62 = vmul.f32 %v633_v22, %v633_v22  ;;  %v299_v1 = vmul.f32 %v635_v21, %v635_v21 }
 0x11e   :  { %v320_v63 = vsel %vm232_vm1, %v296_v56, 0.0  ;;  %v322_v2 = vsel %vm232_vm1, %v297_v59, 0.0  ;;  %v300_v4 = vmul.f32 %v637_v24, %v637_v24  ;;  %v301_v7 = vmul.f32 %v639_v32, %v639_v32 }
 0x11f   :  { %v309_v46 = vadd.f32 %v308_v45, %v307_v43  ;;  %v324_v5 = vsel %vm232_vm1, %v298_v62, 0.0  ;;  %v326_v8 = vsel %vm232_vm1, %v299_v1, 0.0  ;;  %v302_v10 = vmul.f32 %v641_v33, %v641_v33 }
 0x120   :  { %v328_v12 = vsel %vm232_vm1, %v300_v4, 0.0  ;;  %v330_v14 = vsel %vm232_vm1, %v301_v7, 0.0 }
 0x121   :  { %v311_v49 = vadd.f32 %v310_v48, %v309_v46  ;;  %v332_v17 = vsel %vm232_vm1, %v302_v10, 0.0  ;;  %v459_v46 = vld [vmem:[%s780_s3] ss:$0 sm:$0xff] }
 0x123   :  { %v313_v52 = vadd.f32 %v312_v51, %v311_v49 }
 0x125   :  { %v315_v55 = vadd.f32 %v314_v54, %v313_v52 }
 0x127   :  { %v317_v58 = vadd.f32 %v316_v57, %v315_v55 }
 0x129   :  { %v319_v61 = vadd.f32 %v318_v60, %v317_v58 }
 0x12b   :  { %v321_v0 = vadd.f32 %v320_v63, %v319_v61 }
 0x12d   :  { %v323_v3 = vadd.f32 %v322_v2, %v321_v0 }
 0x12f   :  { %v325_v6 = vadd.f32 %v324_v5, %v323_v3 }
 0x131   :  { %v327_v9 = vadd.f32 %v326_v8, %v325_v6 }
 0x133   :  { %v329_v13 = vadd.f32 %v328_v12, %v327_v9 }
 0x135   :  { %v331_v15 = vadd.f32 %v330_v14, %v329_v13 }
 0x137   :  { %v333_v18 = vadd.f32 %v332_v17, %v331_v15 }
 0x139   :  { %v334_v19 = vrot.slane %v333_v18, 4 }
 0x13b   :  { %v335_v34 = vadd.f32 %v334_v19, %v333_v18 }
 0x13d   :  { %v336_v35 = vrot.slane %v335_v34, 2 }
 0x13f   :  { %v337_v36 = vadd.f32 %v336_v35, %v335_v34 }
 0x141   :  { %v338_v37 = vrot.slane %v337_v36, 1 }
 0x143   :  { %v339_v38 = vadd.f32 %v338_v37, %v337_v36 }
 0x145   :  { %v340_v39 = vmul.f32 0.0078125, %v339_v38 }
 0x147   :  { %v341_v40 = vadd.f32 1e-05, %v340_v39 }
 0x149   :  { %511 = vrsqrt.f32 %v341_v40 }
 0x153   :  { %v512_v41 = vpop.eup %511 }
 0x154   :  { %v343_v42 = vmul.f32 %v512_v41, %v610_v20  ;;  %v344_v43 = vmul.f32 %v512_v41, %v612_v11  ;;  %v345_v44 = vmul.f32 %v512_v41, %v615_v23  ;;  %v346_v45 = vmul.f32 %v512_v41, %v617_v25 }
 0x155   :  { %v347_v47 = vmul.f32 %v512_v41, %v619_v26  ;;  %v348_v48 = vmul.f32 %v512_v41, %v621_v27  ;;  %v349_v49 = vmul.f32 %v512_v41, %v623_v28  ;;  %v350_v50 = vmul.f32 %v512_v41, %v625_v29 }
 0x156   :  { %v351_v20 = vmul.f32 %v512_v41, %v627_v30  ;;  %v352_v11 = vmul.f32 %v512_v41, %v629_v31  ;;  %v353_v23 = vmul.f32 %v512_v41, %v631_v16  ;;  %v354_v25 = vmul.f32 %v512_v41, %v633_v22  ;;  %v460_v30 = vld [vmem:[%s781_s4] ss:$0 sm:$0xff] }
 0x157   :  { %v355_v51 = vmul.f32 %v512_v41, %v635_v21  ;;  %v356_v52 = vmul.f32 %v512_v41, %v637_v24  ;;  %v357_v26 = vmul.f32 %v512_v41, %v639_v32  ;;  %v358_v27 = vmul.f32 %v512_v41, %v641_v33 }
 0x158   :  { %v365_v53 = vmul.f32 %v459_v46, %v343_v42  ;;  %v366_v28 = vmul.f32 %v459_v46, %v344_v43  ;;  %v367_v54 = vmul.f32 %v459_v46, %v345_v44  ;;  %v368_v29 = vmul.f32 %v459_v46, %v346_v45 }
 0x159   :  { %v369_v31 = vmul.f32 %v459_v46, %v347_v47  ;;  %v370_v16 = vmul.f32 %v459_v46, %v348_v48  ;;  %v371_v55 = vmul.f32 %v459_v46, %v349_v49  ;;  %v372_v22 = vmul.f32 %v459_v46, %v350_v50 }
 0x15a   :  { %v373_v56 = vmul.f32 %v459_v46, %v351_v20  ;;  %v374_v21 = vmul.f32 %v459_v46, %v352_v11  ;;  %v375_v57 = vmul.f32 %v459_v46, %v353_v23  ;;  %v376_v24 = vmul.f32 %v459_v46, %v354_v25 }
 0x15b   :  { %v377_v58 = vmul.f32 %v459_v46, %v355_v51  ;;  %v378_v32 = vmul.f32 %v459_v46, %v356_v52  ;;  %v379_v59 = vmul.f32 %v459_v46, %v357_v26  ;;  %v380_v33 = vmul.f32 %v459_v46, %v358_v27 }
 0x15c   :  { %v387_v60 = vadd.f32 %v460_v30, %v365_v53  ;;  %v388_v61 = vadd.f32 %v460_v30, %v366_v28  ;;  %v389_v62 = vadd.f32 %v460_v30, %v367_v54  ;;  %v390_v63 = vadd.f32 %v460_v30, %v368_v29 }
 0x15d   :  { %v391_v0 = vadd.f32 %v460_v30, %v369_v31  ;;  %v392_v1 = vadd.f32 %v460_v30, %v370_v16  ;;  %v393_v2 = vadd.f32 %v460_v30, %v371_v55  ;;  %v394_v3 = vadd.f32 %v460_v30, %v372_v22 }
 0x15e   :  { %v395_v4 = vadd.f32 %v460_v30, %v373_v56  ;;  %v396_v5 = vadd.f32 %v460_v30, %v374_v21  ;;  %v397_v6 = vadd.f32 %v460_v30, %v375_v57  ;;  %v398_v7 = vadd.f32 %v460_v30, %v376_v24 }
 0x15f   :  { %v399_v8 = vadd.f32 %v460_v30, %v377_v58  ;;  %v400_v9 = vadd.f32 %v460_v30, %v378_v32  ;;  %v401_v10 = vadd.f32 %v460_v30, %v379_v59  ;;  %v402_v12 = vadd.f32 %v460_v30, %v380_v33 }
 0x160   :  { %v403_v13 = vmax.f32 %v387_v60, 0.0  ;;  %v404_v14 = vmax.f32 %v388_v61, 0.0  ;;  %v405_v15 = vmax.f32 %v389_v62, 0.0  ;;  %v406_v17 = vmax.f32 %v390_v63, 0.0 }
 0x161   :  { %v407_v18 = vmax.f32 %v391_v0, 0.0  ;;  %v408_v19 = vmax.f32 %v392_v1, 0.0  ;;  %v409_v34 = vmax.f32 %v393_v2, 0.0  ;;  %v410_v35 = vmax.f32 %v394_v3, 0.0 }
 0x162   :  { %v411_v36 = vmax.f32 %v395_v4, 0.0  ;;  %v412_v37 = vmax.f32 %v396_v5, 0.0  ;;  %v413_v38 = vmax.f32 %v397_v6, 0.0  ;;  %v414_v39 = vmax.f32 %v398_v7, 0.0  ;;  %419 = vst.msk [vmem:[%s782_s5] sm:$0xff] %vm232_vm1, %v403_v13  ;;  %420 = vst.msk [vmem:[%s782_s5 + $0x8] sm:$0xff] %vm232_vm1, %v404_v14 }
 0x163   :  { %421 = vst.msk [vmem:[%s782_s5 + $0x10] sm:$0xff] %vm232_vm1, %v405_v15  ;;  %422 = vst.msk [vmem:[%s782_s5 + $0x18] sm:$0xff] %vm232_vm1, %v406_v17  ;;  %v415_v40 = vmax.f32 %v399_v8, 0.0  ;;  %v416_v41 = vmax.f32 %v400_v9, 0.0  ;;  %v417_v42 = vmax.f32 %v401_v10, 0.0  ;;  %v418_v43 = vmax.f32 %v402_v12, 0.0 }
 0x164   :  { %423 = vst.msk [vmem:[%s782_s5 + $0x20] sm:$0xff] %vm232_vm1, %v407_v18  ;;  %424 = vst.msk [vmem:[%s782_s5 + $0x28] sm:$0xff] %vm232_vm1, %v408_v19 }
 0x165   :  { %425 = vst.msk [vmem:[%s782_s5 + $0x30] sm:$0xff] %vm232_vm1, %v409_v34  ;;  %426 = vst.msk [vmem:[%s782_s5 + $0x38] sm:$0xff] %vm232_vm1, %v410_v35 }
 0x166   :  { %427 = vst.msk [vmem:[%s782_s5 + $0x40] sm:$0xff] %vm232_vm1, %v411_v36  ;;  %428 = vst.msk [vmem:[%s782_s5 + $0x48] sm:$0xff] %vm232_vm1, %v412_v37 }
 0x167   :  { %429 = vst.msk [vmem:[%s782_s5 + $0x50] sm:$0xff] %vm232_vm1, %v413_v38  ;;  %430 = vst.msk [vmem:[%s782_s5 + $0x58] sm:$0xff] %vm232_vm1, %v414_v39 }
 0x168   :  { %431 = vst.msk [vmem:[%s782_s5 + $0x60] sm:$0xff] %vm232_vm1, %v415_v40  ;;  %432 = vst.msk [vmem:[%s782_s5 + $0x68] sm:$0xff] %vm232_vm1, %v416_v41 }
 0x169   :  { %433 = vst.msk [vmem:[%s782_s5 + $0x70] sm:$0xff] %vm232_vm1, %v417_v42  ;;  %434 = vst.msk [vmem:[%s782_s5 + $0x78] sm:$0xff] %vm232_vm1, %v418_v43 }

// kernel: vqvae_forward.8
= control target key start
LH: loop header
LB: loop body
LE: loop exit
PB: predicated region body
PF: predicated region fallthrough
CT: control target
= control target key end

     0   :  { %vm432_vm0 = vcmask 261120   ;;  %s831_s1 = inlined_call_operand.vmem [shape: bf16[512,32], index: 1, kind: input, shape index: {}]   ;;  %s832_s0 = inlined_call_operand.vmem [shape: bf16[32,512], index: 0, kind: input, shape index: {}]   ;;  %s833_s2 = inlined_call_operand.vmem [shape: f32[1,32], index: 2, kind: input, shape index: {}]   ;;  %s834_s3 = inlined_call_operand.vmem [shape: f32[1,32], index: 3, kind: input, shape index: {}]   ;;  %s835_s4 = inlined_call_operand.vmem [shape: f32[1,32], index: 4, kind: input, shape index: {}]   ;;  %s836_s5 = inlined_call_operand.vmem [shape: f32[32,32], index: 5, kind: output, shape index: {}]  }
   0x1   :  { %v602_v0 = vld [vmem:[%s831_s1 + $0x40] sm:$0xff]   ;;  %v606_v4 = vld [vmem:[%s831_s1 + $0x48] sm:$0xff]   ;;  %v610_v8 = vld [vmem:[%s831_s1 + $0x50] sm:$0xff]  }
   0x2   :  { %v603_v1 = vld [vmem:[%s831_s1 + $0xc0] sm:$0xff]   ;;  %546 = vmatprep.subr.bf16.mxu0 %v602_v0  ;;  %v607_v5 = vld [vmem:[%s831_s1 + $0xc8] sm:$0xff]   ;;  %v611_v9 = vld [vmem:[%s831_s1 + $0xd0] sm:$0xff]  }
   0x3   :  { %v604_v2 = vld [vmem:[%s831_s1] sm:$0xff]   ;;  %574 = vmatprep.subr.bf16.mxu1 %v603_v1  ;;  %v608_v6 = vld [vmem:[%s831_s1 + $0x8] sm:$0xff]   ;;  %v612_v10 = vld [vmem:[%s831_s1 + $0x10] sm:$0xff]  }
   0x4   :  { %v605_v3 = vld [vmem:[%s831_s1 + $0x80] sm:$0xff]   ;;  %547 = vmatpush3.bf16.msra.mxu0 %v604_v2  ;;  %v609_v7 = vld [vmem:[%s831_s1 + $0x88] sm:$0xff]   ;;  %v613_v11 = vld [vmem:[%s831_s1 + $0x90] sm:$0xff]  }
   0x5   :  { %575 = vmatpush3.bf16.msra.mxu1 %v605_v3  ;;  %548 = vmatprep.subr.bf16.mxu0 %v606_v4  ;;  %v614_v12 = vld [vmem:[%s831_s1 + $0x58] sm:$0xff]   ;;  %v618_v16 = vld [vmem:[%s831_s1 + $0x60] sm:$0xff]   ;;  %v622_v20 = vld [vmem:[%s831_s1 + $0x68] sm:$0xff]  }
   0x6   :  { %576 = vmatprep.subr.bf16.mxu1 %v607_v5  ;;  %v615_v13 = vld [vmem:[%s831_s1 + $0xd8] sm:$0xff]   ;;  %v619_v17 = vld [vmem:[%s831_s1 + $0xe0] sm:$0xff]   ;;  %v623_v21 = vld [vmem:[%s831_s1 + $0xe8] sm:$0xff]  }
   0x7   :  { %v616_v14 = vld [vmem:[%s831_s1 + $0x18] sm:$0xff]   ;;  %v620_v18 = vld [vmem:[%s831_s1 + $0x20] sm:$0xff]   ;;  %v624_v22 = vld [vmem:[%s831_s1 + $0x28] sm:$0xff]  }
   0x8   :  { %549 = vmatpush3.bf16.msra.mxu0 %v608_v6  ;;  %v617_v15 = vld [vmem:[%s831_s1 + $0x98] sm:$0xff]   ;;  %v621_v19 = vld [vmem:[%s831_s1 + $0xa0] sm:$0xff]   ;;  %v625_v23 = vld [vmem:[%s831_s1 + $0xa8] sm:$0xff]  }
   0x9   :  { %577 = vmatpush3.bf16.msra.mxu1 %v609_v7  ;;  %550 = vmatprep.subr.bf16.mxu0 %v610_v8  ;;  %v626_v24 = vld [vmem:[%s831_s1 + $0x70] sm:$0xff]   ;;  %v630_v28 = vld [vmem:[%s831_s1 + $0x78] sm:$0xff]   ;;  %v503_v42 = vld [vmem:[%s833_s2] ss:$0 sm:$0xff] }
   0xa   :  { %578 = vmatprep.subr.bf16.mxu1 %v611_v9  ;;  %v627_v25 = vld [vmem:[%s831_s1 + $0xf0] sm:$0xff]   ;;  %v631_v29 = vld [vmem:[%s831_s1 + $0xf8] sm:$0xff]  }
   0xb   :  { %v628_v26 = vld [vmem:[%s831_s1 + $0x30] sm:$0xff]   ;;  %v632_v30 = vld [vmem:[%s831_s1 + $0x38] sm:$0xff]  }
   0xc   :  { %551 = vmatpush3.bf16.msra.mxu0 %v612_v10  ;;  %v629_v27 = vld [vmem:[%s831_s1 + $0xb0] sm:$0xff]   ;;  %v633_v31 = vld [vmem:[%s831_s1 + $0xb8] sm:$0xff]  }
   0xd   :  { %579 = vmatpush3.bf16.msra.mxu1 %v613_v11  ;;  %552 = vmatprep.subr.bf16.mxu0 %v614_v12  ;;  %v634_v32 = vld [vmem:[%s832_s0] ss:$16 sps:$4 sm:$0xff]   ;;  %v636_v33 = vld [vmem:[%s832_s0 + $0x4] ss:$16 sps:$4 sm:$0xff]   ;;  %v637_v34 = vld [vmem:[%s832_s0 + $0x8] ss:$16 sps:$4 sm:$0xff]  }
   0xe   :  { %580 = vmatprep.subr.bf16.mxu1 %v615_v13  ;;  %v639_v35 = vld [vmem:[%s832_s0 + $0xc] ss:$16 sps:$4 sm:$0xff]   ;;  %364 = vmatprep.mubr.bf16.mxu0 %v636_v33  ;;  %v640_v36 = vld [vmem:[%s832_s0 + $0x24] ss:$16 sps:$4 sm:$0xff]   ;;  %v644_v38 = vld [vmem:[%s832_s0 + $0x20] ss:$16 sps:$4 sm:$0xff]  }
   0xf   :  { %413 = vmatprep.mubr.bf16.mxu1 %v639_v35  ;;  %v642_v37 = vld [vmem:[%s832_s0 + $0x2c] ss:$16 sps:$4 sm:$0xff]   ;;  %v645_v39 = vld [vmem:[%s832_s0 + $0x28] ss:$16 sps:$4 sm:$0xff]  }
  0x10   :  { %553 = vmatpush3.bf16.msra.mxu0 %v616_v14 }
  0x11   :  { %581 = vmatpush3.bf16.msra.mxu1 %v617_v15  ;;  %554 = vmatprep.subr.bf16.mxu0 %v618_v16 }
  0x12   :  { %582 = vmatprep.subr.bf16.mxu1 %v619_v17 }
  0x14   :  { %555 = vmatpush3.bf16.msra.mxu0 %v620_v18 }
  0x15   :  { %583 = vmatpush3.bf16.msra.mxu1 %v621_v19  ;;  %556 = vmatprep.subr.bf16.mxu0 %v622_v20 }
  0x16   :  { %584 = vmatprep.subr.bf16.mxu1 %v623_v21 }
  0x18   :  { %557 = vmatpush3.bf16.msra.mxu0 %v624_v22 }
  0x19   :  { %585 = vmatpush3.bf16.msra.mxu1 %v625_v23  ;;  %558 = vmatprep.subr.bf16.mxu0 %v626_v24 }
  0x1a   :  { %586 = vmatprep.subr.bf16.mxu1 %v627_v25 }
  0x1c   :  { %559 = vmatpush3.bf16.msra.mxu0 %v628_v26 }
  0x1d   :  { %587 = vmatpush3.bf16.msra.mxu1 %v629_v27  ;;  %560 = vmatprep.subr.bf16.mxu0 %v630_v28 }
  0x1e   :  { %588 = vmatprep.subr.bf16.mxu1 %v631_v29 }
  0x20   :  { %561 = vmatpush3.bf16.msra.mxu0 %v632_v30 }
  0x21   :  { %589 = vmatpush3.bf16.msra.mxu1 %v633_v31 }
  0x23   :  { %365 = vmatmul.mubr.bf16.vlgmr.msra.gmra.mrb[0].mxu0 %v634_v32 }
  0x24   :  { %414 = vmatmul.mubr.bf16.vlgmr.msra.gmra.mrb[0].mxu1 %v637_v34  ;;  %372 = vmatprep.mubr.bf16.mxu0 %v640_v36 }
  0x25   :  { %421 = vmatprep.mubr.bf16.mxu1 %v642_v37 }
  0x2b   :  { %373 = vmatmul.mubr.bf16.gmra.mrb[4].mxu0 %v644_v38 }
  0x2c   :  { %422 = vmatmul.mubr.bf16.gmra.mrb[4].mxu1 %v645_v39 }
  0xf6   :  { %v562_v40 = vpop.f32.mrb[0].mxu0 }
  0xf7   :  { %v590_v41 = vpop.f32.mrb[0].mxu1  ;;  %v563_v43 = vpop.f32.mrb[1].mxu0 }
  0xf8   :  { %v564_v44 = vadd.f32 %v563_v43, %v562_v40  ;;  %v591_v45 = vpop.f32.mrb[1].mxu1  ;;  %v565_v46 = vpop.f32.mrb[2].mxu0 }
  0xf9   :  { %v592_v47 = vadd.f32 %v591_v45, %v590_v41  ;;  %v593_v48 = vpop.f32.mrb[2].mxu1  ;;  %v566_v49 = vpop.f32.mrb[3].mxu0 }
  0xfa   :  { %v367_v50 = vadd.f32 %v564_v44, %v503_v42  ;;  %v567_v51 = vadd.f32 %v566_v49, %v565_v46  ;;  %v594_v52 = vpop.f32.mrb[3].mxu1 }
  0xfb   :  { %v595_v53 = vadd.f32 %v594_v52, %v593_v48  ;;  %v545_v52 = vld [vmem:[%s835_s4] ss:$0 sm:$0xff] }
  0xfc   :  { %v416_v54 = vadd.f32 %v592_v47, %v367_v50  ;;  %v370_v55 = vadd.f32 %v567_v51, %v503_v42  ;;  %v544_v47 = vld [vmem:[%s834_s3] ss:$0 sm:$0xff] }
  0xfe   :  { %v419_v56 = vadd.f32 %v595_v53, %v370_v55  ;;  %v568_v57 = vpop.f32.mrb[4].mxu0  ;;  %v433_v60 = vsel %vm432_vm0, %v416_v54, 0.0 }
  0xff   :  { %v596_v58 = vpop.f32.mrb[4].mxu1  ;;  %v569_v59 = vpop.f32.mrb[5].mxu0 }
 0x100   :  { %v434_v61 = vsel %vm432_vm0, %v419_v56, 0.0  ;;  %v570_v62 = vadd.f32 %v569_v59, %v568_v57  ;;  %v597_v63 = vpop.f32.mrb[5].mxu1  ;;  %v571_v0 = vpop.f32.mrb[6].mxu0 }
 0x101   :  { %v435_v1 = vadd.f32 %v434_v61, %v433_v60  ;;  %v598_v2 = vadd.f32 %v597_v63, %v596_v58  ;;  %v599_v3 = vpop.f32.mrb[6].mxu1  ;;  %v572_v4 = vpop.f32.mrb[7].mxu0 }
 0x102   :  { %v375_v5 = vadd.f32 %v570_v62, %v503_v42  ;;  %v573_v6 = vadd.f32 %v572_v4, %v571_v0  ;;  %v600_v7 = vpop.f32.mrb[7].mxu1 }
 0x103   :  { %v601_v8 = vadd.f32 %v600_v7, %v599_v3 }
 0x104   :  { %v424_v9 = vadd.f32 %v598_v2, %v375_v5  ;;  %v378_v10 = vadd.f32 %v573_v6, %v503_v42 }
 0x106   :  { %v436_v11 = vsel %vm432_vm0, %v424_v9, 0.0  ;;  %v427_v12 = vadd.f32 %v601_v8, %v378_v10 }
 0x107   :  { %v437_v13 = vadd.f32 %v436_v11, %v435_v1 }
 0x108   :  { %v438_v14 = vsel %vm432_vm0, %v427_v12, 0.0 }
 0x109   :  { %v439_v15 = vadd.f32 %v438_v14, %v437_v13 }
 0x10b   :  { %v440_v16 = vrot.slane %v439_v15, 4 }
 0x10d   :  { %v441_v17 = vadd.f32 %v440_v16, %v439_v15 }
 0x10f   :  { %v442_v18 = vrot.slane %v441_v17, 2 }
 0x111   :  { %v443_v19 = vadd.f32 %v442_v18, %v441_v17 }
 0x113   :  { %v444_v20 = vrot.slane %v443_v19, 1 }
 0x115   :  { %v445_v21 = vadd.f32 %v444_v20, %v443_v19 }
 0x117   :  { %v446_v22 = vmul.f32 0.03125, %v445_v21 }
 0x119   :  { %v447_v23 = vsub.f32 %v416_v54, %v446_v22  ;;  %v448_v24 = vsub.f32 %v419_v56, %v446_v22  ;;  %v449_v25 = vsub.f32 %v424_v9, %v446_v22  ;;  %v450_v26 = vsub.f32 %v427_v12, %v446_v22 }
 0x11b   :  { %v451_v27 = vmul.f32 %v447_v23, %v447_v23  ;;  %v452_v28 = vmul.f32 %v448_v24, %v448_v24  ;;  %v453_v29 = vmul.f32 %v449_v25, %v449_v25  ;;  %v454_v30 = vmul.f32 %v450_v26, %v450_v26 }
 0x11d   :  { %v455_v31 = vsel %vm432_vm0, %v451_v27, 0.0  ;;  %v456_v32 = vsel %vm432_vm0, %v452_v28, 0.0  ;;  %v458_v34 = vsel %vm432_vm0, %v453_v29, 0.0  ;;  %v460_v36 = vsel %vm432_vm0, %v454_v30, 0.0 }
 0x11e   :  { %v457_v33 = vadd.f32 %v456_v32, %v455_v31 }
 0x120   :  { %v459_v35 = vadd.f32 %v458_v34, %v457_v33 }
 0x122   :  { %v461_v37 = vadd.f32 %v460_v36, %v459_v35 }
 0x124   :  { %v462_v38 = vrot.slane %v461_v37, 4 }
 0x126   :  { %v463_v39 = vadd.f32 %v462_v38, %v461_v37 }
 0x128   :  { %v464_v40 = vrot.slane %v463_v39, 2 }
 0x12a   :  { %v465_v41 = vadd.f32 %v464_v40, %v463_v39 }
 0x12c   :  { %v466_v42 = vrot.slane %v465_v41, 1 }
 0x12e   :  { %v467_v43 = vadd.f32 %v466_v42, %v465_v41 }
 0x130   :  { %v468_v44 = vmul.f32 0.03125, %v467_v43 }
 0x132   :  { %v469_v45 = vadd.f32 1e-05, %v468_v44 }
 0x134   :  { %646 = vrsqrt.f32 %v469_v45 }
 0x13e   :  { %v647_v46 = vpop.eup %646 }
 0x13f   :  { %v471_v48 = vmul.f32 %v647_v46, %v447_v23  ;;  %v472_v49 = vmul.f32 %v647_v46, %v448_v24  ;;  %v473_v50 = vmul.f32 %v647_v46, %v449_v25  ;;  %v474_v51 = vmul.f32 %v647_v46, %v450_v26 }
 0x141   :  { %v481_v53 = vmul.f32 %v544_v47, %v471_v48  ;;  %v482_v54 = vmul.f32 %v544_v47, %v472_v49  ;;  %v483_v55 = vmul.f32 %v544_v47, %v473_v50  ;;  %v484_v56 = vmul.f32 %v544_v47, %v474_v51 }
 0x143   :  { %v491_v57 = vadd.f32 %v545_v52, %v481_v53  ;;  %v492_v58 = vadd.f32 %v545_v52, %v482_v54  ;;  %v493_v59 = vadd.f32 %v545_v52, %v483_v55  ;;  %v494_v60 = vadd.f32 %v545_v52, %v484_v56 }
 0x145   :  { %495 = vst.msk [vmem:[%s836_s5] sm:$0xff] %vm432_vm0, %v491_v57  ;;  %496 = vst.msk [vmem:[%s836_s5 + $0x8] sm:$0xff] %vm432_vm0, %v492_v58 }
 0x146   :  { %497 = vst.msk [vmem:[%s836_s5 + $0x10] sm:$0xff] %vm432_vm0, %v493_v59  ;;  %498 = vst.msk [vmem:[%s836_s5 + $0x18] sm:$0xff] %vm432_vm0, %v494_v60 }

// kernel: vqvae_forward.10
= control target key start
LH: loop header
LB: loop body
LE: loop exit
PB: predicated region body
PF: predicated region fallthrough
CT: control target
= control target key end

     0   :  { %vm34_vm0 = vcmask 261120   ;;  %s792_s0 = inlined_call_operand.vmem [shape: f32[32,32], index: 0, kind: input, shape index: {}]   ;;  %s793_s1 = inlined_call_operand.vmem [shape: f32[1,64], index: 1, kind: input, shape index: {}]   ;;  %s794_s2 = inlined_call_operand.vmem [shape: f32[64,32], index: 2, kind: input, shape index: {}]   ;;  %s795_s3 = inlined_call_operand.vmem [shape: f32[32,32], index: 3, kind: output, shape index: {0}]   ;;  %s796_s4 = inlined_call_operand.vmem [shape: s32[32,1], index: 4, kind: output, shape index: {1}]   ;;  %s797_s5 = inlined_call_operand.hbm [shape: f32[1,1], index: 5, kind: output, shape index: {2}]  }
   0x1   :  { %v22_v0 = vld [vmem:[%s794_s2] sm:$0xff]  ;;  %v23_v1 = vld [vmem:[%s794_s2 + $0x8] sm:$0xff]  ;;  %v24_v2 = vld [vmem:[%s794_s2 + $0x10] sm:$0xff] }
   0x2   :  { %v531_v3 = vpack.c.bf16 %v23_v1, %v22_v0  ;;  %vm640_vm1 = vmpackc.low %vm34_vm0, %vm34_vm0  ;;  %v25_v5 = vld [vmem:[%s794_s2 + $0x18] sm:$0xff]  ;;  %v652_v7 = vld [vmem:[%s792_s0] sm:$0xff] }
   0x3   :  { %v537_v6 = vpack.c.bf16 %v25_v5, %v24_v2  ;;  %v657_v8 = vld [vmem:[%s792_s0 + $0x8] sm:$0xff]  ;;  %v662_v9 = vld [vmem:[%s792_s0 + $0x10] sm:$0xff]  ;;  %503 = vmatprep.mubr.msk.f32.mxu0 %vm34_vm0, %v652_v7  ;;  %v671_v10 = vld [vmem:[%s792_s0 + $0x18] sm:$0xff]  ;;  %v30_v11 = vmul.f32 %v652_v7, %v652_v7 }
   0x4   :  { %533 = vmatprep.subr.msk.bf16.mxu0 %vm640_vm1, %v531_v3  ;;  %556 = vmatprep.subr.bf16.mxu1 %v531_v3  ;;  %v32_v12 = vmul.f32 %v662_v9, %v662_v9  ;;  %v31_v13 = vmul.f32 %v657_v8, %v657_v8 }
   0x5   :  { %536 = vmatpush3.bf16.xpose.msk.msra.mxu0 %vm640_vm1, %v531_v3 }
   0x6   :  { %11 = vsyncpa [#allocation3], 0  ;;  %539 = vmatprep.subr.msk.bf16.mxu0 %vm640_vm1, %v537_v6  ;;  %v26_v14 = vld [vmem:[%s794_s2 + $0x20] sm:$0xff]  ;;  %v27_v15 = vld [vmem:[%s794_s2 + $0x28] sm:$0xff]  ;;  %v33_v16 = vmul.f32 %v671_v10, %v671_v10  ;;  %558 = vmatpush3.bf16.msra.mxu1 %v531_v3  ;;  %v35_v17 = vsel %vm34_vm0, %v30_v11, 0.0  ;;  %v41_v18 = vsel %vm34_vm0, %v32_v12, 0.0  ;;  %v187_v50 = vlaneseq }
   0x7   :  { %560 = vmatprep.subr.bf16.mxu1 %v537_v6  ;;  %36 = vadd.xlane.f32.xlu0 %v35_v17  ;;  %v543_v19 = vpack.c.bf16 %v27_v15, %v26_v14  ;;  %v38_v20 = vsel %vm34_vm0, %v31_v13, 0.0  ;;  %v28_v22 = vld [vmem:[%s794_s2 + $0x30] sm:$0xff]  ;;  %v29_v23 = vld [vmem:[%s794_s2 + $0x38] sm:$0xff]  ;;  %v454_v28 = vld [vmem:[%s793_s1] ss:$0 sm:$0xff]  ;;  %vm189_vm2 = vcmask 523264  }
   0x8   :  { %42 = vadd.xlane.f32.xlu1 %v41_v18  ;;  %v44_v21 = vsel %vm34_vm0, %v33_v16, 0.0  ;;  %v549_v24 = vpack.c.bf16 %v29_v23, %v28_v22  ;;  %v722_v51 = vand.u32 127, %v187_v50  ;;  %vm383_vm11 = vcmask 7168  }
   0xa   :  { %562 = vmatpush3.bf16.msra.mxu1 %v537_v6 }
   0xb   :  { %564 = vmatprep.subr.bf16.mxu1 %v543_v19  ;;  %39 = vadd.xlane.f32.xlu0 %v38_v20 }
   0xc   :  { %45 = vadd.xlane.f32.xlu1 %v44_v21 }
   0xd   :  { %542 = vmatpush3.bf16.xpose.msk.msra.mxu0 %vm640_vm1, %v537_v6 }
   0xe   :  { %545 = vmatprep.subr.msk.bf16.mxu0 %vm640_vm1, %v543_v19  ;;  %566 = vmatpush3.bf16.msra.mxu1 %v543_v19 }
   0xf   :  { %568 = vmatprep.subr.bf16.mxu1 %v549_v24 }
  0x12   :  { %570 = vmatpush3.bf16.msra.mxu1 %v549_v24 }
  0x15   :  { %548 = vmatpush3.bf16.xpose.msk.msra.mxu0 %vm640_vm1, %v543_v19 }
  0x16   :  { %551 = vmatprep.subr.msk.bf16.mxu0 %vm640_vm1, %v549_v24 }
  0x1d   :  { %554 = vmatpush3.bf16.xpose.msk.msra.mxu0 %vm640_vm1, %v549_v24  ;;  %vm418_vm1 = vcmask 0  }
  0x24   :  { %504 = vmatmul.mubr.msk.f32.vlgmr.msra.gmra.mrb[0].mxu0 %vm34_vm0, %v657_v8 }
  0x25   :  { %506 = vmatprep.mubr.msk.f32.mxu0 %vm34_vm0, %v662_v9 }
  0x28   :  { %507 = vmatmul.mubr.msk.f32.gmra.mrb[2].mxu0 %vm34_vm0, %v671_v10 }
  0x94   :  { %v37_v25 = vpop.xlane.xlu0 %36 }
  0x95   :  { %v43_v26 = vpop.xlane.xlu1 %42  ;;  %v175_v34 = vadd.f32 %v454_v28, %v37_v25 }
  0x96   :  { %v177_v43 = vadd.f32 %v454_v28, %v43_v26 }
  0x98   :  { %v40_v27 = vpop.xlane.xlu0 %39 }
  0x99   :  { %v176_v29 = vadd.f32 %v454_v28, %v40_v27  ;;  %v46_v31 = vpop.xlane.xlu1 %45 }
  0x9a   :  { %v178_v36 = vadd.f32 %v454_v28, %v46_v31 }
  0xf7   :  { %v505_v30 = vpop.f32.mrb[0].mxu0 }
  0xf8   :  { %v180_v32 = vmul.f32 2.0, %v505_v30  ;;  %v149_v33 = vpop.f32.mrb[1].mxu0 }
  0xf9   :  { %v179_v35 = vmul.f32 2.0, %v149_v33 }
  0xfa   :  { %v184_v37 = vsub.f32 %v176_v29, %v180_v32 }
  0xfb   :  { %v508_v38 = vpop.f32.mrb[2].mxu0  ;;  %v183_v39 = vsub.f32 %v175_v34, %v179_v35 }
  0xfc   :  { %v182_v40 = vmul.f32 2.0, %v508_v38  ;;  %v159_v41 = vpop.f32.mrb[3].mxu0  ;;  %v193_v42 = vsel %vm189_vm2, %v184_v37, inf }
  0xfd   :  { %v181_v44 = vmul.f32 2.0, %v159_v41  ;;  %194 = vmin.xlane.f32.xlu1 %v193_v42  ;;  %v190_v45 = vsel %vm189_vm2, %v183_v39, inf }
  0xfe   :  { %191 = vmin.xlane.f32.xlu0 %v190_v45  ;;  %v186_v46 = vsub.f32 %v178_v36, %v182_v40 }
  0xff   :  { %v185_v47 = vsub.f32 %v177_v43, %v181_v44 }
 0x100   :  { %v199_v48 = vsel %vm189_vm2, %v186_v46, inf }
 0x101   :  { %200 = vmin.xlane.f32.xlu1 %v199_v48  ;;  %v196_v49 = vsel %vm189_vm2, %v185_v47, inf }
 0x102   :  { %197 = vmin.xlane.f32.xlu0 %v196_v49 }
 0x18a   :  { %v195_v52 = vpop.xlane.xlu1 %194 }
 0x18b   :  { %vm203_vm3 = vcmp.eq.f32.partialorder %v184_v37, %v195_v52  ;;  %v192_v53 = vpop.xlane.xlu0 %191 }
 0x18c   :  { %v207_v54 = vsel %vm203_vm3, %v722_v51, 64  ;;  %vm202_vm4 = vcmp.eq.f32.partialorder %v183_v39, %v192_v53 }
 0x18d   :  { %v225_v55 = vsel %vm189_vm2, %v207_v54, 2147483647  ;;  %v206_v56 = vsel %vm202_vm4, %v722_v51, 64 }
 0x18e   :  { %v210_v57 = vsel %vm189_vm2, %v206_v56, 2147483647  ;;  %v201_v58 = vpop.xlane.xlu1 %200  ;;  %v227_v59 = vshra.s32 %v225_v55, 16  ;;  %v226_v12 = vand.u32 65535, %v225_v55 }
 0x18f   :  { %vm205_vm5 = vcmp.eq.f32.partialorder %v186_v46, %v201_v58  ;;  %v198_v60 = vpop.xlane.xlu0 %197  ;;  %v212_v61 = vshra.s32 %v210_v57, 16  ;;  %v211_v13 = vand.u32 65535, %v210_v57 }
 0x190   :  { %v209_v62 = vsel %vm205_vm5, %v722_v51, 64  ;;  %vm204_vm6 = vcmp.eq.f32.partialorder %v185_v47, %v198_v60  ;;  %v229_v63 = vcvt.s32.f32 %v227_v59  ;;  %v228_v15 = vcvt.s32.f32 %v226_v12 }
 0x191   :  { %v255_v0 = vsel %vm189_vm2, %v209_v62, 2147483647  ;;  %v208_v1 = vsel %vm204_vm6, %v722_v51, 64  ;;  %v214_v2 = vcvt.s32.f32 %v212_v61  ;;  %v213_v18 = vcvt.s32.f32 %v211_v13 }
 0x192   :  { %v240_v3 = vsel %vm189_vm2, %v208_v1, 2147483647  ;;  %230 = vmin.xlane.f32.xlu1 %v229_v63  ;;  %v257_v4 = vshra.s32 %v255_v0, 16  ;;  %v256_v16 = vand.u32 65535, %v255_v0  ;;  %v597_v47 = vmov 0.0  }
 0x193   :  { %215 = vmin.xlane.f32.xlu0 %v214_v2  ;;  %v242_v5 = vshra.s32 %v240_v3, 16  ;;  %v241_v19 = vand.u32 65535, %v240_v3 }
 0x194   :  { %v259_v6 = vcvt.s32.f32 %v257_v4  ;;  %v258_v23 = vcvt.s32.f32 %v256_v16 }
 0x195   :  { %v244_v11 = vcvt.s32.f32 %v242_v5  ;;  %v243_v25 = vcvt.s32.f32 %v241_v19 }
 0x196   :  { %260 = vmin.xlane.f32.xlu1 %v259_v6 }
 0x197   :  { %245 = vmin.xlane.f32.xlu0 %v244_v11 }
 0x21f   :  { %v231_v14 = vpop.xlane.xlu1 %230 }
 0x220   :  { %v216_v17 = vpop.xlane.xlu0 %215  ;;  %vm232_vm7 = vcmp.eq.f32.partialorder %v229_v63, %v231_v14  ;;  %v237_v28 = vcvt.f32.s32 %v231_v14 }
 0x221   :  { %v233_v20 = vsel %vm232_vm7, %v228_v15, inf  ;;  %vm217_vm8 = vcmp.eq.f32.partialorder %v214_v2, %v216_v17  ;;  %v222_v29 = vcvt.f32.s32 %v216_v17 }
 0x222   :  { %234 = vmin.xlane.f32.xlu1 %v233_v20  ;;  %v218_v21 = vsel %vm217_vm8, %v213_v18, inf  ;;  %v238_v31 = vshll.u32 %v237_v28, 16 }
 0x223   :  { %v261_v22 = vpop.xlane.xlu1 %260  ;;  %219 = vmin.xlane.f32.xlu0 %v218_v21  ;;  %v223_v35 = vshll.u32 %v222_v29, 16 }
 0x224   :  { %v246_v24 = vpop.xlane.xlu0 %245  ;;  %vm262_vm9 = vcmp.eq.f32.partialorder %v259_v6, %v261_v22  ;;  %v267_v32 = vcvt.f32.s32 %v261_v22 }
 0x225   :  { %v263_v26 = vsel %vm262_vm9, %v258_v23, inf  ;;  %vm247_vm10 = vcmp.eq.f32.partialorder %v244_v11, %v246_v24  ;;  %v252_v36 = vcvt.f32.s32 %v246_v24 }
 0x226   :  { %264 = vmin.xlane.f32.xlu1 %v263_v26  ;;  %v248_v27 = vsel %vm247_vm10, %v243_v25, inf  ;;  %v268_v41 = vshll.u32 %v267_v32, 16 }
 0x227   :  { %249 = vmin.xlane.f32.xlu0 %v248_v27  ;;  %v253_v44 = vshll.u32 %v252_v36, 16 }
 0x2af   :  { %v235_v30 = vpop.xlane.xlu1 %234 }
 0x2b0   :  { %v236_v33 = vcvt.f32.s32 %v235_v30  ;;  %v220_v34 = vpop.xlane.xlu0 %219 }
 0x2b1   :  { %v221_v37 = vcvt.f32.s32 %v220_v34 }
 0x2b2   :  { %v239_v38 = vadd.s32 %v238_v31, %v236_v33 }
 0x2b3   :  { %v224_v39 = vadd.s32 %v223_v35, %v221_v37  ;;  %v265_v40 = vpop.xlane.xlu1 %264 }
 0x2b4   :  { %385 = vst.msk [vmem:[%s796_s4 + $0x8] sm:$0xff] %vm383_vm11, %v239_v38  ;;  %v266_v42 = vcvt.f32.s32 %v265_v40  ;;  %v250_v43 = vpop.xlane.xlu0 %249  ;;  %vm271_vm12 = vcmp.eq.s32.totalorder %v722_v51, %v239_v38 }
 0x2b5   :  { %384 = vst.msk [vmem:[%s796_s4] sm:$0xff] %vm383_vm11, %v224_v39  ;;  %v251_v45 = vcvt.f32.s32 %v250_v43  ;;  %vm270_vm13 = vcmp.eq.s32.totalorder %v722_v51, %v224_v39  ;;  %v456_v50 = vsel %vm271_vm12, 1.0, %v597_v47 }
 0x2b6   :  { %v269_v46 = vadd.s32 %v268_v41, %v266_v42  ;;  %v455_v48 = vsel %vm270_vm13, 1.0, %v597_v47 }
 0x2b7   :  { %v254_v49 = vadd.s32 %v253_v44, %v251_v45  ;;  %525 = vmatprep.mubr.msk.f32.mxu1 %vm189_vm2, %v455_v48 }
 0x2b8   :  { %387 = vst.msk [vmem:[%s796_s4 + $0x18] sm:$0xff] %vm383_vm11, %v269_v46  ;;  %526 = vmatmul.mubr.msk.f32.vlgmr.msra.gmra.mrb[0].mxu1 %vm189_vm2, %v456_v50  ;;  %vm273_vm14 = vcmp.eq.s32.totalorder %v722_v51, %v269_v46 }
 0x2b9   :  { %386 = vst.msk [vmem:[%s796_s4 + $0x10] sm:$0xff] %vm383_vm11, %v254_v49  ;;  %vm272_vm15 = vcmp.eq.s32.totalorder %v722_v51, %v254_v49  ;;  %v458_v53 = vsel %vm273_vm14, 1.0, %v597_v47 }
 0x2ba   :  { %v457_v52 = vsel %vm272_vm15, 1.0, %v597_v47 }
 0x2bb   :  { %528 = vmatprep.mubr.msk.f32.mxu1 %vm189_vm2, %v457_v52 }
 0x2bc   :  { %529 = vmatmul.mubr.msk.f32.gmra.mrb[2].mxu1 %vm189_vm2, %v458_v53 }
 0x38b   :  { %v527_v54 = vpop.f32.mrb[0].mxu1 }
 0x38c   :  { %380 = vst.msk [vmem:[%s795_s3 + $0x8] sm:$0xff] %vm34_vm0, %v527_v54  ;;  %v389_v55 = vsub.f32 %v527_v54, %v657_v8  ;;  %v360_v56 = vpop.f32.mrb[1].mxu1 }
 0x38d   :  { %379 = vst.msk [vmem:[%s795_s3] sm:$0xff] %vm34_vm0, %v360_v56  ;;  %v388_v51 = vsub.f32 %v360_v56, %v652_v7 }
 0x38e   :  { %v393_v57 = vmul.f32 %v389_v55, %v389_v55 }
 0x38f   :  { %v392_v58 = vmul.f32 %v388_v51, %v388_v51  ;;  %v530_v59 = vpop.f32.mrb[2].mxu1 }
 0x390   :  { %382 = vst.msk [vmem:[%s795_s3 + $0x18] sm:$0xff] %vm34_vm0, %v530_v59  ;;  %v391_v60 = vsub.f32 %v530_v59, %v671_v10  ;;  %v370_v61 = vpop.f32.mrb[3].mxu1  ;;  %v399_v8 = vsel %vm34_vm0, %v393_v57, 0.0 }
 0x391   :  { %381 = vst.msk [vmem:[%s795_s3 + $0x10] sm:$0xff] %vm34_vm0, %v370_v61  ;;  %v390_v7 = vsub.f32 %v370_v61, %v662_v9  ;;  %400 = vadd.xlane.f32.xlu1 %v399_v8  ;;  %v396_v62 = vsel %vm34_vm0, %v392_v58, 0.0  ;;  %s598_s3 = smov [#allocation2]  }
 0x392   :  { %v395_v63 = vmul.f32 %v391_v60, %v391_v60  ;;  %397 = vadd.xlane.f32.xlu0 %v396_v62  ;;  %s430_s6 = sshll.u32 %s598_s3, 4  ;;  %s431_s6 = int_to_ptr.vmem [resolvable:$true] %s430_s6 }
 0x393   :  { %v394_v0 = vmul.f32 %v390_v7, %v390_v7  ;;  %s573_s7 = scalar_lea.vmem %s431_s6, 16  ;;  %s577_s8 = scalar_lea.vmem %s431_s6, 32 }
 0x394   :  { %v405_v1 = vsel %vm34_vm0, %v395_v63, 0.0  ;;  %p574_p0 = scmp.ne.s32.totalorder %s431_s6, %s573_s7  ;;  %p578_p1 = scmp.lt.s32.totalorder %s431_s6, %s431_s6 }
 0x395   :  { %406 = vadd.xlane.f32.xlu1 %v405_v1  ;;  %v402_v10 = vsel %vm34_vm0, %v394_v0, 0.0  ;;  %p579_p2 = scmp.lt.s32.totalorder %s577_s8, %s573_s7 }
 0x396   :  { %403 = vadd.xlane.f32.xlu0 %v402_v10 }
 0x397   :  { %p580_p3 = por %p579_p2, %p578_p1 }
 0x399   :  { %p581_p4 = pnand %p580_p3, %p574_p0 }
 0x41e   :  { %v401_v2 = vpop.xlane.xlu1 %400 }
 0x41f   :  { %v398_v3 = vpop.xlane.xlu0 %397 }
 0x420   :  { %v408_v4 = vadd.f32 %v401_v2, %v398_v3 }
 0x422   :  { %v407_v11 = vpop.xlane.xlu1 %406 }
 0x423   :  { %v404_v5 = vpop.xlane.xlu0 %403 }
 0x424   :  { %v409_v6 = vadd.f32 %v408_v4, %v404_v5 }
 0x426   :  { %v410_v12 = vadd.f32 %v409_v6, %v407_v11 }
 0x428   :  { %v411_v9 = vrot.slane %v410_v12, 4 }
 0x42a   :  { %v412_v13 = vadd.f32 %v411_v9, %v410_v12 }
 0x42c   :  { %v413_v14 = vrot.slane %v412_v13, 2 }
 0x42e   :  { %v414_v15 = vadd.f32 %v413_v14, %v412_v13 }
 0x430   :  { %v415_v16 = vrot.slane %v414_v15, 1 }
 0x432   :  { %v416_v17 = vadd.f32 %v415_v16, %v414_v15 }
 0x434   :  { %v417_v18 = vmul.f32 0.0012207031, %v416_v17 }
 0x436   :  { %419 = vst.msk [vmem:[#allocation2] sm:$0x1] %vm418_vm1, %v417_v18 }
 0x437   :  { %584 = shalt.err (!%p581_p4)
}
 0x438   :  { %s585_s11 = scalar_lea.hbm %s797_s5, 16 }
 0x439   :  { %p586_p5 = scmp.ne.s32.totalorder %s797_s5, %s585_s11  ;;  %p589_p6 = scmp.lt.u32.totalorder %s585_s11, %s797_s5 }
 0x43b   :  { %p591_p7 = pnand %p589_p6, %p586_p5 }
 0x43d   :  { %594 = shalt.err (!%p591_p7)
}
 0x43e   :  { %433 = dma.vmem_to_hbm [thread:$0]  %s431_s6, 16, %s797_s5, [#allocation3]  }
 0x43f   :  { %595 = dma.done.wait [#allocation3], 16  }
 0x440   :  { %596 = vsyncadd [#allocation3], 4294967280 }
 0x441   :  { %441 = vsyncpa [#allocation3], 1 }

// kernel: vqvae_forward.11
= control target key start
LH: loop header
LB: loop body
LE: loop exit
PB: predicated region body
PF: predicated region fallthrough
CT: control target
= control target key end

     0   :  { %vm42_vm0 = vcmask 261120   ;;  %s5838_s23 = smov 96   ;;  %s5839_s14 = smov 32   ;;  %vm1056_vm1 = vcmask 523264   ;;  %vm1061_vm2 = vcmask 785408   ;;  %s7060_s0 = inlined_call_operand.vmem [shape: f32[32,32], index: 0, kind: input, shape index: {}]   ;;  %s7061_s1 = inlined_call_operand.vmem [shape: f32[9,32,32], index: 1, kind: input, shape index: {}]   ;;  %s7062_s2 = inlined_call_operand.vmem [shape: bf16[3,288,32], index: 2, kind: input, shape index: {}]   ;;  %s7063_s5 = inlined_call_operand.vmem [shape: bf16[3,32,32], index: 5, kind: input, shape index: {}]   ;;  %s7064_s3 = inlined_call_operand.vmem [shape: f32[3,1,32], index: 3, kind: input, shape index: {}]   ;;  %s7065_s4 = inlined_call_operand.vmem [shape: f32[3,1,32], index: 4, kind: input, shape index: {}]   ;;  %s7066_s6 = inlined_call_operand.vmem [shape: f32[3,1,32], index: 6, kind: input, shape index: {}]   ;;  %s7067_s7 = inlined_call_operand.vmem [shape: f32[3,1,32], index: 7, kind: input, shape index: {}]   ;;  %s7068_s8 = inlined_call_operand.vmem [shape: f32[32,32], index: 8, kind: output, shape index: {}]  }
   0x1   :  { %v5889_v0 = vld [vmem:[%s7060_s0] sm:$0xff]  ;;  %v5894_v1 = vld [vmem:[%s7060_s0 + $0x8] sm:$0xff]  ;;  %v5899_v2 = vld [vmem:[%s7060_s0 + $0x10] sm:$0xff]  ;;  %s5840_s20 = smov 64  }
   0x2   :  { %v34_v3 = vmax.f32 %v5889_v0, 0.0  ;;  %v35_v4 = vmax.f32 %v5894_v1, 0.0  ;;  %v5906_v5 = vld [vmem:[%s7060_s0 + $0x18] sm:$0xff]  ;;  %v36_v6 = vmax.f32 %v5899_v2, 0.0  ;;  %v5912_v7 = vld [vmem:[%s7061_s1] sm:$0xff]  ;;  %v39_v12 = vld [vmem:[%s7061_s1 + $0x8] sm:$0xff] }
   0x3   :  { %v5917_v8 = vld [vmem:[%s7061_s1 + $0x60] sm:$0xff]  ;;  %v37_v9 = vmax.f32 %v5906_v5, 0.0  ;;  %4913 = vmatprep.mubr.msk.f32.mxu0 %vm42_vm0, %v5912_v7  ;;  %v4290_v13 = vld [vmem:[%s7061_s1 + $0x68] sm:$0xff]  ;;  %v40_v14 = vld [vmem:[%s7061_s1 + $0x10] sm:$0xff] }
   0x4   :  { %4955 = vmatprep.mubr.msk.f32.mxu1 %vm42_vm0, %v5917_v8  ;;  %v5928_v10 = vpack.c.bf16 %v35_v4, %v34_v3  ;;  %v4291_v15 = vld [vmem:[%s7061_s1 + $0x70] sm:$0xff]  ;;  %v41_v16 = vld [vmem:[%s7061_s1 + $0x18] sm:$0xff]  ;;  %v4273_v18 = vld [vmem:[%s7061_s1 + $0x20] sm:$0xff] }
   0x5   :  { %v5934_v11 = vpack.c.bf16 %v37_v9, %v36_v6  ;;  %v4292_v17 = vld [vmem:[%s7061_s1 + $0x78] sm:$0xff]  ;;  %v4305_v19 = vld [vmem:[%s7061_s1 + $0xa0] sm:$0xff]  ;;  %v4274_v20 = vld [vmem:[%s7061_s1 + $0x28] sm:$0xff] }
   0x6   :  { %5332 = vmatprep.subr.bf16.mxu0 %v5928_v10  ;;  %5356 = vmatprep.subr.bf16.mxu1 %v5928_v10  ;;  %v4306_v21 = vld [vmem:[%s7061_s1 + $0xa8] sm:$0xff]  ;;  %v4275_v22 = vld [vmem:[%s7061_s1 + $0x30] sm:$0xff]  ;;  %v4276_v24 = vld [vmem:[%s7061_s1 + $0x38] sm:$0xff] }
   0x7   :  { %5334 = vmatpush3.bf16.msra.mxu0 %v5928_v10  ;;  %5358 = vmatpush3.bf16.msra.mxu1 %v5928_v10  ;;  %v4307_v23 = vld [vmem:[%s7061_s1 + $0xb0] sm:$0xff]  ;;  %v4308_v25 = vld [vmem:[%s7061_s1 + $0xb8] sm:$0xff]  ;;  %v4281_v26 = vld [vmem:[%s7061_s1 + $0x40] sm:$0xff] }
   0x8   :  { %5336 = vmatprep.subr.bf16.mxu0 %v5934_v11  ;;  %5360 = vmatprep.subr.bf16.mxu1 %v5934_v11  ;;  %v4321_v27 = vld [vmem:[%s7061_s1 + $0xe0] sm:$0xff]  ;;  %v4282_v28 = vld [vmem:[%s7061_s1 + $0x48] sm:$0xff]  ;;  %v4283_v29 = vld [vmem:[%s7061_s1 + $0x50] sm:$0xff] }
   0x9   :  { %v4322_v30 = vld [vmem:[%s7061_s1 + $0xe8] sm:$0xff]  ;;  %v4323_v31 = vld [vmem:[%s7061_s1 + $0xf0] sm:$0xff]  ;;  %v4284_v32 = vld [vmem:[%s7061_s1 + $0x58] sm:$0xff] }
   0xa   :  { %v4297_v33 = vld [vmem:[%s7061_s1 + $0x80] sm:$0xff]  ;;  %v4324_v34 = vld [vmem:[%s7061_s1 + $0xf8] sm:$0xff]  ;;  %v4298_v35 = vld [vmem:[%s7061_s1 + $0x88] sm:$0xff] }
   0xb   :  { %5338 = vmatpush3.bf16.msra.mxu0 %v5934_v11  ;;  %5362 = vmatpush3.bf16.msra.mxu1 %v5934_v11  ;;  %v4299_v36 = vld [vmem:[%s7061_s1 + $0x90] sm:$0xff]  ;;  %v4300_v37 = vld [vmem:[%s7061_s1 + $0x98] sm:$0xff]  ;;  %v4313_v38 = vld [vmem:[%s7061_s1 + $0xc0] sm:$0xff] }
   0xc   :  { %5340 = vmatprep.subr.bf16.mxu0 %v5928_v10  ;;  %5372 = vmatprep.subr.bf16.mxu1 %v5928_v10  ;;  %v4314_v39 = vld [vmem:[%s7061_s1 + $0xc8] sm:$0xff]  ;;  %v4315_v40 = vld [vmem:[%s7061_s1 + $0xd0] sm:$0xff]  ;;  %v4316_v41 = vld [vmem:[%s7061_s1 + $0xd8] sm:$0xff] }
   0xd   :  { %v4329_v42 = vld [vmem:[%s7061_s1 + $0x100] sm:$0xff]  ;;  %v4330_v43 = vld [vmem:[%s7061_s1 + $0x108] sm:$0xff]  ;;  %v4331_v44 = vld [vmem:[%s7061_s1 + $0x110] sm:$0xff] }
   0xe   :  { %4914 = vmatmul.mubr.msk.f32.vlgmr.msra.gmra.mrb[0].mxu0 %vm42_vm0, %v39_v12  ;;  %4956 = vmatmul.mubr.msk.f32.vlgmr.msra.gmra.mrb[0].mxu1 %vm42_vm0, %v4290_v13  ;;  %v4332_v45 = vld [vmem:[%s7061_s1 + $0x118] sm:$0xff]  ;;  %v5730_v46 = vld [vmem:[%s7062_s2 + $0x40] sm:$0xff]   ;;  %v5732_v50 = vld [vmem:[%s7062_s2 + $0x48] sm:$0xff]  }
   0xf   :  { %5342 = vmatpush3.bf16.msra.mxu0 %v5928_v10  ;;  %5374 = vmatpush3.bf16.msra.mxu1 %v5928_v10  ;;  %v5731_v47 = vld [vmem:[%s7062_s2] sm:$0xff]   ;;  %v5733_v53 = vld [vmem:[%s7062_s2 + $0x8] sm:$0xff]   ;;  %v5734_v57 = vld [vmem:[%s7062_s2 + $0x50] sm:$0xff]  }
  0x10   :  { %4916 = vmatprep.mubr.msk.f32.mxu0 %vm42_vm0, %v40_v14  ;;  %4958 = vmatprep.mubr.msk.f32.mxu1 %vm42_vm0, %v4291_v15  ;;  %v5735_v60 = vld [vmem:[%s7062_s2 + $0x10] sm:$0xff]   ;;  %v5737_v13 = vld [vmem:[%s7062_s2 + $0x18] sm:$0xff]   ;;  %v6322_v5 = vld [vmem:[%s7061_s1 + $0x68] sm:$0xff] }
  0x11   :  { %5344 = vmatprep.subr.bf16.mxu0 %v5934_v11  ;;  %5376 = vmatprep.subr.bf16.mxu1 %v5934_v11 }
  0x12   :  { %4917 = vmatmul.mubr.msk.f32.gmra.mrb[2].mxu0 %vm42_vm0, %v41_v16  ;;  %4959 = vmatmul.mubr.msk.f32.gmra.mrb[2].mxu1 %vm42_vm0, %v4292_v17  ;;  %v5738_v16 = vld [vmem:[%s7062_s2 + $0x60] sm:$0xff]  }
  0x13   :  { %5346 = vmatpush3.bf16.msra.mxu0 %v5934_v11  ;;  %5378 = vmatpush3.bf16.msra.mxu1 %v5934_v11  ;;  %v5739_v17 = vld [vmem:[%s7062_s2 + $0x20] sm:$0xff]  }
  0x14   :  { %4927 = vmatprep.mubr.msk.f32.mxu0 %vm42_vm0, %v4273_v18  ;;  %4983 = vmatprep.mubr.msk.f32.mxu1 %vm42_vm0, %v4305_v19 }
  0x15   :  { %5348 = vmatprep.subr.bf16.mxu0 %v5928_v10  ;;  %5388 = vmatprep.subr.bf16.mxu1 %v5928_v10 }
  0x16   :  { %4928 = vmatmul.mubr.msk.f32.vlgmr.msra.gmra.mrb[4].mxu0 %vm42_vm0, %v4274_v20  ;;  %4984 = vmatmul.mubr.msk.f32.vlgmr.msra.gmra.mrb[4].mxu1 %vm42_vm0, %v4306_v21  ;;  %v5740_v20 = vld [vmem:[%s7062_s2 + $0x68] sm:$0xff]  }
  0x17   :  { %5350 = vmatpush3.bf16.msra.mxu0 %v5928_v10  ;;  %4930 = vmatprep.mubr.msk.f32.mxu0 %vm42_vm0, %v4275_v22 }
  0x18   :  { %5352 = vmatprep.subr.bf16.mxu0 %v5934_v11  ;;  %4986 = vmatprep.mubr.msk.f32.mxu1 %vm42_vm0, %v4307_v23 }
  0x19   :  { %5390 = vmatpush3.bf16.msra.mxu1 %v5928_v10 }
  0x1a   :  { %4931 = vmatmul.mubr.msk.f32.gmra.mrb[6].mxu0 %vm42_vm0, %v4276_v24  ;;  %4987 = vmatmul.mubr.msk.f32.gmra.mrb[6].mxu1 %vm42_vm0, %v4308_v25  ;;  %v5741_v25 = vld [vmem:[%s7062_s2 + $0x28] sm:$0xff]  }
  0x1b   :  { %5354 = vmatpush3.bf16.msra.mxu0 %v5934_v11  ;;  %4941 = vmatprep.mubr.msk.f32.mxu0 %vm42_vm0, %v4281_v26 }
  0x1c   :  { %5364 = vmatprep.subr.bf16.mxu0 %v5928_v10  ;;  %5392 = vmatprep.subr.bf16.mxu1 %v5934_v11 }
  0x1d   :  { %5394 = vmatpush3.bf16.msra.mxu1 %v5934_v11  ;;  %5011 = vmatprep.mubr.msk.f32.mxu1 %vm42_vm0, %v4321_v27 }
  0x1e   :  { %4942 = vmatmul.mubr.msk.f32.vlgmr.msra.gmra.mrb[8].mxu0 %vm42_vm0, %v4282_v28  ;;  %4653 = vmatprep.subr.bf16.mxu1 %v5730_v46  ;;  %v5742_v28 = vld [vmem:[%s7062_s2 + $0x70] sm:$0xff]  }
  0x1f   :  { %5366 = vmatpush3.bf16.msra.mxu0 %v5928_v10  ;;  %4944 = vmatprep.mubr.msk.f32.mxu0 %vm42_vm0, %v4283_v29 }
  0x20   :  { %5368 = vmatprep.subr.bf16.mxu0 %v5934_v11  ;;  %5012 = vmatmul.mubr.msk.f32.vlgmr.msra.gmra.mrb[8].mxu1 %vm42_vm0, %v4322_v30 }
  0x21   :  { %5014 = vmatprep.mubr.msk.f32.mxu1 %vm42_vm0, %v4323_v31  ;;  %4654 = vmatpush3.bf16.msra.mxu1 %v5731_v47 }
  0x22   :  { %4945 = vmatmul.mubr.msk.f32.gmra.mrb[10].mxu0 %vm42_vm0, %v4284_v32  ;;  %4655 = vmatprep.subr.bf16.mxu1 %v5732_v50 }
  0x23   :  { %5370 = vmatpush3.bf16.msra.mxu0 %v5934_v11  ;;  %4969 = vmatprep.mubr.msk.f32.mxu0 %vm42_vm0, %v4297_v33 }
  0x24   :  { %5380 = vmatprep.subr.bf16.mxu0 %v5928_v10  ;;  %5015 = vmatmul.mubr.msk.f32.gmra.mrb[10].mxu1 %vm42_vm0, %v4324_v34 }
  0x25   :  { %4656 = vmatpush3.bf16.msra.mxu1 %v5733_v53 }
  0x26   :  { %4970 = vmatmul.mubr.msk.f32.vlgmr.msra.gmra.mrb[12].mxu0 %vm42_vm0, %v4298_v35  ;;  %4657 = vmatprep.subr.bf16.mxu1 %v5734_v57  ;;  %v5743_v35 = vld [vmem:[%s7062_s2 + $0x30] sm:$0xff]  }
  0x27   :  { %5382 = vmatpush3.bf16.msra.mxu0 %v5928_v10  ;;  %4972 = vmatprep.mubr.msk.f32.mxu0 %vm42_vm0, %v4299_v36 }
  0x28   :  { %5384 = vmatprep.subr.bf16.mxu0 %v5934_v11 }
  0x29   :  { %4658 = vmatpush3.bf16.msra.mxu1 %v5735_v60 }
  0x2a   :  { %4973 = vmatmul.mubr.msk.f32.gmra.mrb[14].mxu0 %vm42_vm0, %v4300_v37 }
  0x2b   :  { %5386 = vmatpush3.bf16.msra.mxu0 %v5934_v11  ;;  %4997 = vmatprep.mubr.msk.f32.mxu0 %vm42_vm0, %v4313_v38  ;;  %v5744_v38 = vld [vmem:[%s7062_s2 + $0x80] sm:$0xff]  }
  0x2c   :  { %5396 = vmatprep.subr.bf16.mxu0 %v5928_v10 }
  0x2e   :  { %4998 = vmatmul.mubr.msk.f32.vlgmr.msra.gmra.mrb[16].mxu0 %vm42_vm0, %v4314_v39 }
  0x2f   :  { %5000 = vmatprep.mubr.msk.f32.mxu0 %vm42_vm0, %v4315_v40  ;;  %5398 = vmatpush3.bf16.msra.mxu0 %v5928_v10  ;;  %v5736_v10 = vld [vmem:[%s7062_s2 + $0x58] sm:$0xff]  }
  0x30   :  { %5400 = vmatprep.subr.bf16.mxu0 %v5934_v11  ;;  %4659 = vmatprep.subr.bf16.mxu1 %v5736_v10 }
  0x31   :  { %4660 = vmatpush3.bf16.msra.mxu1 %v5737_v13 }
  0x32   :  { %5001 = vmatmul.mubr.msk.f32.gmra.mrb[18].mxu0 %vm42_vm0, %v4316_v41  ;;  %4661 = vmatprep.subr.bf16.mxu1 %v5738_v16 }
  0x33   :  { %5402 = vmatpush3.bf16.msra.mxu0 %v5934_v11  ;;  %5025 = vmatprep.mubr.msk.f32.mxu0 %vm42_vm0, %v4329_v42  ;;  %v5745_v42 = vld [vmem:[%s7062_s2 + $0x78] sm:$0xff]  }
  0x34   :  { %5031 = vmatprep.subr.bf16.mxu0 %v5744_v38 }
  0x35   :  { %4662 = vmatpush3.bf16.msra.mxu1 %v5739_v17 }
  0x36   :  { %5026 = vmatmul.mubr.msk.f32.vlgmr.msra.gmra.mrb[20].mxu0 %vm42_vm0, %v4330_v43  ;;  %4663 = vmatprep.subr.bf16.mxu1 %v5740_v20 }
  0x37   :  { %5028 = vmatprep.mubr.msk.f32.mxu0 %vm42_vm0, %v4331_v44  ;;  %5032 = vmatpush3.bf16.msra.mxu0 %v5744_v38  ;;  %v5746_v44 = vld [vmem:[%s7062_s2 + $0x38] sm:$0xff]  }
  0x39   :  { %4664 = vmatpush3.bf16.msra.mxu1 %v5741_v25 }
  0x3a   :  { %5029 = vmatmul.mubr.msk.f32.gmra.mrb[22].mxu0 %vm42_vm0, %v4332_v45  ;;  %4665 = vmatprep.subr.bf16.mxu1 %v5742_v28  ;;  %v5747_v45 = vld [vmem:[%s7062_s2 + $0x88] sm:$0xff]  }
  0x3b   :  { %5033 = vmatprep.subr.bf16.mxu0 %v5747_v45 }
  0x3c   :  { %5034 = vmatpush3.bf16.msra.mxu0 %v5747_v45 }
  0x3d   :  { %4666 = vmatpush3.bf16.msra.mxu1 %v5743_v35 }
  0x3e   :  { %4667 = vmatprep.subr.bf16.mxu1 %v5745_v42 }
  0x41   :  { %4668 = vmatpush3.bf16.msra.mxu1 %v5746_v44 }
  0xe1   :  { %v6114_v48 = vpop.f32.mrb[0].mxu0  ;;  %v4957_v49 = vpop.f32.mrb[0].mxu1 }
  0xe2   :  { %v6119_v51 = vpop.f32.mrb[1].mxu0  ;;  %v427_v52 = vpop.f32.mrb[1].mxu1 }
  0xe3   :  { %v5550_v54 = vpack.i.bf16 %v4957_v49, %v427_v52 }
  0xe5   :  { %v6124_v55 = vpop.f32.mrb[2].mxu0  ;;  %v6126_v56 = vpop.f32.mrb[2].mxu1  ;;  %5551 = vrot.lane.b32.xlu1 %v5550_v54, %s5838_s23 }
  0xe6   :  { %v6132_v58 = vpop.f32.mrb[3].mxu0  ;;  %v6134_v59 = vpop.f32.mrb[3].mxu1 }
  0xe7   :  { %v5605_v61 = vpack.i.bf16 %v6126_v56, %v6134_v59 }
  0xe9   :  { %v4929_v62 = vpop.f32.mrb[4].mxu0  ;;  %v4985_v63 = vpop.f32.mrb[4].mxu1 }
  0xea   :  { %v223_v11 = vpop.f32.mrb[5].mxu0  ;;  %v631_v12 = vpop.f32.mrb[5].mxu1 }
  0xeb   :  { %v5560_v14 = vpack.i.bf16 %v4929_v62, %v223_v11  ;;  %v5555_v15 = vpack.i.bf16 %v4985_v63, %v631_v12 }
  0xed   :  { %5556 = vrot.lane.b32.xlu0 %v5555_v15, %s5839_s14  ;;  %v4932_v18 = vpop.f32.mrb[6].mxu0  ;;  %v4988_v19 = vpop.f32.mrb[6].mxu1 }
  0xee   :  { %v233_v21 = vpop.f32.mrb[7].mxu0  ;;  %v641_v22 = vpop.f32.mrb[7].mxu1 }
  0xef   :  { %v5585_v23 = vpack.i.bf16 %v4932_v18, %v233_v21  ;;  %v5565_v24 = vpack.i.bf16 %v4988_v19, %v641_v22 }
  0xf1   :  { %5561 = vrot.lane.b32.xlu0 %v5560_v14, %s5839_s14  ;;  %v4943_v26 = vpop.f32.mrb[8].mxu0 }
  0xf2   :  { %v325_v27 = vpop.f32.mrb[9].mxu0 }
  0xf3   :  { %v5570_v29 = vpack.i.bf16 %v4943_v26, %v325_v27  ;;  %v5013_v30 = vpop.f32.mrb[8].mxu1 }
  0xf4   :  { %v835_v31 = vpop.f32.mrb[9].mxu1 }
  0xf5   :  { %5566 = vrot.lane.b32.xlu0 %v5565_v24, %s5839_s14  ;;  %5571 = vrot.lane.b32.xlu1 %v5570_v29, %s5840_s20  ;;  %v4946_v32 = vpop.f32.mrb[10].mxu0  ;;  %v5575_v33 = vpack.i.bf16 %v5013_v30, %v835_v31 }
  0xf6   :  { %v335_v34 = vpop.f32.mrb[11].mxu0 }
  0xf7   :  { %v5590_v36 = vpack.i.bf16 %v4946_v32, %v335_v34  ;;  %v5016_v37 = vpop.f32.mrb[10].mxu1 }
  0xf8   :  { %v845_v39 = vpop.f32.mrb[11].mxu1 }
  0xf9   :  { %v6172_v40 = vpop.f32.mrb[12].mxu0  ;;  %5576 = vrot.lane.b32.xlu0 %v5575_v33, %s5838_s23  ;;  %v5600_v41 = vpack.i.bf16 %v5016_v37, %v845_v39 }
  0xfa   :  { %v529_v43 = vpop.f32.mrb[13].mxu0 }
  0xfd   :  { %v6184_v46 = vpop.f32.mrb[14].mxu0 }
  0xfe   :  { %v6186_v47 = vpop.f32.mrb[15].mxu0 }
 0x101   :  { %v4999_v49 = vpop.f32.mrb[16].mxu0 }
 0x102   :  { %v733_v50 = vpop.f32.mrb[17].mxu0 }
 0x103   :  { %v5580_v52 = vpack.i.bf16 %v4999_v49, %v733_v50 }
 0x105   :  { %5581 = vrot.lane.b32.xlu1 %v5580_v52, %s5840_s20  ;;  %v5002_v53 = vpop.f32.mrb[18].mxu0 }
 0x106   :  { %v743_v54 = vpop.f32.mrb[19].mxu0 }
 0x107   :  { %v5595_v57 = vpack.i.bf16 %v5002_v53, %v743_v54 }
 0x109   :  { %5586 = vrot.lane.b32.xlu1 %v5585_v23, %s5839_s14  ;;  %5596 = vrot.lane.b32.xlu0 %v5595_v57, %s5840_s20  ;;  %v5027_v60 = vpop.f32.mrb[20].mxu0 }
 0x10a   :  { %v937_v62 = vpop.f32.mrb[21].mxu0 }
 0x10b   :  { %v1080_v63 = vpack.c.bf16 %v5027_v60, %v937_v62 }
 0x10d   :  { %5591 = vrot.lane.b32.xlu1 %v5590_v36, %s5840_s20  ;;  %5601 = vrot.lane.b32.xlu0 %v5600_v41, %s5838_s23  ;;  %v5030_v10 = vpop.f32.mrb[22].mxu0 }
 0x10e   :  { %v947_v11 = vpop.f32.mrb[23].mxu0  ;;  %5035 = vmatprep.mubr.msk.bf16.mxu0 %vm42_vm0, %v1080_v63 }
 0x10f   :  { %v1083_v12 = vpack.c.bf16 %v5030_v10, %v947_v11 }
 0x111   :  { %5606 = vrot.lane.b32.xlu1 %v5605_v61, %s5838_s23  ;;  %5036 = vmatmul.mubr.msk.bf16.vlgmr.msra.gmra.mrb[24].mxu0 %vm42_vm0, %v1083_v12 }
 0x157   :  { %v5552_v14 = vpop.permute.xlu1 %5551 }
 0x158   :  { %v5554_v21 = vunpack.i.h.bf16 %v5552_v14  ;;  %v5553_v22 = vunpack.i.l.bf16 %v5552_v14 }
 0x15f   :  { %v5557_v13 = vpop.permute.xlu0 %5556 }
 0x160   :  { %v5559_v29 = vunpack.i.h.bf16 %v5557_v13  ;;  %v5558_v30 = vunpack.i.l.bf16 %v5557_v13 }
 0x162   :  { %v1067_v35 = vsel %vm42_vm0, %v6172_v40, %v5559_v29 }
 0x163   :  { %v5562_v15 = vpop.permute.xlu0 %5561 }
 0x164   :  { %v5564_v16 = vunpack.i.h.bf16 %v5562_v15  ;;  %v5563_v17 = vunpack.i.l.bf16 %v5562_v15 }
 0x166   :  { %v1053_v23 = vsel %vm42_vm0, %v6114_v48, %v5564_v16  ;;  %v1052_v56 = vsel %vm42_vm0, %v6119_v51, %v5563_v17  ;;  %v1066_v51 = vsel %vm42_vm0, %v529_v43, %v5558_v30 }
 0x167   :  { %v5572_v18 = vpop.permute.xlu1 %5571  ;;  %v5567_v27 = vpop.permute.xlu0 %5566 }
 0x168   :  { %v5574_v19 = vunpack.i.h.bf16 %v5572_v18  ;;  %v5573_v20 = vunpack.i.l.bf16 %v5572_v18  ;;  %v5569_v38 = vunpack.i.h.bf16 %v5567_v27  ;;  %v5568_v39 = vunpack.i.l.bf16 %v5567_v27 }
 0x16a   :  { %v1058_v59 = vsel %vm1056_vm1, %v1053_v23, %v5574_v19  ;;  %v1057_v61 = vsel %vm1056_vm1, %v1052_v56, %v5573_v20  ;;  %v1068_v43 = vsel %vm42_vm0, %v6186_v47, %v5568_v39  ;;  %v1069_v40 = vsel %vm42_vm0, %v6184_v46, %v5569_v38 }
 0x16b   :  { %v1063_v24 = vsel %vm1061_vm2, %v1058_v59, %v5554_v21  ;;  %v1062_v25 = vsel %vm1061_vm2, %v1057_v61, %v5553_v22  ;;  %v5577_v28 = vpop.permute.xlu0 %5576 }
 0x16c   :  { %v1078_v26 = vpack.c.bf16 %v1063_v24, %v1062_v25  ;;  %v5579_v31 = vunpack.i.h.bf16 %v5577_v28  ;;  %v5578_v32 = vunpack.i.l.bf16 %v5577_v28  ;;  %v5748_v24 = vld [vmem:[%s7063_s5] sm:$0xff]   ;;  %v5749_v25 = vld [vmem:[%s7063_s5 + $0x8] sm:$0xff]  }
 0x16d   :  { %5039 = vmatprep.subr.bf16.mxu0 %v5748_v24 }
 0x16e   :  { %5040 = vmatpush3.bf16.msra.mxu0 %v5748_v24 }
 0x16f   :  { %5041 = vmatprep.subr.bf16.mxu0 %v5749_v25 }
 0x172   :  { %5042 = vmatpush3.bf16.msra.mxu0 %v5749_v25  ;;  %v4357_v25 = vld [vmem:[%s7064_s3] ss:$0 sm:$0xff] }
 0x177   :  { %v5582_v33 = vpop.permute.xlu1 %5581 }
 0x178   :  { %v5584_v48 = vunpack.i.h.bf16 %v5582_v33  ;;  %v5583_v34 = vunpack.i.l.bf16 %v5582_v33 }
 0x17a   :  { %v1071_v36 = vsel %vm1056_vm1, %v1067_v35, %v5584_v48  ;;  %v1070_v37 = vsel %vm1056_vm1, %v1066_v51, %v5583_v34 }
 0x17b   :  { %v5587_v41 = vpop.permute.xlu1 %5586  ;;  %v5597_v42 = vpop.permute.xlu0 %5596  ;;  %v1074_v44 = vsel %vm1061_vm2, %v1070_v37, %v5578_v32  ;;  %v1075_v45 = vsel %vm1061_vm2, %v1071_v36, %v5579_v31 }
 0x17c   :  { %v5599_v49 = vunpack.i.h.bf16 %v5597_v42  ;;  %v5598_v50 = vunpack.i.l.bf16 %v5597_v42  ;;  %v1079_v52 = vpack.c.bf16 %v1075_v45, %v1074_v44  ;;  %v5589_v57 = vunpack.i.h.bf16 %v5587_v41 }
 0x17d   :  { %v5588_v60 = vunpack.i.l.bf16 %v5587_v41 }
 0x17e   :  { %1266 = vmatprep.mubr.bf16.mxu1 %v1079_v52  ;;  %v1073_v10 = vsel %vm1056_vm1, %v1069_v40, %v5599_v49  ;;  %v1072_v11 = vsel %vm1056_vm1, %v1068_v43, %v5598_v50  ;;  %v1055_v16 = vsel %vm42_vm0, %v6124_v55, %v5589_v57 }
 0x17f   :  { %v5592_v53 = vpop.permute.xlu1 %5591  ;;  %v5602_v54 = vpop.permute.xlu0 %5601  ;;  %1267 = vmatmul.mubr.bf16.vlgmr.msra.gmra.mrb[12].mxu1 %v1078_v26  ;;  %v1054_v17 = vsel %vm42_vm0, %v6132_v58, %v5588_v60 }
 0x180   :  { %v5604_v62 = vunpack.i.h.bf16 %v5602_v54  ;;  %v5603_v63 = vunpack.i.l.bf16 %v5602_v54  ;;  %v5594_v12 = vunpack.i.h.bf16 %v5592_v53  ;;  %v5593_v13 = vunpack.i.l.bf16 %v5592_v53 }
 0x182   :  { %v1076_v14 = vsel %vm1061_vm2, %v1072_v11, %v5603_v63  ;;  %v1077_v47 = vsel %vm1061_vm2, %v1073_v10, %v5604_v62  ;;  %v1059_v20 = vsel %vm1056_vm1, %v1054_v17, %v5593_v13  ;;  %v1060_v21 = vsel %vm1056_vm1, %v1055_v16, %v5594_v12 }
 0x183   :  { %v5607_v15 = vpop.permute.xlu1 %5606  ;;  %v1082_v46 = vpack.c.bf16 %v1077_v47, %v1076_v14 }
 0x184   :  { %v5609_v18 = vunpack.i.h.bf16 %v5607_v15  ;;  %v5608_v19 = vunpack.i.l.bf16 %v5607_v15 }
 0x185   :  { %1274 = vmatprep.mubr.bf16.mxu1 %v1082_v46 }
 0x186   :  { %v1064_v22 = vsel %vm1061_vm2, %v1059_v20, %v5608_v19  ;;  %v1065_v23 = vsel %vm1061_vm2, %v1060_v21, %v5609_v18 }
 0x187   :  { %v1081_v56 = vpack.c.bf16 %v1065_v23, %v1064_v22 }
 0x189   :  { %1275 = vmatmul.mubr.bf16.gmra.mrb[16].mxu1 %v1081_v56 }
 0x18a   :  { %5097 = vmatprep.mubr.msk.f32.mxu1 %vm42_vm0, %v5917_v8 }
 0x1e4   :  { %v5037_v55 = vpop.f32.mrb[24].mxu0 }
 0x1e5   :  { %v1317_v59 = vpop.f32.mrb[25].mxu0 }
 0x1e6   :  { %v5038_v61 = vpop.f32.mrb[26].mxu0 }
 0x1e7   :  { %v1320_v58 = vpop.f32.mrb[27].mxu0 }
 0x252   :  { %v4669_v26 = vpop.f32.mrb[12].mxu1 }
 0x253   :  { %v4670_v27 = vpop.f32.mrb[13].mxu1 }
 0x254   :  { %v4671_v28 = vadd.f32 %v4670_v27, %v4669_v26  ;;  %v4672_v8 = vpop.f32.mrb[14].mxu1 }
 0x255   :  { %v4673_v29 = vpop.f32.mrb[15].mxu1 }
 0x256   :  { %v4674_v30 = vadd.f32 %v4673_v29, %v4672_v8  ;;  %v1318_v31 = vadd.f32 %v4671_v28, %v1317_v59  ;;  %v4358_v29 = vld [vmem:[%s7065_s4] ss:$0 sm:$0xff] }
 0x258   :  { %v1321_v32 = vadd.f32 %v4674_v30, %v1320_v58  ;;  %v1334_v33 = vsel %vm42_vm0, %v1318_v31, 0.0 }
 0x25a   :  { %v1335_v48 = vsel %vm42_vm0, %v1321_v32, 0.0 }
 0x25b   :  { %v1336_v34 = vadd.f32 %v1335_v48, %v1334_v33 }
 0x25c   :  { %v4675_v51 = vpop.f32.mrb[16].mxu1 }
 0x25d   :  { %v4676_v35 = vpop.f32.mrb[17].mxu1 }
 0x25e   :  { %v4677_v36 = vadd.f32 %v4676_v35, %v4675_v51  ;;  %v4678_v37 = vpop.f32.mrb[18].mxu1 }
 0x25f   :  { %v4679_v38 = vpop.f32.mrb[19].mxu1 }
 0x260   :  { %v1326_v39 = vadd.f32 %v5037_v55, %v4677_v36  ;;  %v4680_v41 = vadd.f32 %v4679_v38, %v4678_v37 }
 0x262   :  { %v1337_v42 = vsel %vm42_vm0, %v1326_v39, 0.0  ;;  %v1329_v44 = vadd.f32 %v5038_v61, %v4680_v41 }
 0x263   :  { %v1338_v45 = vadd.f32 %v1337_v42, %v1336_v34 }
 0x264   :  { %v1339_v49 = vsel %vm42_vm0, %v1329_v44, 0.0 }
 0x265   :  { %v1340_v50 = vadd.f32 %v1339_v49, %v1338_v45 }
 0x267   :  { %v1341_v52 = vrot.slane %v1340_v50, 4 }
 0x269   :  { %v1342_v43 = vadd.f32 %v1341_v52, %v1340_v50 }
 0x26b   :  { %v1343_v40 = vrot.slane %v1342_v43, 2 }
 0x26d   :  { %v1344_v53 = vadd.f32 %v1343_v40, %v1342_v43 }
 0x26f   :  { %v1345_v54 = vrot.slane %v1344_v53, 1 }
 0x271   :  { %v1346_v57 = vadd.f32 %v1345_v54, %v1344_v53 }
 0x273   :  { %v1347_v60 = vmul.f32 0.03125, %v1346_v57 }
 0x275   :  { %v1348_v62 = vsub.f32 %v1318_v31, %v1347_v60  ;;  %v1349_v63 = vsub.f32 %v1321_v32, %v1347_v60  ;;  %v1350_v10 = vsub.f32 %v1326_v39, %v1347_v60  ;;  %v1351_v11 = vsub.f32 %v1329_v44, %v1347_v60 }
 0x277   :  { %v1352_v12 = vmul.f32 %v1348_v62, %v1348_v62  ;;  %v1353_v13 = vmul.f32 %v1349_v63, %v1349_v63  ;;  %v1354_v14 = vmul.f32 %v1350_v10, %v1350_v10  ;;  %v1355_v47 = vmul.f32 %v1351_v11, %v1351_v11 }
 0x279   :  { %v1356_v15 = vsel %vm42_vm0, %v1352_v12, 0.0  ;;  %v1357_v46 = vsel %vm42_vm0, %v1353_v13, 0.0  ;;  %v1359_v17 = vsel %vm42_vm0, %v1354_v14, 0.0  ;;  %v1361_v19 = vsel %vm42_vm0, %v1355_v47, 0.0 }
 0x27a   :  { %v1358_v16 = vadd.f32 %v1357_v46, %v1356_v15 }
 0x27c   :  { %v1360_v18 = vadd.f32 %v1359_v17, %v1358_v16 }
 0x27e   :  { %v1362_v20 = vadd.f32 %v1361_v19, %v1360_v18 }
 0x280   :  { %v1363_v21 = vrot.slane %v1362_v20, 4 }
 0x282   :  { %v1364_v22 = vadd.f32 %v1363_v21, %v1362_v20 }
 0x284   :  { %v1365_v23 = vrot.slane %v1364_v22, 2 }
 0x286   :  { %v1366_v56 = vadd.f32 %v1365_v23, %v1364_v22 }
 0x288   :  { %v1367_v55 = vrot.slane %v1366_v56, 1 }
 0x28a   :  { %v1368_v59 = vadd.f32 %v1367_v55, %v1366_v56 }
 0x28c   :  { %v1369_v61 = vmul.f32 0.03125, %v1368_v59 }
 0x28e   :  { %v1370_v58 = vadd.f32 1e-05, %v1369_v61 }
 0x290   :  { %5790 = vrsqrt.f32 %v1370_v58 }
 0x29a   :  { %v5791_v24 = vpop.eup %5790 }
 0x29b   :  { %v1375_v26 = vmul.f32 %v5791_v24, %v1351_v11  ;;  %v1372_v27 = vmul.f32 %v5791_v24, %v1348_v62  ;;  %v1373_v28 = vmul.f32 %v5791_v24, %v1349_v63  ;;  %v1374_v8 = vmul.f32 %v5791_v24, %v1350_v10 }
 0x29d   :  { %v1385_v30 = vmul.f32 %v4357_v25, %v1375_v26  ;;  %v1382_v31 = vmul.f32 %v4357_v25, %v1372_v27  ;;  %v1383_v32 = vmul.f32 %v4357_v25, %v1373_v28  ;;  %v1384_v33 = vmul.f32 %v4357_v25, %v1374_v8 }
 0x29f   :  { %v1395_v48 = vadd.f32 %v4358_v29, %v1385_v30  ;;  %v1392_v34 = vadd.f32 %v4358_v29, %v1382_v31  ;;  %v1393_v51 = vadd.f32 %v4358_v29, %v1383_v32  ;;  %v1394_v35 = vadd.f32 %v4358_v29, %v1384_v33  ;;  %v4363_v30 = vld [vmem:[%s7066_s6] ss:$0 sm:$0xff] }
 0x2a1   :  { %v1399_v36 = vmax.f32 %v1395_v48, 0.0  ;;  %v1396_v37 = vmax.f32 %v1392_v34, 0.0  ;;  %v1397_v38 = vmax.f32 %v1393_v51, 0.0  ;;  %v1398_v39 = vmax.f32 %v1394_v35, 0.0  ;;  %v4364_v34 = vld [vmem:[%s7067_s7] ss:$0 sm:$0xff] }
 0x2a3   :  { %v1400_v41 = vpack.c.bf16 %v1397_v38, %v1396_v37  ;;  %v1401_v42 = vpack.c.bf16 %v1399_v36, %v1398_v39 }
 0x2a5   :  { %5043 = vmatprep.mubr.msk.bf16.mxu0 %vm42_vm0, %v1400_v41 }
 0x2a6   :  { %5044 = vmatmul.mubr.msk.bf16.vlgmr.msra.gmra.mrb[28].mxu0 %vm42_vm0, %v1401_v42 }
 0x2a7   :  { %5055 = vmatprep.mubr.msk.f32.mxu0 %vm42_vm0, %v5912_v7 }
 0x379   :  { %v5045_v44 = vpop.f32.mrb[28].mxu0 }
 0x37a   :  { %v1458_v45 = vpop.f32.mrb[29].mxu0  ;;  %v1478_v53 = vsel %vm42_vm0, %v5045_v44, 0.0 }
 0x37b   :  { %v5046_v49 = vpop.f32.mrb[30].mxu0  ;;  %v1475_v52 = vsel %vm42_vm0, %v1458_v45, 0.0 }
 0x37c   :  { %v1461_v50 = vpop.f32.mrb[31].mxu0  ;;  %v1480_v57 = vsel %vm42_vm0, %v5046_v49, 0.0 }
 0x37d   :  { %v1476_v43 = vsel %vm42_vm0, %v1461_v50, 0.0 }
 0x37e   :  { %v1477_v40 = vadd.f32 %v1476_v43, %v1475_v52 }
 0x380   :  { %v1479_v54 = vadd.f32 %v1478_v53, %v1477_v40  ;;  %v6347_v40 = vld [vmem:[%s7061_s1 + $0x18] sm:$0xff] }
 0x381   :  { %v6354_v53 = vld [vmem:[%s7061_s1 + $0x78] sm:$0xff] }
 0x382   :  { %v1481_v60 = vadd.f32 %v1480_v57, %v1479_v54  ;;  %v6365_v54 = vld [vmem:[%s7061_s1 + $0x20] sm:$0xff] }
 0x383   :  { %v6372_v57 = vld [vmem:[%s7061_s1 + $0xa0] sm:$0xff] }
 0x384   :  { %v1482_v62 = vrot.slane %v1481_v60, 4 }
 0x386   :  { %v1483_v63 = vadd.f32 %v1482_v62, %v1481_v60  ;;  %v6379_v60 = vld [vmem:[%s7061_s1 + $0x28] sm:$0xff] }
 0x387   :  { %v6386_v62 = vld [vmem:[%s7061_s1 + $0xa8] sm:$0xff] }
 0x388   :  { %v1484_v10 = vrot.slane %v1483_v63, 2 }
 0x38a   :  { %v1485_v11 = vadd.f32 %v1484_v10, %v1483_v63  ;;  %v6397_v63 = vld [vmem:[%s7061_s1 + $0x30] sm:$0xff] }
 0x38b   :  { %v6404_v10 = vld [vmem:[%s7061_s1 + $0xb0] sm:$0xff] }
 0x38c   :  { %v1486_v7 = vrot.slane %v1485_v11, 1 }
 0x38e   :  { %v1487_v12 = vadd.f32 %v1486_v7, %v1485_v11  ;;  %v6411_v11 = vld [vmem:[%s7061_s1 + $0x38] sm:$0xff] }
 0x38f   :  { %v6418_v7 = vld [vmem:[%s7061_s1 + $0xb8] sm:$0xff] }
 0x390   :  { %v1488_v13 = vmul.f32 0.03125, %v1487_v12  ;;  %v6428_v12 = vld [vmem:[%s7061_s1 + $0x40] sm:$0xff] }
 0x392   :  { %v1489_v14 = vsub.f32 %v1458_v45, %v1488_v13  ;;  %v1490_v47 = vsub.f32 %v1461_v50, %v1488_v13  ;;  %v1491_v15 = vsub.f32 %v5045_v44, %v1488_v13  ;;  %v1492_v46 = vsub.f32 %v5046_v49, %v1488_v13  ;;  %v6435_v13 = vld [vmem:[%s7061_s1 + $0xe0] sm:$0xff] }
 0x394   :  { %v1493_v16 = vmul.f32 %v1489_v14, %v1489_v14  ;;  %v1494_v17 = vmul.f32 %v1490_v47, %v1490_v47  ;;  %v1495_v18 = vmul.f32 %v1491_v15, %v1491_v15  ;;  %v1496_v19 = vmul.f32 %v1492_v46, %v1492_v46 }
 0x396   :  { %v1497_v20 = vsel %vm42_vm0, %v1493_v16, 0.0  ;;  %v1498_v21 = vsel %vm42_vm0, %v1494_v17, 0.0  ;;  %v1500_v23 = vsel %vm42_vm0, %v1495_v18, 0.0  ;;  %v1502_v55 = vsel %vm42_vm0, %v1496_v19, 0.0  ;;  %v6472_v16 = vld [vmem:[%s7061_s1 + $0x58] sm:$0xff]  ;;  %v6487_v18 = vld [vmem:[%s7061_s1 + $0x80] sm:$0xff] }
 0x397   :  { %v1499_v22 = vadd.f32 %v1498_v21, %v1497_v20  ;;  %v6479_v17 = vld [vmem:[%s7061_s1 + $0xf8] sm:$0xff]  ;;  %v6495_v19 = vld [vmem:[%s7061_s1 + $0x88] sm:$0xff]  ;;  %v6503_v20 = vld [vmem:[%s7061_s1 + $0x90] sm:$0xff] }
 0x398   :  { %v6511_v21 = vld [vmem:[%s7061_s1 + $0x98] sm:$0xff] }
 0x399   :  { %v1501_v56 = vadd.f32 %v1500_v23, %v1499_v22  ;;  %v6519_v22 = vld [vmem:[%s7061_s1 + $0xc0] sm:$0xff]  ;;  %v6527_v23 = vld [vmem:[%s7061_s1 + $0xc8] sm:$0xff] }
 0x39b   :  { %v1503_v59 = vadd.f32 %v1502_v55, %v1501_v56  ;;  %v6535_v56 = vld [vmem:[%s7061_s1 + $0xd0] sm:$0xff]  ;;  %v6543_v55 = vld [vmem:[%s7061_s1 + $0xd8] sm:$0xff] }
 0x39d   :  { %v1504_v61 = vrot.slane %v1503_v59, 4 }
 0x39f   :  { %v1505_v58 = vadd.f32 %v1504_v61, %v1503_v59  ;;  %v6551_v59 = vld [vmem:[%s7061_s1 + $0x100] sm:$0xff]  ;;  %v6558_v61 = vld [vmem:[%s7061_s1 + $0x108] sm:$0xff] }
 0x3a1   :  { %v1506_v24 = vrot.slane %v1505_v58, 2 }
 0x3a3   :  { %v1507_v25 = vadd.f32 %v1506_v24, %v1505_v58  ;;  %v6565_v58 = vld [vmem:[%s7061_s1 + $0x110] sm:$0xff]  ;;  %v6572_v24 = vld [vmem:[%s7061_s1 + $0x118] sm:$0xff] }
 0x3a4   :  { %7075 = vst [vmem:[#allocation2_spill] sm:$0xff] %v6565_v58  ;;  %7076 = vst [vmem:[#allocation3_spill] sm:$0xff] %v6572_v24 }
 0x3a5   :  { %v1508_v26 = vrot.slane %v1507_v25, 1 }
 0x3a7   :  { %v1509_v27 = vadd.f32 %v1508_v26, %v1507_v25  ;;  %v5750_v25 = vld [vmem:[%s7062_s2 + $0xd0] sm:$0xff]  }
 0x3a8   :  { %v5751_v26 = vld [vmem:[%s7062_s2 + $0x90] sm:$0xff]  }
 0x3a9   :  { %v1510_v28 = vmul.f32 0.03125, %v1509_v27 }
 0x3ab   :  { %v1511_v8 = vadd.f32 1e-05, %v1510_v28 }
 0x3ad   :  { %5792 = vrsqrt.f32 %v1511_v8 }
 0x3b7   :  { %v5793_v29 = vpop.eup %5792 }
 0x3b8   :  { %v1513_v31 = vmul.f32 %v5793_v29, %v1489_v14  ;;  %v1514_v32 = vmul.f32 %v5793_v29, %v1490_v47  ;;  %v1515_v33 = vmul.f32 %v5793_v29, %v1491_v15  ;;  %v1516_v48 = vmul.f32 %v5793_v29, %v1492_v46  ;;  %v6442_v14 = vld [vmem:[%s7061_s1 + $0x48] sm:$0xff]  ;;  %v6457_v15 = vld [vmem:[%s7061_s1 + $0x50] sm:$0xff] }
 0x3b9   :  { %v6449_v47 = vld [vmem:[%s7061_s1 + $0xe8] sm:$0xff]  ;;  %v6465_v46 = vld [vmem:[%s7061_s1 + $0xf0] sm:$0xff] }
 0x3ba   :  { %v1523_v51 = vmul.f32 %v4363_v30, %v1513_v31  ;;  %v1524_v35 = vmul.f32 %v4363_v30, %v1514_v32  ;;  %v1525_v36 = vmul.f32 %v4363_v30, %v1515_v33  ;;  %v1526_v37 = vmul.f32 %v4363_v30, %v1516_v48  ;;  %v5752_v30 = vld [vmem:[%s7062_s2 + $0xd8] sm:$0xff]   ;;  %v5754_v32 = vld [vmem:[%s7062_s2 + $0xe0] sm:$0xff]  }
 0x3bb   :  { %v5753_v31 = vld [vmem:[%s7062_s2 + $0x98] sm:$0xff]  }
 0x3bc   :  { %v1533_v38 = vadd.f32 %v4364_v34, %v1523_v51  ;;  %v1534_v39 = vadd.f32 %v4364_v34, %v1524_v35  ;;  %v1535_v41 = vadd.f32 %v4364_v34, %v1525_v36  ;;  %v1536_v42 = vadd.f32 %v4364_v34, %v1526_v37  ;;  %v5755_v37 = vld [vmem:[%s7062_s2 + $0xa0] sm:$0xff]  }
 0x3be   :  { %v6272_v44 = vadd.f32 %v1533_v38, %v34_v3  ;;  %v6276_v45 = vadd.f32 %v1534_v39, %v35_v4  ;;  %v6280_v49 = vadd.f32 %v1535_v41, %v36_v6  ;;  %v6284_v50 = vadd.f32 %v1536_v42, %v37_v9  ;;  %v6315_v4 = vld [vmem:[%s7061_s1 + $0x8] sm:$0xff]  ;;  %v6333_v6 = vld [vmem:[%s7061_s1 + $0x10] sm:$0xff] }
 0x3bf   :  { %v6340_v9 = vld [vmem:[%s7061_s1 + $0x70] sm:$0xff] }
 0x3c0   :  { %v7072_v52 = vmax.f32 %v6272_v44, 0.0  ;;  %v7071_v43 = vmax.f32 %v6276_v45, 0.0  ;;  %v7070_v0 = vmax.f32 %v6280_v49, 0.0  ;;  %v7069_v3 = vmax.f32 %v6284_v50, 0.0 }
 0x3c2   :  { %v6294_v1 = vpack.c.bf16 %v7071_v43, %v7072_v52  ;;  %v6300_v2 = vpack.c.bf16 %v7069_v3, %v7070_v0 }
 0x3c4   :  { %5404 = vmatprep.subr.bf16.mxu0 %v6294_v1  ;;  %5428 = vmatprep.subr.bf16.mxu1 %v6294_v1 }
 0x3c5   :  { %5406 = vmatpush3.bf16.msra.mxu0 %v6294_v1  ;;  %5430 = vmatpush3.bf16.msra.mxu1 %v6294_v1 }
 0x3c6   :  { %5408 = vmatprep.subr.bf16.mxu0 %v6300_v2  ;;  %5432 = vmatprep.subr.bf16.mxu1 %v6300_v2 }
 0x3c9   :  { %5410 = vmatpush3.bf16.msra.mxu0 %v6300_v2  ;;  %5434 = vmatpush3.bf16.msra.mxu1 %v6300_v2 }
 0x3ca   :  { %5412 = vmatprep.subr.bf16.mxu0 %v6294_v1  ;;  %5444 = vmatprep.subr.bf16.mxu1 %v6294_v1 }
 0x3cc   :  { %5056 = vmatmul.mubr.msk.f32.vlgmr.msra.gmra.mrb[32].mxu0 %vm42_vm0, %v6315_v4  ;;  %5098 = vmatmul.mubr.msk.f32.vlgmr.msra.gmra.mrb[20].mxu1 %vm42_vm0, %v6322_v5 }
 0x3cd   :  { %5414 = vmatpush3.bf16.msra.mxu0 %v6294_v1  ;;  %5446 = vmatpush3.bf16.msra.mxu1 %v6294_v1 }
 0x3ce   :  { %5416 = vmatprep.subr.bf16.mxu0 %v6300_v2  ;;  %5448 = vmatprep.subr.bf16.mxu1 %v6300_v2 }
 0x3cf   :  { %5058 = vmatprep.mubr.msk.f32.mxu0 %vm42_vm0, %v6333_v6  ;;  %5100 = vmatprep.mubr.msk.f32.mxu1 %vm42_vm0, %v6340_v9 }
 0x3d0   :  { %5059 = vmatmul.mubr.msk.f32.gmra.mrb[34].mxu0 %vm42_vm0, %v6347_v40  ;;  %5101 = vmatmul.mubr.msk.f32.gmra.mrb[22].mxu1 %vm42_vm0, %v6354_v53 }
 0x3d1   :  { %5418 = vmatpush3.bf16.msra.mxu0 %v6300_v2  ;;  %5450 = vmatpush3.bf16.msra.mxu1 %v6300_v2 }
 0x3d2   :  { %5420 = vmatprep.subr.bf16.mxu0 %v6294_v1  ;;  %5460 = vmatprep.subr.bf16.mxu1 %v6294_v1 }
 0x3d3   :  { %5069 = vmatprep.mubr.msk.f32.mxu0 %vm42_vm0, %v6365_v54  ;;  %5125 = vmatprep.mubr.msk.f32.mxu1 %vm42_vm0, %v6372_v57 }
 0x3d4   :  { %5070 = vmatmul.mubr.msk.f32.vlgmr.msra.gmra.mrb[36].mxu0 %vm42_vm0, %v6379_v60  ;;  %5126 = vmatmul.mubr.msk.f32.vlgmr.msra.gmra.mrb[24].mxu1 %vm42_vm0, %v6386_v62 }
 0x3d5   :  { %5422 = vmatpush3.bf16.msra.mxu0 %v6294_v1  ;;  %5462 = vmatpush3.bf16.msra.mxu1 %v6294_v1 }
 0x3d6   :  { %5424 = vmatprep.subr.bf16.mxu0 %v6300_v2  ;;  %5464 = vmatprep.subr.bf16.mxu1 %v6300_v2 }
 0x3d7   :  { %5072 = vmatprep.mubr.msk.f32.mxu0 %vm42_vm0, %v6397_v63  ;;  %5128 = vmatprep.mubr.msk.f32.mxu1 %vm42_vm0, %v6404_v10 }
 0x3d8   :  { %5073 = vmatmul.mubr.msk.f32.gmra.mrb[38].mxu0 %vm42_vm0, %v6411_v11  ;;  %5129 = vmatmul.mubr.msk.f32.gmra.mrb[26].mxu1 %vm42_vm0, %v6418_v7 }
 0x3d9   :  { %5426 = vmatpush3.bf16.msra.mxu0 %v6300_v2  ;;  %5466 = vmatpush3.bf16.msra.mxu1 %v6300_v2 }
 0x3da   :  { %5436 = vmatprep.subr.bf16.mxu0 %v6294_v1  ;;  %5083 = vmatprep.mubr.msk.f32.mxu0 %vm42_vm0, %v6428_v12 }
 0x3db   :  { %5153 = vmatprep.mubr.msk.f32.mxu1 %vm42_vm0, %v6435_v13  ;;  %4761 = vmatprep.subr.bf16.mxu1 %v5750_v25 }
 0x3dc   :  { %5084 = vmatmul.mubr.msk.f32.vlgmr.msra.gmra.mrb[40].mxu0 %vm42_vm0, %v6442_v14  ;;  %5154 = vmatmul.mubr.msk.f32.vlgmr.msra.gmra.mrb[28].mxu1 %vm42_vm0, %v6449_v47 }
 0x3dd   :  { %5438 = vmatpush3.bf16.msra.mxu0 %v6294_v1  ;;  %5086 = vmatprep.mubr.msk.f32.mxu0 %vm42_vm0, %v6457_v15 }
 0x3de   :  { %5440 = vmatprep.subr.bf16.mxu0 %v6300_v2  ;;  %5156 = vmatprep.mubr.msk.f32.mxu1 %vm42_vm0, %v6465_v46 }
 0x3df   :  { %4762 = vmatpush3.bf16.msra.mxu1 %v5751_v26  ;;  %v5757_v26 = vld [vmem:[%s7062_s2 + $0xa8] sm:$0xff]  }
 0x3e0   :  { %5087 = vmatmul.mubr.msk.f32.gmra.mrb[42].mxu0 %vm42_vm0, %v6472_v16  ;;  %5157 = vmatmul.mubr.msk.f32.gmra.mrb[30].mxu1 %vm42_vm0, %v6479_v17 }
 0x3e1   :  { %5442 = vmatpush3.bf16.msra.mxu0 %v6300_v2  ;;  %5111 = vmatprep.mubr.msk.f32.mxu0 %vm42_vm0, %v6487_v18 }
 0x3e2   :  { %5452 = vmatprep.subr.bf16.mxu0 %v6294_v1  ;;  %4763 = vmatprep.subr.bf16.mxu1 %v5752_v30 }
 0x3e3   :  { %4764 = vmatpush3.bf16.msra.mxu1 %v5753_v31 }
 0x3e4   :  { %5112 = vmatmul.mubr.msk.f32.vlgmr.msra.gmra.mrb[44].mxu0 %vm42_vm0, %v6495_v19  ;;  %4765 = vmatprep.subr.bf16.mxu1 %v5754_v32  ;;  %v5758_v32 = vld [vmem:[%s7062_s2 + $0xf0] sm:$0xff]  }
 0x3e5   :  { %5454 = vmatpush3.bf16.msra.mxu0 %v6294_v1  ;;  %5114 = vmatprep.mubr.msk.f32.mxu0 %vm42_vm0, %v6503_v20 }
 0x3e6   :  { %5456 = vmatprep.subr.bf16.mxu0 %v6300_v2 }
 0x3e7   :  { %4766 = vmatpush3.bf16.msra.mxu1 %v5755_v37 }
 0x3e8   :  { %5115 = vmatmul.mubr.msk.f32.gmra.mrb[46].mxu0 %vm42_vm0, %v6511_v21 }
 0x3e9   :  { %5458 = vmatpush3.bf16.msra.mxu0 %v6300_v2  ;;  %5139 = vmatprep.mubr.msk.f32.mxu0 %vm42_vm0, %v6519_v22 }
 0x3ea   :  { %5468 = vmatprep.subr.bf16.mxu0 %v6294_v1 }
 0x3ec   :  { %5140 = vmatmul.mubr.msk.f32.vlgmr.msra.gmra.mrb[48].mxu0 %vm42_vm0, %v6527_v23 }
 0x3ed   :  { %5470 = vmatpush3.bf16.msra.mxu0 %v6294_v1  ;;  %5142 = vmatprep.mubr.msk.f32.mxu0 %vm42_vm0, %v6535_v56  ;;  %v5756_v1 = vld [vmem:[%s7062_s2 + $0xe8] sm:$0xff]  }
 0x3ee   :  { %5472 = vmatprep.subr.bf16.mxu0 %v6300_v2  ;;  %4767 = vmatprep.subr.bf16.mxu1 %v5756_v1 }
 0x3ef   :  { %4768 = vmatpush3.bf16.msra.mxu1 %v5757_v26  ;;  %v5762_v26 = vld [vmem:[%s7062_s2 + $0x100] sm:$0xff]  }
 0x3f0   :  { %5143 = vmatmul.mubr.msk.f32.gmra.mrb[50].mxu0 %vm42_vm0, %v6543_v55  ;;  %4769 = vmatprep.subr.bf16.mxu1 %v5758_v32 }
 0x3f1   :  { %5474 = vmatpush3.bf16.msra.mxu0 %v6300_v2  ;;  %5167 = vmatprep.mubr.msk.f32.mxu0 %vm42_vm0, %v6551_v59 }
 0x3f4   :  { %5168 = vmatmul.mubr.msk.f32.vlgmr.msra.gmra.mrb[52].mxu0 %vm42_vm0, %v6558_v61 }
 0x3f5   :  { %5170 = vmatprep.mubr.msk.f32.mxu0 %vm42_vm0, %v6565_v58 }
 0x3f8   :  { %5171 = vmatmul.mubr.msk.f32.gmra.mrb[54].mxu0 %vm42_vm0, %v6572_v24 }
 0x49f   :  { %v6582_v27 = vpop.f32.mrb[32].mxu0  ;;  %v5099_v28 = vpop.f32.mrb[20].mxu1 }
 0x4a0   :  { %v6584_v8 = vpop.f32.mrb[33].mxu0  ;;  %v1866_v29 = vpop.f32.mrb[21].mxu1 }
 0x4a1   :  { %v5610_v33 = vpack.i.bf16 %v5099_v28, %v1866_v29 }
 0x4a3   :  { %v6595_v48 = vpop.f32.mrb[34].mxu0  ;;  %v6597_v34 = vpop.f32.mrb[22].mxu1  ;;  %5611 = vrot.lane.b32.xlu1 %v5610_v33, %s5838_s23 }
 0x4a4   :  { %v6600_v51 = vpop.f32.mrb[35].mxu0  ;;  %v6602_v35 = vpop.f32.mrb[23].mxu1 }
 0x4a5   :  { %v5665_v36 = vpack.i.bf16 %v6597_v34, %v6602_v35  ;;  %v5759_v35 = vld [vmem:[%s7062_s2 + $0xb0] sm:$0xff]  }
 0x4a6   :  { %4770 = vmatpush3.bf16.msra.mxu1 %v5759_v35 }
 0x4a7   :  { %v5071_v38 = vpop.f32.mrb[36].mxu0  ;;  %v5127_v39 = vpop.f32.mrb[24].mxu1 }
 0x4a8   :  { %v1696_v41 = vpop.f32.mrb[37].mxu0  ;;  %v2036_v42 = vpop.f32.mrb[25].mxu1 }
 0x4a9   :  { %v5620_v2 = vpack.i.bf16 %v5071_v38, %v1696_v41  ;;  %v5615_v25 = vpack.i.bf16 %v5127_v39, %v2036_v42  ;;  %v5760_v42 = vld [vmem:[%s7062_s2 + $0xf8] sm:$0xff]  }
 0x4aa   :  { %4771 = vmatprep.subr.bf16.mxu1 %v5760_v42  ;;  %v5765_v42 = vld [vmem:[%s7062_s2 + $0x108] sm:$0xff]  }
 0x4ab   :  { %5616 = vrot.lane.b32.xlu0 %v5615_v25, %s5839_s14  ;;  %5621 = vrot.lane.b32.xlu1 %v5620_v2, %s5839_s14  ;;  %v5074_v28 = vpop.f32.mrb[38].mxu0  ;;  %v5130_v29 = vpop.f32.mrb[26].mxu1  ;;  %v5761_v25 = vld [vmem:[%s7062_s2 + $0xb8] sm:$0xff]  }
 0x4ac   :  { %v1706_v30 = vpop.f32.mrb[39].mxu0  ;;  %v2046_v31 = vpop.f32.mrb[27].mxu1  ;;  %4772 = vmatpush3.bf16.msra.mxu1 %v5761_v25 }
 0x4ad   :  { %v5645_v33 = vpack.i.bf16 %v5074_v28, %v1706_v30  ;;  %v5640_v34 = vpack.i.bf16 %v5130_v29, %v2046_v31  ;;  %4773 = vmatprep.subr.bf16.mxu1 %v5762_v26 }
 0x4af   :  { %v5085_v37 = vpop.f32.mrb[40].mxu0  ;;  %v5155_v38 = vpop.f32.mrb[28].mxu1 }
 0x4b0   :  { %v1781_v39 = vpop.f32.mrb[41].mxu0  ;;  %v2206_v41 = vpop.f32.mrb[29].mxu1 }
 0x4b1   :  { %v5625_v1 = vpack.i.bf16 %v5085_v37, %v1781_v39  ;;  %v5630_v2 = vpack.i.bf16 %v5155_v38, %v2206_v41  ;;  %v5763_v37 = vld [vmem:[%s7062_s2 + $0xc0] sm:$0xff]   ;;  %v5764_v38 = vld [vmem:[%s7062_s2 + $0x110] sm:$0xff]  }
 0x4b2   :  { %4774 = vmatpush3.bf16.msra.mxu1 %v5763_v37  ;;  %5173 = vmatprep.subr.bf16.mxu0 %v5764_v38 }
 0x4b3   :  { %5626 = vrot.lane.b32.xlu1 %v5625_v1, %s5840_s20  ;;  %v5088_v28 = vpop.f32.mrb[42].mxu0  ;;  %5631 = vrot.lane.b32.xlu0 %v5630_v2, %s5838_s23  ;;  %v5158_v29 = vpop.f32.mrb[30].mxu1  ;;  %v5766_v1 = vld [vmem:[%s7062_s2 + $0xc8] sm:$0xff]  }
 0x4b4   :  { %v1791_v30 = vpop.f32.mrb[43].mxu0  ;;  %v2216_v31 = vpop.f32.mrb[31].mxu1  ;;  %5174 = vmatpush3.bf16.msra.mxu0 %v5764_v38  ;;  %4775 = vmatprep.subr.bf16.mxu1 %v5765_v42 }
 0x4b5   :  { %v5650_v32 = vpack.i.bf16 %v5088_v28, %v1791_v30  ;;  %v5660_v35 = vpack.i.bf16 %v5158_v29, %v2216_v31 }
 0x4b6   :  { %4776 = vmatpush3.bf16.msra.mxu1 %v5766_v1 }
 0x4b7   :  { %5646 = vrot.lane.b32.xlu1 %v5645_v33, %s5839_s14  ;;  %v6641_v39 = vpop.f32.mrb[44].mxu0  ;;  %v5767_v33 = vld [vmem:[%s7062_s2 + $0x118] sm:$0xff]  }
 0x4b8   :  { %v6643_v41 = vpop.f32.mrb[45].mxu0  ;;  %5175 = vmatprep.subr.bf16.mxu0 %v5767_v33 }
 0x4b9   :  { %5176 = vmatpush3.bf16.msra.mxu0 %v5767_v33 }
 0x4bb   :  { %5651 = vrot.lane.b32.xlu1 %v5650_v32, %s5840_s20  ;;  %v6655_v2 = vpop.f32.mrb[46].mxu0 }
 0x4bc   :  { %v6657_v25 = vpop.f32.mrb[47].mxu0 }
 0x4bf   :  { %5666 = vrot.lane.b32.xlu1 %v5665_v36, %s5838_s23  ;;  %v5141_v26 = vpop.f32.mrb[48].mxu0 }
 0x4c0   :  { %v2121_v28 = vpop.f32.mrb[49].mxu0 }
 0x4c1   :  { %v5635_v29 = vpack.i.bf16 %v5141_v26, %v2121_v28 }
 0x4c3   :  { %5636 = vrot.lane.b32.xlu0 %v5635_v29, %s5840_s20  ;;  %v5144_v30 = vpop.f32.mrb[50].mxu0 }
 0x4c4   :  { %v2131_v31 = vpop.f32.mrb[51].mxu0 }
 0x4c5   :  { %v5655_v37 = vpack.i.bf16 %v5144_v30, %v2131_v31 }
 0x4c7   :  { %5641 = vrot.lane.b32.xlu0 %v5640_v34, %s5839_s14  ;;  %v5169_v32 = vpop.f32.mrb[52].mxu0 }
 0x4c8   :  { %v2291_v38 = vpop.f32.mrb[53].mxu0 }
 0x4c9   :  { %v2432_v42 = vpack.c.bf16 %v5169_v32, %v2291_v38 }
 0x4cb   :  { %5656 = vrot.lane.b32.xlu0 %v5655_v37, %s5840_s20  ;;  %v5172_v1 = vpop.f32.mrb[54].mxu0  ;;  %5177 = vmatprep.mubr.msk.bf16.mxu0 %vm42_vm0, %v2432_v42 }
 0x4cc   :  { %v2301_v33 = vpop.f32.mrb[55].mxu0 }
 0x4cd   :  { %v2435_v36 = vpack.c.bf16 %v5172_v1, %v2301_v33 }
 0x4cf   :  { %5661 = vrot.lane.b32.xlu0 %v5660_v35, %s5838_s23  ;;  %5178 = vmatmul.mubr.msk.bf16.vlgmr.msra.gmra.mrb[56].mxu0 %vm42_vm0, %v2435_v36 }
 0x515   :  { %v5612_v26 = vpop.permute.xlu1 %5611 }
 0x516   :  { %v5614_v0 = vunpack.i.h.bf16 %v5612_v26  ;;  %v5613_v32 = vunpack.i.l.bf16 %v5612_v26 }
 0x51d   :  { %v5622_v28 = vpop.permute.xlu1 %5621  ;;  %v5617_v43 = vpop.permute.xlu0 %5616 }
 0x51e   :  { %v5624_v29 = vunpack.i.h.bf16 %v5622_v28  ;;  %v5623_v30 = vunpack.i.l.bf16 %v5622_v28 }
 0x520   :  { %v2407_v37 = vsel %vm42_vm0, %v6582_v27, %v5624_v29  ;;  %v2406_v38 = vsel %vm42_vm0, %v6584_v8, %v5623_v30 }
 0x525   :  { %v5627_v31 = vpop.permute.xlu1 %5626  ;;  %v5632_v27 = vpop.permute.xlu0 %5631 }
 0x526   :  { %v5629_v34 = vunpack.i.h.bf16 %v5627_v31  ;;  %v5628_v3 = vunpack.i.l.bf16 %v5627_v31 }
 0x528   :  { %v2411_v42 = vsel %vm1056_vm1, %v2407_v37, %v5629_v34  ;;  %v2410_v35 = vsel %vm1056_vm1, %v2406_v38, %v5628_v3  ;;  %v5619_v34 = vunpack.i.h.bf16 %v5617_v43 }
 0x529   :  { %v2415_v1 = vsel %vm1061_vm2, %v2411_v42, %v5614_v0  ;;  %v2414_v33 = vsel %vm1061_vm2, %v2410_v35, %v5613_v32  ;;  %v5647_v36 = vpop.permute.xlu1 %5646  ;;  %v5618_v32 = vunpack.i.l.bf16 %v5617_v43  ;;  %v5633_v43 = vunpack.i.l.bf16 %v5632_v27 }
 0x52a   :  { %v2430_v28 = vpack.c.bf16 %v2415_v1, %v2414_v33  ;;  %v5649_v52 = vunpack.i.h.bf16 %v5647_v36  ;;  %v5648_v26 = vunpack.i.l.bf16 %v5647_v36 }
 0x52c   :  { %v2409_v8 = vsel %vm42_vm0, %v6595_v48, %v5649_v52  ;;  %v2408_v3 = vsel %vm42_vm0, %v6600_v51, %v5648_v26  ;;  %v2418_v52 = vsel %vm42_vm0, %v6643_v41, %v5618_v32  ;;  %v2419_v48 = vsel %vm42_vm0, %v6641_v39, %v5619_v34 }
 0x52d   :  { %v5652_v31 = vpop.permute.xlu1 %5651  ;;  %v5634_v51 = vunpack.i.h.bf16 %v5632_v27 }
 0x52e   :  { %v5654_v24 = vunpack.i.h.bf16 %v5652_v31  ;;  %v5653_v58 = vunpack.i.l.bf16 %v5652_v31 }
 0x530   :  { %v2413_v37 = vsel %vm1056_vm1, %v2409_v8, %v5654_v24  ;;  %v2412_v38 = vsel %vm1056_vm1, %v2408_v3, %v5653_v58 }
 0x531   :  { %v5667_v29 = vpop.permute.xlu1 %5666 }
 0x532   :  { %v5669_v30 = vunpack.i.h.bf16 %v5667_v29  ;;  %v5668_v0 = vunpack.i.l.bf16 %v5667_v29 }
 0x534   :  { %v2416_v42 = vsel %vm1061_vm2, %v2412_v38, %v5668_v0  ;;  %v2417_v35 = vsel %vm1061_vm2, %v2413_v37, %v5669_v30 }
 0x535   :  { %v5637_v1 = vpop.permute.xlu0 %5636  ;;  %v2433_v33 = vpack.c.bf16 %v2417_v35, %v2416_v42 }
 0x536   :  { %v5639_v36 = vunpack.i.h.bf16 %v5637_v1  ;;  %v5638_v31 = vunpack.i.l.bf16 %v5637_v1 }
 0x538   :  { %v2423_v24 = vsel %vm1056_vm1, %v2419_v48, %v5639_v36  ;;  %v2422_v58 = vsel %vm1056_vm1, %v2418_v52, %v5638_v31 }
 0x539   :  { %v5642_v26 = vpop.permute.xlu0 %5641  ;;  %v2426_v29 = vsel %vm1061_vm2, %v2422_v58, %v5633_v43  ;;  %v2427_v8 = vsel %vm1061_vm2, %v2423_v24, %v5634_v51  ;;  %v5768_v43 = vld [vmem:[%s7063_s5 + $0x10] sm:$0xff]  }
 0x53a   :  { %v2431_v3 = vpack.c.bf16 %v2427_v8, %v2426_v29  ;;  %v5644_v0 = vunpack.i.h.bf16 %v5642_v26  ;;  %v5643_v41 = vunpack.i.l.bf16 %v5642_v26  ;;  %5181 = vmatprep.subr.bf16.mxu0 %v5768_v43 }
 0x53b   :  { %5182 = vmatpush3.bf16.msra.mxu0 %v5768_v43 }
 0x53c   :  { %2619 = vmatprep.mubr.bf16.mxu1 %v2431_v3  ;;  %v2421_v27 = vsel %vm42_vm0, %v6655_v2, %v5644_v0  ;;  %v2420_v34 = vsel %vm42_vm0, %v6657_v25, %v5643_v41  ;;  %v5836_v2 = vld [vmem:[%s7061_s1 + $0x60] sm:$0xff] }
 0x53d   :  { %2620 = vmatmul.mubr.bf16.vlgmr.msra.gmra.mrb[32].mxu1 %v2430_v28  ;;  %v5657_v30 = vpop.permute.xlu0 %5656 }
 0x53e   :  { %v5659_v32 = vunpack.i.h.bf16 %v5657_v30  ;;  %v5658_v37 = vunpack.i.l.bf16 %v5657_v30 }
 0x540   :  { %v2425_v35 = vsel %vm1056_vm1, %v2421_v27, %v5659_v32  ;;  %v2424_v1 = vsel %vm1056_vm1, %v2420_v34, %v5658_v37 }
 0x541   :  { %v5662_v39 = vpop.permute.xlu0 %5661 }
 0x542   :  { %v5664_v38 = vunpack.i.h.bf16 %v5662_v39  ;;  %v5663_v42 = vunpack.i.l.bf16 %v5662_v39 }
 0x544   :  { %v2428_v28 = vsel %vm1061_vm2, %v2424_v1, %v5663_v42  ;;  %v2429_v36 = vsel %vm1061_vm2, %v2425_v35, %v5664_v38 }
 0x545   :  { %v2434_v31 = vpack.c.bf16 %v2429_v36, %v2428_v28 }
 0x547   :  { %2627 = vmatprep.mubr.bf16.mxu1 %v2434_v31 }
 0x548   :  { %2628 = vmatmul.mubr.bf16.gmra.mrb[36].mxu1 %v2433_v33  ;;  %v5769_v33 = vld [vmem:[%s7063_s5 + $0x18] sm:$0xff]  }
 0x549   :  { %5239 = vmatprep.mubr.msk.f32.mxu1 %vm42_vm0, %v5836_v2  ;;  %5183 = vmatprep.subr.bf16.mxu0 %v5769_v33 }
 0x54a   :  { %5184 = vmatpush3.bf16.msra.mxu0 %v5769_v33 }
 0x5a2   :  { %v5179_v25 = vpop.f32.mrb[56].mxu0 }
 0x5a3   :  { %v2670_v52 = vpop.f32.mrb[57].mxu0 }
 0x5a4   :  { %v5180_v48 = vpop.f32.mrb[58].mxu0 }
 0x5a5   :  { %v2673_v51 = vpop.f32.mrb[59].mxu0 }
 0x610   :  { %v4777_v24 = vpop.f32.mrb[32].mxu1 }
 0x611   :  { %v4778_v58 = vpop.f32.mrb[33].mxu1 }
 0x612   :  { %v4779_v26 = vadd.f32 %v4778_v58, %v4777_v24  ;;  %v4780_v29 = vpop.f32.mrb[34].mxu1 }
 0x613   :  { %v4781_v8 = vpop.f32.mrb[35].mxu1 }
 0x614   :  { %v4782_v3 = vadd.f32 %v4781_v8, %v4780_v29  ;;  %v2671_v30 = vadd.f32 %v4779_v26, %v2670_v52 }
 0x616   :  { %v2674_v0 = vadd.f32 %v4782_v3, %v2673_v51  ;;  %v2689_v41 = vsel %vm42_vm0, %v2671_v30, 0.0 }
 0x618   :  { %v2690_v32 = vsel %vm42_vm0, %v2674_v0, 0.0 }
 0x619   :  { %v2691_v37 = vadd.f32 %v2690_v32, %v2689_v41 }
 0x61b   :  { %v4783_v39 = vpop.f32.mrb[36].mxu1 }
 0x61c   :  { %v4784_v27 = vpop.f32.mrb[37].mxu1 }
 0x61d   :  { %v4785_v34 = vadd.f32 %v4784_v27, %v4783_v39  ;;  %v4786_v38 = vpop.f32.mrb[38].mxu1 }
 0x61e   :  { %v4787_v42 = vpop.f32.mrb[39].mxu1 }
 0x61f   :  { %v2679_v35 = vadd.f32 %v5179_v25, %v4785_v34  ;;  %v4788_v1 = vadd.f32 %v4787_v42, %v4786_v38 }
 0x621   :  { %v2692_v28 = vsel %vm42_vm0, %v2679_v35, 0.0  ;;  %v2682_v36 = vadd.f32 %v5180_v48, %v4788_v1 }
 0x622   :  { %v2693_v31 = vadd.f32 %v2692_v28, %v2691_v37 }
 0x623   :  { %v2694_v2 = vsel %vm42_vm0, %v2682_v36, 0.0 }
 0x624   :  { %v2695_v52 = vadd.f32 %v2694_v2, %v2693_v31 }
 0x626   :  { %v2696_v51 = vrot.slane %v2695_v52, 4 }
 0x628   :  { %v2697_v43 = vadd.f32 %v2696_v51, %v2695_v52 }
 0x62a   :  { %v2698_v33 = vrot.slane %v2697_v43, 2 }
 0x62c   :  { %v2699_v24 = vadd.f32 %v2698_v33, %v2697_v43 }
 0x62e   :  { %v2700_v58 = vrot.slane %v2699_v24, 1 }
 0x630   :  { %v2701_v26 = vadd.f32 %v2700_v58, %v2699_v24  ;;  %v4459_v24 = vld [vmem:[%s7064_s3 + $0x1] ss:$0 sm:$0xff] }
 0x632   :  { %v2702_v29 = vmul.f32 0.03125, %v2701_v26 }
 0x634   :  { %v2703_v8 = vsub.f32 %v2671_v30, %v2702_v29  ;;  %v2704_v3 = vsub.f32 %v2674_v0, %v2702_v29  ;;  %v2705_v41 = vsub.f32 %v2679_v35, %v2702_v29  ;;  %v2706_v32 = vsub.f32 %v2682_v36, %v2702_v29 }
 0x636   :  { %v2707_v25 = vmul.f32 %v2703_v8, %v2703_v8  ;;  %v2708_v39 = vmul.f32 %v2704_v3, %v2704_v3  ;;  %v2709_v27 = vmul.f32 %v2705_v41, %v2705_v41  ;;  %v2710_v34 = vmul.f32 %v2706_v32, %v2706_v32 }
 0x638   :  { %v2711_v48 = vsel %vm42_vm0, %v2707_v25, 0.0  ;;  %v2712_v37 = vsel %vm42_vm0, %v2708_v39, 0.0  ;;  %v2714_v42 = vsel %vm42_vm0, %v2709_v27, 0.0  ;;  %v2716_v28 = vsel %vm42_vm0, %v2710_v34, 0.0  ;;  %v4460_v39 = vld [vmem:[%s7065_s4 + $0x1] ss:$0 sm:$0xff] }
 0x639   :  { %v2713_v38 = vadd.f32 %v2712_v37, %v2711_v48 }
 0x63b   :  { %v2715_v1 = vadd.f32 %v2714_v42, %v2713_v38 }
 0x63d   :  { %v2717_v31 = vadd.f32 %v2716_v28, %v2715_v1 }
 0x63f   :  { %v2718_v2 = vrot.slane %v2717_v31, 4 }
 0x641   :  { %v2719_v30 = vadd.f32 %v2718_v2, %v2717_v31 }
 0x643   :  { %v2720_v0 = vrot.slane %v2719_v30, 2 }
 0x645   :  { %v2721_v35 = vadd.f32 %v2720_v0, %v2719_v30 }
 0x647   :  { %v2722_v36 = vrot.slane %v2721_v35, 1 }
 0x649   :  { %v2723_v52 = vadd.f32 %v2722_v36, %v2721_v35 }
 0x64b   :  { %v2724_v51 = vmul.f32 0.03125, %v2723_v52 }
 0x64d   :  { %v2725_v43 = vadd.f32 1e-05, %v2724_v51 }
 0x64f   :  { %5794 = vrsqrt.f32 %v2725_v43 }
 0x659   :  { %v5795_v33 = vpop.eup %5794 }
 0x65a   :  { %v2730_v58 = vmul.f32 %v5795_v33, %v2706_v32  ;;  %v2727_v26 = vmul.f32 %v5795_v33, %v2703_v8  ;;  %v2728_v29 = vmul.f32 %v5795_v33, %v2704_v3  ;;  %v2729_v25 = vmul.f32 %v5795_v33, %v2705_v41  ;;  %v5837_v3 = vld [vmem:[%s7061_s1] sm:$0xff] }
 0x65c   :  { %v2740_v27 = vmul.f32 %v4459_v24, %v2730_v58  ;;  %v2737_v34 = vmul.f32 %v4459_v24, %v2727_v26  ;;  %v2738_v48 = vmul.f32 %v4459_v24, %v2728_v29  ;;  %v2739_v37 = vmul.f32 %v4459_v24, %v2729_v25 }
 0x65e   :  { %v2750_v38 = vadd.f32 %v4460_v39, %v2740_v27  ;;  %v2747_v42 = vadd.f32 %v4460_v39, %v2737_v34  ;;  %v2748_v1 = vadd.f32 %v4460_v39, %v2738_v48  ;;  %v2749_v28 = vadd.f32 %v4460_v39, %v2739_v37 }
 0x660   :  { %v2754_v31 = vmax.f32 %v2750_v38, 0.0  ;;  %v2751_v2 = vmax.f32 %v2747_v42, 0.0  ;;  %v2752_v30 = vmax.f32 %v2748_v1, 0.0  ;;  %v2753_v0 = vmax.f32 %v2749_v28, 0.0 }
 0x662   :  { %v2755_v32 = vpack.c.bf16 %v2752_v30, %v2751_v2  ;;  %v2756_v8 = vpack.c.bf16 %v2754_v31, %v2753_v0 }
 0x664   :  { %5185 = vmatprep.mubr.msk.bf16.mxu0 %vm42_vm0, %v2755_v32 }
 0x665   :  { %5186 = vmatmul.mubr.msk.bf16.vlgmr.msra.gmra.mrb[60].mxu0 %vm42_vm0, %v2756_v8 }
 0x666   :  { %5197 = vmatprep.mubr.msk.f32.mxu0 %vm42_vm0, %v5837_v3 }
 0x738   :  { %v5187_v41 = vpop.f32.mrb[60].mxu0 }
 0x739   :  { %v2814_v35 = vpop.f32.mrb[61].mxu0  ;;  %v2836_v24 = vsel %vm42_vm0, %v5187_v41, 0.0 }
 0x73a   :  { %v5188_v36 = vpop.f32.mrb[62].mxu0  ;;  %v2833_v51 = vsel %vm42_vm0, %v2814_v35, 0.0 }
 0x73b   :  { %v2817_v52 = vpop.f32.mrb[63].mxu0  ;;  %v2838_v26 = vsel %vm42_vm0, %v5188_v36, 0.0 }
 0x73c   :  { %v2834_v43 = vsel %vm42_vm0, %v2817_v52, 0.0 }
 0x73d   :  { %v2835_v33 = vadd.f32 %v2834_v43, %v2833_v51 }
 0x73f   :  { %v2837_v58 = vadd.f32 %v2836_v24, %v2835_v33 }
 0x741   :  { %v2839_v29 = vadd.f32 %v2838_v26, %v2837_v58 }
 0x743   :  { %v2840_v25 = vrot.slane %v2839_v29, 4 }
 0x745   :  { %v2841_v39 = vadd.f32 %v2840_v25, %v2839_v29 }
 0x747   :  { %v2842_v27 = vrot.slane %v2841_v39, 2 }
 0x749   :  { %v2843_v34 = vadd.f32 %v2842_v27, %v2841_v39 }
 0x74b   :  { %v2844_v48 = vrot.slane %v2843_v34, 1 }
 0x74d   :  { %v2845_v37 = vadd.f32 %v2844_v48, %v2843_v34  ;;  %v4471_v34 = vld [vmem:[%s7066_s6 + $0x1] ss:$0 sm:$0xff] }
 0x74f   :  { %v2846_v38 = vmul.f32 0.03125, %v2845_v37 }
 0x751   :  { %v2847_v42 = vsub.f32 %v2814_v35, %v2846_v38  ;;  %v2848_v1 = vsub.f32 %v2817_v52, %v2846_v38  ;;  %v2849_v28 = vsub.f32 %v5187_v41, %v2846_v38  ;;  %v2850_v31 = vsub.f32 %v5188_v36, %v2846_v38 }
 0x753   :  { %v2851_v2 = vmul.f32 %v2847_v42, %v2847_v42  ;;  %v2852_v30 = vmul.f32 %v2848_v1, %v2848_v1  ;;  %v2853_v0 = vmul.f32 %v2849_v28, %v2849_v28  ;;  %v2854_v32 = vmul.f32 %v2850_v31, %v2850_v31 }
 0x755   :  { %v2855_v8 = vsel %vm42_vm0, %v2851_v2, 0.0  ;;  %v2856_v3 = vsel %vm42_vm0, %v2852_v30, 0.0  ;;  %v2858_v43 = vsel %vm42_vm0, %v2853_v0, 0.0  ;;  %v2860_v24 = vsel %vm42_vm0, %v2854_v32, 0.0  ;;  %v4472_v30 = vld [vmem:[%s7067_s7 + $0x1] ss:$0 sm:$0xff] }
 0x756   :  { %v2857_v51 = vadd.f32 %v2856_v3, %v2855_v8 }
 0x758   :  { %v2859_v33 = vadd.f32 %v2858_v43, %v2857_v51 }
 0x75a   :  { %v2861_v58 = vadd.f32 %v2860_v24, %v2859_v33 }
 0x75c   :  { %v2862_v26 = vrot.slane %v2861_v58, 4 }
 0x75e   :  { %v2863_v35 = vadd.f32 %v2862_v26, %v2861_v58  ;;  %v7077_v58 = vmax.f32 %v6272_v44, 0.0 }
 0x760   :  { %v2864_v52 = vrot.slane %v2863_v35, 2 }
 0x762   :  { %v2865_v41 = vadd.f32 %v2864_v52, %v2863_v35  ;;  %v7080_v35 = vmax.f32 %v6284_v50, 0.0  ;;  %v7081_v50 = vld [vmem:[#allocation2_spill] sm:$0xff] }
 0x764   :  { %v2866_v36 = vrot.slane %v2865_v41, 1 }
 0x766   :  { %v2867_v29 = vadd.f32 %v2866_v36, %v2865_v41 }
 0x768   :  { %v2868_v25 = vmul.f32 0.03125, %v2867_v29 }
 0x76a   :  { %v2869_v39 = vadd.f32 1e-05, %v2868_v25  ;;  %v5779_v25 = vld [vmem:[%s7062_s2 + $0x140] sm:$0xff]  }
 0x76c   :  { %5796 = vrsqrt.f32 %v2869_v39 }
 0x776   :  { %v5797_v27 = vpop.eup %5796 }
 0x777   :  { %v2871_v48 = vmul.f32 %v5797_v27, %v2847_v42  ;;  %v2872_v37 = vmul.f32 %v5797_v27, %v2848_v1  ;;  %v2873_v38 = vmul.f32 %v5797_v27, %v2849_v28  ;;  %v2874_v2 = vmul.f32 %v5797_v27, %v2850_v31 }
 0x778   :  { %v7078_v42 = vmax.f32 %v6276_v45, 0.0  ;;  %v7079_v28 = vmax.f32 %v6280_v49, 0.0 }
 0x779   :  { %v2881_v0 = vmul.f32 %v4471_v34, %v2871_v48  ;;  %v2882_v32 = vmul.f32 %v4471_v34, %v2872_v37  ;;  %v2883_v8 = vmul.f32 %v4471_v34, %v2873_v38  ;;  %v2884_v3 = vmul.f32 %v4471_v34, %v2874_v2  ;;  %v5780_v37 = vld [vmem:[%s7062_s2 + $0x188] sm:$0xff]  }
 0x77b   :  { %v2891_v51 = vadd.f32 %v4472_v30, %v2881_v0  ;;  %v2892_v43 = vadd.f32 %v4472_v30, %v2882_v32  ;;  %v2893_v33 = vadd.f32 %v4472_v30, %v2883_v8  ;;  %v2894_v24 = vadd.f32 %v4472_v30, %v2884_v3  ;;  %v5781_v30 = vld [vmem:[%s7062_s2 + $0x148] sm:$0xff]   ;;  %v5782_v0 = vld [vmem:[%s7062_s2 + $0x190] sm:$0xff]  }
 0x77d   :  { %v6744_v26 = vadd.f32 %v2891_v51, %v7077_v58  ;;  %v6748_v1 = vadd.f32 %v2892_v43, %v7078_v42  ;;  %v6752_v31 = vadd.f32 %v2893_v33, %v7079_v28  ;;  %v6756_v52 = vadd.f32 %v2894_v24, %v7080_v35  ;;  %v5783_v24 = vld [vmem:[%s7062_s2 + $0x150] sm:$0xff]   ;;  %v5784_v58 = vld [vmem:[%s7062_s2 + $0x1a0] sm:$0xff]   ;;  %v5785_v35 = vld [vmem:[%s7062_s2 + $0x198] sm:$0xff]  }
 0x77f   :  { %v2899_v41 = vmax.f32 %v6744_v26, 0.0  ;;  %v2900_v36 = vmax.f32 %v6748_v1, 0.0  ;;  %v2901_v44 = vmax.f32 %v6752_v31, 0.0  ;;  %v2902_v29 = vmax.f32 %v6756_v52, 0.0 }
 0x781   :  { %v6766_v45 = vpack.c.bf16 %v2900_v36, %v2899_v41  ;;  %v6772_v49 = vpack.c.bf16 %v2902_v29, %v2901_v44 }
 0x783   :  { %5476 = vmatprep.subr.bf16.mxu0 %v6766_v45  ;;  %5500 = vmatprep.subr.bf16.mxu1 %v6766_v45 }
 0x784   :  { %5478 = vmatpush3.bf16.msra.mxu0 %v6766_v45  ;;  %5502 = vmatpush3.bf16.msra.mxu1 %v6766_v45 }
 0x785   :  { %5480 = vmatprep.subr.bf16.mxu0 %v6772_v49  ;;  %5504 = vmatprep.subr.bf16.mxu1 %v6772_v49 }
 0x788   :  { %5482 = vmatpush3.bf16.msra.mxu0 %v6772_v49  ;;  %5506 = vmatpush3.bf16.msra.mxu1 %v6772_v49 }
 0x789   :  { %5484 = vmatprep.subr.bf16.mxu0 %v6766_v45  ;;  %5516 = vmatprep.subr.bf16.mxu1 %v6766_v45 }
 0x78b   :  { %5198 = vmatmul.mubr.msk.f32.vlgmr.msra.gmra.mrb[64].mxu0 %vm42_vm0, %v6315_v4  ;;  %5240 = vmatmul.mubr.msk.f32.vlgmr.msra.gmra.mrb[40].mxu1 %vm42_vm0, %v6322_v5  ;;  %v7082_v4 = vld [vmem:[#allocation3_spill] sm:$0xff]  ;;  %v5770_v5 = vld [vmem:[%s7062_s2 + $0x160] sm:$0xff]  }
 0x78c   :  { %5486 = vmatpush3.bf16.msra.mxu0 %v6766_v45  ;;  %5518 = vmatpush3.bf16.msra.mxu1 %v6766_v45 }
 0x78d   :  { %5488 = vmatprep.subr.bf16.mxu0 %v6772_v49  ;;  %5520 = vmatprep.subr.bf16.mxu1 %v6772_v49 }
 0x78e   :  { %5200 = vmatprep.mubr.msk.f32.mxu0 %vm42_vm0, %v6333_v6  ;;  %5242 = vmatprep.mubr.msk.f32.mxu1 %vm42_vm0, %v6340_v9  ;;  %v5771_v6 = vld [vmem:[%s7062_s2 + $0x120] sm:$0xff]  }
 0x78f   :  { %5201 = vmatmul.mubr.msk.f32.gmra.mrb[66].mxu0 %vm42_vm0, %v6347_v40  ;;  %5243 = vmatmul.mubr.msk.f32.gmra.mrb[42].mxu1 %vm42_vm0, %v6354_v53 }
 0x790   :  { %5490 = vmatpush3.bf16.msra.mxu0 %v6772_v49  ;;  %5522 = vmatpush3.bf16.msra.mxu1 %v6772_v49 }
 0x791   :  { %5492 = vmatprep.subr.bf16.mxu0 %v6766_v45  ;;  %5532 = vmatprep.subr.bf16.mxu1 %v6766_v45 }
 0x792   :  { %5211 = vmatprep.mubr.msk.f32.mxu0 %vm42_vm0, %v6365_v54  ;;  %5267 = vmatprep.mubr.msk.f32.mxu1 %vm42_vm0, %v6372_v57  ;;  %v5772_v57 = vld [vmem:[%s7062_s2 + $0x168] sm:$0xff]  }
 0x793   :  { %5212 = vmatmul.mubr.msk.f32.vlgmr.msra.gmra.mrb[68].mxu0 %vm42_vm0, %v6379_v60  ;;  %5268 = vmatmul.mubr.msk.f32.vlgmr.msra.gmra.mrb[44].mxu1 %vm42_vm0, %v6386_v62  ;;  %v5773_v60 = vld [vmem:[%s7062_s2 + $0x128] sm:$0xff]   ;;  %v5774_v62 = vld [vmem:[%s7062_s2 + $0x170] sm:$0xff]  }
 0x794   :  { %5494 = vmatpush3.bf16.msra.mxu0 %v6766_v45  ;;  %5534 = vmatpush3.bf16.msra.mxu1 %v6766_v45 }
 0x795   :  { %5496 = vmatprep.subr.bf16.mxu0 %v6772_v49  ;;  %5536 = vmatprep.subr.bf16.mxu1 %v6772_v49 }
 0x796   :  { %5214 = vmatprep.mubr.msk.f32.mxu0 %vm42_vm0, %v6397_v63  ;;  %5270 = vmatprep.mubr.msk.f32.mxu1 %vm42_vm0, %v6404_v10 }
 0x797   :  { %5215 = vmatmul.mubr.msk.f32.gmra.mrb[70].mxu0 %vm42_vm0, %v6411_v11  ;;  %5271 = vmatmul.mubr.msk.f32.gmra.mrb[46].mxu1 %vm42_vm0, %v6418_v7 }
 0x798   :  { %5498 = vmatpush3.bf16.msra.mxu0 %v6772_v49  ;;  %5538 = vmatpush3.bf16.msra.mxu1 %v6772_v49 }
 0x799   :  { %5508 = vmatprep.subr.bf16.mxu0 %v6766_v45  ;;  %5225 = vmatprep.mubr.msk.f32.mxu0 %vm42_vm0, %v6428_v12 }
 0x79a   :  { %5295 = vmatprep.mubr.msk.f32.mxu1 %vm42_vm0, %v6435_v13  ;;  %4869 = vmatprep.subr.bf16.mxu1 %v5770_v5 }
 0x79b   :  { %5226 = vmatmul.mubr.msk.f32.vlgmr.msra.gmra.mrb[72].mxu0 %vm42_vm0, %v6442_v14  ;;  %5296 = vmatmul.mubr.msk.f32.vlgmr.msra.gmra.mrb[48].mxu1 %vm42_vm0, %v6449_v47  ;;  %v5775_v14 = vld [vmem:[%s7062_s2 + $0x130] sm:$0xff]  }
 0x79c   :  { %5510 = vmatpush3.bf16.msra.mxu0 %v6766_v45  ;;  %5228 = vmatprep.mubr.msk.f32.mxu0 %vm42_vm0, %v6457_v15 }
 0x79d   :  { %5512 = vmatprep.subr.bf16.mxu0 %v6772_v49  ;;  %5298 = vmatprep.mubr.msk.f32.mxu1 %vm42_vm0, %v6465_v46 }
 0x79e   :  { %4870 = vmatpush3.bf16.msra.mxu1 %v5771_v6 }
 0x79f   :  { %5229 = vmatmul.mubr.msk.f32.gmra.mrb[74].mxu0 %vm42_vm0, %v6472_v16  ;;  %5299 = vmatmul.mubr.msk.f32.gmra.mrb[50].mxu1 %vm42_vm0, %v6479_v17  ;;  %v5776_v17 = vld [vmem:[%s7062_s2 + $0x178] sm:$0xff]  }
 0x7a0   :  { %5514 = vmatpush3.bf16.msra.mxu0 %v6772_v49  ;;  %5253 = vmatprep.mubr.msk.f32.mxu0 %vm42_vm0, %v6487_v18 }
 0x7a1   :  { %5524 = vmatprep.subr.bf16.mxu0 %v6766_v45  ;;  %4871 = vmatprep.subr.bf16.mxu1 %v5772_v57 }
 0x7a2   :  { %4872 = vmatpush3.bf16.msra.mxu1 %v5773_v60 }
 0x7a3   :  { %5254 = vmatmul.mubr.msk.f32.vlgmr.msra.gmra.mrb[76].mxu0 %vm42_vm0, %v6495_v19  ;;  %4873 = vmatprep.subr.bf16.mxu1 %v5774_v62 }
 0x7a4   :  { %5526 = vmatpush3.bf16.msra.mxu0 %v6766_v45  ;;  %5256 = vmatprep.mubr.msk.f32.mxu0 %vm42_vm0, %v6503_v20  ;;  %v5777_v20 = vld [vmem:[%s7062_s2 + $0x138] sm:$0xff]  }
 0x7a5   :  { %5528 = vmatprep.subr.bf16.mxu0 %v6772_v49 }
 0x7a6   :  { %4874 = vmatpush3.bf16.msra.mxu1 %v5775_v14 }
 0x7a7   :  { %5257 = vmatmul.mubr.msk.f32.gmra.mrb[78].mxu0 %vm42_vm0, %v6511_v21  ;;  %4875 = vmatprep.subr.bf16.mxu1 %v5776_v17 }
 0x7a8   :  { %5530 = vmatpush3.bf16.msra.mxu0 %v6772_v49  ;;  %5281 = vmatprep.mubr.msk.f32.mxu0 %vm42_vm0, %v6519_v22 }
 0x7a9   :  { %5540 = vmatprep.subr.bf16.mxu0 %v6766_v45 }
 0x7aa   :  { %4876 = vmatpush3.bf16.msra.mxu1 %v5777_v20 }
 0x7ab   :  { %5282 = vmatmul.mubr.msk.f32.vlgmr.msra.gmra.mrb[80].mxu0 %vm42_vm0, %v6527_v23 }
 0x7ac   :  { %5542 = vmatpush3.bf16.msra.mxu0 %v6766_v45  ;;  %5284 = vmatprep.mubr.msk.f32.mxu0 %vm42_vm0, %v6535_v56  ;;  %v5786_v45 = vld [vmem:[%s7062_s2 + $0x158] sm:$0xff]  }
 0x7ad   :  { %5544 = vmatprep.subr.bf16.mxu0 %v6772_v49 }
 0x7af   :  { %5285 = vmatmul.mubr.msk.f32.gmra.mrb[82].mxu0 %vm42_vm0, %v6543_v55  ;;  %v5778_v55 = vld [vmem:[%s7062_s2 + $0x180] sm:$0xff]  }
 0x7b0   :  { %5546 = vmatpush3.bf16.msra.mxu0 %v6772_v49  ;;  %5309 = vmatprep.mubr.msk.f32.mxu0 %vm42_vm0, %v6551_v59  ;;  %v5787_v49 = vld [vmem:[%s7062_s2 + $0x1a8] sm:$0xff]  }
 0x7b1   :  { %4877 = vmatprep.subr.bf16.mxu1 %v5778_v55  ;;  %5315 = vmatprep.subr.bf16.mxu0 %v5784_v58 }
 0x7b2   :  { %4878 = vmatpush3.bf16.msra.mxu1 %v5779_v25 }
 0x7b3   :  { %5310 = vmatmul.mubr.msk.f32.vlgmr.msra.gmra.mrb[84].mxu0 %vm42_vm0, %v6558_v61  ;;  %4879 = vmatprep.subr.bf16.mxu1 %v5780_v37 }
 0x7b4   :  { %5312 = vmatprep.mubr.msk.f32.mxu0 %vm42_vm0, %v7081_v50  ;;  %5316 = vmatpush3.bf16.msra.mxu0 %v5784_v58 }
 0x7b5   :  { %5317 = vmatprep.subr.bf16.mxu0 %v5787_v49 }
 0x7b6   :  { %4880 = vmatpush3.bf16.msra.mxu1 %v5781_v30 }
 0x7b7   :  { %5313 = vmatmul.mubr.msk.f32.gmra.mrb[86].mxu0 %vm42_vm0, %v7082_v4  ;;  %4881 = vmatprep.subr.bf16.mxu1 %v5782_v0 }
 0x7b8   :  { %5318 = vmatpush3.bf16.msra.mxu0 %v5787_v49 }
 0x7ba   :  { %4882 = vmatpush3.bf16.msra.mxu1 %v5783_v24 }
 0x7bb   :  { %4883 = vmatprep.subr.bf16.mxu1 %v5785_v35 }
 0x7be   :  { %4884 = vmatpush3.bf16.msra.mxu1 %v5786_v45 }
 0x85e   :  { %v6884_v9 = vpop.f32.mrb[64].mxu0  ;;  %v5241_v40 = vpop.f32.mrb[40].mxu1 }
 0x85f   :  { %v6886_v53 = vpop.f32.mrb[65].mxu0  ;;  %v3224_v54 = vpop.f32.mrb[41].mxu1 }
 0x860   :  { %v5670_v63 = vpack.i.bf16 %v5241_v40, %v3224_v54 }
 0x862   :  { %v6897_v10 = vpop.f32.mrb[66].mxu0  ;;  %v6899_v11 = vpop.f32.mrb[42].mxu1  ;;  %5671 = vrot.lane.b32.xlu1 %v5670_v63, %s5838_s23 }
 0x863   :  { %v6902_v7 = vpop.f32.mrb[67].mxu0  ;;  %v6904_v12 = vpop.f32.mrb[43].mxu1 }
 0x864   :  { %v5725_v13 = vpack.i.bf16 %v6899_v11, %v6904_v12 }
 0x866   :  { %v5213_v47 = vpop.f32.mrb[68].mxu0  ;;  %v5269_v15 = vpop.f32.mrb[44].mxu1 }
 0x867   :  { %v3054_v46 = vpop.f32.mrb[69].mxu0  ;;  %v3394_v16 = vpop.f32.mrb[45].mxu1 }
 0x868   :  { %v5680_v18 = vpack.i.bf16 %v5213_v47, %v3054_v46  ;;  %v5675_v19 = vpack.i.bf16 %v5269_v15, %v3394_v16 }
 0x86a   :  { %5676 = vrot.lane.b32.xlu0 %v5675_v19, %s5839_s14  ;;  %5681 = vrot.lane.b32.xlu1 %v5680_v18, %s5839_s14  ;;  %v5216_v21 = vpop.f32.mrb[70].mxu0  ;;  %v5272_v22 = vpop.f32.mrb[46].mxu1 }
 0x86b   :  { %v3064_v23 = vpop.f32.mrb[71].mxu0  ;;  %v3404_v56 = vpop.f32.mrb[47].mxu1 }
 0x86c   :  { %v5705_v59 = vpack.i.bf16 %v5216_v21, %v3064_v23  ;;  %v5700_v61 = vpack.i.bf16 %v5272_v22, %v3404_v56 }
 0x86e   :  { %v5227_v39 = vpop.f32.mrb[72].mxu0  ;;  %v5297_v27 = vpop.f32.mrb[48].mxu1 }
 0x86f   :  { %v3139_v34 = vpop.f32.mrb[73].mxu0  ;;  %v3564_v48 = vpop.f32.mrb[49].mxu1 }
 0x870   :  { %v5685_v38 = vpack.i.bf16 %v5227_v39, %v3139_v34  ;;  %v5690_v2 = vpack.i.bf16 %v5297_v27, %v3564_v48 }
 0x872   :  { %5686 = vrot.lane.b32.xlu1 %v5685_v38, %s5840_s20  ;;  %v5230_v32 = vpop.f32.mrb[74].mxu0  ;;  %5691 = vrot.lane.b32.xlu0 %v5690_v2, %s5838_s23  ;;  %v5300_v8 = vpop.f32.mrb[50].mxu1 }
 0x873   :  { %v3149_v3 = vpop.f32.mrb[75].mxu0  ;;  %v3574_v51 = vpop.f32.mrb[51].mxu1 }
 0x874   :  { %v5710_v43 = vpack.i.bf16 %v5230_v32, %v3149_v3  ;;  %v5720_v33 = vpack.i.bf16 %v5300_v8, %v3574_v51 }
 0x876   :  { %5706 = vrot.lane.b32.xlu1 %v5705_v59, %s5839_s14  ;;  %v6943_v42 = vpop.f32.mrb[76].mxu0 }
 0x877   :  { %v6945_v28 = vpop.f32.mrb[77].mxu0 }
 0x87a   :  { %5711 = vrot.lane.b32.xlu1 %v5710_v43, %s5840_s20  ;;  %v6957_v50 = vpop.f32.mrb[78].mxu0 }
 0x87b   :  { %v6959_v4 = vpop.f32.mrb[79].mxu0 }
 0x87e   :  { %5726 = vrot.lane.b32.xlu1 %v5725_v13, %s5838_s23  ;;  %v5283_v5 = vpop.f32.mrb[80].mxu0 }
 0x87f   :  { %v3479_v6 = vpop.f32.mrb[81].mxu0 }
 0x880   :  { %v5695_v40 = vpack.i.bf16 %v5283_v5, %v3479_v6 }
 0x882   :  { %5696 = vrot.lane.b32.xlu0 %v5695_v40, %s5840_s20  ;;  %v5286_v54 = vpop.f32.mrb[82].mxu0 }
 0x883   :  { %v3489_v57 = vpop.f32.mrb[83].mxu0 }
 0x884   :  { %v5715_v60 = vpack.i.bf16 %v5286_v54, %v3489_v57 }
 0x886   :  { %5701 = vrot.lane.b32.xlu0 %v5700_v61, %s5839_s14  ;;  %v5311_v62 = vpop.f32.mrb[84].mxu0 }
 0x887   :  { %v3649_v63 = vpop.f32.mrb[85].mxu0 }
 0x888   :  { %v3790_v11 = vpack.c.bf16 %v5311_v62, %v3649_v63 }
 0x88a   :  { %5716 = vrot.lane.b32.xlu0 %v5715_v60, %s5840_s20  ;;  %v5314_v12 = vpop.f32.mrb[86].mxu0  ;;  %5319 = vmatprep.mubr.msk.bf16.mxu0 %vm42_vm0, %v3790_v11 }
 0x88b   :  { %v3659_v14 = vpop.f32.mrb[87].mxu0 }
 0x88c   :  { %v3793_v13 = vpack.c.bf16 %v5314_v12, %v3659_v14 }
 0x88e   :  { %5721 = vrot.lane.b32.xlu0 %v5720_v33, %s5838_s23  ;;  %5320 = vmatmul.mubr.msk.bf16.vlgmr.msra.gmra.mrb[88].mxu0 %vm42_vm0, %v3793_v13 }
 0x8d4   :  { %v5672_v47 = vpop.permute.xlu1 %5671 }
 0x8d5   :  { %v5674_v20 = vunpack.i.h.bf16 %v5672_v47  ;;  %v5673_v21 = vunpack.i.l.bf16 %v5672_v47 }
 0x8dc   :  { %v5682_v15 = vpop.permute.xlu1 %5681  ;;  %v5677_v27 = vpop.permute.xlu0 %5676 }
 0x8dd   :  { %v5684_v46 = vunpack.i.h.bf16 %v5682_v15  ;;  %v5683_v16 = vunpack.i.l.bf16 %v5682_v15  ;;  %v5679_v3 = vunpack.i.h.bf16 %v5677_v27  ;;  %v5678_v51 = vunpack.i.l.bf16 %v5677_v27 }
 0x8df   :  { %v3765_v22 = vsel %vm42_vm0, %v6884_v9, %v5684_v46  ;;  %v3764_v23 = vsel %vm42_vm0, %v6886_v53, %v5683_v16 }
 0x8e4   :  { %v5687_v17 = vpop.permute.xlu1 %5686  ;;  %v5692_v9 = vpop.permute.xlu0 %5691 }
 0x8e5   :  { %v5689_v18 = vunpack.i.h.bf16 %v5687_v17  ;;  %v5688_v19 = vunpack.i.l.bf16 %v5687_v17  ;;  %v5694_v6 = vunpack.i.h.bf16 %v5692_v9  ;;  %v5693_v40 = vunpack.i.l.bf16 %v5692_v9 }
 0x8e7   :  { %v3769_v56 = vsel %vm1056_vm1, %v3765_v22, %v5689_v18  ;;  %v3768_v55 = vsel %vm1056_vm1, %v3764_v23, %v5688_v19 }
 0x8e8   :  { %v3773_v59 = vsel %vm1061_vm2, %v3769_v56, %v5674_v20  ;;  %v3772_v61 = vsel %vm1061_vm2, %v3768_v55, %v5673_v21  ;;  %v5707_v25 = vpop.permute.xlu1 %5706 }
 0x8e9   :  { %v3788_v39 = vpack.c.bf16 %v3773_v59, %v3772_v61  ;;  %v5709_v48 = vunpack.i.h.bf16 %v5707_v25  ;;  %v5708_v37 = vunpack.i.l.bf16 %v5707_v25  ;;  %v5789_v59 = vld [vmem:[%s7063_s5 + $0x28] sm:$0xff]  }
 0x8eb   :  { %v3767_v53 = vsel %vm42_vm0, %v6897_v10, %v5709_v48  ;;  %v3766_v0 = vsel %vm42_vm0, %v6902_v7, %v5708_v37  ;;  %v3776_v10 = vsel %vm42_vm0, %v6945_v28, %v5678_v51  ;;  %v3777_v7 = vsel %vm42_vm0, %v6943_v42, %v5679_v3 }
 0x8ec   :  { %v5712_v34 = vpop.permute.xlu1 %5711 }
 0x8ed   :  { %v5714_v38 = vunpack.i.h.bf16 %v5712_v34  ;;  %v5713_v2 = vunpack.i.l.bf16 %v5712_v34 }
 0x8ef   :  { %v3771_v43 = vsel %vm1056_vm1, %v3767_v53, %v5714_v38  ;;  %v3770_v33 = vsel %vm1056_vm1, %v3766_v0, %v5713_v2 }
 0x8f0   :  { %v5727_v30 = vpop.permute.xlu1 %5726 }
 0x8f1   :  { %v5729_v32 = vunpack.i.h.bf16 %v5727_v30  ;;  %v5728_v8 = vunpack.i.l.bf16 %v5727_v30 }
 0x8f3   :  { %v3774_v24 = vsel %vm1061_vm2, %v3770_v33, %v5728_v8  ;;  %v3775_v58 = vsel %vm1061_vm2, %v3771_v43, %v5729_v32 }
 0x8f4   :  { %v5697_v35 = vpop.permute.xlu0 %5696  ;;  %v3791_v45 = vpack.c.bf16 %v3775_v58, %v3774_v24 }
 0x8f5   :  { %v5699_v49 = vunpack.i.h.bf16 %v5697_v35  ;;  %v5698_v5 = vunpack.i.l.bf16 %v5697_v35 }
 0x8f7   :  { %v3781_v54 = vsel %vm1056_vm1, %v3777_v7, %v5699_v49  ;;  %v3780_v57 = vsel %vm1056_vm1, %v3776_v10, %v5698_v5 }
 0x8f8   :  { %v5702_v60 = vpop.permute.xlu0 %5701  ;;  %v3784_v62 = vsel %vm1061_vm2, %v3780_v57, %v5693_v40  ;;  %v3785_v63 = vsel %vm1061_vm2, %v3781_v54, %v5694_v6 }
 0x8f9   :  { %v3789_v11 = vpack.c.bf16 %v3785_v63, %v3784_v62  ;;  %v5704_v14 = vunpack.i.h.bf16 %v5702_v60  ;;  %v5703_v28 = vunpack.i.l.bf16 %v5702_v60 }
 0x8fb   :  { %3977 = vmatprep.mubr.bf16.mxu1 %v3789_v11  ;;  %v3779_v15 = vsel %vm42_vm0, %v6957_v50, %v5704_v14  ;;  %v3778_v46 = vsel %vm42_vm0, %v6959_v4, %v5703_v28  ;;  %v5788_v4 = vld [vmem:[%s7063_s5 + $0x20] sm:$0xff]  }
 0x8fc   :  { %3978 = vmatmul.mubr.bf16.vlgmr.msra.gmra.mrb[52].mxu1 %v3788_v39  ;;  %v5717_v12 = vpop.permute.xlu0 %5716  ;;  %5323 = vmatprep.subr.bf16.mxu0 %v5788_v4 }
 0x8fd   :  { %v5719_v13 = vunpack.i.h.bf16 %v5717_v12  ;;  %v5718_v47 = vunpack.i.l.bf16 %v5717_v12  ;;  %5324 = vmatpush3.bf16.msra.mxu0 %v5788_v4  ;;  %v4567_v4 = vld [vmem:[%s7064_s3 + $0x2] ss:$0 sm:$0xff] }
 0x8fe   :  { %5325 = vmatprep.subr.bf16.mxu0 %v5789_v59 }
 0x8ff   :  { %v3783_v18 = vsel %vm1056_vm1, %v3779_v15, %v5719_v13  ;;  %v3782_v19 = vsel %vm1056_vm1, %v3778_v46, %v5718_v47 }
 0x900   :  { %v5722_v42 = vpop.permute.xlu0 %5721 }
 0x901   :  { %v5724_v16 = vunpack.i.h.bf16 %v5722_v42  ;;  %v5723_v17 = vunpack.i.l.bf16 %v5722_v42  ;;  %5326 = vmatpush3.bf16.msra.mxu0 %v5789_v59 }
 0x903   :  { %v3786_v20 = vsel %vm1061_vm2, %v3782_v19, %v5723_v17  ;;  %v3787_v21 = vsel %vm1061_vm2, %v3783_v18, %v5724_v16 }
 0x904   :  { %v3792_v22 = vpack.c.bf16 %v3787_v21, %v3786_v20 }
 0x906   :  { %3985 = vmatprep.mubr.bf16.mxu1 %v3792_v22 }
 0x907   :  { %3986 = vmatmul.mubr.bf16.gmra.mrb[56].mxu1 %v3791_v45 }
 0x961   :  { %v5321_v23 = vpop.f32.mrb[88].mxu0 }
 0x962   :  { %v4028_v56 = vpop.f32.mrb[89].mxu0 }
 0x963   :  { %v5322_v55 = vpop.f32.mrb[90].mxu0 }
 0x964   :  { %v4031_v50 = vpop.f32.mrb[91].mxu0 }
 0x9cf   :  { %v4885_v61 = vpop.f32.mrb[52].mxu1 }
 0x9d0   :  { %v4886_v25 = vpop.f32.mrb[53].mxu1 }
 0x9d1   :  { %v4887_v39 = vadd.f32 %v4886_v25, %v4885_v61  ;;  %v4888_v27 = vpop.f32.mrb[54].mxu1 }
 0x9d2   :  { %v4889_v34 = vpop.f32.mrb[55].mxu1 }
 0x9d3   :  { %v4890_v48 = vadd.f32 %v4889_v34, %v4888_v27  ;;  %v4029_v37 = vadd.f32 %v4887_v39, %v4028_v56  ;;  %v4568_v27 = vld [vmem:[%s7065_s4 + $0x2] ss:$0 sm:$0xff] }
 0x9d5   :  { %v4032_v38 = vadd.f32 %v4890_v48, %v4031_v50  ;;  %v4047_v2 = vsel %vm42_vm0, %v4029_v37, 0.0 }
 0x9d7   :  { %v4048_v9 = vsel %vm42_vm0, %v4032_v38, 0.0 }
 0x9d8   :  { %v4049_v30 = vadd.f32 %v4048_v9, %v4047_v2 }
 0x9da   :  { %v4891_v53 = vpop.f32.mrb[56].mxu1 }
 0x9db   :  { %v4892_v0 = vpop.f32.mrb[57].mxu1 }
 0x9dc   :  { %v4893_v32 = vadd.f32 %v4892_v0, %v4891_v53  ;;  %v4894_v8 = vpop.f32.mrb[58].mxu1 }
 0x9dd   :  { %v4895_v3 = vpop.f32.mrb[59].mxu1 }
 0x9de   :  { %v4037_v51 = vadd.f32 %v5321_v23, %v4893_v32  ;;  %v4896_v43 = vadd.f32 %v4895_v3, %v4894_v8 }
 0x9e0   :  { %v4050_v33 = vsel %vm42_vm0, %v4037_v51, 0.0  ;;  %v4040_v24 = vadd.f32 %v5322_v55, %v4896_v43 }
 0x9e1   :  { %v4051_v58 = vadd.f32 %v4050_v33, %v4049_v30 }
 0x9e2   :  { %v4052_v35 = vsel %vm42_vm0, %v4040_v24, 0.0 }
 0x9e3   :  { %v4053_v45 = vadd.f32 %v4052_v35, %v4051_v58 }
 0x9e5   :  { %v4054_v49 = vrot.slane %v4053_v45, 4 }
 0x9e7   :  { %v4055_v5 = vadd.f32 %v4054_v49, %v4053_v45 }
 0x9e9   :  { %v4056_v10 = vrot.slane %v4055_v5, 2 }
 0x9eb   :  { %v4057_v7 = vadd.f32 %v4056_v10, %v4055_v5 }
 0x9ed   :  { %v4058_v6 = vrot.slane %v4057_v7, 1 }
 0x9ef   :  { %v4059_v40 = vadd.f32 %v4058_v6, %v4057_v7 }
 0x9f1   :  { %v4060_v54 = vmul.f32 0.03125, %v4059_v40 }
 0x9f3   :  { %v4061_v57 = vsub.f32 %v4029_v37, %v4060_v54  ;;  %v4062_v60 = vsub.f32 %v4032_v38, %v4060_v54  ;;  %v4063_v62 = vsub.f32 %v4037_v51, %v4060_v54  ;;  %v4064_v63 = vsub.f32 %v4040_v24, %v4060_v54 }
 0x9f5   :  { %v4065_v11 = vmul.f32 %v4061_v57, %v4061_v57  ;;  %v4066_v12 = vmul.f32 %v4062_v60, %v4062_v60  ;;  %v4067_v14 = vmul.f32 %v4063_v62, %v4063_v62  ;;  %v4068_v28 = vmul.f32 %v4064_v63, %v4064_v63 }
 0x9f7   :  { %v4069_v13 = vsel %vm42_vm0, %v4065_v11, 0.0  ;;  %v4070_v47 = vsel %vm42_vm0, %v4066_v12, 0.0  ;;  %v4072_v15 = vsel %vm42_vm0, %v4067_v14, 0.0  ;;  %v4074_v16 = vsel %vm42_vm0, %v4068_v28, 0.0 }
 0x9f8   :  { %v4071_v42 = vadd.f32 %v4070_v47, %v4069_v13 }
 0x9fa   :  { %v4073_v46 = vadd.f32 %v4072_v15, %v4071_v42 }
 0x9fc   :  { %v4075_v17 = vadd.f32 %v4074_v16, %v4073_v46 }
 0x9fe   :  { %v4076_v18 = vrot.slane %v4075_v17, 4 }
 0xa00   :  { %v4077_v19 = vadd.f32 %v4076_v18, %v4075_v17 }
 0xa02   :  { %v4078_v20 = vrot.slane %v4077_v19, 2 }
 0xa04   :  { %v4079_v21 = vadd.f32 %v4078_v20, %v4077_v19 }
 0xa06   :  { %v4080_v22 = vrot.slane %v4079_v21, 1 }
 0xa08   :  { %v4081_v23 = vadd.f32 %v4080_v22, %v4079_v21 }
 0xa0a   :  { %v4082_v56 = vmul.f32 0.03125, %v4081_v23 }
 0xa0c   :  { %v4083_v55 = vadd.f32 1e-05, %v4082_v56 }
 0xa0e   :  { %5798 = vrsqrt.f32 %v4083_v55 }
 0xa18   :  { %v5799_v50 = vpop.eup %5798 }
 0xa19   :  { %v4088_v59 = vmul.f32 %v5799_v50, %v4064_v63  ;;  %v4085_v61 = vmul.f32 %v5799_v50, %v4061_v57  ;;  %v4086_v25 = vmul.f32 %v5799_v50, %v4062_v60  ;;  %v4087_v39 = vmul.f32 %v5799_v50, %v4063_v62 }
 0xa1b   :  { %v4098_v34 = vmul.f32 %v4567_v4, %v4088_v59  ;;  %v4095_v48 = vmul.f32 %v4567_v4, %v4085_v61  ;;  %v4096_v37 = vmul.f32 %v4567_v4, %v4086_v25  ;;  %v4097_v38 = vmul.f32 %v4567_v4, %v4087_v39 }
 0xa1d   :  { %v4108_v2 = vadd.f32 %v4568_v27, %v4098_v34  ;;  %v4105_v9 = vadd.f32 %v4568_v27, %v4095_v48  ;;  %v4106_v30 = vadd.f32 %v4568_v27, %v4096_v37  ;;  %v4107_v53 = vadd.f32 %v4568_v27, %v4097_v38  ;;  %v4579_v34 = vld [vmem:[%s7066_s6 + $0x2] ss:$0 sm:$0xff] }
 0xa1f   :  { %v4112_v0 = vmax.f32 %v4108_v2, 0.0  ;;  %v4109_v32 = vmax.f32 %v4105_v9, 0.0  ;;  %v4110_v8 = vmax.f32 %v4106_v30, 0.0  ;;  %v4111_v3 = vmax.f32 %v4107_v53, 0.0  ;;  %v4580_v9 = vld [vmem:[%s7067_s7 + $0x2] ss:$0 sm:$0xff] }
 0xa21   :  { %v4113_v51 = vpack.c.bf16 %v4110_v8, %v4109_v32  ;;  %v4114_v43 = vpack.c.bf16 %v4112_v0, %v4111_v3 }
 0xa23   :  { %5327 = vmatprep.mubr.msk.bf16.mxu0 %vm42_vm0, %v4113_v51 }
 0xa24   :  { %5328 = vmatmul.mubr.msk.bf16.vlgmr.msra.gmra.mrb[92].mxu0 %vm42_vm0, %v4114_v43 }
 0xaf7   :  { %v5329_v33 = vpop.f32.mrb[92].mxu0 }
 0xaf8   :  { %v4172_v24 = vpop.f32.mrb[93].mxu0  ;;  %v4194_v10 = vsel %vm42_vm0, %v5329_v33, 0.0 }
 0xaf9   :  { %v5330_v58 = vpop.f32.mrb[94].mxu0  ;;  %v4191_v45 = vsel %vm42_vm0, %v4172_v24, 0.0 }
 0xafa   :  { %v4175_v35 = vpop.f32.mrb[95].mxu0  ;;  %v4196_v6 = vsel %vm42_vm0, %v5330_v58, 0.0 }
 0xafb   :  { %v4192_v49 = vsel %vm42_vm0, %v4175_v35, 0.0 }
 0xafc   :  { %v4193_v5 = vadd.f32 %v4192_v49, %v4191_v45 }
 0xafe   :  { %v4195_v7 = vadd.f32 %v4194_v10, %v4193_v5 }
 0xb00   :  { %v4197_v40 = vadd.f32 %v4196_v6, %v4195_v7 }
 0xb02   :  { %v4198_v54 = vrot.slane %v4197_v40, 4 }
 0xb04   :  { %v4199_v57 = vadd.f32 %v4198_v54, %v4197_v40 }
 0xb06   :  { %v4200_v60 = vrot.slane %v4199_v57, 2 }
 0xb08   :  { %v4201_v62 = vadd.f32 %v4200_v60, %v4199_v57 }
 0xb0a   :  { %v4202_v63 = vrot.slane %v4201_v62, 1 }
 0xb0c   :  { %v4203_v11 = vadd.f32 %v4202_v63, %v4201_v62 }
 0xb0e   :  { %v4204_v12 = vmul.f32 0.03125, %v4203_v11 }
 0xb10   :  { %v4205_v14 = vsub.f32 %v4172_v24, %v4204_v12  ;;  %v4206_v28 = vsub.f32 %v4175_v35, %v4204_v12  ;;  %v4207_v13 = vsub.f32 %v5329_v33, %v4204_v12  ;;  %v4208_v47 = vsub.f32 %v5330_v58, %v4204_v12 }
 0xb12   :  { %v4209_v42 = vmul.f32 %v4205_v14, %v4205_v14  ;;  %v4210_v15 = vmul.f32 %v4206_v28, %v4206_v28  ;;  %v4211_v46 = vmul.f32 %v4207_v13, %v4207_v13  ;;  %v4212_v16 = vmul.f32 %v4208_v47, %v4208_v47 }
 0xb14   :  { %v4213_v17 = vsel %vm42_vm0, %v4209_v42, 0.0  ;;  %v4214_v18 = vsel %vm42_vm0, %v4210_v15, 0.0  ;;  %v4216_v20 = vsel %vm42_vm0, %v4211_v46, 0.0  ;;  %v4218_v22 = vsel %vm42_vm0, %v4212_v16, 0.0 }
 0xb15   :  { %v4215_v19 = vadd.f32 %v4214_v18, %v4213_v17 }
 0xb17   :  { %v4217_v21 = vadd.f32 %v4216_v20, %v4215_v19 }
 0xb19   :  { %v4219_v23 = vadd.f32 %v4218_v22, %v4217_v21 }
 0xb1b   :  { %v4220_v56 = vrot.slane %v4219_v23, 4 }
 0xb1d   :  { %v4221_v55 = vadd.f32 %v4220_v56, %v4219_v23 }
 0xb1f   :  { %v4222_v50 = vrot.slane %v4221_v55, 2 }
 0xb21   :  { %v4223_v4 = vadd.f32 %v4222_v50, %v4221_v55 }
 0xb23   :  { %v4224_v59 = vrot.slane %v4223_v4, 1 }
 0xb25   :  { %v4225_v61 = vadd.f32 %v4224_v59, %v4223_v4 }
 0xb27   :  { %v4226_v25 = vmul.f32 0.03125, %v4225_v61 }
 0xb29   :  { %v4227_v39 = vadd.f32 1e-05, %v4226_v25 }
 0xb2b   :  { %5800 = vrsqrt.f32 %v4227_v39 }
 0xb35   :  { %v5801_v27 = vpop.eup %5800 }
 0xb36   :  { %v4229_v48 = vmul.f32 %v5801_v27, %v4205_v14  ;;  %v4230_v37 = vmul.f32 %v5801_v27, %v4206_v28  ;;  %v4231_v38 = vmul.f32 %v5801_v27, %v4207_v13  ;;  %v4232_v2 = vmul.f32 %v5801_v27, %v4208_v47 }
 0xb38   :  { %v4239_v30 = vmul.f32 %v4579_v34, %v4229_v48  ;;  %v4240_v53 = vmul.f32 %v4579_v34, %v4230_v37  ;;  %v4241_v0 = vmul.f32 %v4579_v34, %v4231_v38  ;;  %v4242_v32 = vmul.f32 %v4579_v34, %v4232_v2 }
 0xb3a   :  { %v4249_v8 = vadd.f32 %v4580_v9, %v4239_v30  ;;  %v4250_v3 = vadd.f32 %v4580_v9, %v4240_v53  ;;  %v4251_v51 = vadd.f32 %v4580_v9, %v4241_v0  ;;  %v4252_v43 = vadd.f32 %v4580_v9, %v4242_v32 }
 0xb3c   :  { %v4253_v33 = vadd.f32 %v4249_v8, %v2899_v41  ;;  %v4254_v24 = vadd.f32 %v4250_v3, %v2900_v36  ;;  %v4255_v58 = vadd.f32 %v4251_v51, %v2901_v44  ;;  %v4256_v35 = vadd.f32 %v4252_v43, %v2902_v29 }
 0xb3e   :  { %v4257_v45 = vmax.f32 %v4253_v33, 0.0  ;;  %v4258_v49 = vmax.f32 %v4254_v24, 0.0  ;;  %v4259_v5 = vmax.f32 %v4255_v58, 0.0  ;;  %v4260_v10 = vmax.f32 %v4256_v35, 0.0 }
 0xb40   :  { %4261 = vst.msk [vmem:[%s7068_s8] sm:$0xff] %vm42_vm0, %v4257_v45  ;;  %4262 = vst.msk [vmem:[%s7068_s8 + $0x8] sm:$0xff] %vm42_vm0, %v4258_v49 }
 0xb41   :  { %4263 = vst.msk [vmem:[%s7068_s8 + $0x10] sm:$0xff] %vm42_vm0, %v4259_v5  ;;  %4264 = vst.msk [vmem:[%s7068_s8 + $0x18] sm:$0xff] %vm42_vm0, %v4260_v10 }

// kernel: vqvae_forward.9
= control target key start
LH: loop header
LB: loop body
LE: loop exit
PB: predicated region body
PF: predicated region fallthrough
CT: control target
= control target key end

     0   :  { %vm42_vm0 = vcmask 261120   ;;  %s5834_s23 = smov 96   ;;  %s5835_s14 = smov 32   ;;  %vm1056_vm1 = vcmask 523264   ;;  %vm1061_vm2 = vcmask 785408   ;;  %s7056_s0 = inlined_call_operand.vmem [shape: f32[32,32], index: 0, kind: input, shape index: {}]   ;;  %s7057_s1 = inlined_call_operand.vmem [shape: f32[9,32,32], index: 1, kind: input, shape index: {}]   ;;  %s7058_s2 = inlined_call_operand.vmem [shape: bf16[3,288,32], index: 2, kind: input, shape index: {}]   ;;  %s7059_s5 = inlined_call_operand.vmem [shape: bf16[3,32,32], index: 5, kind: input, shape index: {}]   ;;  %s7060_s3 = inlined_call_operand.vmem [shape: f32[3,1,32], index: 3, kind: input, shape index: {}]   ;;  %s7061_s4 = inlined_call_operand.vmem [shape: f32[3,1,32], index: 4, kind: input, shape index: {}]   ;;  %s7062_s6 = inlined_call_operand.vmem [shape: f32[3,1,32], index: 6, kind: input, shape index: {}]   ;;  %s7063_s7 = inlined_call_operand.vmem [shape: f32[3,1,32], index: 7, kind: input, shape index: {}]   ;;  %s7064_s8 = inlined_call_operand.vmem [shape: f32[32,32], index: 8, kind: output, shape index: {}]  }
   0x1   :  { %v5885_v0 = vld [vmem:[%s7056_s0] sm:$0xff]  ;;  %v5890_v1 = vld [vmem:[%s7056_s0 + $0x8] sm:$0xff]  ;;  %v5895_v2 = vld [vmem:[%s7056_s0 + $0x10] sm:$0xff]  ;;  %s5836_s20 = smov 64  }
   0x2   :  { %v34_v3 = vmax.f32 %v5885_v0, 0.0  ;;  %v35_v4 = vmax.f32 %v5890_v1, 0.0  ;;  %v5902_v5 = vld [vmem:[%s7056_s0 + $0x18] sm:$0xff]  ;;  %v36_v6 = vmax.f32 %v5895_v2, 0.0  ;;  %v5908_v7 = vld [vmem:[%s7057_s1] sm:$0xff]  ;;  %v39_v12 = vld [vmem:[%s7057_s1 + $0x8] sm:$0xff] }
   0x3   :  { %v5913_v8 = vld [vmem:[%s7057_s1 + $0x60] sm:$0xff]  ;;  %v37_v9 = vmax.f32 %v5902_v5, 0.0  ;;  %4909 = vmatprep.mubr.msk.f32.mxu0 %vm42_vm0, %v5908_v7  ;;  %v4286_v13 = vld [vmem:[%s7057_s1 + $0x68] sm:$0xff]  ;;  %v40_v14 = vld [vmem:[%s7057_s1 + $0x10] sm:$0xff] }
   0x4   :  { %4951 = vmatprep.mubr.msk.f32.mxu1 %vm42_vm0, %v5913_v8  ;;  %v5924_v10 = vpack.c.bf16 %v35_v4, %v34_v3  ;;  %v4287_v15 = vld [vmem:[%s7057_s1 + $0x70] sm:$0xff]  ;;  %v41_v16 = vld [vmem:[%s7057_s1 + $0x18] sm:$0xff]  ;;  %v4269_v18 = vld [vmem:[%s7057_s1 + $0x20] sm:$0xff] }
   0x5   :  { %v5930_v11 = vpack.c.bf16 %v37_v9, %v36_v6  ;;  %v4288_v17 = vld [vmem:[%s7057_s1 + $0x78] sm:$0xff]  ;;  %v4301_v19 = vld [vmem:[%s7057_s1 + $0xa0] sm:$0xff]  ;;  %v4270_v20 = vld [vmem:[%s7057_s1 + $0x28] sm:$0xff] }
   0x6   :  { %5328 = vmatprep.subr.bf16.mxu0 %v5924_v10  ;;  %5352 = vmatprep.subr.bf16.mxu1 %v5924_v10  ;;  %v4302_v21 = vld [vmem:[%s7057_s1 + $0xa8] sm:$0xff]  ;;  %v4271_v22 = vld [vmem:[%s7057_s1 + $0x30] sm:$0xff]  ;;  %v4272_v24 = vld [vmem:[%s7057_s1 + $0x38] sm:$0xff] }
   0x7   :  { %5330 = vmatpush3.bf16.msra.mxu0 %v5924_v10  ;;  %5354 = vmatpush3.bf16.msra.mxu1 %v5924_v10  ;;  %v4303_v23 = vld [vmem:[%s7057_s1 + $0xb0] sm:$0xff]  ;;  %v4304_v25 = vld [vmem:[%s7057_s1 + $0xb8] sm:$0xff]  ;;  %v4277_v26 = vld [vmem:[%s7057_s1 + $0x40] sm:$0xff] }
   0x8   :  { %5332 = vmatprep.subr.bf16.mxu0 %v5930_v11  ;;  %5356 = vmatprep.subr.bf16.mxu1 %v5930_v11  ;;  %v4317_v27 = vld [vmem:[%s7057_s1 + $0xe0] sm:$0xff]  ;;  %v4278_v28 = vld [vmem:[%s7057_s1 + $0x48] sm:$0xff]  ;;  %v4279_v29 = vld [vmem:[%s7057_s1 + $0x50] sm:$0xff] }
   0x9   :  { %v4318_v30 = vld [vmem:[%s7057_s1 + $0xe8] sm:$0xff]  ;;  %v4319_v31 = vld [vmem:[%s7057_s1 + $0xf0] sm:$0xff]  ;;  %v4280_v32 = vld [vmem:[%s7057_s1 + $0x58] sm:$0xff] }
   0xa   :  { %v4293_v33 = vld [vmem:[%s7057_s1 + $0x80] sm:$0xff]  ;;  %v4320_v34 = vld [vmem:[%s7057_s1 + $0xf8] sm:$0xff]  ;;  %v4294_v35 = vld [vmem:[%s7057_s1 + $0x88] sm:$0xff] }
   0xb   :  { %5334 = vmatpush3.bf16.msra.mxu0 %v5930_v11  ;;  %5358 = vmatpush3.bf16.msra.mxu1 %v5930_v11  ;;  %v4295_v36 = vld [vmem:[%s7057_s1 + $0x90] sm:$0xff]  ;;  %v4296_v37 = vld [vmem:[%s7057_s1 + $0x98] sm:$0xff]  ;;  %v4309_v38 = vld [vmem:[%s7057_s1 + $0xc0] sm:$0xff] }
   0xc   :  { %5336 = vmatprep.subr.bf16.mxu0 %v5924_v10  ;;  %5368 = vmatprep.subr.bf16.mxu1 %v5924_v10  ;;  %v4310_v39 = vld [vmem:[%s7057_s1 + $0xc8] sm:$0xff]  ;;  %v4311_v40 = vld [vmem:[%s7057_s1 + $0xd0] sm:$0xff]  ;;  %v4312_v41 = vld [vmem:[%s7057_s1 + $0xd8] sm:$0xff] }
   0xd   :  { %v4325_v42 = vld [vmem:[%s7057_s1 + $0x100] sm:$0xff]  ;;  %v4326_v43 = vld [vmem:[%s7057_s1 + $0x108] sm:$0xff]  ;;  %v4327_v44 = vld [vmem:[%s7057_s1 + $0x110] sm:$0xff] }
   0xe   :  { %4910 = vmatmul.mubr.msk.f32.vlgmr.msra.gmra.mrb[0].mxu0 %vm42_vm0, %v39_v12  ;;  %4952 = vmatmul.mubr.msk.f32.vlgmr.msra.gmra.mrb[0].mxu1 %vm42_vm0, %v4286_v13  ;;  %v4328_v45 = vld [vmem:[%s7057_s1 + $0x118] sm:$0xff]  ;;  %v5726_v46 = vld [vmem:[%s7058_s2 + $0x40] sm:$0xff]   ;;  %v5728_v50 = vld [vmem:[%s7058_s2 + $0x48] sm:$0xff]  }
   0xf   :  { %5338 = vmatpush3.bf16.msra.mxu0 %v5924_v10  ;;  %5370 = vmatpush3.bf16.msra.mxu1 %v5924_v10  ;;  %v5727_v47 = vld [vmem:[%s7058_s2] sm:$0xff]   ;;  %v5729_v53 = vld [vmem:[%s7058_s2 + $0x8] sm:$0xff]   ;;  %v5730_v57 = vld [vmem:[%s7058_s2 + $0x50] sm:$0xff]  }
  0x10   :  { %4912 = vmatprep.mubr.msk.f32.mxu0 %vm42_vm0, %v40_v14  ;;  %4954 = vmatprep.mubr.msk.f32.mxu1 %vm42_vm0, %v4287_v15  ;;  %v5731_v60 = vld [vmem:[%s7058_s2 + $0x10] sm:$0xff]   ;;  %v5733_v13 = vld [vmem:[%s7058_s2 + $0x18] sm:$0xff]   ;;  %v6318_v5 = vld [vmem:[%s7057_s1 + $0x68] sm:$0xff] }
  0x11   :  { %5340 = vmatprep.subr.bf16.mxu0 %v5930_v11  ;;  %5372 = vmatprep.subr.bf16.mxu1 %v5930_v11 }
  0x12   :  { %4913 = vmatmul.mubr.msk.f32.gmra.mrb[2].mxu0 %vm42_vm0, %v41_v16  ;;  %4955 = vmatmul.mubr.msk.f32.gmra.mrb[2].mxu1 %vm42_vm0, %v4288_v17  ;;  %v5734_v16 = vld [vmem:[%s7058_s2 + $0x60] sm:$0xff]  }
  0x13   :  { %5342 = vmatpush3.bf16.msra.mxu0 %v5930_v11  ;;  %5374 = vmatpush3.bf16.msra.mxu1 %v5930_v11  ;;  %v5735_v17 = vld [vmem:[%s7058_s2 + $0x20] sm:$0xff]  }
  0x14   :  { %4923 = vmatprep.mubr.msk.f32.mxu0 %vm42_vm0, %v4269_v18  ;;  %4979 = vmatprep.mubr.msk.f32.mxu1 %vm42_vm0, %v4301_v19 }
  0x15   :  { %5344 = vmatprep.subr.bf16.mxu0 %v5924_v10  ;;  %5384 = vmatprep.subr.bf16.mxu1 %v5924_v10 }
  0x16   :  { %4924 = vmatmul.mubr.msk.f32.vlgmr.msra.gmra.mrb[4].mxu0 %vm42_vm0, %v4270_v20  ;;  %4980 = vmatmul.mubr.msk.f32.vlgmr.msra.gmra.mrb[4].mxu1 %vm42_vm0, %v4302_v21  ;;  %v5736_v20 = vld [vmem:[%s7058_s2 + $0x68] sm:$0xff]  }
  0x17   :  { %5346 = vmatpush3.bf16.msra.mxu0 %v5924_v10  ;;  %4926 = vmatprep.mubr.msk.f32.mxu0 %vm42_vm0, %v4271_v22 }
  0x18   :  { %5348 = vmatprep.subr.bf16.mxu0 %v5930_v11  ;;  %4982 = vmatprep.mubr.msk.f32.mxu1 %vm42_vm0, %v4303_v23 }
  0x19   :  { %5386 = vmatpush3.bf16.msra.mxu1 %v5924_v10 }
  0x1a   :  { %4927 = vmatmul.mubr.msk.f32.gmra.mrb[6].mxu0 %vm42_vm0, %v4272_v24  ;;  %4983 = vmatmul.mubr.msk.f32.gmra.mrb[6].mxu1 %vm42_vm0, %v4304_v25  ;;  %v5737_v25 = vld [vmem:[%s7058_s2 + $0x28] sm:$0xff]  }
  0x1b   :  { %5350 = vmatpush3.bf16.msra.mxu0 %v5930_v11  ;;  %4937 = vmatprep.mubr.msk.f32.mxu0 %vm42_vm0, %v4277_v26 }
  0x1c   :  { %5360 = vmatprep.subr.bf16.mxu0 %v5924_v10  ;;  %5388 = vmatprep.subr.bf16.mxu1 %v5930_v11 }
  0x1d   :  { %5390 = vmatpush3.bf16.msra.mxu1 %v5930_v11  ;;  %5007 = vmatprep.mubr.msk.f32.mxu1 %vm42_vm0, %v4317_v27 }
  0x1e   :  { %4938 = vmatmul.mubr.msk.f32.vlgmr.msra.gmra.mrb[8].mxu0 %vm42_vm0, %v4278_v28  ;;  %4649 = vmatprep.subr.bf16.mxu1 %v5726_v46  ;;  %v5738_v28 = vld [vmem:[%s7058_s2 + $0x70] sm:$0xff]  }
  0x1f   :  { %5362 = vmatpush3.bf16.msra.mxu0 %v5924_v10  ;;  %4940 = vmatprep.mubr.msk.f32.mxu0 %vm42_vm0, %v4279_v29 }
  0x20   :  { %5364 = vmatprep.subr.bf16.mxu0 %v5930_v11  ;;  %5008 = vmatmul.mubr.msk.f32.vlgmr.msra.gmra.mrb[8].mxu1 %vm42_vm0, %v4318_v30 }
  0x21   :  { %5010 = vmatprep.mubr.msk.f32.mxu1 %vm42_vm0, %v4319_v31  ;;  %4650 = vmatpush3.bf16.msra.mxu1 %v5727_v47 }
  0x22   :  { %4941 = vmatmul.mubr.msk.f32.gmra.mrb[10].mxu0 %vm42_vm0, %v4280_v32  ;;  %4651 = vmatprep.subr.bf16.mxu1 %v5728_v50 }
  0x23   :  { %5366 = vmatpush3.bf16.msra.mxu0 %v5930_v11  ;;  %4965 = vmatprep.mubr.msk.f32.mxu0 %vm42_vm0, %v4293_v33 }
  0x24   :  { %5376 = vmatprep.subr.bf16.mxu0 %v5924_v10  ;;  %5011 = vmatmul.mubr.msk.f32.gmra.mrb[10].mxu1 %vm42_vm0, %v4320_v34 }
  0x25   :  { %4652 = vmatpush3.bf16.msra.mxu1 %v5729_v53 }
  0x26   :  { %4966 = vmatmul.mubr.msk.f32.vlgmr.msra.gmra.mrb[12].mxu0 %vm42_vm0, %v4294_v35  ;;  %4653 = vmatprep.subr.bf16.mxu1 %v5730_v57  ;;  %v5739_v35 = vld [vmem:[%s7058_s2 + $0x30] sm:$0xff]  }
  0x27   :  { %5378 = vmatpush3.bf16.msra.mxu0 %v5924_v10  ;;  %4968 = vmatprep.mubr.msk.f32.mxu0 %vm42_vm0, %v4295_v36 }
  0x28   :  { %5380 = vmatprep.subr.bf16.mxu0 %v5930_v11 }
  0x29   :  { %4654 = vmatpush3.bf16.msra.mxu1 %v5731_v60 }
  0x2a   :  { %4969 = vmatmul.mubr.msk.f32.gmra.mrb[14].mxu0 %vm42_vm0, %v4296_v37 }
  0x2b   :  { %5382 = vmatpush3.bf16.msra.mxu0 %v5930_v11  ;;  %4993 = vmatprep.mubr.msk.f32.mxu0 %vm42_vm0, %v4309_v38  ;;  %v5740_v38 = vld [vmem:[%s7058_s2 + $0x80] sm:$0xff]  }
  0x2c   :  { %5392 = vmatprep.subr.bf16.mxu0 %v5924_v10 }
  0x2e   :  { %4994 = vmatmul.mubr.msk.f32.vlgmr.msra.gmra.mrb[16].mxu0 %vm42_vm0, %v4310_v39 }
  0x2f   :  { %4996 = vmatprep.mubr.msk.f32.mxu0 %vm42_vm0, %v4311_v40  ;;  %5394 = vmatpush3.bf16.msra.mxu0 %v5924_v10  ;;  %v5732_v10 = vld [vmem:[%s7058_s2 + $0x58] sm:$0xff]  }
  0x30   :  { %5396 = vmatprep.subr.bf16.mxu0 %v5930_v11  ;;  %4655 = vmatprep.subr.bf16.mxu1 %v5732_v10 }
  0x31   :  { %4656 = vmatpush3.bf16.msra.mxu1 %v5733_v13 }
  0x32   :  { %4997 = vmatmul.mubr.msk.f32.gmra.mrb[18].mxu0 %vm42_vm0, %v4312_v41  ;;  %4657 = vmatprep.subr.bf16.mxu1 %v5734_v16 }
  0x33   :  { %5398 = vmatpush3.bf16.msra.mxu0 %v5930_v11  ;;  %5021 = vmatprep.mubr.msk.f32.mxu0 %vm42_vm0, %v4325_v42  ;;  %v5741_v42 = vld [vmem:[%s7058_s2 + $0x78] sm:$0xff]  }
  0x34   :  { %5027 = vmatprep.subr.bf16.mxu0 %v5740_v38 }
  0x35   :  { %4658 = vmatpush3.bf16.msra.mxu1 %v5735_v17 }
  0x36   :  { %5022 = vmatmul.mubr.msk.f32.vlgmr.msra.gmra.mrb[20].mxu0 %vm42_vm0, %v4326_v43  ;;  %4659 = vmatprep.subr.bf16.mxu1 %v5736_v20 }
  0x37   :  { %5024 = vmatprep.mubr.msk.f32.mxu0 %vm42_vm0, %v4327_v44  ;;  %5028 = vmatpush3.bf16.msra.mxu0 %v5740_v38  ;;  %v5742_v44 = vld [vmem:[%s7058_s2 + $0x38] sm:$0xff]  }
  0x39   :  { %4660 = vmatpush3.bf16.msra.mxu1 %v5737_v25 }
  0x3a   :  { %5025 = vmatmul.mubr.msk.f32.gmra.mrb[22].mxu0 %vm42_vm0, %v4328_v45  ;;  %4661 = vmatprep.subr.bf16.mxu1 %v5738_v28  ;;  %v5743_v45 = vld [vmem:[%s7058_s2 + $0x88] sm:$0xff]  }
  0x3b   :  { %5029 = vmatprep.subr.bf16.mxu0 %v5743_v45 }
  0x3c   :  { %5030 = vmatpush3.bf16.msra.mxu0 %v5743_v45 }
  0x3d   :  { %4662 = vmatpush3.bf16.msra.mxu1 %v5739_v35 }
  0x3e   :  { %4663 = vmatprep.subr.bf16.mxu1 %v5741_v42 }
  0x41   :  { %4664 = vmatpush3.bf16.msra.mxu1 %v5742_v44 }
  0xe1   :  { %v6110_v48 = vpop.f32.mrb[0].mxu0  ;;  %v4953_v49 = vpop.f32.mrb[0].mxu1 }
  0xe2   :  { %v6115_v51 = vpop.f32.mrb[1].mxu0  ;;  %v427_v52 = vpop.f32.mrb[1].mxu1 }
  0xe3   :  { %v5546_v54 = vpack.i.bf16 %v4953_v49, %v427_v52 }
  0xe5   :  { %v6120_v55 = vpop.f32.mrb[2].mxu0  ;;  %v6122_v56 = vpop.f32.mrb[2].mxu1  ;;  %5547 = vrot.lane.b32.xlu1 %v5546_v54, %s5834_s23 }
  0xe6   :  { %v6128_v58 = vpop.f32.mrb[3].mxu0  ;;  %v6130_v59 = vpop.f32.mrb[3].mxu1 }
  0xe7   :  { %v5601_v61 = vpack.i.bf16 %v6122_v56, %v6130_v59 }
  0xe9   :  { %v4925_v62 = vpop.f32.mrb[4].mxu0  ;;  %v4981_v63 = vpop.f32.mrb[4].mxu1 }
  0xea   :  { %v223_v11 = vpop.f32.mrb[5].mxu0  ;;  %v631_v12 = vpop.f32.mrb[5].mxu1 }
  0xeb   :  { %v5556_v14 = vpack.i.bf16 %v4925_v62, %v223_v11  ;;  %v5551_v15 = vpack.i.bf16 %v4981_v63, %v631_v12 }
  0xed   :  { %5552 = vrot.lane.b32.xlu0 %v5551_v15, %s5835_s14  ;;  %v4928_v18 = vpop.f32.mrb[6].mxu0  ;;  %v4984_v19 = vpop.f32.mrb[6].mxu1 }
  0xee   :  { %v233_v21 = vpop.f32.mrb[7].mxu0  ;;  %v641_v22 = vpop.f32.mrb[7].mxu1 }
  0xef   :  { %v5581_v23 = vpack.i.bf16 %v4928_v18, %v233_v21  ;;  %v5561_v24 = vpack.i.bf16 %v4984_v19, %v641_v22 }
  0xf1   :  { %5557 = vrot.lane.b32.xlu0 %v5556_v14, %s5835_s14  ;;  %v4939_v26 = vpop.f32.mrb[8].mxu0 }
  0xf2   :  { %v325_v27 = vpop.f32.mrb[9].mxu0 }
  0xf3   :  { %v5566_v29 = vpack.i.bf16 %v4939_v26, %v325_v27  ;;  %v5009_v30 = vpop.f32.mrb[8].mxu1 }
  0xf4   :  { %v835_v31 = vpop.f32.mrb[9].mxu1 }
  0xf5   :  { %5562 = vrot.lane.b32.xlu0 %v5561_v24, %s5835_s14  ;;  %5567 = vrot.lane.b32.xlu1 %v5566_v29, %s5836_s20  ;;  %v4942_v32 = vpop.f32.mrb[10].mxu0  ;;  %v5571_v33 = vpack.i.bf16 %v5009_v30, %v835_v31 }
  0xf6   :  { %v335_v34 = vpop.f32.mrb[11].mxu0 }
  0xf7   :  { %v5586_v36 = vpack.i.bf16 %v4942_v32, %v335_v34  ;;  %v5012_v37 = vpop.f32.mrb[10].mxu1 }
  0xf8   :  { %v845_v39 = vpop.f32.mrb[11].mxu1 }
  0xf9   :  { %v6168_v40 = vpop.f32.mrb[12].mxu0  ;;  %5572 = vrot.lane.b32.xlu0 %v5571_v33, %s5834_s23  ;;  %v5596_v41 = vpack.i.bf16 %v5012_v37, %v845_v39 }
  0xfa   :  { %v529_v43 = vpop.f32.mrb[13].mxu0 }
  0xfd   :  { %v6180_v46 = vpop.f32.mrb[14].mxu0 }
  0xfe   :  { %v6182_v47 = vpop.f32.mrb[15].mxu0 }
 0x101   :  { %v4995_v49 = vpop.f32.mrb[16].mxu0 }
 0x102   :  { %v733_v50 = vpop.f32.mrb[17].mxu0 }
 0x103   :  { %v5576_v52 = vpack.i.bf16 %v4995_v49, %v733_v50 }
 0x105   :  { %5577 = vrot.lane.b32.xlu1 %v5576_v52, %s5836_s20  ;;  %v4998_v53 = vpop.f32.mrb[18].mxu0 }
 0x106   :  { %v743_v54 = vpop.f32.mrb[19].mxu0 }
 0x107   :  { %v5591_v57 = vpack.i.bf16 %v4998_v53, %v743_v54 }
 0x109   :  { %5582 = vrot.lane.b32.xlu1 %v5581_v23, %s5835_s14  ;;  %5592 = vrot.lane.b32.xlu0 %v5591_v57, %s5836_s20  ;;  %v5023_v60 = vpop.f32.mrb[20].mxu0 }
 0x10a   :  { %v937_v62 = vpop.f32.mrb[21].mxu0 }
 0x10b   :  { %v1080_v63 = vpack.c.bf16 %v5023_v60, %v937_v62 }
 0x10d   :  { %5587 = vrot.lane.b32.xlu1 %v5586_v36, %s5836_s20  ;;  %5597 = vrot.lane.b32.xlu0 %v5596_v41, %s5834_s23  ;;  %v5026_v10 = vpop.f32.mrb[22].mxu0 }
 0x10e   :  { %v947_v11 = vpop.f32.mrb[23].mxu0  ;;  %5031 = vmatprep.mubr.msk.bf16.mxu0 %vm42_vm0, %v1080_v63 }
 0x10f   :  { %v1083_v12 = vpack.c.bf16 %v5026_v10, %v947_v11 }
 0x111   :  { %5602 = vrot.lane.b32.xlu1 %v5601_v61, %s5834_s23  ;;  %5032 = vmatmul.mubr.msk.bf16.vlgmr.msra.gmra.mrb[24].mxu0 %vm42_vm0, %v1083_v12 }
 0x157   :  { %v5548_v14 = vpop.permute.xlu1 %5547 }
 0x158   :  { %v5550_v21 = vunpack.i.h.bf16 %v5548_v14  ;;  %v5549_v22 = vunpack.i.l.bf16 %v5548_v14 }
 0x15f   :  { %v5553_v13 = vpop.permute.xlu0 %5552 }
 0x160   :  { %v5555_v29 = vunpack.i.h.bf16 %v5553_v13  ;;  %v5554_v30 = vunpack.i.l.bf16 %v5553_v13 }
 0x162   :  { %v1067_v35 = vsel %vm42_vm0, %v6168_v40, %v5555_v29 }
 0x163   :  { %v5558_v15 = vpop.permute.xlu0 %5557 }
 0x164   :  { %v5560_v16 = vunpack.i.h.bf16 %v5558_v15  ;;  %v5559_v17 = vunpack.i.l.bf16 %v5558_v15 }
 0x166   :  { %v1053_v23 = vsel %vm42_vm0, %v6110_v48, %v5560_v16  ;;  %v1052_v56 = vsel %vm42_vm0, %v6115_v51, %v5559_v17  ;;  %v1066_v51 = vsel %vm42_vm0, %v529_v43, %v5554_v30 }
 0x167   :  { %v5568_v18 = vpop.permute.xlu1 %5567  ;;  %v5563_v27 = vpop.permute.xlu0 %5562 }
 0x168   :  { %v5570_v19 = vunpack.i.h.bf16 %v5568_v18  ;;  %v5569_v20 = vunpack.i.l.bf16 %v5568_v18  ;;  %v5565_v38 = vunpack.i.h.bf16 %v5563_v27  ;;  %v5564_v39 = vunpack.i.l.bf16 %v5563_v27 }
 0x16a   :  { %v1058_v59 = vsel %vm1056_vm1, %v1053_v23, %v5570_v19  ;;  %v1057_v61 = vsel %vm1056_vm1, %v1052_v56, %v5569_v20  ;;  %v1068_v43 = vsel %vm42_vm0, %v6182_v47, %v5564_v39  ;;  %v1069_v40 = vsel %vm42_vm0, %v6180_v46, %v5565_v38 }
 0x16b   :  { %v1063_v24 = vsel %vm1061_vm2, %v1058_v59, %v5550_v21  ;;  %v1062_v25 = vsel %vm1061_vm2, %v1057_v61, %v5549_v22  ;;  %v5573_v28 = vpop.permute.xlu0 %5572 }
 0x16c   :  { %v1078_v26 = vpack.c.bf16 %v1063_v24, %v1062_v25  ;;  %v5575_v31 = vunpack.i.h.bf16 %v5573_v28  ;;  %v5574_v32 = vunpack.i.l.bf16 %v5573_v28  ;;  %v5744_v24 = vld [vmem:[%s7059_s5] sm:$0xff]   ;;  %v5745_v25 = vld [vmem:[%s7059_s5 + $0x8] sm:$0xff]  }
 0x16d   :  { %5035 = vmatprep.subr.bf16.mxu0 %v5744_v24 }
 0x16e   :  { %5036 = vmatpush3.bf16.msra.mxu0 %v5744_v24 }
 0x16f   :  { %5037 = vmatprep.subr.bf16.mxu0 %v5745_v25 }
 0x172   :  { %5038 = vmatpush3.bf16.msra.mxu0 %v5745_v25  ;;  %v4353_v25 = vld [vmem:[%s7060_s3] ss:$0 sm:$0xff] }
 0x177   :  { %v5578_v33 = vpop.permute.xlu1 %5577 }
 0x178   :  { %v5580_v48 = vunpack.i.h.bf16 %v5578_v33  ;;  %v5579_v34 = vunpack.i.l.bf16 %v5578_v33 }
 0x17a   :  { %v1071_v36 = vsel %vm1056_vm1, %v1067_v35, %v5580_v48  ;;  %v1070_v37 = vsel %vm1056_vm1, %v1066_v51, %v5579_v34 }
 0x17b   :  { %v5583_v41 = vpop.permute.xlu1 %5582  ;;  %v5593_v42 = vpop.permute.xlu0 %5592  ;;  %v1074_v44 = vsel %vm1061_vm2, %v1070_v37, %v5574_v32  ;;  %v1075_v45 = vsel %vm1061_vm2, %v1071_v36, %v5575_v31 }
 0x17c   :  { %v5595_v49 = vunpack.i.h.bf16 %v5593_v42  ;;  %v5594_v50 = vunpack.i.l.bf16 %v5593_v42  ;;  %v1079_v52 = vpack.c.bf16 %v1075_v45, %v1074_v44  ;;  %v5585_v57 = vunpack.i.h.bf16 %v5583_v41 }
 0x17d   :  { %v5584_v60 = vunpack.i.l.bf16 %v5583_v41 }
 0x17e   :  { %1266 = vmatprep.mubr.bf16.mxu1 %v1079_v52  ;;  %v1073_v10 = vsel %vm1056_vm1, %v1069_v40, %v5595_v49  ;;  %v1072_v11 = vsel %vm1056_vm1, %v1068_v43, %v5594_v50  ;;  %v1055_v16 = vsel %vm42_vm0, %v6120_v55, %v5585_v57 }
 0x17f   :  { %v5588_v53 = vpop.permute.xlu1 %5587  ;;  %v5598_v54 = vpop.permute.xlu0 %5597  ;;  %1267 = vmatmul.mubr.bf16.vlgmr.msra.gmra.mrb[12].mxu1 %v1078_v26  ;;  %v1054_v17 = vsel %vm42_vm0, %v6128_v58, %v5584_v60 }
 0x180   :  { %v5600_v62 = vunpack.i.h.bf16 %v5598_v54  ;;  %v5599_v63 = vunpack.i.l.bf16 %v5598_v54  ;;  %v5590_v12 = vunpack.i.h.bf16 %v5588_v53  ;;  %v5589_v13 = vunpack.i.l.bf16 %v5588_v53 }
 0x182   :  { %v1076_v14 = vsel %vm1061_vm2, %v1072_v11, %v5599_v63  ;;  %v1077_v47 = vsel %vm1061_vm2, %v1073_v10, %v5600_v62  ;;  %v1059_v20 = vsel %vm1056_vm1, %v1054_v17, %v5589_v13  ;;  %v1060_v21 = vsel %vm1056_vm1, %v1055_v16, %v5590_v12 }
 0x183   :  { %v5603_v15 = vpop.permute.xlu1 %5602  ;;  %v1082_v46 = vpack.c.bf16 %v1077_v47, %v1076_v14 }
 0x184   :  { %v5605_v18 = vunpack.i.h.bf16 %v5603_v15  ;;  %v5604_v19 = vunpack.i.l.bf16 %v5603_v15 }
 0x185   :  { %1274 = vmatprep.mubr.bf16.mxu1 %v1082_v46 }
 0x186   :  { %v1064_v22 = vsel %vm1061_vm2, %v1059_v20, %v5604_v19  ;;  %v1065_v23 = vsel %vm1061_vm2, %v1060_v21, %v5605_v18 }
 0x187   :  { %v1081_v56 = vpack.c.bf16 %v1065_v23, %v1064_v22 }
 0x189   :  { %1275 = vmatmul.mubr.bf16.gmra.mrb[16].mxu1 %v1081_v56 }
 0x18a   :  { %5093 = vmatprep.mubr.msk.f32.mxu1 %vm42_vm0, %v5913_v8 }
 0x1e4   :  { %v5033_v55 = vpop.f32.mrb[24].mxu0 }
 0x1e5   :  { %v1317_v59 = vpop.f32.mrb[25].mxu0 }
 0x1e6   :  { %v5034_v61 = vpop.f32.mrb[26].mxu0 }
 0x1e7   :  { %v1320_v58 = vpop.f32.mrb[27].mxu0 }
 0x252   :  { %v4665_v26 = vpop.f32.mrb[12].mxu1 }
 0x253   :  { %v4666_v27 = vpop.f32.mrb[13].mxu1 }
 0x254   :  { %v4667_v28 = vadd.f32 %v4666_v27, %v4665_v26  ;;  %v4668_v8 = vpop.f32.mrb[14].mxu1 }
 0x255   :  { %v4669_v29 = vpop.f32.mrb[15].mxu1 }
 0x256   :  { %v4670_v30 = vadd.f32 %v4669_v29, %v4668_v8  ;;  %v1318_v31 = vadd.f32 %v4667_v28, %v1317_v59  ;;  %v4354_v29 = vld [vmem:[%s7061_s4] ss:$0 sm:$0xff] }
 0x258   :  { %v1321_v32 = vadd.f32 %v4670_v30, %v1320_v58  ;;  %v1334_v33 = vsel %vm42_vm0, %v1318_v31, 0.0 }
 0x25a   :  { %v1335_v48 = vsel %vm42_vm0, %v1321_v32, 0.0 }
 0x25b   :  { %v1336_v34 = vadd.f32 %v1335_v48, %v1334_v33 }
 0x25c   :  { %v4671_v51 = vpop.f32.mrb[16].mxu1 }
 0x25d   :  { %v4672_v35 = vpop.f32.mrb[17].mxu1 }
 0x25e   :  { %v4673_v36 = vadd.f32 %v4672_v35, %v4671_v51  ;;  %v4674_v37 = vpop.f32.mrb[18].mxu1 }
 0x25f   :  { %v4675_v38 = vpop.f32.mrb[19].mxu1 }
 0x260   :  { %v1326_v39 = vadd.f32 %v5033_v55, %v4673_v36  ;;  %v4676_v41 = vadd.f32 %v4675_v38, %v4674_v37 }
 0x262   :  { %v1337_v42 = vsel %vm42_vm0, %v1326_v39, 0.0  ;;  %v1329_v44 = vadd.f32 %v5034_v61, %v4676_v41 }
 0x263   :  { %v1338_v45 = vadd.f32 %v1337_v42, %v1336_v34 }
 0x264   :  { %v1339_v49 = vsel %vm42_vm0, %v1329_v44, 0.0 }
 0x265   :  { %v1340_v50 = vadd.f32 %v1339_v49, %v1338_v45 }
 0x267   :  { %v1341_v52 = vrot.slane %v1340_v50, 4 }
 0x269   :  { %v1342_v43 = vadd.f32 %v1341_v52, %v1340_v50 }
 0x26b   :  { %v1343_v40 = vrot.slane %v1342_v43, 2 }
 0x26d   :  { %v1344_v53 = vadd.f32 %v1343_v40, %v1342_v43 }
 0x26f   :  { %v1345_v54 = vrot.slane %v1344_v53, 1 }
 0x271   :  { %v1346_v57 = vadd.f32 %v1345_v54, %v1344_v53 }
 0x273   :  { %v1347_v60 = vmul.f32 0.03125, %v1346_v57 }
 0x275   :  { %v1348_v62 = vsub.f32 %v1318_v31, %v1347_v60  ;;  %v1349_v63 = vsub.f32 %v1321_v32, %v1347_v60  ;;  %v1350_v10 = vsub.f32 %v1326_v39, %v1347_v60  ;;  %v1351_v11 = vsub.f32 %v1329_v44, %v1347_v60 }
 0x277   :  { %v1352_v12 = vmul.f32 %v1348_v62, %v1348_v62  ;;  %v1353_v13 = vmul.f32 %v1349_v63, %v1349_v63  ;;  %v1354_v14 = vmul.f32 %v1350_v10, %v1350_v10  ;;  %v1355_v47 = vmul.f32 %v1351_v11, %v1351_v11 }
 0x279   :  { %v1356_v15 = vsel %vm42_vm0, %v1352_v12, 0.0  ;;  %v1357_v46 = vsel %vm42_vm0, %v1353_v13, 0.0  ;;  %v1359_v17 = vsel %vm42_vm0, %v1354_v14, 0.0  ;;  %v1361_v19 = vsel %vm42_vm0, %v1355_v47, 0.0 }
 0x27a   :  { %v1358_v16 = vadd.f32 %v1357_v46, %v1356_v15 }
 0x27c   :  { %v1360_v18 = vadd.f32 %v1359_v17, %v1358_v16 }
 0x27e   :  { %v1362_v20 = vadd.f32 %v1361_v19, %v1360_v18 }
 0x280   :  { %v1363_v21 = vrot.slane %v1362_v20, 4 }
 0x282   :  { %v1364_v22 = vadd.f32 %v1363_v21, %v1362_v20 }
 0x284   :  { %v1365_v23 = vrot.slane %v1364_v22, 2 }
 0x286   :  { %v1366_v56 = vadd.f32 %v1365_v23, %v1364_v22 }
 0x288   :  { %v1367_v55 = vrot.slane %v1366_v56, 1 }
 0x28a   :  { %v1368_v59 = vadd.f32 %v1367_v55, %v1366_v56 }
 0x28c   :  { %v1369_v61 = vmul.f32 0.03125, %v1368_v59 }
 0x28e   :  { %v1370_v58 = vadd.f32 1e-05, %v1369_v61 }
 0x290   :  { %5786 = vrsqrt.f32 %v1370_v58 }
 0x29a   :  { %v5787_v24 = vpop.eup %5786 }
 0x29b   :  { %v1375_v26 = vmul.f32 %v5787_v24, %v1351_v11  ;;  %v1372_v27 = vmul.f32 %v5787_v24, %v1348_v62  ;;  %v1373_v28 = vmul.f32 %v5787_v24, %v1349_v63  ;;  %v1374_v8 = vmul.f32 %v5787_v24, %v1350_v10 }
 0x29d   :  { %v1385_v30 = vmul.f32 %v4353_v25, %v1375_v26  ;;  %v1382_v31 = vmul.f32 %v4353_v25, %v1372_v27  ;;  %v1383_v32 = vmul.f32 %v4353_v25, %v1373_v28  ;;  %v1384_v33 = vmul.f32 %v4353_v25, %v1374_v8 }
 0x29f   :  { %v1395_v48 = vadd.f32 %v4354_v29, %v1385_v30  ;;  %v1392_v34 = vadd.f32 %v4354_v29, %v1382_v31  ;;  %v1393_v51 = vadd.f32 %v4354_v29, %v1383_v32  ;;  %v1394_v35 = vadd.f32 %v4354_v29, %v1384_v33  ;;  %v4359_v30 = vld [vmem:[%s7062_s6] ss:$0 sm:$0xff] }
 0x2a1   :  { %v1399_v36 = vmax.f32 %v1395_v48, 0.0  ;;  %v1396_v37 = vmax.f32 %v1392_v34, 0.0  ;;  %v1397_v38 = vmax.f32 %v1393_v51, 0.0  ;;  %v1398_v39 = vmax.f32 %v1394_v35, 0.0  ;;  %v4360_v34 = vld [vmem:[%s7063_s7] ss:$0 sm:$0xff] }
 0x2a3   :  { %v1400_v41 = vpack.c.bf16 %v1397_v38, %v1396_v37  ;;  %v1401_v42 = vpack.c.bf16 %v1399_v36, %v1398_v39 }
 0x2a5   :  { %5039 = vmatprep.mubr.msk.bf16.mxu0 %vm42_vm0, %v1400_v41 }
 0x2a6   :  { %5040 = vmatmul.mubr.msk.bf16.vlgmr.msra.gmra.mrb[28].mxu0 %vm42_vm0, %v1401_v42 }
 0x2a7   :  { %5051 = vmatprep.mubr.msk.f32.mxu0 %vm42_vm0, %v5908_v7 }
 0x379   :  { %v5041_v44 = vpop.f32.mrb[28].mxu0 }
 0x37a   :  { %v1458_v45 = vpop.f32.mrb[29].mxu0  ;;  %v1478_v53 = vsel %vm42_vm0, %v5041_v44, 0.0 }
 0x37b   :  { %v5042_v49 = vpop.f32.mrb[30].mxu0  ;;  %v1475_v52 = vsel %vm42_vm0, %v1458_v45, 0.0 }
 0x37c   :  { %v1461_v50 = vpop.f32.mrb[31].mxu0  ;;  %v1480_v57 = vsel %vm42_vm0, %v5042_v49, 0.0 }
 0x37d   :  { %v1476_v43 = vsel %vm42_vm0, %v1461_v50, 0.0 }
 0x37e   :  { %v1477_v40 = vadd.f32 %v1476_v43, %v1475_v52 }
 0x380   :  { %v1479_v54 = vadd.f32 %v1478_v53, %v1477_v40  ;;  %v6343_v40 = vld [vmem:[%s7057_s1 + $0x18] sm:$0xff] }
 0x381   :  { %v6350_v53 = vld [vmem:[%s7057_s1 + $0x78] sm:$0xff] }
 0x382   :  { %v1481_v60 = vadd.f32 %v1480_v57, %v1479_v54  ;;  %v6361_v54 = vld [vmem:[%s7057_s1 + $0x20] sm:$0xff] }
 0x383   :  { %v6368_v57 = vld [vmem:[%s7057_s1 + $0xa0] sm:$0xff] }
 0x384   :  { %v1482_v62 = vrot.slane %v1481_v60, 4 }
 0x386   :  { %v1483_v63 = vadd.f32 %v1482_v62, %v1481_v60  ;;  %v6375_v60 = vld [vmem:[%s7057_s1 + $0x28] sm:$0xff] }
 0x387   :  { %v6382_v62 = vld [vmem:[%s7057_s1 + $0xa8] sm:$0xff] }
 0x388   :  { %v1484_v10 = vrot.slane %v1483_v63, 2 }
 0x38a   :  { %v1485_v11 = vadd.f32 %v1484_v10, %v1483_v63  ;;  %v6393_v63 = vld [vmem:[%s7057_s1 + $0x30] sm:$0xff] }
 0x38b   :  { %v6400_v10 = vld [vmem:[%s7057_s1 + $0xb0] sm:$0xff] }
 0x38c   :  { %v1486_v7 = vrot.slane %v1485_v11, 1 }
 0x38e   :  { %v1487_v12 = vadd.f32 %v1486_v7, %v1485_v11  ;;  %v6407_v11 = vld [vmem:[%s7057_s1 + $0x38] sm:$0xff] }
 0x38f   :  { %v6414_v7 = vld [vmem:[%s7057_s1 + $0xb8] sm:$0xff] }
 0x390   :  { %v1488_v13 = vmul.f32 0.03125, %v1487_v12  ;;  %v6424_v12 = vld [vmem:[%s7057_s1 + $0x40] sm:$0xff] }
 0x392   :  { %v1489_v14 = vsub.f32 %v1458_v45, %v1488_v13  ;;  %v1490_v47 = vsub.f32 %v1461_v50, %v1488_v13  ;;  %v1491_v15 = vsub.f32 %v5041_v44, %v1488_v13  ;;  %v1492_v46 = vsub.f32 %v5042_v49, %v1488_v13  ;;  %v6431_v13 = vld [vmem:[%s7057_s1 + $0xe0] sm:$0xff] }
 0x394   :  { %v1493_v16 = vmul.f32 %v1489_v14, %v1489_v14  ;;  %v1494_v17 = vmul.f32 %v1490_v47, %v1490_v47  ;;  %v1495_v18 = vmul.f32 %v1491_v15, %v1491_v15  ;;  %v1496_v19 = vmul.f32 %v1492_v46, %v1492_v46 }
 0x396   :  { %v1497_v20 = vsel %vm42_vm0, %v1493_v16, 0.0  ;;  %v1498_v21 = vsel %vm42_vm0, %v1494_v17, 0.0  ;;  %v1500_v23 = vsel %vm42_vm0, %v1495_v18, 0.0  ;;  %v1502_v55 = vsel %vm42_vm0, %v1496_v19, 0.0  ;;  %v6468_v16 = vld [vmem:[%s7057_s1 + $0x58] sm:$0xff]  ;;  %v6483_v18 = vld [vmem:[%s7057_s1 + $0x80] sm:$0xff] }
 0x397   :  { %v1499_v22 = vadd.f32 %v1498_v21, %v1497_v20  ;;  %v6475_v17 = vld [vmem:[%s7057_s1 + $0xf8] sm:$0xff]  ;;  %v6491_v19 = vld [vmem:[%s7057_s1 + $0x88] sm:$0xff]  ;;  %v6499_v20 = vld [vmem:[%s7057_s1 + $0x90] sm:$0xff] }
 0x398   :  { %v6507_v21 = vld [vmem:[%s7057_s1 + $0x98] sm:$0xff] }
 0x399   :  { %v1501_v56 = vadd.f32 %v1500_v23, %v1499_v22  ;;  %v6515_v22 = vld [vmem:[%s7057_s1 + $0xc0] sm:$0xff]  ;;  %v6523_v23 = vld [vmem:[%s7057_s1 + $0xc8] sm:$0xff] }
 0x39b   :  { %v1503_v59 = vadd.f32 %v1502_v55, %v1501_v56  ;;  %v6531_v56 = vld [vmem:[%s7057_s1 + $0xd0] sm:$0xff]  ;;  %v6539_v55 = vld [vmem:[%s7057_s1 + $0xd8] sm:$0xff] }
 0x39d   :  { %v1504_v61 = vrot.slane %v1503_v59, 4 }
 0x39f   :  { %v1505_v58 = vadd.f32 %v1504_v61, %v1503_v59  ;;  %v6547_v59 = vld [vmem:[%s7057_s1 + $0x100] sm:$0xff]  ;;  %v6554_v61 = vld [vmem:[%s7057_s1 + $0x108] sm:$0xff] }
 0x3a1   :  { %v1506_v24 = vrot.slane %v1505_v58, 2 }
 0x3a3   :  { %v1507_v25 = vadd.f32 %v1506_v24, %v1505_v58  ;;  %v6561_v58 = vld [vmem:[%s7057_s1 + $0x110] sm:$0xff]  ;;  %v6568_v24 = vld [vmem:[%s7057_s1 + $0x118] sm:$0xff] }
 0x3a4   :  { %7071 = vst [vmem:[#allocation2_spill] sm:$0xff] %v6561_v58  ;;  %7072 = vst [vmem:[#allocation3_spill] sm:$0xff] %v6568_v24 }
 0x3a5   :  { %v1508_v26 = vrot.slane %v1507_v25, 1 }
 0x3a7   :  { %v1509_v27 = vadd.f32 %v1508_v26, %v1507_v25  ;;  %v5746_v25 = vld [vmem:[%s7058_s2 + $0xd0] sm:$0xff]  }
 0x3a8   :  { %v5747_v26 = vld [vmem:[%s7058_s2 + $0x90] sm:$0xff]  }
 0x3a9   :  { %v1510_v28 = vmul.f32 0.03125, %v1509_v27 }
 0x3ab   :  { %v1511_v8 = vadd.f32 1e-05, %v1510_v28 }
 0x3ad   :  { %5788 = vrsqrt.f32 %v1511_v8 }
 0x3b7   :  { %v5789_v29 = vpop.eup %5788 }
 0x3b8   :  { %v1513_v31 = vmul.f32 %v5789_v29, %v1489_v14  ;;  %v1514_v32 = vmul.f32 %v5789_v29, %v1490_v47  ;;  %v1515_v33 = vmul.f32 %v5789_v29, %v1491_v15  ;;  %v1516_v48 = vmul.f32 %v5789_v29, %v1492_v46  ;;  %v6438_v14 = vld [vmem:[%s7057_s1 + $0x48] sm:$0xff]  ;;  %v6453_v15 = vld [vmem:[%s7057_s1 + $0x50] sm:$0xff] }
 0x3b9   :  { %v6445_v47 = vld [vmem:[%s7057_s1 + $0xe8] sm:$0xff]  ;;  %v6461_v46 = vld [vmem:[%s7057_s1 + $0xf0] sm:$0xff] }
 0x3ba   :  { %v1523_v51 = vmul.f32 %v4359_v30, %v1513_v31  ;;  %v1524_v35 = vmul.f32 %v4359_v30, %v1514_v32  ;;  %v1525_v36 = vmul.f32 %v4359_v30, %v1515_v33  ;;  %v1526_v37 = vmul.f32 %v4359_v30, %v1516_v48  ;;  %v5748_v30 = vld [vmem:[%s7058_s2 + $0xd8] sm:$0xff]   ;;  %v5750_v32 = vld [vmem:[%s7058_s2 + $0xe0] sm:$0xff]  }
 0x3bb   :  { %v5749_v31 = vld [vmem:[%s7058_s2 + $0x98] sm:$0xff]  }
 0x3bc   :  { %v1533_v38 = vadd.f32 %v4360_v34, %v1523_v51  ;;  %v1534_v39 = vadd.f32 %v4360_v34, %v1524_v35  ;;  %v1535_v41 = vadd.f32 %v4360_v34, %v1525_v36  ;;  %v1536_v42 = vadd.f32 %v4360_v34, %v1526_v37  ;;  %v5751_v37 = vld [vmem:[%s7058_s2 + $0xa0] sm:$0xff]  }
 0x3be   :  { %v6268_v44 = vadd.f32 %v1533_v38, %v34_v3  ;;  %v6272_v45 = vadd.f32 %v1534_v39, %v35_v4  ;;  %v6276_v49 = vadd.f32 %v1535_v41, %v36_v6  ;;  %v6280_v50 = vadd.f32 %v1536_v42, %v37_v9  ;;  %v6311_v4 = vld [vmem:[%s7057_s1 + $0x8] sm:$0xff]  ;;  %v6329_v6 = vld [vmem:[%s7057_s1 + $0x10] sm:$0xff] }
 0x3bf   :  { %v6336_v9 = vld [vmem:[%s7057_s1 + $0x70] sm:$0xff] }
 0x3c0   :  { %v7068_v52 = vmax.f32 %v6268_v44, 0.0  ;;  %v7067_v43 = vmax.f32 %v6272_v45, 0.0  ;;  %v7066_v0 = vmax.f32 %v6276_v49, 0.0  ;;  %v7065_v3 = vmax.f32 %v6280_v50, 0.0 }
 0x3c2   :  { %v6290_v1 = vpack.c.bf16 %v7067_v43, %v7068_v52  ;;  %v6296_v2 = vpack.c.bf16 %v7065_v3, %v7066_v0 }
 0x3c4   :  { %5400 = vmatprep.subr.bf16.mxu0 %v6290_v1  ;;  %5424 = vmatprep.subr.bf16.mxu1 %v6290_v1 }
 0x3c5   :  { %5402 = vmatpush3.bf16.msra.mxu0 %v6290_v1  ;;  %5426 = vmatpush3.bf16.msra.mxu1 %v6290_v1 }
 0x3c6   :  { %5404 = vmatprep.subr.bf16.mxu0 %v6296_v2  ;;  %5428 = vmatprep.subr.bf16.mxu1 %v6296_v2 }
 0x3c9   :  { %5406 = vmatpush3.bf16.msra.mxu0 %v6296_v2  ;;  %5430 = vmatpush3.bf16.msra.mxu1 %v6296_v2 }
 0x3ca   :  { %5408 = vmatprep.subr.bf16.mxu0 %v6290_v1  ;;  %5440 = vmatprep.subr.bf16.mxu1 %v6290_v1 }
 0x3cc   :  { %5052 = vmatmul.mubr.msk.f32.vlgmr.msra.gmra.mrb[32].mxu0 %vm42_vm0, %v6311_v4  ;;  %5094 = vmatmul.mubr.msk.f32.vlgmr.msra.gmra.mrb[20].mxu1 %vm42_vm0, %v6318_v5 }
 0x3cd   :  { %5410 = vmatpush3.bf16.msra.mxu0 %v6290_v1  ;;  %5442 = vmatpush3.bf16.msra.mxu1 %v6290_v1 }
 0x3ce   :  { %5412 = vmatprep.subr.bf16.mxu0 %v6296_v2  ;;  %5444 = vmatprep.subr.bf16.mxu1 %v6296_v2 }
 0x3cf   :  { %5054 = vmatprep.mubr.msk.f32.mxu0 %vm42_vm0, %v6329_v6  ;;  %5096 = vmatprep.mubr.msk.f32.mxu1 %vm42_vm0, %v6336_v9 }
 0x3d0   :  { %5055 = vmatmul.mubr.msk.f32.gmra.mrb[34].mxu0 %vm42_vm0, %v6343_v40  ;;  %5097 = vmatmul.mubr.msk.f32.gmra.mrb[22].mxu1 %vm42_vm0, %v6350_v53 }
 0x3d1   :  { %5414 = vmatpush3.bf16.msra.mxu0 %v6296_v2  ;;  %5446 = vmatpush3.bf16.msra.mxu1 %v6296_v2 }
 0x3d2   :  { %5416 = vmatprep.subr.bf16.mxu0 %v6290_v1  ;;  %5456 = vmatprep.subr.bf16.mxu1 %v6290_v1 }
 0x3d3   :  { %5065 = vmatprep.mubr.msk.f32.mxu0 %vm42_vm0, %v6361_v54  ;;  %5121 = vmatprep.mubr.msk.f32.mxu1 %vm42_vm0, %v6368_v57 }
 0x3d4   :  { %5066 = vmatmul.mubr.msk.f32.vlgmr.msra.gmra.mrb[36].mxu0 %vm42_vm0, %v6375_v60  ;;  %5122 = vmatmul.mubr.msk.f32.vlgmr.msra.gmra.mrb[24].mxu1 %vm42_vm0, %v6382_v62 }
 0x3d5   :  { %5418 = vmatpush3.bf16.msra.mxu0 %v6290_v1  ;;  %5458 = vmatpush3.bf16.msra.mxu1 %v6290_v1 }
 0x3d6   :  { %5420 = vmatprep.subr.bf16.mxu0 %v6296_v2  ;;  %5460 = vmatprep.subr.bf16.mxu1 %v6296_v2 }
 0x3d7   :  { %5068 = vmatprep.mubr.msk.f32.mxu0 %vm42_vm0, %v6393_v63  ;;  %5124 = vmatprep.mubr.msk.f32.mxu1 %vm42_vm0, %v6400_v10 }
 0x3d8   :  { %5069 = vmatmul.mubr.msk.f32.gmra.mrb[38].mxu0 %vm42_vm0, %v6407_v11  ;;  %5125 = vmatmul.mubr.msk.f32.gmra.mrb[26].mxu1 %vm42_vm0, %v6414_v7 }
 0x3d9   :  { %5422 = vmatpush3.bf16.msra.mxu0 %v6296_v2  ;;  %5462 = vmatpush3.bf16.msra.mxu1 %v6296_v2 }
 0x3da   :  { %5432 = vmatprep.subr.bf16.mxu0 %v6290_v1  ;;  %5079 = vmatprep.mubr.msk.f32.mxu0 %vm42_vm0, %v6424_v12 }
 0x3db   :  { %5149 = vmatprep.mubr.msk.f32.mxu1 %vm42_vm0, %v6431_v13  ;;  %4757 = vmatprep.subr.bf16.mxu1 %v5746_v25 }
 0x3dc   :  { %5080 = vmatmul.mubr.msk.f32.vlgmr.msra.gmra.mrb[40].mxu0 %vm42_vm0, %v6438_v14  ;;  %5150 = vmatmul.mubr.msk.f32.vlgmr.msra.gmra.mrb[28].mxu1 %vm42_vm0, %v6445_v47 }
 0x3dd   :  { %5434 = vmatpush3.bf16.msra.mxu0 %v6290_v1  ;;  %5082 = vmatprep.mubr.msk.f32.mxu0 %vm42_vm0, %v6453_v15 }
 0x3de   :  { %5436 = vmatprep.subr.bf16.mxu0 %v6296_v2  ;;  %5152 = vmatprep.mubr.msk.f32.mxu1 %vm42_vm0, %v6461_v46 }
 0x3df   :  { %4758 = vmatpush3.bf16.msra.mxu1 %v5747_v26  ;;  %v5753_v26 = vld [vmem:[%s7058_s2 + $0xa8] sm:$0xff]  }
 0x3e0   :  { %5083 = vmatmul.mubr.msk.f32.gmra.mrb[42].mxu0 %vm42_vm0, %v6468_v16  ;;  %5153 = vmatmul.mubr.msk.f32.gmra.mrb[30].mxu1 %vm42_vm0, %v6475_v17 }
 0x3e1   :  { %5438 = vmatpush3.bf16.msra.mxu0 %v6296_v2  ;;  %5107 = vmatprep.mubr.msk.f32.mxu0 %vm42_vm0, %v6483_v18 }
 0x3e2   :  { %5448 = vmatprep.subr.bf16.mxu0 %v6290_v1  ;;  %4759 = vmatprep.subr.bf16.mxu1 %v5748_v30 }
 0x3e3   :  { %4760 = vmatpush3.bf16.msra.mxu1 %v5749_v31 }
 0x3e4   :  { %5108 = vmatmul.mubr.msk.f32.vlgmr.msra.gmra.mrb[44].mxu0 %vm42_vm0, %v6491_v19  ;;  %4761 = vmatprep.subr.bf16.mxu1 %v5750_v32  ;;  %v5754_v32 = vld [vmem:[%s7058_s2 + $0xf0] sm:$0xff]  }
 0x3e5   :  { %5450 = vmatpush3.bf16.msra.mxu0 %v6290_v1  ;;  %5110 = vmatprep.mubr.msk.f32.mxu0 %vm42_vm0, %v6499_v20 }
 0x3e6   :  { %5452 = vmatprep.subr.bf16.mxu0 %v6296_v2 }
 0x3e7   :  { %4762 = vmatpush3.bf16.msra.mxu1 %v5751_v37 }
 0x3e8   :  { %5111 = vmatmul.mubr.msk.f32.gmra.mrb[46].mxu0 %vm42_vm0, %v6507_v21 }
 0x3e9   :  { %5454 = vmatpush3.bf16.msra.mxu0 %v6296_v2  ;;  %5135 = vmatprep.mubr.msk.f32.mxu0 %vm42_vm0, %v6515_v22 }
 0x3ea   :  { %5464 = vmatprep.subr.bf16.mxu0 %v6290_v1 }
 0x3ec   :  { %5136 = vmatmul.mubr.msk.f32.vlgmr.msra.gmra.mrb[48].mxu0 %vm42_vm0, %v6523_v23 }
 0x3ed   :  { %5466 = vmatpush3.bf16.msra.mxu0 %v6290_v1  ;;  %5138 = vmatprep.mubr.msk.f32.mxu0 %vm42_vm0, %v6531_v56  ;;  %v5752_v1 = vld [vmem:[%s7058_s2 + $0xe8] sm:$0xff]  }
 0x3ee   :  { %5468 = vmatprep.subr.bf16.mxu0 %v6296_v2  ;;  %4763 = vmatprep.subr.bf16.mxu1 %v5752_v1 }
 0x3ef   :  { %4764 = vmatpush3.bf16.msra.mxu1 %v5753_v26  ;;  %v5758_v26 = vld [vmem:[%s7058_s2 + $0x100] sm:$0xff]  }
 0x3f0   :  { %5139 = vmatmul.mubr.msk.f32.gmra.mrb[50].mxu0 %vm42_vm0, %v6539_v55  ;;  %4765 = vmatprep.subr.bf16.mxu1 %v5754_v32 }
 0x3f1   :  { %5470 = vmatpush3.bf16.msra.mxu0 %v6296_v2  ;;  %5163 = vmatprep.mubr.msk.f32.mxu0 %vm42_vm0, %v6547_v59 }
 0x3f4   :  { %5164 = vmatmul.mubr.msk.f32.vlgmr.msra.gmra.mrb[52].mxu0 %vm42_vm0, %v6554_v61 }
 0x3f5   :  { %5166 = vmatprep.mubr.msk.f32.mxu0 %vm42_vm0, %v6561_v58 }
 0x3f8   :  { %5167 = vmatmul.mubr.msk.f32.gmra.mrb[54].mxu0 %vm42_vm0, %v6568_v24 }
 0x49f   :  { %v6578_v27 = vpop.f32.mrb[32].mxu0  ;;  %v5095_v28 = vpop.f32.mrb[20].mxu1 }
 0x4a0   :  { %v6580_v8 = vpop.f32.mrb[33].mxu0  ;;  %v1866_v29 = vpop.f32.mrb[21].mxu1 }
 0x4a1   :  { %v5606_v33 = vpack.i.bf16 %v5095_v28, %v1866_v29 }
 0x4a3   :  { %v6591_v48 = vpop.f32.mrb[34].mxu0  ;;  %v6593_v34 = vpop.f32.mrb[22].mxu1  ;;  %5607 = vrot.lane.b32.xlu1 %v5606_v33, %s5834_s23 }
 0x4a4   :  { %v6596_v51 = vpop.f32.mrb[35].mxu0  ;;  %v6598_v35 = vpop.f32.mrb[23].mxu1 }
 0x4a5   :  { %v5661_v36 = vpack.i.bf16 %v6593_v34, %v6598_v35  ;;  %v5755_v35 = vld [vmem:[%s7058_s2 + $0xb0] sm:$0xff]  }
 0x4a6   :  { %4766 = vmatpush3.bf16.msra.mxu1 %v5755_v35 }
 0x4a7   :  { %v5067_v38 = vpop.f32.mrb[36].mxu0  ;;  %v5123_v39 = vpop.f32.mrb[24].mxu1 }
 0x4a8   :  { %v1696_v41 = vpop.f32.mrb[37].mxu0  ;;  %v2036_v42 = vpop.f32.mrb[25].mxu1 }
 0x4a9   :  { %v5616_v2 = vpack.i.bf16 %v5067_v38, %v1696_v41  ;;  %v5611_v25 = vpack.i.bf16 %v5123_v39, %v2036_v42  ;;  %v5756_v42 = vld [vmem:[%s7058_s2 + $0xf8] sm:$0xff]  }
 0x4aa   :  { %4767 = vmatprep.subr.bf16.mxu1 %v5756_v42  ;;  %v5761_v42 = vld [vmem:[%s7058_s2 + $0x108] sm:$0xff]  }
 0x4ab   :  { %5612 = vrot.lane.b32.xlu0 %v5611_v25, %s5835_s14  ;;  %5617 = vrot.lane.b32.xlu1 %v5616_v2, %s5835_s14  ;;  %v5070_v28 = vpop.f32.mrb[38].mxu0  ;;  %v5126_v29 = vpop.f32.mrb[26].mxu1  ;;  %v5757_v25 = vld [vmem:[%s7058_s2 + $0xb8] sm:$0xff]  }
 0x4ac   :  { %v1706_v30 = vpop.f32.mrb[39].mxu0  ;;  %v2046_v31 = vpop.f32.mrb[27].mxu1  ;;  %4768 = vmatpush3.bf16.msra.mxu1 %v5757_v25 }
 0x4ad   :  { %v5641_v33 = vpack.i.bf16 %v5070_v28, %v1706_v30  ;;  %v5636_v34 = vpack.i.bf16 %v5126_v29, %v2046_v31  ;;  %4769 = vmatprep.subr.bf16.mxu1 %v5758_v26 }
 0x4af   :  { %v5081_v37 = vpop.f32.mrb[40].mxu0  ;;  %v5151_v38 = vpop.f32.mrb[28].mxu1 }
 0x4b0   :  { %v1781_v39 = vpop.f32.mrb[41].mxu0  ;;  %v2206_v41 = vpop.f32.mrb[29].mxu1 }
 0x4b1   :  { %v5621_v1 = vpack.i.bf16 %v5081_v37, %v1781_v39  ;;  %v5626_v2 = vpack.i.bf16 %v5151_v38, %v2206_v41  ;;  %v5759_v37 = vld [vmem:[%s7058_s2 + $0xc0] sm:$0xff]   ;;  %v5760_v38 = vld [vmem:[%s7058_s2 + $0x110] sm:$0xff]  }
 0x4b2   :  { %4770 = vmatpush3.bf16.msra.mxu1 %v5759_v37  ;;  %5169 = vmatprep.subr.bf16.mxu0 %v5760_v38 }
 0x4b3   :  { %5622 = vrot.lane.b32.xlu1 %v5621_v1, %s5836_s20  ;;  %v5084_v28 = vpop.f32.mrb[42].mxu0  ;;  %5627 = vrot.lane.b32.xlu0 %v5626_v2, %s5834_s23  ;;  %v5154_v29 = vpop.f32.mrb[30].mxu1  ;;  %v5762_v1 = vld [vmem:[%s7058_s2 + $0xc8] sm:$0xff]  }
 0x4b4   :  { %v1791_v30 = vpop.f32.mrb[43].mxu0  ;;  %v2216_v31 = vpop.f32.mrb[31].mxu1  ;;  %5170 = vmatpush3.bf16.msra.mxu0 %v5760_v38  ;;  %4771 = vmatprep.subr.bf16.mxu1 %v5761_v42 }
 0x4b5   :  { %v5646_v32 = vpack.i.bf16 %v5084_v28, %v1791_v30  ;;  %v5656_v35 = vpack.i.bf16 %v5154_v29, %v2216_v31 }
 0x4b6   :  { %4772 = vmatpush3.bf16.msra.mxu1 %v5762_v1 }
 0x4b7   :  { %5642 = vrot.lane.b32.xlu1 %v5641_v33, %s5835_s14  ;;  %v6637_v39 = vpop.f32.mrb[44].mxu0  ;;  %v5763_v33 = vld [vmem:[%s7058_s2 + $0x118] sm:$0xff]  }
 0x4b8   :  { %v6639_v41 = vpop.f32.mrb[45].mxu0  ;;  %5171 = vmatprep.subr.bf16.mxu0 %v5763_v33 }
 0x4b9   :  { %5172 = vmatpush3.bf16.msra.mxu0 %v5763_v33 }
 0x4bb   :  { %5647 = vrot.lane.b32.xlu1 %v5646_v32, %s5836_s20  ;;  %v6651_v2 = vpop.f32.mrb[46].mxu0 }
 0x4bc   :  { %v6653_v25 = vpop.f32.mrb[47].mxu0 }
 0x4bf   :  { %5662 = vrot.lane.b32.xlu1 %v5661_v36, %s5834_s23  ;;  %v5137_v26 = vpop.f32.mrb[48].mxu0 }
 0x4c0   :  { %v2121_v28 = vpop.f32.mrb[49].mxu0 }
 0x4c1   :  { %v5631_v29 = vpack.i.bf16 %v5137_v26, %v2121_v28 }
 0x4c3   :  { %5632 = vrot.lane.b32.xlu0 %v5631_v29, %s5836_s20  ;;  %v5140_v30 = vpop.f32.mrb[50].mxu0 }
 0x4c4   :  { %v2131_v31 = vpop.f32.mrb[51].mxu0 }
 0x4c5   :  { %v5651_v37 = vpack.i.bf16 %v5140_v30, %v2131_v31 }
 0x4c7   :  { %5637 = vrot.lane.b32.xlu0 %v5636_v34, %s5835_s14  ;;  %v5165_v32 = vpop.f32.mrb[52].mxu0 }
 0x4c8   :  { %v2291_v38 = vpop.f32.mrb[53].mxu0 }
 0x4c9   :  { %v2432_v42 = vpack.c.bf16 %v5165_v32, %v2291_v38 }
 0x4cb   :  { %5652 = vrot.lane.b32.xlu0 %v5651_v37, %s5836_s20  ;;  %v5168_v1 = vpop.f32.mrb[54].mxu0  ;;  %5173 = vmatprep.mubr.msk.bf16.mxu0 %vm42_vm0, %v2432_v42 }
 0x4cc   :  { %v2301_v33 = vpop.f32.mrb[55].mxu0 }
 0x4cd   :  { %v2435_v36 = vpack.c.bf16 %v5168_v1, %v2301_v33 }
 0x4cf   :  { %5657 = vrot.lane.b32.xlu0 %v5656_v35, %s5834_s23  ;;  %5174 = vmatmul.mubr.msk.bf16.vlgmr.msra.gmra.mrb[56].mxu0 %vm42_vm0, %v2435_v36 }
 0x515   :  { %v5608_v26 = vpop.permute.xlu1 %5607 }
 0x516   :  { %v5610_v0 = vunpack.i.h.bf16 %v5608_v26  ;;  %v5609_v32 = vunpack.i.l.bf16 %v5608_v26 }
 0x51d   :  { %v5618_v28 = vpop.permute.xlu1 %5617  ;;  %v5613_v43 = vpop.permute.xlu0 %5612 }
 0x51e   :  { %v5620_v29 = vunpack.i.h.bf16 %v5618_v28  ;;  %v5619_v30 = vunpack.i.l.bf16 %v5618_v28 }
 0x520   :  { %v2407_v37 = vsel %vm42_vm0, %v6578_v27, %v5620_v29  ;;  %v2406_v38 = vsel %vm42_vm0, %v6580_v8, %v5619_v30 }
 0x525   :  { %v5623_v31 = vpop.permute.xlu1 %5622  ;;  %v5628_v27 = vpop.permute.xlu0 %5627 }
 0x526   :  { %v5625_v34 = vunpack.i.h.bf16 %v5623_v31  ;;  %v5624_v3 = vunpack.i.l.bf16 %v5623_v31 }
 0x528   :  { %v2411_v42 = vsel %vm1056_vm1, %v2407_v37, %v5625_v34  ;;  %v2410_v35 = vsel %vm1056_vm1, %v2406_v38, %v5624_v3  ;;  %v5615_v34 = vunpack.i.h.bf16 %v5613_v43 }
 0x529   :  { %v2415_v1 = vsel %vm1061_vm2, %v2411_v42, %v5610_v0  ;;  %v2414_v33 = vsel %vm1061_vm2, %v2410_v35, %v5609_v32  ;;  %v5643_v36 = vpop.permute.xlu1 %5642  ;;  %v5614_v32 = vunpack.i.l.bf16 %v5613_v43  ;;  %v5629_v43 = vunpack.i.l.bf16 %v5628_v27 }
 0x52a   :  { %v2430_v28 = vpack.c.bf16 %v2415_v1, %v2414_v33  ;;  %v5645_v52 = vunpack.i.h.bf16 %v5643_v36  ;;  %v5644_v26 = vunpack.i.l.bf16 %v5643_v36 }
 0x52c   :  { %v2409_v8 = vsel %vm42_vm0, %v6591_v48, %v5645_v52  ;;  %v2408_v3 = vsel %vm42_vm0, %v6596_v51, %v5644_v26  ;;  %v2418_v52 = vsel %vm42_vm0, %v6639_v41, %v5614_v32  ;;  %v2419_v48 = vsel %vm42_vm0, %v6637_v39, %v5615_v34 }
 0x52d   :  { %v5648_v31 = vpop.permute.xlu1 %5647  ;;  %v5630_v51 = vunpack.i.h.bf16 %v5628_v27 }
 0x52e   :  { %v5650_v24 = vunpack.i.h.bf16 %v5648_v31  ;;  %v5649_v58 = vunpack.i.l.bf16 %v5648_v31 }
 0x530   :  { %v2413_v37 = vsel %vm1056_vm1, %v2409_v8, %v5650_v24  ;;  %v2412_v38 = vsel %vm1056_vm1, %v2408_v3, %v5649_v58 }
 0x531   :  { %v5663_v29 = vpop.permute.xlu1 %5662 }
 0x532   :  { %v5665_v30 = vunpack.i.h.bf16 %v5663_v29  ;;  %v5664_v0 = vunpack.i.l.bf16 %v5663_v29 }
 0x534   :  { %v2416_v42 = vsel %vm1061_vm2, %v2412_v38, %v5664_v0  ;;  %v2417_v35 = vsel %vm1061_vm2, %v2413_v37, %v5665_v30 }
 0x535   :  { %v5633_v1 = vpop.permute.xlu0 %5632  ;;  %v2433_v33 = vpack.c.bf16 %v2417_v35, %v2416_v42 }
 0x536   :  { %v5635_v36 = vunpack.i.h.bf16 %v5633_v1  ;;  %v5634_v31 = vunpack.i.l.bf16 %v5633_v1 }
 0x538   :  { %v2423_v24 = vsel %vm1056_vm1, %v2419_v48, %v5635_v36  ;;  %v2422_v58 = vsel %vm1056_vm1, %v2418_v52, %v5634_v31 }
 0x539   :  { %v5638_v26 = vpop.permute.xlu0 %5637  ;;  %v2426_v29 = vsel %vm1061_vm2, %v2422_v58, %v5629_v43  ;;  %v2427_v8 = vsel %vm1061_vm2, %v2423_v24, %v5630_v51  ;;  %v5764_v43 = vld [vmem:[%s7059_s5 + $0x10] sm:$0xff]  }
 0x53a   :  { %v2431_v3 = vpack.c.bf16 %v2427_v8, %v2426_v29  ;;  %v5640_v0 = vunpack.i.h.bf16 %v5638_v26  ;;  %v5639_v41 = vunpack.i.l.bf16 %v5638_v26  ;;  %5177 = vmatprep.subr.bf16.mxu0 %v5764_v43 }
 0x53b   :  { %5178 = vmatpush3.bf16.msra.mxu0 %v5764_v43 }
 0x53c   :  { %2619 = vmatprep.mubr.bf16.mxu1 %v2431_v3  ;;  %v2421_v27 = vsel %vm42_vm0, %v6651_v2, %v5640_v0  ;;  %v2420_v34 = vsel %vm42_vm0, %v6653_v25, %v5639_v41  ;;  %v5832_v2 = vld [vmem:[%s7057_s1 + $0x60] sm:$0xff] }
 0x53d   :  { %2620 = vmatmul.mubr.bf16.vlgmr.msra.gmra.mrb[32].mxu1 %v2430_v28  ;;  %v5653_v30 = vpop.permute.xlu0 %5652 }
 0x53e   :  { %v5655_v32 = vunpack.i.h.bf16 %v5653_v30  ;;  %v5654_v37 = vunpack.i.l.bf16 %v5653_v30 }
 0x540   :  { %v2425_v35 = vsel %vm1056_vm1, %v2421_v27, %v5655_v32  ;;  %v2424_v1 = vsel %vm1056_vm1, %v2420_v34, %v5654_v37 }
 0x541   :  { %v5658_v39 = vpop.permute.xlu0 %5657 }
 0x542   :  { %v5660_v38 = vunpack.i.h.bf16 %v5658_v39  ;;  %v5659_v42 = vunpack.i.l.bf16 %v5658_v39 }
 0x544   :  { %v2428_v28 = vsel %vm1061_vm2, %v2424_v1, %v5659_v42  ;;  %v2429_v36 = vsel %vm1061_vm2, %v2425_v35, %v5660_v38 }
 0x545   :  { %v2434_v31 = vpack.c.bf16 %v2429_v36, %v2428_v28 }
 0x547   :  { %2627 = vmatprep.mubr.bf16.mxu1 %v2434_v31 }
 0x548   :  { %2628 = vmatmul.mubr.bf16.gmra.mrb[36].mxu1 %v2433_v33  ;;  %v5765_v33 = vld [vmem:[%s7059_s5 + $0x18] sm:$0xff]  }
 0x549   :  { %5235 = vmatprep.mubr.msk.f32.mxu1 %vm42_vm0, %v5832_v2  ;;  %5179 = vmatprep.subr.bf16.mxu0 %v5765_v33 }
 0x54a   :  { %5180 = vmatpush3.bf16.msra.mxu0 %v5765_v33 }
 0x5a2   :  { %v5175_v25 = vpop.f32.mrb[56].mxu0 }
 0x5a3   :  { %v2670_v52 = vpop.f32.mrb[57].mxu0 }
 0x5a4   :  { %v5176_v48 = vpop.f32.mrb[58].mxu0 }
 0x5a5   :  { %v2673_v51 = vpop.f32.mrb[59].mxu0 }
 0x610   :  { %v4773_v24 = vpop.f32.mrb[32].mxu1 }
 0x611   :  { %v4774_v58 = vpop.f32.mrb[33].mxu1 }
 0x612   :  { %v4775_v26 = vadd.f32 %v4774_v58, %v4773_v24  ;;  %v4776_v29 = vpop.f32.mrb[34].mxu1 }
 0x613   :  { %v4777_v8 = vpop.f32.mrb[35].mxu1 }
 0x614   :  { %v4778_v3 = vadd.f32 %v4777_v8, %v4776_v29  ;;  %v2671_v30 = vadd.f32 %v4775_v26, %v2670_v52 }
 0x616   :  { %v2674_v0 = vadd.f32 %v4778_v3, %v2673_v51  ;;  %v2689_v41 = vsel %vm42_vm0, %v2671_v30, 0.0 }
 0x618   :  { %v2690_v32 = vsel %vm42_vm0, %v2674_v0, 0.0 }
 0x619   :  { %v2691_v37 = vadd.f32 %v2690_v32, %v2689_v41 }
 0x61b   :  { %v4779_v39 = vpop.f32.mrb[36].mxu1 }
 0x61c   :  { %v4780_v27 = vpop.f32.mrb[37].mxu1 }
 0x61d   :  { %v4781_v34 = vadd.f32 %v4780_v27, %v4779_v39  ;;  %v4782_v38 = vpop.f32.mrb[38].mxu1 }
 0x61e   :  { %v4783_v42 = vpop.f32.mrb[39].mxu1 }
 0x61f   :  { %v2679_v35 = vadd.f32 %v5175_v25, %v4781_v34  ;;  %v4784_v1 = vadd.f32 %v4783_v42, %v4782_v38 }
 0x621   :  { %v2692_v28 = vsel %vm42_vm0, %v2679_v35, 0.0  ;;  %v2682_v36 = vadd.f32 %v5176_v48, %v4784_v1 }
 0x622   :  { %v2693_v31 = vadd.f32 %v2692_v28, %v2691_v37 }
 0x623   :  { %v2694_v2 = vsel %vm42_vm0, %v2682_v36, 0.0 }
 0x624   :  { %v2695_v52 = vadd.f32 %v2694_v2, %v2693_v31 }
 0x626   :  { %v2696_v51 = vrot.slane %v2695_v52, 4 }
 0x628   :  { %v2697_v43 = vadd.f32 %v2696_v51, %v2695_v52 }
 0x62a   :  { %v2698_v33 = vrot.slane %v2697_v43, 2 }
 0x62c   :  { %v2699_v24 = vadd.f32 %v2698_v33, %v2697_v43 }
 0x62e   :  { %v2700_v58 = vrot.slane %v2699_v24, 1 }
 0x630   :  { %v2701_v26 = vadd.f32 %v2700_v58, %v2699_v24  ;;  %v4455_v24 = vld [vmem:[%s7060_s3 + $0x1] ss:$0 sm:$0xff] }
 0x632   :  { %v2702_v29 = vmul.f32 0.03125, %v2701_v26 }
 0x634   :  { %v2703_v8 = vsub.f32 %v2671_v30, %v2702_v29  ;;  %v2704_v3 = vsub.f32 %v2674_v0, %v2702_v29  ;;  %v2705_v41 = vsub.f32 %v2679_v35, %v2702_v29  ;;  %v2706_v32 = vsub.f32 %v2682_v36, %v2702_v29 }
 0x636   :  { %v2707_v25 = vmul.f32 %v2703_v8, %v2703_v8  ;;  %v2708_v39 = vmul.f32 %v2704_v3, %v2704_v3  ;;  %v2709_v27 = vmul.f32 %v2705_v41, %v2705_v41  ;;  %v2710_v34 = vmul.f32 %v2706_v32, %v2706_v32 }
 0x638   :  { %v2711_v48 = vsel %vm42_vm0, %v2707_v25, 0.0  ;;  %v2712_v37 = vsel %vm42_vm0, %v2708_v39, 0.0  ;;  %v2714_v42 = vsel %vm42_vm0, %v2709_v27, 0.0  ;;  %v2716_v28 = vsel %vm42_vm0, %v2710_v34, 0.0  ;;  %v4456_v39 = vld [vmem:[%s7061_s4 + $0x1] ss:$0 sm:$0xff] }
 0x639   :  { %v2713_v38 = vadd.f32 %v2712_v37, %v2711_v48 }
 0x63b   :  { %v2715_v1 = vadd.f32 %v2714_v42, %v2713_v38 }
 0x63d   :  { %v2717_v31 = vadd.f32 %v2716_v28, %v2715_v1 }
 0x63f   :  { %v2718_v2 = vrot.slane %v2717_v31, 4 }
 0x641   :  { %v2719_v30 = vadd.f32 %v2718_v2, %v2717_v31 }
 0x643   :  { %v2720_v0 = vrot.slane %v2719_v30, 2 }
 0x645   :  { %v2721_v35 = vadd.f32 %v2720_v0, %v2719_v30 }
 0x647   :  { %v2722_v36 = vrot.slane %v2721_v35, 1 }
 0x649   :  { %v2723_v52 = vadd.f32 %v2722_v36, %v2721_v35 }
 0x64b   :  { %v2724_v51 = vmul.f32 0.03125, %v2723_v52 }
 0x64d   :  { %v2725_v43 = vadd.f32 1e-05, %v2724_v51 }
 0x64f   :  { %5790 = vrsqrt.f32 %v2725_v43 }
 0x659   :  { %v5791_v33 = vpop.eup %5790 }
 0x65a   :  { %v2730_v58 = vmul.f32 %v5791_v33, %v2706_v32  ;;  %v2727_v26 = vmul.f32 %v5791_v33, %v2703_v8  ;;  %v2728_v29 = vmul.f32 %v5791_v33, %v2704_v3  ;;  %v2729_v25 = vmul.f32 %v5791_v33, %v2705_v41  ;;  %v5833_v3 = vld [vmem:[%s7057_s1] sm:$0xff] }
 0x65c   :  { %v2740_v27 = vmul.f32 %v4455_v24, %v2730_v58  ;;  %v2737_v34 = vmul.f32 %v4455_v24, %v2727_v26  ;;  %v2738_v48 = vmul.f32 %v4455_v24, %v2728_v29  ;;  %v2739_v37 = vmul.f32 %v4455_v24, %v2729_v25 }
 0x65e   :  { %v2750_v38 = vadd.f32 %v4456_v39, %v2740_v27  ;;  %v2747_v42 = vadd.f32 %v4456_v39, %v2737_v34  ;;  %v2748_v1 = vadd.f32 %v4456_v39, %v2738_v48  ;;  %v2749_v28 = vadd.f32 %v4456_v39, %v2739_v37 }
 0x660   :  { %v2754_v31 = vmax.f32 %v2750_v38, 0.0  ;;  %v2751_v2 = vmax.f32 %v2747_v42, 0.0  ;;  %v2752_v30 = vmax.f32 %v2748_v1, 0.0  ;;  %v2753_v0 = vmax.f32 %v2749_v28, 0.0 }
 0x662   :  { %v2755_v32 = vpack.c.bf16 %v2752_v30, %v2751_v2  ;;  %v2756_v8 = vpack.c.bf16 %v2754_v31, %v2753_v0 }
 0x664   :  { %5181 = vmatprep.mubr.msk.bf16.mxu0 %vm42_vm0, %v2755_v32 }
 0x665   :  { %5182 = vmatmul.mubr.msk.bf16.vlgmr.msra.gmra.mrb[60].mxu0 %vm42_vm0, %v2756_v8 }
 0x666   :  { %5193 = vmatprep.mubr.msk.f32.mxu0 %vm42_vm0, %v5833_v3 }
 0x738   :  { %v5183_v41 = vpop.f32.mrb[60].mxu0 }
 0x739   :  { %v2814_v35 = vpop.f32.mrb[61].mxu0  ;;  %v2836_v24 = vsel %vm42_vm0, %v5183_v41, 0.0 }
 0x73a   :  { %v5184_v36 = vpop.f32.mrb[62].mxu0  ;;  %v2833_v51 = vsel %vm42_vm0, %v2814_v35, 0.0 }
 0x73b   :  { %v2817_v52 = vpop.f32.mrb[63].mxu0  ;;  %v2838_v26 = vsel %vm42_vm0, %v5184_v36, 0.0 }
 0x73c   :  { %v2834_v43 = vsel %vm42_vm0, %v2817_v52, 0.0 }
 0x73d   :  { %v2835_v33 = vadd.f32 %v2834_v43, %v2833_v51 }
 0x73f   :  { %v2837_v58 = vadd.f32 %v2836_v24, %v2835_v33 }
 0x741   :  { %v2839_v29 = vadd.f32 %v2838_v26, %v2837_v58 }
 0x743   :  { %v2840_v25 = vrot.slane %v2839_v29, 4 }
 0x745   :  { %v2841_v39 = vadd.f32 %v2840_v25, %v2839_v29 }
 0x747   :  { %v2842_v27 = vrot.slane %v2841_v39, 2 }
 0x749   :  { %v2843_v34 = vadd.f32 %v2842_v27, %v2841_v39 }
 0x74b   :  { %v2844_v48 = vrot.slane %v2843_v34, 1 }
 0x74d   :  { %v2845_v37 = vadd.f32 %v2844_v48, %v2843_v34  ;;  %v4467_v34 = vld [vmem:[%s7062_s6 + $0x1] ss:$0 sm:$0xff] }
 0x74f   :  { %v2846_v38 = vmul.f32 0.03125, %v2845_v37 }
 0x751   :  { %v2847_v42 = vsub.f32 %v2814_v35, %v2846_v38  ;;  %v2848_v1 = vsub.f32 %v2817_v52, %v2846_v38  ;;  %v2849_v28 = vsub.f32 %v5183_v41, %v2846_v38  ;;  %v2850_v31 = vsub.f32 %v5184_v36, %v2846_v38 }
 0x753   :  { %v2851_v2 = vmul.f32 %v2847_v42, %v2847_v42  ;;  %v2852_v30 = vmul.f32 %v2848_v1, %v2848_v1  ;;  %v2853_v0 = vmul.f32 %v2849_v28, %v2849_v28  ;;  %v2854_v32 = vmul.f32 %v2850_v31, %v2850_v31 }
 0x755   :  { %v2855_v8 = vsel %vm42_vm0, %v2851_v2, 0.0  ;;  %v2856_v3 = vsel %vm42_vm0, %v2852_v30, 0.0  ;;  %v2858_v43 = vsel %vm42_vm0, %v2853_v0, 0.0  ;;  %v2860_v24 = vsel %vm42_vm0, %v2854_v32, 0.0  ;;  %v4468_v30 = vld [vmem:[%s7063_s7 + $0x1] ss:$0 sm:$0xff] }
 0x756   :  { %v2857_v51 = vadd.f32 %v2856_v3, %v2855_v8 }
 0x758   :  { %v2859_v33 = vadd.f32 %v2858_v43, %v2857_v51 }
 0x75a   :  { %v2861_v58 = vadd.f32 %v2860_v24, %v2859_v33 }
 0x75c   :  { %v2862_v26 = vrot.slane %v2861_v58, 4 }
 0x75e   :  { %v2863_v35 = vadd.f32 %v2862_v26, %v2861_v58  ;;  %v7073_v58 = vmax.f32 %v6268_v44, 0.0 }
 0x760   :  { %v2864_v52 = vrot.slane %v2863_v35, 2 }
 0x762   :  { %v2865_v41 = vadd.f32 %v2864_v52, %v2863_v35  ;;  %v7076_v35 = vmax.f32 %v6280_v50, 0.0  ;;  %v7077_v50 = vld [vmem:[#allocation2_spill] sm:$0xff] }
 0x764   :  { %v2866_v36 = vrot.slane %v2865_v41, 1 }
 0x766   :  { %v2867_v29 = vadd.f32 %v2866_v36, %v2865_v41 }
 0x768   :  { %v2868_v25 = vmul.f32 0.03125, %v2867_v29 }
 0x76a   :  { %v2869_v39 = vadd.f32 1e-05, %v2868_v25  ;;  %v5775_v25 = vld [vmem:[%s7058_s2 + $0x140] sm:$0xff]  }
 0x76c   :  { %5792 = vrsqrt.f32 %v2869_v39 }
 0x776   :  { %v5793_v27 = vpop.eup %5792 }
 0x777   :  { %v2871_v48 = vmul.f32 %v5793_v27, %v2847_v42  ;;  %v2872_v37 = vmul.f32 %v5793_v27, %v2848_v1  ;;  %v2873_v38 = vmul.f32 %v5793_v27, %v2849_v28  ;;  %v2874_v2 = vmul.f32 %v5793_v27, %v2850_v31 }
 0x778   :  { %v7074_v42 = vmax.f32 %v6272_v45, 0.0  ;;  %v7075_v28 = vmax.f32 %v6276_v49, 0.0 }
 0x779   :  { %v2881_v0 = vmul.f32 %v4467_v34, %v2871_v48  ;;  %v2882_v32 = vmul.f32 %v4467_v34, %v2872_v37  ;;  %v2883_v8 = vmul.f32 %v4467_v34, %v2873_v38  ;;  %v2884_v3 = vmul.f32 %v4467_v34, %v2874_v2  ;;  %v5776_v37 = vld [vmem:[%s7058_s2 + $0x188] sm:$0xff]  }
 0x77b   :  { %v2891_v51 = vadd.f32 %v4468_v30, %v2881_v0  ;;  %v2892_v43 = vadd.f32 %v4468_v30, %v2882_v32  ;;  %v2893_v33 = vadd.f32 %v4468_v30, %v2883_v8  ;;  %v2894_v24 = vadd.f32 %v4468_v30, %v2884_v3  ;;  %v5777_v30 = vld [vmem:[%s7058_s2 + $0x148] sm:$0xff]   ;;  %v5778_v0 = vld [vmem:[%s7058_s2 + $0x190] sm:$0xff]  }
 0x77d   :  { %v6740_v26 = vadd.f32 %v2891_v51, %v7073_v58  ;;  %v6744_v1 = vadd.f32 %v2892_v43, %v7074_v42  ;;  %v6748_v31 = vadd.f32 %v2893_v33, %v7075_v28  ;;  %v6752_v52 = vadd.f32 %v2894_v24, %v7076_v35  ;;  %v5779_v24 = vld [vmem:[%s7058_s2 + $0x150] sm:$0xff]   ;;  %v5780_v58 = vld [vmem:[%s7058_s2 + $0x1a0] sm:$0xff]   ;;  %v5781_v35 = vld [vmem:[%s7058_s2 + $0x198] sm:$0xff]  }
 0x77f   :  { %v2899_v41 = vmax.f32 %v6740_v26, 0.0  ;;  %v2900_v36 = vmax.f32 %v6744_v1, 0.0  ;;  %v2901_v44 = vmax.f32 %v6748_v31, 0.0  ;;  %v2902_v29 = vmax.f32 %v6752_v52, 0.0 }
 0x781   :  { %v6762_v45 = vpack.c.bf16 %v2900_v36, %v2899_v41  ;;  %v6768_v49 = vpack.c.bf16 %v2902_v29, %v2901_v44 }
 0x783   :  { %5472 = vmatprep.subr.bf16.mxu0 %v6762_v45  ;;  %5496 = vmatprep.subr.bf16.mxu1 %v6762_v45 }
 0x784   :  { %5474 = vmatpush3.bf16.msra.mxu0 %v6762_v45  ;;  %5498 = vmatpush3.bf16.msra.mxu1 %v6762_v45 }
 0x785   :  { %5476 = vmatprep.subr.bf16.mxu0 %v6768_v49  ;;  %5500 = vmatprep.subr.bf16.mxu1 %v6768_v49 }
 0x788   :  { %5478 = vmatpush3.bf16.msra.mxu0 %v6768_v49  ;;  %5502 = vmatpush3.bf16.msra.mxu1 %v6768_v49 }
 0x789   :  { %5480 = vmatprep.subr.bf16.mxu0 %v6762_v45  ;;  %5512 = vmatprep.subr.bf16.mxu1 %v6762_v45 }
 0x78b   :  { %5194 = vmatmul.mubr.msk.f32.vlgmr.msra.gmra.mrb[64].mxu0 %vm42_vm0, %v6311_v4  ;;  %5236 = vmatmul.mubr.msk.f32.vlgmr.msra.gmra.mrb[40].mxu1 %vm42_vm0, %v6318_v5  ;;  %v7078_v4 = vld [vmem:[#allocation3_spill] sm:$0xff]  ;;  %v5766_v5 = vld [vmem:[%s7058_s2 + $0x160] sm:$0xff]  }
 0x78c   :  { %5482 = vmatpush3.bf16.msra.mxu0 %v6762_v45  ;;  %5514 = vmatpush3.bf16.msra.mxu1 %v6762_v45 }
 0x78d   :  { %5484 = vmatprep.subr.bf16.mxu0 %v6768_v49  ;;  %5516 = vmatprep.subr.bf16.mxu1 %v6768_v49 }
 0x78e   :  { %5196 = vmatprep.mubr.msk.f32.mxu0 %vm42_vm0, %v6329_v6  ;;  %5238 = vmatprep.mubr.msk.f32.mxu1 %vm42_vm0, %v6336_v9  ;;  %v5767_v6 = vld [vmem:[%s7058_s2 + $0x120] sm:$0xff]  }
 0x78f   :  { %5197 = vmatmul.mubr.msk.f32.gmra.mrb[66].mxu0 %vm42_vm0, %v6343_v40  ;;  %5239 = vmatmul.mubr.msk.f32.gmra.mrb[42].mxu1 %vm42_vm0, %v6350_v53 }
 0x790   :  { %5486 = vmatpush3.bf16.msra.mxu0 %v6768_v49  ;;  %5518 = vmatpush3.bf16.msra.mxu1 %v6768_v49 }
 0x791   :  { %5488 = vmatprep.subr.bf16.mxu0 %v6762_v45  ;;  %5528 = vmatprep.subr.bf16.mxu1 %v6762_v45 }
 0x792   :  { %5207 = vmatprep.mubr.msk.f32.mxu0 %vm42_vm0, %v6361_v54  ;;  %5263 = vmatprep.mubr.msk.f32.mxu1 %vm42_vm0, %v6368_v57  ;;  %v5768_v57 = vld [vmem:[%s7058_s2 + $0x168] sm:$0xff]  }
 0x793   :  { %5208 = vmatmul.mubr.msk.f32.vlgmr.msra.gmra.mrb[68].mxu0 %vm42_vm0, %v6375_v60  ;;  %5264 = vmatmul.mubr.msk.f32.vlgmr.msra.gmra.mrb[44].mxu1 %vm42_vm0, %v6382_v62  ;;  %v5769_v60 = vld [vmem:[%s7058_s2 + $0x128] sm:$0xff]   ;;  %v5770_v62 = vld [vmem:[%s7058_s2 + $0x170] sm:$0xff]  }
 0x794   :  { %5490 = vmatpush3.bf16.msra.mxu0 %v6762_v45  ;;  %5530 = vmatpush3.bf16.msra.mxu1 %v6762_v45 }
 0x795   :  { %5492 = vmatprep.subr.bf16.mxu0 %v6768_v49  ;;  %5532 = vmatprep.subr.bf16.mxu1 %v6768_v49 }
 0x796   :  { %5210 = vmatprep.mubr.msk.f32.mxu0 %vm42_vm0, %v6393_v63  ;;  %5266 = vmatprep.mubr.msk.f32.mxu1 %vm42_vm0, %v6400_v10 }
 0x797   :  { %5211 = vmatmul.mubr.msk.f32.gmra.mrb[70].mxu0 %vm42_vm0, %v6407_v11  ;;  %5267 = vmatmul.mubr.msk.f32.gmra.mrb[46].mxu1 %vm42_vm0, %v6414_v7 }
 0x798   :  { %5494 = vmatpush3.bf16.msra.mxu0 %v6768_v49  ;;  %5534 = vmatpush3.bf16.msra.mxu1 %v6768_v49 }
 0x799   :  { %5504 = vmatprep.subr.bf16.mxu0 %v6762_v45  ;;  %5221 = vmatprep.mubr.msk.f32.mxu0 %vm42_vm0, %v6424_v12 }
 0x79a   :  { %5291 = vmatprep.mubr.msk.f32.mxu1 %vm42_vm0, %v6431_v13  ;;  %4865 = vmatprep.subr.bf16.mxu1 %v5766_v5 }
 0x79b   :  { %5222 = vmatmul.mubr.msk.f32.vlgmr.msra.gmra.mrb[72].mxu0 %vm42_vm0, %v6438_v14  ;;  %5292 = vmatmul.mubr.msk.f32.vlgmr.msra.gmra.mrb[48].mxu1 %vm42_vm0, %v6445_v47  ;;  %v5771_v14 = vld [vmem:[%s7058_s2 + $0x130] sm:$0xff]  }
 0x79c   :  { %5506 = vmatpush3.bf16.msra.mxu0 %v6762_v45  ;;  %5224 = vmatprep.mubr.msk.f32.mxu0 %vm42_vm0, %v6453_v15 }
 0x79d   :  { %5508 = vmatprep.subr.bf16.mxu0 %v6768_v49  ;;  %5294 = vmatprep.mubr.msk.f32.mxu1 %vm42_vm0, %v6461_v46 }
 0x79e   :  { %4866 = vmatpush3.bf16.msra.mxu1 %v5767_v6 }
 0x79f   :  { %5225 = vmatmul.mubr.msk.f32.gmra.mrb[74].mxu0 %vm42_vm0, %v6468_v16  ;;  %5295 = vmatmul.mubr.msk.f32.gmra.mrb[50].mxu1 %vm42_vm0, %v6475_v17  ;;  %v5772_v17 = vld [vmem:[%s7058_s2 + $0x178] sm:$0xff]  }
 0x7a0   :  { %5510 = vmatpush3.bf16.msra.mxu0 %v6768_v49  ;;  %5249 = vmatprep.mubr.msk.f32.mxu0 %vm42_vm0, %v6483_v18 }
 0x7a1   :  { %5520 = vmatprep.subr.bf16.mxu0 %v6762_v45  ;;  %4867 = vmatprep.subr.bf16.mxu1 %v5768_v57 }
 0x7a2   :  { %4868 = vmatpush3.bf16.msra.mxu1 %v5769_v60 }
 0x7a3   :  { %5250 = vmatmul.mubr.msk.f32.vlgmr.msra.gmra.mrb[76].mxu0 %vm42_vm0, %v6491_v19  ;;  %4869 = vmatprep.subr.bf16.mxu1 %v5770_v62 }
 0x7a4   :  { %5522 = vmatpush3.bf16.msra.mxu0 %v6762_v45  ;;  %5252 = vmatprep.mubr.msk.f32.mxu0 %vm42_vm0, %v6499_v20  ;;  %v5773_v20 = vld [vmem:[%s7058_s2 + $0x138] sm:$0xff]  }
 0x7a5   :  { %5524 = vmatprep.subr.bf16.mxu0 %v6768_v49 }
 0x7a6   :  { %4870 = vmatpush3.bf16.msra.mxu1 %v5771_v14 }
 0x7a7   :  { %5253 = vmatmul.mubr.msk.f32.gmra.mrb[78].mxu0 %vm42_vm0, %v6507_v21  ;;  %4871 = vmatprep.subr.bf16.mxu1 %v5772_v17 }
 0x7a8   :  { %5526 = vmatpush3.bf16.msra.mxu0 %v6768_v49  ;;  %5277 = vmatprep.mubr.msk.f32.mxu0 %vm42_vm0, %v6515_v22 }
 0x7a9   :  { %5536 = vmatprep.subr.bf16.mxu0 %v6762_v45 }
 0x7aa   :  { %4872 = vmatpush3.bf16.msra.mxu1 %v5773_v20 }
 0x7ab   :  { %5278 = vmatmul.mubr.msk.f32.vlgmr.msra.gmra.mrb[80].mxu0 %vm42_vm0, %v6523_v23 }
 0x7ac   :  { %5538 = vmatpush3.bf16.msra.mxu0 %v6762_v45  ;;  %5280 = vmatprep.mubr.msk.f32.mxu0 %vm42_vm0, %v6531_v56  ;;  %v5782_v45 = vld [vmem:[%s7058_s2 + $0x158] sm:$0xff]  }
 0x7ad   :  { %5540 = vmatprep.subr.bf16.mxu0 %v6768_v49 }
 0x7af   :  { %5281 = vmatmul.mubr.msk.f32.gmra.mrb[82].mxu0 %vm42_vm0, %v6539_v55  ;;  %v5774_v55 = vld [vmem:[%s7058_s2 + $0x180] sm:$0xff]  }
 0x7b0   :  { %5542 = vmatpush3.bf16.msra.mxu0 %v6768_v49  ;;  %5305 = vmatprep.mubr.msk.f32.mxu0 %vm42_vm0, %v6547_v59  ;;  %v5783_v49 = vld [vmem:[%s7058_s2 + $0x1a8] sm:$0xff]  }
 0x7b1   :  { %4873 = vmatprep.subr.bf16.mxu1 %v5774_v55  ;;  %5311 = vmatprep.subr.bf16.mxu0 %v5780_v58 }
 0x7b2   :  { %4874 = vmatpush3.bf16.msra.mxu1 %v5775_v25 }
 0x7b3   :  { %5306 = vmatmul.mubr.msk.f32.vlgmr.msra.gmra.mrb[84].mxu0 %vm42_vm0, %v6554_v61  ;;  %4875 = vmatprep.subr.bf16.mxu1 %v5776_v37 }
 0x7b4   :  { %5308 = vmatprep.mubr.msk.f32.mxu0 %vm42_vm0, %v7077_v50  ;;  %5312 = vmatpush3.bf16.msra.mxu0 %v5780_v58 }
 0x7b5   :  { %5313 = vmatprep.subr.bf16.mxu0 %v5783_v49 }
 0x7b6   :  { %4876 = vmatpush3.bf16.msra.mxu1 %v5777_v30 }
 0x7b7   :  { %5309 = vmatmul.mubr.msk.f32.gmra.mrb[86].mxu0 %vm42_vm0, %v7078_v4  ;;  %4877 = vmatprep.subr.bf16.mxu1 %v5778_v0 }
 0x7b8   :  { %5314 = vmatpush3.bf16.msra.mxu0 %v5783_v49 }
 0x7ba   :  { %4878 = vmatpush3.bf16.msra.mxu1 %v5779_v24 }
 0x7bb   :  { %4879 = vmatprep.subr.bf16.mxu1 %v5781_v35 }
 0x7be   :  { %4880 = vmatpush3.bf16.msra.mxu1 %v5782_v45 }
 0x85e   :  { %v6880_v9 = vpop.f32.mrb[64].mxu0  ;;  %v5237_v40 = vpop.f32.mrb[40].mxu1 }
 0x85f   :  { %v6882_v53 = vpop.f32.mrb[65].mxu0  ;;  %v3224_v54 = vpop.f32.mrb[41].mxu1 }
 0x860   :  { %v5666_v63 = vpack.i.bf16 %v5237_v40, %v3224_v54 }
 0x862   :  { %v6893_v10 = vpop.f32.mrb[66].mxu0  ;;  %v6895_v11 = vpop.f32.mrb[42].mxu1  ;;  %5667 = vrot.lane.b32.xlu1 %v5666_v63, %s5834_s23 }
 0x863   :  { %v6898_v7 = vpop.f32.mrb[67].mxu0  ;;  %v6900_v12 = vpop.f32.mrb[43].mxu1 }
 0x864   :  { %v5721_v13 = vpack.i.bf16 %v6895_v11, %v6900_v12 }
 0x866   :  { %v5209_v47 = vpop.f32.mrb[68].mxu0  ;;  %v5265_v15 = vpop.f32.mrb[44].mxu1 }
 0x867   :  { %v3054_v46 = vpop.f32.mrb[69].mxu0  ;;  %v3394_v16 = vpop.f32.mrb[45].mxu1 }
 0x868   :  { %v5676_v18 = vpack.i.bf16 %v5209_v47, %v3054_v46  ;;  %v5671_v19 = vpack.i.bf16 %v5265_v15, %v3394_v16 }
 0x86a   :  { %5672 = vrot.lane.b32.xlu0 %v5671_v19, %s5835_s14  ;;  %5677 = vrot.lane.b32.xlu1 %v5676_v18, %s5835_s14  ;;  %v5212_v21 = vpop.f32.mrb[70].mxu0  ;;  %v5268_v22 = vpop.f32.mrb[46].mxu1 }
 0x86b   :  { %v3064_v23 = vpop.f32.mrb[71].mxu0  ;;  %v3404_v56 = vpop.f32.mrb[47].mxu1 }
 0x86c   :  { %v5701_v59 = vpack.i.bf16 %v5212_v21, %v3064_v23  ;;  %v5696_v61 = vpack.i.bf16 %v5268_v22, %v3404_v56 }
 0x86e   :  { %v5223_v39 = vpop.f32.mrb[72].mxu0  ;;  %v5293_v27 = vpop.f32.mrb[48].mxu1 }
 0x86f   :  { %v3139_v34 = vpop.f32.mrb[73].mxu0  ;;  %v3564_v48 = vpop.f32.mrb[49].mxu1 }
 0x870   :  { %v5681_v38 = vpack.i.bf16 %v5223_v39, %v3139_v34  ;;  %v5686_v2 = vpack.i.bf16 %v5293_v27, %v3564_v48 }
 0x872   :  { %5682 = vrot.lane.b32.xlu1 %v5681_v38, %s5836_s20  ;;  %v5226_v32 = vpop.f32.mrb[74].mxu0  ;;  %5687 = vrot.lane.b32.xlu0 %v5686_v2, %s5834_s23  ;;  %v5296_v8 = vpop.f32.mrb[50].mxu1 }
 0x873   :  { %v3149_v3 = vpop.f32.mrb[75].mxu0  ;;  %v3574_v51 = vpop.f32.mrb[51].mxu1 }
 0x874   :  { %v5706_v43 = vpack.i.bf16 %v5226_v32, %v3149_v3  ;;  %v5716_v33 = vpack.i.bf16 %v5296_v8, %v3574_v51 }
 0x876   :  { %5702 = vrot.lane.b32.xlu1 %v5701_v59, %s5835_s14  ;;  %v6939_v42 = vpop.f32.mrb[76].mxu0 }
 0x877   :  { %v6941_v28 = vpop.f32.mrb[77].mxu0 }
 0x87a   :  { %5707 = vrot.lane.b32.xlu1 %v5706_v43, %s5836_s20  ;;  %v6953_v50 = vpop.f32.mrb[78].mxu0 }
 0x87b   :  { %v6955_v4 = vpop.f32.mrb[79].mxu0 }
 0x87e   :  { %5722 = vrot.lane.b32.xlu1 %v5721_v13, %s5834_s23  ;;  %v5279_v5 = vpop.f32.mrb[80].mxu0 }
 0x87f   :  { %v3479_v6 = vpop.f32.mrb[81].mxu0 }
 0x880   :  { %v5691_v40 = vpack.i.bf16 %v5279_v5, %v3479_v6 }
 0x882   :  { %5692 = vrot.lane.b32.xlu0 %v5691_v40, %s5836_s20  ;;  %v5282_v54 = vpop.f32.mrb[82].mxu0 }
 0x883   :  { %v3489_v57 = vpop.f32.mrb[83].mxu0 }
 0x884   :  { %v5711_v60 = vpack.i.bf16 %v5282_v54, %v3489_v57 }
 0x886   :  { %5697 = vrot.lane.b32.xlu0 %v5696_v61, %s5835_s14  ;;  %v5307_v62 = vpop.f32.mrb[84].mxu0 }
 0x887   :  { %v3649_v63 = vpop.f32.mrb[85].mxu0 }
 0x888   :  { %v3790_v11 = vpack.c.bf16 %v5307_v62, %v3649_v63 }
 0x88a   :  { %5712 = vrot.lane.b32.xlu0 %v5711_v60, %s5836_s20  ;;  %v5310_v12 = vpop.f32.mrb[86].mxu0  ;;  %5315 = vmatprep.mubr.msk.bf16.mxu0 %vm42_vm0, %v3790_v11 }
 0x88b   :  { %v3659_v14 = vpop.f32.mrb[87].mxu0 }
 0x88c   :  { %v3793_v13 = vpack.c.bf16 %v5310_v12, %v3659_v14 }
 0x88e   :  { %5717 = vrot.lane.b32.xlu0 %v5716_v33, %s5834_s23  ;;  %5316 = vmatmul.mubr.msk.bf16.vlgmr.msra.gmra.mrb[88].mxu0 %vm42_vm0, %v3793_v13 }
 0x8d4   :  { %v5668_v47 = vpop.permute.xlu1 %5667 }
 0x8d5   :  { %v5670_v20 = vunpack.i.h.bf16 %v5668_v47  ;;  %v5669_v21 = vunpack.i.l.bf16 %v5668_v47 }
 0x8dc   :  { %v5678_v15 = vpop.permute.xlu1 %5677  ;;  %v5673_v27 = vpop.permute.xlu0 %5672 }
 0x8dd   :  { %v5680_v46 = vunpack.i.h.bf16 %v5678_v15  ;;  %v5679_v16 = vunpack.i.l.bf16 %v5678_v15  ;;  %v5675_v3 = vunpack.i.h.bf16 %v5673_v27  ;;  %v5674_v51 = vunpack.i.l.bf16 %v5673_v27 }
 0x8df   :  { %v3765_v22 = vsel %vm42_vm0, %v6880_v9, %v5680_v46  ;;  %v3764_v23 = vsel %vm42_vm0, %v6882_v53, %v5679_v16 }
 0x8e4   :  { %v5683_v17 = vpop.permute.xlu1 %5682  ;;  %v5688_v9 = vpop.permute.xlu0 %5687 }
 0x8e5   :  { %v5685_v18 = vunpack.i.h.bf16 %v5683_v17  ;;  %v5684_v19 = vunpack.i.l.bf16 %v5683_v17  ;;  %v5690_v6 = vunpack.i.h.bf16 %v5688_v9  ;;  %v5689_v40 = vunpack.i.l.bf16 %v5688_v9 }
 0x8e7   :  { %v3769_v56 = vsel %vm1056_vm1, %v3765_v22, %v5685_v18  ;;  %v3768_v55 = vsel %vm1056_vm1, %v3764_v23, %v5684_v19 }
 0x8e8   :  { %v3773_v59 = vsel %vm1061_vm2, %v3769_v56, %v5670_v20  ;;  %v3772_v61 = vsel %vm1061_vm2, %v3768_v55, %v5669_v21  ;;  %v5703_v25 = vpop.permute.xlu1 %5702 }
 0x8e9   :  { %v3788_v39 = vpack.c.bf16 %v3773_v59, %v3772_v61  ;;  %v5705_v48 = vunpack.i.h.bf16 %v5703_v25  ;;  %v5704_v37 = vunpack.i.l.bf16 %v5703_v25  ;;  %v5785_v59 = vld [vmem:[%s7059_s5 + $0x28] sm:$0xff]  }
 0x8eb   :  { %v3767_v53 = vsel %vm42_vm0, %v6893_v10, %v5705_v48  ;;  %v3766_v0 = vsel %vm42_vm0, %v6898_v7, %v5704_v37  ;;  %v3776_v10 = vsel %vm42_vm0, %v6941_v28, %v5674_v51  ;;  %v3777_v7 = vsel %vm42_vm0, %v6939_v42, %v5675_v3 }
 0x8ec   :  { %v5708_v34 = vpop.permute.xlu1 %5707 }
 0x8ed   :  { %v5710_v38 = vunpack.i.h.bf16 %v5708_v34  ;;  %v5709_v2 = vunpack.i.l.bf16 %v5708_v34 }
 0x8ef   :  { %v3771_v43 = vsel %vm1056_vm1, %v3767_v53, %v5710_v38  ;;  %v3770_v33 = vsel %vm1056_vm1, %v3766_v0, %v5709_v2 }
 0x8f0   :  { %v5723_v30 = vpop.permute.xlu1 %5722 }
 0x8f1   :  { %v5725_v32 = vunpack.i.h.bf16 %v5723_v30  ;;  %v5724_v8 = vunpack.i.l.bf16 %v5723_v30 }
 0x8f3   :  { %v3774_v24 = vsel %vm1061_vm2, %v3770_v33, %v5724_v8  ;;  %v3775_v58 = vsel %vm1061_vm2, %v3771_v43, %v5725_v32 }
 0x8f4   :  { %v5693_v35 = vpop.permute.xlu0 %5692  ;;  %v3791_v45 = vpack.c.bf16 %v3775_v58, %v3774_v24 }
 0x8f5   :  { %v5695_v49 = vunpack.i.h.bf16 %v5693_v35  ;;  %v5694_v5 = vunpack.i.l.bf16 %v5693_v35 }
 0x8f7   :  { %v3781_v54 = vsel %vm1056_vm1, %v3777_v7, %v5695_v49  ;;  %v3780_v57 = vsel %vm1056_vm1, %v3776_v10, %v5694_v5 }
 0x8f8   :  { %v5698_v60 = vpop.permute.xlu0 %5697  ;;  %v3784_v62 = vsel %vm1061_vm2, %v3780_v57, %v5689_v40  ;;  %v3785_v63 = vsel %vm1061_vm2, %v3781_v54, %v5690_v6 }
 0x8f9   :  { %v3789_v11 = vpack.c.bf16 %v3785_v63, %v3784_v62  ;;  %v5700_v14 = vunpack.i.h.bf16 %v5698_v60  ;;  %v5699_v28 = vunpack.i.l.bf16 %v5698_v60 }
 0x8fb   :  { %3977 = vmatprep.mubr.bf16.mxu1 %v3789_v11  ;;  %v3779_v15 = vsel %vm42_vm0, %v6953_v50, %v5700_v14  ;;  %v3778_v46 = vsel %vm42_vm0, %v6955_v4, %v5699_v28  ;;  %v5784_v4 = vld [vmem:[%s7059_s5 + $0x20] sm:$0xff]  }
 0x8fc   :  { %3978 = vmatmul.mubr.bf16.vlgmr.msra.gmra.mrb[52].mxu1 %v3788_v39  ;;  %v5713_v12 = vpop.permute.xlu0 %5712  ;;  %5319 = vmatprep.subr.bf16.mxu0 %v5784_v4 }
 0x8fd   :  { %v5715_v13 = vunpack.i.h.bf16 %v5713_v12  ;;  %v5714_v47 = vunpack.i.l.bf16 %v5713_v12  ;;  %5320 = vmatpush3.bf16.msra.mxu0 %v5784_v4  ;;  %v4563_v4 = vld [vmem:[%s7060_s3 + $0x2] ss:$0 sm:$0xff] }
 0x8fe   :  { %5321 = vmatprep.subr.bf16.mxu0 %v5785_v59 }
 0x8ff   :  { %v3783_v18 = vsel %vm1056_vm1, %v3779_v15, %v5715_v13  ;;  %v3782_v19 = vsel %vm1056_vm1, %v3778_v46, %v5714_v47 }
 0x900   :  { %v5718_v42 = vpop.permute.xlu0 %5717 }
 0x901   :  { %v5720_v16 = vunpack.i.h.bf16 %v5718_v42  ;;  %v5719_v17 = vunpack.i.l.bf16 %v5718_v42  ;;  %5322 = vmatpush3.bf16.msra.mxu0 %v5785_v59 }
 0x903   :  { %v3786_v20 = vsel %vm1061_vm2, %v3782_v19, %v5719_v17  ;;  %v3787_v21 = vsel %vm1061_vm2, %v3783_v18, %v5720_v16 }
 0x904   :  { %v3792_v22 = vpack.c.bf16 %v3787_v21, %v3786_v20 }
 0x906   :  { %3985 = vmatprep.mubr.bf16.mxu1 %v3792_v22 }
 0x907   :  { %3986 = vmatmul.mubr.bf16.gmra.mrb[56].mxu1 %v3791_v45 }
 0x961   :  { %v5317_v23 = vpop.f32.mrb[88].mxu0 }
 0x962   :  { %v4028_v56 = vpop.f32.mrb[89].mxu0 }
 0x963   :  { %v5318_v55 = vpop.f32.mrb[90].mxu0 }
 0x964   :  { %v4031_v50 = vpop.f32.mrb[91].mxu0 }
 0x9cf   :  { %v4881_v61 = vpop.f32.mrb[52].mxu1 }
 0x9d0   :  { %v4882_v25 = vpop.f32.mrb[53].mxu1 }
 0x9d1   :  { %v4883_v39 = vadd.f32 %v4882_v25, %v4881_v61  ;;  %v4884_v27 = vpop.f32.mrb[54].mxu1 }
 0x9d2   :  { %v4885_v34 = vpop.f32.mrb[55].mxu1 }
 0x9d3   :  { %v4886_v48 = vadd.f32 %v4885_v34, %v4884_v27  ;;  %v4029_v37 = vadd.f32 %v4883_v39, %v4028_v56  ;;  %v4564_v27 = vld [vmem:[%s7061_s4 + $0x2] ss:$0 sm:$0xff] }
 0x9d5   :  { %v4032_v38 = vadd.f32 %v4886_v48, %v4031_v50  ;;  %v4047_v2 = vsel %vm42_vm0, %v4029_v37, 0.0 }
 0x9d7   :  { %v4048_v9 = vsel %vm42_vm0, %v4032_v38, 0.0 }
 0x9d8   :  { %v4049_v30 = vadd.f32 %v4048_v9, %v4047_v2 }
 0x9da   :  { %v4887_v53 = vpop.f32.mrb[56].mxu1 }
 0x9db   :  { %v4888_v0 = vpop.f32.mrb[57].mxu1 }
 0x9dc   :  { %v4889_v32 = vadd.f32 %v4888_v0, %v4887_v53  ;;  %v4890_v8 = vpop.f32.mrb[58].mxu1 }
 0x9dd   :  { %v4891_v3 = vpop.f32.mrb[59].mxu1 }
 0x9de   :  { %v4037_v51 = vadd.f32 %v5317_v23, %v4889_v32  ;;  %v4892_v43 = vadd.f32 %v4891_v3, %v4890_v8 }
 0x9e0   :  { %v4050_v33 = vsel %vm42_vm0, %v4037_v51, 0.0  ;;  %v4040_v24 = vadd.f32 %v5318_v55, %v4892_v43 }
 0x9e1   :  { %v4051_v58 = vadd.f32 %v4050_v33, %v4049_v30 }
 0x9e2   :  { %v4052_v35 = vsel %vm42_vm0, %v4040_v24, 0.0 }
 0x9e3   :  { %v4053_v45 = vadd.f32 %v4052_v35, %v4051_v58 }
 0x9e5   :  { %v4054_v49 = vrot.slane %v4053_v45, 4 }
 0x9e7   :  { %v4055_v5 = vadd.f32 %v4054_v49, %v4053_v45 }
 0x9e9   :  { %v4056_v10 = vrot.slane %v4055_v5, 2 }
 0x9eb   :  { %v4057_v7 = vadd.f32 %v4056_v10, %v4055_v5 }
 0x9ed   :  { %v4058_v6 = vrot.slane %v4057_v7, 1 }
 0x9ef   :  { %v4059_v40 = vadd.f32 %v4058_v6, %v4057_v7 }
 0x9f1   :  { %v4060_v54 = vmul.f32 0.03125, %v4059_v40 }
 0x9f3   :  { %v4061_v57 = vsub.f32 %v4029_v37, %v4060_v54  ;;  %v4062_v60 = vsub.f32 %v4032_v38, %v4060_v54  ;;  %v4063_v62 = vsub.f32 %v4037_v51, %v4060_v54  ;;  %v4064_v63 = vsub.f32 %v4040_v24, %v4060_v54 }
 0x9f5   :  { %v4065_v11 = vmul.f32 %v4061_v57, %v4061_v57  ;;  %v4066_v12 = vmul.f32 %v4062_v60, %v4062_v60  ;;  %v4067_v14 = vmul.f32 %v4063_v62, %v4063_v62  ;;  %v4068_v28 = vmul.f32 %v4064_v63, %v4064_v63 }
 0x9f7   :  { %v4069_v13 = vsel %vm42_vm0, %v4065_v11, 0.0  ;;  %v4070_v47 = vsel %vm42_vm0, %v4066_v12, 0.0  ;;  %v4072_v15 = vsel %vm42_vm0, %v4067_v14, 0.0  ;;  %v4074_v16 = vsel %vm42_vm0, %v4068_v28, 0.0 }
 0x9f8   :  { %v4071_v42 = vadd.f32 %v4070_v47, %v4069_v13 }
 0x9fa   :  { %v4073_v46 = vadd.f32 %v4072_v15, %v4071_v42 }
 0x9fc   :  { %v4075_v17 = vadd.f32 %v4074_v16, %v4073_v46 }
 0x9fe   :  { %v4076_v18 = vrot.slane %v4075_v17, 4 }
 0xa00   :  { %v4077_v19 = vadd.f32 %v4076_v18, %v4075_v17 }
 0xa02   :  { %v4078_v20 = vrot.slane %v4077_v19, 2 }
 0xa04   :  { %v4079_v21 = vadd.f32 %v4078_v20, %v4077_v19 }
 0xa06   :  { %v4080_v22 = vrot.slane %v4079_v21, 1 }
 0xa08   :  { %v4081_v23 = vadd.f32 %v4080_v22, %v4079_v21 }
 0xa0a   :  { %v4082_v56 = vmul.f32 0.03125, %v4081_v23 }
 0xa0c   :  { %v4083_v55 = vadd.f32 1e-05, %v4082_v56 }
 0xa0e   :  { %5794 = vrsqrt.f32 %v4083_v55 }
 0xa18   :  { %v5795_v50 = vpop.eup %5794 }
 0xa19   :  { %v4088_v59 = vmul.f32 %v5795_v50, %v4064_v63  ;;  %v4085_v61 = vmul.f32 %v5795_v50, %v4061_v57  ;;  %v4086_v25 = vmul.f32 %v5795_v50, %v4062_v60  ;;  %v4087_v39 = vmul.f32 %v5795_v50, %v4063_v62 }
 0xa1b   :  { %v4098_v34 = vmul.f32 %v4563_v4, %v4088_v59  ;;  %v4095_v48 = vmul.f32 %v4563_v4, %v4085_v61  ;;  %v4096_v37 = vmul.f32 %v4563_v4, %v4086_v25  ;;  %v4097_v38 = vmul.f32 %v4563_v4, %v4087_v39 }
 0xa1d   :  { %v4108_v2 = vadd.f32 %v4564_v27, %v4098_v34  ;;  %v4105_v9 = vadd.f32 %v4564_v27, %v4095_v48  ;;  %v4106_v30 = vadd.f32 %v4564_v27, %v4096_v37  ;;  %v4107_v53 = vadd.f32 %v4564_v27, %v4097_v38  ;;  %v4575_v34 = vld [vmem:[%s7062_s6 + $0x2] ss:$0 sm:$0xff] }
 0xa1f   :  { %v4112_v0 = vmax.f32 %v4108_v2, 0.0  ;;  %v4109_v32 = vmax.f32 %v4105_v9, 0.0  ;;  %v4110_v8 = vmax.f32 %v4106_v30, 0.0  ;;  %v4111_v3 = vmax.f32 %v4107_v53, 0.0  ;;  %v4576_v9 = vld [vmem:[%s7063_s7 + $0x2] ss:$0 sm:$0xff] }
 0xa21   :  { %v4113_v51 = vpack.c.bf16 %v4110_v8, %v4109_v32  ;;  %v4114_v43 = vpack.c.bf16 %v4112_v0, %v4111_v3 }
 0xa23   :  { %5323 = vmatprep.mubr.msk.bf16.mxu0 %vm42_vm0, %v4113_v51 }
 0xa24   :  { %5324 = vmatmul.mubr.msk.bf16.vlgmr.msra.gmra.mrb[92].mxu0 %vm42_vm0, %v4114_v43 }
 0xaf7   :  { %v5325_v33 = vpop.f32.mrb[92].mxu0 }
 0xaf8   :  { %v4172_v24 = vpop.f32.mrb[93].mxu0  ;;  %v4194_v10 = vsel %vm42_vm0, %v5325_v33, 0.0 }
 0xaf9   :  { %v5326_v58 = vpop.f32.mrb[94].mxu0  ;;  %v4191_v45 = vsel %vm42_vm0, %v4172_v24, 0.0 }
 0xafa   :  { %v4175_v35 = vpop.f32.mrb[95].mxu0  ;;  %v4196_v6 = vsel %vm42_vm0, %v5326_v58, 0.0 }
 0xafb   :  { %v4192_v49 = vsel %vm42_vm0, %v4175_v35, 0.0 }
 0xafc   :  { %v4193_v5 = vadd.f32 %v4192_v49, %v4191_v45 }
 0xafe   :  { %v4195_v7 = vadd.f32 %v4194_v10, %v4193_v5 }
 0xb00   :  { %v4197_v40 = vadd.f32 %v4196_v6, %v4195_v7 }
 0xb02   :  { %v4198_v54 = vrot.slane %v4197_v40, 4 }
 0xb04   :  { %v4199_v57 = vadd.f32 %v4198_v54, %v4197_v40 }
 0xb06   :  { %v4200_v60 = vrot.slane %v4199_v57, 2 }
 0xb08   :  { %v4201_v62 = vadd.f32 %v4200_v60, %v4199_v57 }
 0xb0a   :  { %v4202_v63 = vrot.slane %v4201_v62, 1 }
 0xb0c   :  { %v4203_v11 = vadd.f32 %v4202_v63, %v4201_v62 }
 0xb0e   :  { %v4204_v12 = vmul.f32 0.03125, %v4203_v11 }
 0xb10   :  { %v4205_v14 = vsub.f32 %v4172_v24, %v4204_v12  ;;  %v4206_v28 = vsub.f32 %v4175_v35, %v4204_v12  ;;  %v4207_v13 = vsub.f32 %v5325_v33, %v4204_v12  ;;  %v4208_v47 = vsub.f32 %v5326_v58, %v4204_v12 }
 0xb12   :  { %v4209_v42 = vmul.f32 %v4205_v14, %v4205_v14  ;;  %v4210_v15 = vmul.f32 %v4206_v28, %v4206_v28  ;;  %v4211_v46 = vmul.f32 %v4207_v13, %v4207_v13  ;;  %v4212_v16 = vmul.f32 %v4208_v47, %v4208_v47 }
 0xb14   :  { %v4213_v17 = vsel %vm42_vm0, %v4209_v42, 0.0  ;;  %v4214_v18 = vsel %vm42_vm0, %v4210_v15, 0.0  ;;  %v4216_v20 = vsel %vm42_vm0, %v4211_v46, 0.0  ;;  %v4218_v22 = vsel %vm42_vm0, %v4212_v16, 0.0 }
 0xb15   :  { %v4215_v19 = vadd.f32 %v4214_v18, %v4213_v17 }
 0xb17   :  { %v4217_v21 = vadd.f32 %v4216_v20, %v4215_v19 }
 0xb19   :  { %v4219_v23 = vadd.f32 %v4218_v22, %v4217_v21 }
 0xb1b   :  { %v4220_v56 = vrot.slane %v4219_v23, 4 }
 0xb1d   :  { %v4221_v55 = vadd.f32 %v4220_v56, %v4219_v23 }
 0xb1f   :  { %v4222_v50 = vrot.slane %v4221_v55, 2 }
 0xb21   :  { %v4223_v4 = vadd.f32 %v4222_v50, %v4221_v55 }
 0xb23   :  { %v4224_v59 = vrot.slane %v4223_v4, 1 }
 0xb25   :  { %v4225_v61 = vadd.f32 %v4224_v59, %v4223_v4 }
 0xb27   :  { %v4226_v25 = vmul.f32 0.03125, %v4225_v61 }
 0xb29   :  { %v4227_v39 = vadd.f32 1e-05, %v4226_v25 }
 0xb2b   :  { %5796 = vrsqrt.f32 %v4227_v39 }
 0xb35   :  { %v5797_v27 = vpop.eup %5796 }
 0xb36   :  { %v4229_v48 = vmul.f32 %v5797_v27, %v4205_v14  ;;  %v4230_v37 = vmul.f32 %v5797_v27, %v4206_v28  ;;  %v4231_v38 = vmul.f32 %v5797_v27, %v4207_v13  ;;  %v4232_v2 = vmul.f32 %v5797_v27, %v4208_v47 }
 0xb38   :  { %v4239_v30 = vmul.f32 %v4575_v34, %v4229_v48  ;;  %v4240_v53 = vmul.f32 %v4575_v34, %v4230_v37  ;;  %v4241_v0 = vmul.f32 %v4575_v34, %v4231_v38  ;;  %v4242_v32 = vmul.f32 %v4575_v34, %v4232_v2 }
 0xb3a   :  { %v4249_v8 = vadd.f32 %v4576_v9, %v4239_v30  ;;  %v4250_v3 = vadd.f32 %v4576_v9, %v4240_v53  ;;  %v4251_v51 = vadd.f32 %v4576_v9, %v4241_v0  ;;  %v4252_v43 = vadd.f32 %v4576_v9, %v4242_v32 }
 0xb3c   :  { %v4253_v33 = vadd.f32 %v4249_v8, %v2899_v41  ;;  %v4254_v24 = vadd.f32 %v4250_v3, %v2900_v36  ;;  %v4255_v58 = vadd.f32 %v4251_v51, %v2901_v44  ;;  %v4256_v35 = vadd.f32 %v4252_v43, %v2902_v29 }
 0xb3e   :  { %4257 = vst.msk [vmem:[%s7064_s8] sm:$0xff] %vm42_vm0, %v4253_v33  ;;  %4258 = vst.msk [vmem:[%s7064_s8 + $0x8] sm:$0xff] %vm42_vm0, %v4254_v24 }
 0xb3f   :  { %4259 = vst.msk [vmem:[%s7064_s8 + $0x10] sm:$0xff] %vm42_vm0, %v4255_v58  ;;  %4260 = vst.msk [vmem:[%s7064_s8 + $0x18] sm:$0xff] %vm42_vm0, %v4256_v35 }

// kernel: vqvae_forward.12
= control target key start
LH: loop header
LB: loop body
LE: loop exit
PB: predicated region body
PF: predicated region fallthrough
CT: control target
= control target key end

     0   :  { %vm210_vm0 = vcmask 261120   ;;  %s547_s17 = smov 64   ;;  %vm351_vm1 = vcmask 523264   ;;  %vm353_vm2 = vcmask 785408   ;;  %s691_s1 = inlined_call_operand.vmem [shape: bf16[288,128], index: 1, kind: input, shape index: {}]   ;;  %s692_s0 = inlined_call_operand.vmem [shape: bf16[32,288], index: 0, kind: input, shape index: {}]   ;;  %s693_s2 = inlined_call_operand.vmem [shape: f32[1,128], index: 2, kind: input, shape index: {}]   ;;  %s694_s3 = inlined_call_operand.vmem [shape: f32[1,128], index: 3, kind: input, shape index: {}]   ;;  %s695_s4 = inlined_call_operand.vmem [shape: f32[1,128], index: 4, kind: input, shape index: {}]   ;;  %s696_s5 = inlined_call_operand.vmem [shape: f32[32,128], index: 5, kind: output, shape index: {}]  }
   0x1   :  { %v517_v0 = vld [vmem:[%s691_s1 + $0x40] sm:$0xff]   ;;  %v519_v2 = vld [vmem:[%s691_s1 + $0x48] sm:$0xff]   ;;  %v521_v4 = vld [vmem:[%s691_s1 + $0x50] sm:$0xff]  }
   0x2   :  { %v518_v1 = vld [vmem:[%s691_s1] sm:$0xff]   ;;  %474 = vmatprep.subr.bf16.mxu0 %v517_v0  ;;  %v520_v3 = vld [vmem:[%s691_s1 + $0x8] sm:$0xff]   ;;  %v522_v5 = vld [vmem:[%s691_s1 + $0x10] sm:$0xff]  }
   0x3   :  { %475 = vmatpush3.bf16.msra.mxu0 %v518_v1  ;;  %v523_v6 = vld [vmem:[%s691_s1 + $0x58] sm:$0xff]   ;;  %v525_v8 = vld [vmem:[%s691_s1 + $0x60] sm:$0xff]   ;;  %v527_v11 = vld [vmem:[%s691_s1 + $0x68] sm:$0xff]   ;;  %v355_v1 = vlaneseq }
   0x4   :  { %476 = vmatprep.subr.bf16.mxu0 %v519_v2  ;;  %v524_v7 = vld [vmem:[%s691_s1 + $0x18] sm:$0xff]   ;;  %v526_v9 = vld [vmem:[%s691_s1 + $0x20] sm:$0xff]   ;;  %v528_v12 = vld [vmem:[%s691_s1 + $0x28] sm:$0xff]  }
   0x5   :  { %v532_v10 = vld [vmem:[%s691_s1 + $0x80] sm:$0xff]   ;;  %v529_v13 = vld [vmem:[%s691_s1 + $0x70] sm:$0xff]   ;;  %v537_v15 = vld [vmem:[%s691_s1 + $0x88] sm:$0xff]   ;;  %v356_v2 = vshrl.u32 %v355_v1, 7 }
   0x6   :  { %506 = vmatprep.subr.bf16.mxu1 %v532_v10  ;;  %v536_v14 = vld [vmem:[%s692_s0 + $0x4] ss:$12 sps:$4 sm:$0xff]   ;;  %v538_v16 = vld [vmem:[%s692_s0 + $0x8] ss:$12 sps:$4 sm:$0xff]   ;;  %v539_v17 = vld [vmem:[%s692_s0 + $0x20] ss:$12 sps:$4 sm:$0xff]  }
   0x7   :  { %477 = vmatpush3.bf16.msra.mxu0 %v520_v3  ;;  %507 = vmatpush3.bf16.msra.mxu1 %v532_v10  ;;  %v530_v18 = vld [vmem:[%s691_s1 + $0x30] sm:$0xff]   ;;  %v531_v19 = vld [vmem:[%s691_s1 + $0x78] sm:$0xff]   ;;  %v534_v21 = vld [vmem:[%s692_s0] ss:$12 sps:$4 sm:$0xff]  }
   0x8   :  { %478 = vmatprep.subr.bf16.mxu0 %v521_v4  ;;  %249 = vmatprep.mubr.bf16.mxu0 %v536_v14  ;;  %v533_v20 = vld [vmem:[%s691_s1 + $0x38] sm:$0xff]   ;;  %v445_v30 = vld [vmem:[%s693_s2] ss:$0 sm:$0xff]  ;;  %s546_s2 = smov 96  }
   0x9   :  { %508 = vmatprep.subr.bf16.mxu1 %v537_v15  ;;  %510 = vmatprep.mubr.msk.bf16.mxu1 %vm210_vm0, %v538_v16  ;;  %v540_v22 = vld [vmem:[%s692_s0 + $0x1c] ss:$12 sps:$4 sm:$0xff]   ;;  %v542_v23 = vld [vmem:[%s692_s0 + $0x18] ss:$12 sps:$4 sm:$0xff]   ;;  %s545_s0 = smov 32  }
   0xb   :  { %479 = vmatpush3.bf16.msra.mxu0 %v522_v5  ;;  %509 = vmatpush3.bf16.msra.mxu1 %v537_v15 }
   0xc   :  { %480 = vmatprep.subr.bf16.mxu0 %v523_v6  ;;  %v357_v6 = vsub.s32 0, %v356_v2 }
   0xe   :  { %511 = vmatmul.mubr.msk.bf16.vlgmr.msra.gmra.mrb[0].mxu1 %vm210_vm0, %v539_v17 }
   0xf   :  { %481 = vmatpush3.bf16.msra.mxu0 %v524_v7 }
  0x10   :  { %482 = vmatprep.subr.bf16.mxu0 %v525_v8 }
  0x13   :  { %483 = vmatpush3.bf16.msra.mxu0 %v526_v9 }
  0x14   :  { %484 = vmatprep.subr.bf16.mxu0 %v527_v11 }
  0x17   :  { %485 = vmatpush3.bf16.msra.mxu0 %v528_v12 }
  0x18   :  { %486 = vmatprep.subr.bf16.mxu0 %v529_v13 }
  0x1b   :  { %487 = vmatpush3.bf16.msra.mxu0 %v530_v18 }
  0x1c   :  { %488 = vmatprep.subr.bf16.mxu0 %v531_v19 }
  0x1f   :  { %489 = vmatpush3.bf16.msra.mxu0 %v533_v20 }
  0x22   :  { %250 = vmatmul.mubr.bf16.vlgmr.msra.gmra.mrb[0].mxu0 %v534_v21 }
  0x23   :  { %257 = vmatprep.mubr.bf16.mxu0 %v540_v22 }
  0x2a   :  { %258 = vmatmul.mubr.bf16.gmra.mrb[4].mxu0 %v542_v23 }
  0xe1   :  { %v512_v24 = vpop.f32.mrb[0].mxu1 }
  0xe2   :  { %v300_v25 = vpop.f32.mrb[1].mxu1 }
  0xe3   :  { %v513_v26 = vpop.f32.mrb[2].mxu1 }
  0xe4   :  { %v303_v27 = vpop.f32.mrb[3].mxu1 }
  0xf5   :  { %v490_v28 = vpop.f32.mrb[0].mxu0 }
  0xf6   :  { %v491_v29 = vpop.f32.mrb[1].mxu0 }
  0xf7   :  { %v492_v31 = vadd.f32 %v491_v29, %v490_v28  ;;  %v493_v32 = vpop.f32.mrb[2].mxu0 }
  0xf8   :  { %v494_v33 = vpop.f32.mrb[3].mxu0 }
  0xf9   :  { %v495_v34 = vadd.f32 %v494_v33, %v493_v32  ;;  %v252_v35 = vadd.f32 %v492_v31, %v445_v30 }
  0xfb   :  { %v301_v36 = vadd.f32 %v300_v25, %v252_v35  ;;  %v255_v37 = vadd.f32 %v495_v34, %v445_v30 }
  0xfd   :  { %v304_v38 = vadd.f32 %v303_v27, %v255_v37  ;;  %v496_v39 = vpop.f32.mrb[4].mxu0 }
  0xfe   :  { %v497_v40 = vpop.f32.mrb[5].mxu0 }
  0xff   :  { %v498_v41 = vadd.f32 %v497_v40, %v496_v39  ;;  %v499_v42 = vpop.f32.mrb[6].mxu0  ;;  %v317_v46 = vadd.f32 %v304_v38, %v301_v36 }
 0x100   :  { %v500_v43 = vpop.f32.mrb[7].mxu0 }
 0x101   :  { %v260_v44 = vadd.f32 %v498_v41, %v445_v30  ;;  %v501_v45 = vadd.f32 %v500_v43, %v499_v42 }
 0x103   :  { %v309_v47 = vadd.f32 %v512_v24, %v260_v44  ;;  %v263_v48 = vadd.f32 %v501_v45, %v445_v30  ;;  %v472_v44 = vld [vmem:[%s694_s3] ss:$0 sm:$0xff] }
 0x105   :  { %v318_v49 = vadd.f32 %v317_v46, %v309_v47  ;;  %v312_v50 = vadd.f32 %v513_v26, %v263_v48 }
 0x107   :  { %v319_v51 = vadd.f32 %v318_v49, %v312_v50  ;;  %v473_v49 = vld [vmem:[%s695_s4] ss:$0 sm:$0xff] }
 0x109   :  { %v320_v52 = vrot.slane %v319_v51, 4 }
 0x10b   :  { %v321_v53 = vadd.f32 %v320_v52, %v319_v51 }
 0x10d   :  { %v322_v54 = vrot.slane %v321_v53, 2 }
 0x10f   :  { %v323_v55 = vadd.f32 %v322_v54, %v321_v53 }
 0x111   :  { %v324_v56 = vrot.slane %v323_v55, 1 }
 0x113   :  { %v325_v57 = vadd.f32 %v324_v56, %v323_v55 }
 0x115   :  { %v326_v58 = vmul.f32 0.0078125, %v325_v57 }
 0x117   :  { %336 = vrot.lane.b32.xlu1 %v326_v58, %s545_s0  ;;  %328 = vrot.lane.b32.xlu0 %v326_v58, %s546_s2 }
 0x11b   :  { %332 = vrot.lane.b32.xlu0 %v326_v58, %s547_s17 }
 0x189   :  { %v329_v59 = vpop.permute.xlu0 %328  ;;  %v337_v63 = vpop.permute.xlu1 %336 }
 0x18a   :  { %v331_v60 = vadd.f32 %v329_v59, %v326_v58 }
 0x18d   :  { %v333_v61 = vpop.permute.xlu0 %332 }
 0x18e   :  { %v335_v62 = vadd.f32 %v333_v61, %v331_v60 }
 0x190   :  { %v339_v0 = vadd.f32 %v337_v63, %v335_v62 }
 0x192   :  { %344 = vrot.lane.b32.xlu0 %v339_v0, %s547_s17  ;;  %341 = vrot.lane.b32.xlu1 %v339_v0, %s545_s0 }
 0x196   :  { %347 = vrot.lane.b32.xlu1 %v339_v0, %s546_s2 }
 0x204   :  { %v342_v3 = vpop.permute.xlu1 %341  ;;  %v345_v4 = vpop.permute.xlu0 %344 }
 0x205   :  { %v350_v5 = vsel %vm210_vm0, %v339_v0, %v342_v3 }
 0x206   :  { %v352_v7 = vsel %vm351_vm1, %v350_v5, %v345_v4 }
 0x208   :  { %v348_v8 = vpop.permute.xlu1 %347 }
 0x209   :  { %v354_v9 = vsel %vm353_vm2, %v352_v7, %v348_v8 }
 0x20a   :  { %v358_v10 = vrot.slane %v354_v9, %v357_v6 }
 0x20c   :  { %v359_v11 = vsub.f32 %v301_v36, %v358_v10  ;;  %v360_v12 = vsub.f32 %v304_v38, %v358_v10  ;;  %v361_v13 = vsub.f32 %v309_v47, %v358_v10  ;;  %v362_v14 = vsub.f32 %v312_v50, %v358_v10 }
 0x20e   :  { %v363_v15 = vmul.f32 %v359_v11, %v359_v11  ;;  %v364_v16 = vmul.f32 %v360_v12, %v360_v12  ;;  %v365_v17 = vmul.f32 %v361_v13, %v361_v13  ;;  %v366_v19 = vmul.f32 %v362_v14, %v362_v14 }
 0x210   :  { %v367_v18 = vadd.f32 %v364_v16, %v363_v15 }
 0x212   :  { %v368_v20 = vadd.f32 %v367_v18, %v365_v17 }
 0x214   :  { %v369_v21 = vadd.f32 %v368_v20, %v366_v19 }
 0x216   :  { %v370_v22 = vrot.slane %v369_v21, 4 }
 0x218   :  { %v371_v23 = vadd.f32 %v370_v22, %v369_v21 }
 0x21a   :  { %v372_v24 = vrot.slane %v371_v23, 2 }
 0x21c   :  { %v373_v25 = vadd.f32 %v372_v24, %v371_v23 }
 0x21e   :  { %v374_v26 = vrot.slane %v373_v25, 1 }
 0x220   :  { %v375_v27 = vadd.f32 %v374_v26, %v373_v25 }
 0x222   :  { %v376_v28 = vmul.f32 0.0078125, %v375_v27 }
 0x224   :  { %382 = vrot.lane.b32.xlu1 %v376_v28, %s547_s17  ;;  %378 = vrot.lane.b32.xlu0 %v376_v28, %s546_s2 }
 0x228   :  { %386 = vrot.lane.b32.xlu0 %v376_v28, %s545_s0 }
 0x296   :  { %v379_v29 = vpop.permute.xlu0 %378  ;;  %v383_v31 = vpop.permute.xlu1 %382 }
 0x297   :  { %v381_v30 = vadd.f32 %v379_v29, %v376_v28 }
 0x299   :  { %v385_v32 = vadd.f32 %v383_v31, %v381_v30 }
 0x29a   :  { %v387_v33 = vpop.permute.xlu0 %386 }
 0x29b   :  { %v389_v34 = vadd.f32 %v387_v33, %v385_v32 }
 0x29d   :  { %394 = vrot.lane.b32.xlu0 %v389_v34, %s547_s17  ;;  %391 = vrot.lane.b32.xlu1 %v389_v34, %s545_s0 }
 0x2a1   :  { %397 = vrot.lane.b32.xlu1 %v389_v34, %s546_s2 }
 0x30f   :  { %v392_v35 = vpop.permute.xlu1 %391  ;;  %v395_v36 = vpop.permute.xlu0 %394 }
 0x310   :  { %v400_v37 = vsel %vm210_vm0, %v389_v34, %v392_v35 }
 0x311   :  { %v401_v38 = vsel %vm351_vm1, %v400_v37, %v395_v36 }
 0x313   :  { %v398_v39 = vpop.permute.xlu1 %397 }
 0x314   :  { %v402_v40 = vsel %vm353_vm2, %v401_v38, %v398_v39 }
 0x315   :  { %v403_v41 = vadd.f32 1e-05, %v402_v40 }
 0x317   :  { %543 = vrsqrt.f32 %v403_v41 }
 0x321   :  { %v544_v42 = vpop.eup %543 }
 0x322   :  { %v408_v43 = vrot.slane %v544_v42, %v357_v6 }
 0x324   :  { %v409_v45 = vmul.f32 %v408_v43, %v359_v11  ;;  %v410_v46 = vmul.f32 %v408_v43, %v360_v12  ;;  %v411_v47 = vmul.f32 %v408_v43, %v361_v13  ;;  %v412_v48 = vmul.f32 %v408_v43, %v362_v14 }
 0x326   :  { %v419_v50 = vmul.f32 %v472_v44, %v409_v45  ;;  %v420_v51 = vmul.f32 %v472_v44, %v410_v46  ;;  %v421_v52 = vmul.f32 %v472_v44, %v411_v47  ;;  %v422_v53 = vmul.f32 %v472_v44, %v412_v48 }
 0x328   :  { %v429_v54 = vadd.f32 %v473_v49, %v419_v50  ;;  %v430_v55 = vadd.f32 %v473_v49, %v420_v51  ;;  %v431_v56 = vadd.f32 %v473_v49, %v421_v52  ;;  %v432_v57 = vadd.f32 %v473_v49, %v422_v53 }
 0x32a   :  { %v433_v58 = vmax.f32 %v429_v54, 0.0  ;;  %v434_v59 = vmax.f32 %v430_v55, 0.0  ;;  %v435_v60 = vmax.f32 %v431_v56, 0.0  ;;  %v436_v61 = vmax.f32 %v432_v57, 0.0 }
 0x32c   :  { %437 = vst [vmem:[%s696_s5] sm:$0xff] %v433_v58  ;;  %438 = vst [vmem:[%s696_s5 + $0x8] sm:$0xff] %v434_v59 }
 0x32d   :  { %439 = vst [vmem:[%s696_s5 + $0x10] sm:$0xff] %v435_v60  ;;  %440 = vst [vmem:[%s696_s5 + $0x18] sm:$0xff] %v436_v61 }

// kernel: vqvae_forward.13
= control target key start
LH: loop header
LB: loop body
LE: loop exit
PB: predicated region body
PF: predicated region fallthrough
CT: control target
= control target key end

     0   :  { %vm318_vm0 = vcmask 261120   ;;  %vm537_vm1 = vcmask 97280   ;;  %s1020_s1 = inlined_call_operand.vmem [shape: bf16[288,12], index: 1, kind: input, shape index: {}]   ;;  %s1021_s0 = inlined_call_operand.vmem [shape: bf16[128,288], index: 0, kind: input, shape index: {}]   ;;  %s1022_s2 = inlined_call_operand.vmem [shape: f32[1,12], index: 2, kind: input, shape index: {}]   ;;  %s1023_s3 = inlined_call_operand.vmem [shape: f32[128,12], index: 3, kind: output, shape index: {}]  }
   0x1   :  { %v719_v0 = vld [vmem:[%s1020_s1 + $0x40] sm:$0xff]   ;;  %v721_v2 = vld [vmem:[%s1020_s1 + $0x48] sm:$0xff]   ;;  %v723_v4 = vld [vmem:[%s1020_s1 + $0x50] sm:$0xff]  }
   0x2   :  { %v720_v1 = vld [vmem:[%s1020_s1] sm:$0xff]   ;;  %609 = vmatprep.subr.bf16.mxu0 %v719_v0  ;;  %703 = vmatprep.subr.bf16.mxu1 %v719_v0  ;;  %v722_v3 = vld [vmem:[%s1020_s1 + $0x8] sm:$0xff]   ;;  %v724_v5 = vld [vmem:[%s1020_s1 + $0x10] sm:$0xff]  }
   0x3   :  { %610 = vmatpush3.bf16.msra.mxu0 %v720_v1  ;;  %711 = vmatpush3.bf16.msra.mxu1 %v720_v1  ;;  %v725_v6 = vld [vmem:[%s1020_s1 + $0x58] sm:$0xff]   ;;  %v727_v8 = vld [vmem:[%s1020_s1 + $0x60] sm:$0xff]   ;;  %v729_v10 = vld [vmem:[%s1020_s1 + $0x68] sm:$0xff]  }
   0x4   :  { %611 = vmatprep.subr.bf16.mxu0 %v721_v2  ;;  %704 = vmatprep.subr.bf16.mxu1 %v721_v2  ;;  %v726_v7 = vld [vmem:[%s1020_s1 + $0x18] sm:$0xff]   ;;  %v728_v9 = vld [vmem:[%s1020_s1 + $0x20] sm:$0xff]   ;;  %v730_v13 = vld [vmem:[%s1020_s1 + $0x28] sm:$0xff]  }
   0x5   :  { %v737_v11 = vld [vmem:[%s1021_s0 + $0x4] ss:$12 sps:$4 sm:$0xff]   ;;  %v740_v12 = vld [vmem:[%s1021_s0 + $0x94] ss:$12 sps:$4 sm:$0xff]   ;;  %v733_v16 = vld [vmem:[%s1020_s1 + $0x78] sm:$0xff]  }
   0x6   :  { %v731_v14 = vld [vmem:[%s1020_s1 + $0x70] sm:$0xff]   ;;  %375 = vmatprep.mubr.bf16.mxu0 %v737_v11  ;;  %423 = vmatprep.mubr.bf16.mxu1 %v740_v12  ;;  %v734_v17 = vld [vmem:[%s1020_s1 + $0x38] sm:$0xff]   ;;  %v735_v18 = vld [vmem:[%s1021_s0] ss:$12 sps:$4 sm:$0xff]  }
   0x7   :  { %612 = vmatpush3.bf16.msra.mxu0 %v722_v3  ;;  %712 = vmatpush3.bf16.msra.mxu1 %v722_v3  ;;  %v732_v15 = vld [vmem:[%s1020_s1 + $0x30] sm:$0xff]   ;;  %v741_v19 = vld [vmem:[%s1020_s1 + $0x80] sm:$0xff]   ;;  %v742_v21 = vld [vmem:[%s1021_s0 + $0x1c] ss:$12 sps:$4 sm:$0xff]  }
   0x8   :  { %613 = vmatprep.subr.bf16.mxu0 %v723_v4  ;;  %705 = vmatprep.subr.bf16.mxu1 %v723_v4  ;;  %v738_v20 = vld [vmem:[%s1021_s0 + $0x90] ss:$12 sps:$4 sm:$0xff]   ;;  %v744_v22 = vld [vmem:[%s1021_s0 + $0xac] ss:$12 sps:$4 sm:$0xff]   ;;  %v747_v25 = vld [vmem:[%s1021_s0 + $0xa8] ss:$12 sps:$4 sm:$0xff]  }
   0x9   :  { %v748_v23 = vld [vmem:[%s1020_s1 + $0x88] sm:$0xff]   ;;  %v746_v24 = vld [vmem:[%s1021_s0 + $0x18] ss:$12 sps:$4 sm:$0xff]   ;;  %v749_v26 = vld [vmem:[%s1021_s0 + $0x34] ss:$12 sps:$4 sm:$0xff]  }
   0xa   :  { %v751_v27 = vld [vmem:[%s1021_s0 + $0x8] ss:$12 sps:$4 sm:$0xff]   ;;  %v752_v28 = vld [vmem:[%s1021_s0 + $0x30] ss:$12 sps:$4 sm:$0xff]   ;;  %v753_v29 = vld [vmem:[%s1021_s0 + $0x20] ss:$12 sps:$4 sm:$0xff]  }
   0xb   :  { %614 = vmatpush3.bf16.msra.mxu0 %v724_v5  ;;  %713 = vmatpush3.bf16.msra.mxu1 %v724_v5  ;;  %v754_v30 = vld [vmem:[%s1021_s0 + $0x4c] ss:$12 sps:$4 sm:$0xff]   ;;  %v757_v32 = vld [vmem:[%s1021_s0 + $0x48] ss:$12 sps:$4 sm:$0xff]   ;;  %v758_v33 = vld [vmem:[%s1021_s0 + $0x50] ss:$12 sps:$4 sm:$0xff]  }
   0xc   :  { %615 = vmatprep.subr.bf16.mxu0 %v725_v6  ;;  %706 = vmatprep.subr.bf16.mxu1 %v725_v6  ;;  %v756_v31 = vld [vmem:[%s1021_s0 + $0x38] ss:$12 sps:$4 sm:$0xff]   ;;  %v761_v35 = vld [vmem:[%s1021_s0 + $0x68] ss:$12 sps:$4 sm:$0xff]   ;;  %v762_v36 = vld [vmem:[%s1021_s0 + $0x60] ss:$12 sps:$4 sm:$0xff]  }
   0xd   :  { %v759_v34 = vld [vmem:[%s1021_s0 + $0x64] ss:$12 sps:$4 sm:$0xff]   ;;  %v763_v37 = vld [vmem:[%s1021_s0 + $0x80] ss:$12 sps:$4 sm:$0xff]   ;;  %v764_v38 = vld [vmem:[%s1021_s0 + $0x7c] ss:$12 sps:$4 sm:$0xff]  }
   0xe   :  { %v766_v39 = vld [vmem:[%s1021_s0 + $0x98] ss:$12 sps:$4 sm:$0xff]   ;;  %v768_v41 = vld [vmem:[%s1021_s0 + $0xb0] ss:$12 sps:$4 sm:$0xff]   ;;  %v934_v2 = vld [vmem:[%s1022_s2] ss:$0 sm:$0xff] }
   0xf   :  { %616 = vmatpush3.bf16.msra.mxu0 %v726_v7  ;;  %714 = vmatpush3.bf16.msra.mxu1 %v726_v7  ;;  %v767_v40 = vld [vmem:[%s1021_s0 + $0x78] ss:$12 sps:$4 sm:$0xff]  }
  0x10   :  { %617 = vmatprep.subr.bf16.mxu0 %v727_v8  ;;  %707 = vmatprep.subr.bf16.mxu1 %v727_v8 }
  0x13   :  { %618 = vmatpush3.bf16.msra.mxu0 %v728_v9  ;;  %715 = vmatpush3.bf16.msra.mxu1 %v728_v9 }
  0x14   :  { %619 = vmatprep.subr.bf16.mxu0 %v729_v10  ;;  %708 = vmatprep.subr.bf16.mxu1 %v729_v10 }
  0x17   :  { %620 = vmatpush3.bf16.msra.mxu0 %v730_v13  ;;  %716 = vmatpush3.bf16.msra.mxu1 %v730_v13 }
  0x18   :  { %621 = vmatprep.subr.bf16.mxu0 %v731_v14  ;;  %709 = vmatprep.subr.bf16.mxu1 %v731_v14 }
  0x1b   :  { %622 = vmatpush3.bf16.msra.mxu0 %v732_v15  ;;  %717 = vmatpush3.bf16.msra.mxu1 %v732_v15 }
  0x1c   :  { %623 = vmatprep.subr.bf16.mxu0 %v733_v16  ;;  %710 = vmatprep.subr.bf16.mxu1 %v733_v16 }
  0x1f   :  { %624 = vmatpush3.bf16.msra.mxu0 %v734_v17  ;;  %718 = vmatpush3.bf16.msra.mxu1 %v734_v17 }
  0x20   :  { %683 = vmatprep.subr.bf16.mxu1 %v741_v19 }
  0x22   :  { %376 = vmatmul.mubr.bf16.vlgmr.msra.gmra.mrb[0].mxu0 %v735_v18  ;;  %424 = vmatmul.mubr.bf16.vlgmr.msra.gmra.mrb[0].mxu1 %v738_v20 }
  0x23   :  { %684 = vmatpush3.bf16.msra.mxu1 %v741_v19  ;;  %383 = vmatprep.mubr.bf16.mxu0 %v742_v21 }
  0x24   :  { %431 = vmatprep.mubr.bf16.mxu1 %v744_v22  ;;  %685 = vmatprep.subr.bf16.mxu1 %v748_v23 }
  0x27   :  { %686 = vmatpush3.bf16.msra.mxu1 %v748_v23 }
  0x2a   :  { %384 = vmatmul.mubr.bf16.gmra.mrb[4].mxu0 %v746_v24  ;;  %432 = vmatmul.mubr.bf16.gmra.mrb[4].mxu1 %v747_v25 }
  0x2b   :  { %391 = vmatprep.mubr.bf16.mxu0 %v749_v26  ;;  %687 = vmatprep.mubr.msk.bf16.mxu1 %vm318_vm0, %v751_v27 }
  0x32   :  { %392 = vmatmul.mubr.bf16.gmra.mrb[8].mxu0 %v752_v28  ;;  %688 = vmatmul.mubr.msk.bf16.vlgmr.msra.gmra.mrb[8].mxu1 %vm318_vm0, %v753_v29 }
  0x33   :  { %399 = vmatprep.mubr.bf16.mxu0 %v754_v30  ;;  %691 = vmatprep.mubr.msk.bf16.mxu1 %vm318_vm0, %v756_v31 }
  0x3a   :  { %400 = vmatmul.mubr.bf16.gmra.mrb[12].mxu0 %v757_v32  ;;  %692 = vmatmul.mubr.msk.bf16.gmra.mrb[12].mxu1 %vm318_vm0, %v758_v33 }
  0x3b   :  { %407 = vmatprep.mubr.bf16.mxu0 %v759_v34  ;;  %695 = vmatprep.mubr.msk.bf16.mxu1 %vm318_vm0, %v761_v35 }
  0x42   :  { %408 = vmatmul.mubr.bf16.gmra.mrb[16].mxu0 %v762_v36  ;;  %696 = vmatmul.mubr.msk.bf16.gmra.mrb[16].mxu1 %vm318_vm0, %v763_v37 }
  0x43   :  { %415 = vmatprep.mubr.bf16.mxu0 %v764_v38  ;;  %699 = vmatprep.mubr.msk.bf16.mxu1 %vm318_vm0, %v766_v39 }
  0x4a   :  { %416 = vmatmul.mubr.bf16.gmra.mrb[20].mxu0 %v767_v40  ;;  %700 = vmatmul.mubr.msk.bf16.gmra.mrb[20].mxu1 %vm318_vm0, %v768_v41 }
  0xf5   :  { %v625_v42 = vpop.f32.mrb[0].mxu0  ;;  %v661_v43 = vpop.f32.mrb[0].mxu1 }
  0xf6   :  { %v626_v44 = vpop.f32.mrb[1].mxu0  ;;  %v662_v45 = vpop.f32.mrb[1].mxu1 }
  0xf7   :  { %v627_v46 = vadd.f32 %v626_v44, %v625_v42  ;;  %v628_v47 = vpop.f32.mrb[2].mxu0  ;;  %v923_v48 = vadd.f32 %v662_v45, %v661_v43  ;;  %v664_v49 = vpop.f32.mrb[2].mxu1 }
  0xf8   :  { %v629_v50 = vpop.f32.mrb[3].mxu0  ;;  %v665_v51 = vpop.f32.mrb[3].mxu1 }
  0xf9   :  { %v630_v52 = vadd.f32 %v629_v50, %v628_v47  ;;  %v925_v53 = vadd.f32 %v665_v51, %v664_v49  ;;  %v378_v6 = vadd.f32 %v627_v46, %v934_v2 }
  0xfb   :  { %v381_v15 = vadd.f32 %v630_v52, %v934_v2 }
  0xfd   :  { %v631_v54 = vpop.f32.mrb[4].mxu0  ;;  %v667_v55 = vpop.f32.mrb[4].mxu1 }
  0xfe   :  { %v632_v56 = vpop.f32.mrb[5].mxu0  ;;  %v668_v57 = vpop.f32.mrb[5].mxu1 }
  0xff   :  { %v633_v58 = vadd.f32 %v632_v56, %v631_v54  ;;  %v634_v59 = vpop.f32.mrb[6].mxu0  ;;  %v927_v60 = vadd.f32 %v668_v57, %v667_v55  ;;  %v670_v61 = vpop.f32.mrb[6].mxu1 }
 0x100   :  { %v635_v62 = vpop.f32.mrb[7].mxu0  ;;  %v671_v63 = vpop.f32.mrb[7].mxu1 }
 0x101   :  { %v636_v0 = vadd.f32 %v635_v62, %v634_v59  ;;  %v929_v1 = vadd.f32 %v671_v63, %v670_v61  ;;  %v386_v3 = vadd.f32 %v633_v58, %v934_v2  ;;  %v434_v54 = vadd.f32 %v927_v60, %v934_v2 }
 0x102   :  { %v426_v58 = vadd.f32 %v923_v48, %v934_v2 }
 0x103   :  { %v389_v10 = vadd.f32 %v636_v0, %v934_v2  ;;  %v437_v63 = vadd.f32 %v929_v1, %v934_v2 }
 0x105   :  { %v637_v4 = vpop.f32.mrb[8].mxu0  ;;  %v689_v5 = vpop.f32.mrb[8].mxu1 }
 0x106   :  { %v483_v7 = vadd.f32 %v689_v5, %v386_v3  ;;  %v638_v8 = vpop.f32.mrb[9].mxu0  ;;  %v474_v9 = vpop.f32.mrb[9].mxu1  ;;  %v429_v5 = vadd.f32 %v925_v53, %v934_v2 }
 0x107   :  { %v639_v11 = vadd.f32 %v638_v8, %v637_v4  ;;  %v475_v12 = vadd.f32 %v474_v9, %v378_v6  ;;  %v640_v13 = vpop.f32.mrb[10].mxu0  ;;  %v690_v14 = vpop.f32.mrb[10].mxu1 }
 0x108   :  { %540 = vst.msk [vmem:[%s1023_s3 + $0x10] sm:$0xff] %vm537_vm1, %v483_v7  ;;  %v486_v16 = vadd.f32 %v690_v14, %v389_v10  ;;  %v641_v17 = vpop.f32.mrb[11].mxu0  ;;  %v477_v18 = vpop.f32.mrb[11].mxu1 }
 0x109   :  { %538 = vst.msk [vmem:[%s1023_s3] sm:$0xff] %vm537_vm1, %v475_v12  ;;  %v642_v19 = vadd.f32 %v641_v17, %v640_v13  ;;  %v478_v20 = vadd.f32 %v477_v18, %v381_v15  ;;  %v394_v23 = vadd.f32 %v639_v11, %v934_v2 }
 0x10a   :  { %541 = vst.msk [vmem:[%s1023_s3 + $0x18] sm:$0xff] %vm537_vm1, %v486_v16 }
 0x10b   :  { %539 = vst.msk [vmem:[%s1023_s3 + $0x8] sm:$0xff] %vm537_vm1, %v478_v20  ;;  %v397_v30 = vadd.f32 %v642_v19, %v934_v2 }
 0x10d   :  { %v643_v21 = vpop.f32.mrb[12].mxu0  ;;  %v693_v22 = vpop.f32.mrb[12].mxu1 }
 0x10e   :  { %v644_v24 = vpop.f32.mrb[13].mxu0  ;;  %v490_v25 = vpop.f32.mrb[13].mxu1 }
 0x10f   :  { %v645_v26 = vadd.f32 %v644_v24, %v643_v21  ;;  %v491_v27 = vadd.f32 %v490_v25, %v394_v23  ;;  %v646_v28 = vpop.f32.mrb[14].mxu0  ;;  %v694_v29 = vpop.f32.mrb[14].mxu1 }
 0x110   :  { %v647_v31 = vpop.f32.mrb[15].mxu0  ;;  %v493_v32 = vpop.f32.mrb[15].mxu1 }
 0x111   :  { %v402_v33 = vadd.f32 %v645_v26, %v934_v2  ;;  %542 = vst.msk [vmem:[%s1023_s3 + $0x20] sm:$0xff] %vm537_vm1, %v491_v27  ;;  %v648_v34 = vadd.f32 %v647_v31, %v646_v28  ;;  %v494_v35 = vadd.f32 %v493_v32, %v397_v30 }
 0x113   :  { %v499_v36 = vadd.f32 %v693_v22, %v402_v33  ;;  %v405_v37 = vadd.f32 %v648_v34, %v934_v2  ;;  %543 = vst.msk [vmem:[%s1023_s3 + $0x28] sm:$0xff] %vm537_vm1, %v494_v35 }
 0x115   :  { %544 = vst.msk [vmem:[%s1023_s3 + $0x30] sm:$0xff] %vm537_vm1, %v499_v36  ;;  %v502_v38 = vadd.f32 %v694_v29, %v405_v37  ;;  %v649_v39 = vpop.f32.mrb[16].mxu0  ;;  %v697_v40 = vpop.f32.mrb[16].mxu1 }
 0x116   :  { %v650_v41 = vpop.f32.mrb[17].mxu0  ;;  %v506_v42 = vpop.f32.mrb[17].mxu1 }
 0x117   :  { %545 = vst.msk [vmem:[%s1023_s3 + $0x38] sm:$0xff] %vm537_vm1, %v502_v38  ;;  %v651_v43 = vadd.f32 %v650_v41, %v649_v39  ;;  %v652_v44 = vpop.f32.mrb[18].mxu0  ;;  %v698_v45 = vpop.f32.mrb[18].mxu1 }
 0x118   :  { %v653_v46 = vpop.f32.mrb[19].mxu0  ;;  %v509_v47 = vpop.f32.mrb[19].mxu1 }
 0x119   :  { %v410_v49 = vadd.f32 %v651_v43, %v934_v2  ;;  %v654_v50 = vadd.f32 %v653_v46, %v652_v44 }
 0x11b   :  { %v507_v51 = vadd.f32 %v506_v42, %v410_v49  ;;  %v413_v52 = vadd.f32 %v654_v50, %v934_v2 }
 0x11d   :  { %546 = vst.msk [vmem:[%s1023_s3 + $0x40] sm:$0xff] %vm537_vm1, %v507_v51  ;;  %v510_v55 = vadd.f32 %v509_v47, %v413_v52  ;;  %v655_v56 = vpop.f32.mrb[20].mxu0  ;;  %v701_v57 = vpop.f32.mrb[20].mxu1 }
 0x11e   :  { %v531_v59 = vadd.f32 %v701_v57, %v434_v54  ;;  %v656_v61 = vpop.f32.mrb[21].mxu0  ;;  %v522_v62 = vpop.f32.mrb[21].mxu1 }
 0x11f   :  { %547 = vst.msk [vmem:[%s1023_s3 + $0x48] sm:$0xff] %vm537_vm1, %v510_v55  ;;  %v657_v60 = vadd.f32 %v656_v61, %v655_v56  ;;  %v523_v0 = vadd.f32 %v522_v62, %v426_v58  ;;  %v658_v3 = vpop.f32.mrb[22].mxu0  ;;  %v702_v4 = vpop.f32.mrb[22].mxu1 }
 0x120   :  { %552 = vst.msk [vmem:[%s1023_s3 + $0x70] sm:$0xff] %vm537_vm1, %v531_v59  ;;  %v534_v48 = vadd.f32 %v702_v4, %v437_v63  ;;  %v659_v6 = vpop.f32.mrb[23].mxu0  ;;  %v525_v1 = vpop.f32.mrb[23].mxu1 }
 0x121   :  { %v418_v7 = vadd.f32 %v657_v60, %v934_v2  ;;  %550 = vst.msk [vmem:[%s1023_s3 + $0x60] sm:$0xff] %vm537_vm1, %v523_v0  ;;  %v660_v8 = vadd.f32 %v659_v6, %v658_v3  ;;  %v526_v9 = vadd.f32 %v525_v1, %v429_v5 }
 0x122   :  { %553 = vst.msk [vmem:[%s1023_s3 + $0x78] sm:$0xff] %vm537_vm1, %v534_v48 }
 0x123   :  { %v515_v53 = vadd.f32 %v697_v40, %v418_v7  ;;  %v421_v10 = vadd.f32 %v660_v8, %v934_v2  ;;  %551 = vst.msk [vmem:[%s1023_s3 + $0x68] sm:$0xff] %vm537_vm1, %v526_v9 }
 0x125   :  { %548 = vst.msk [vmem:[%s1023_s3 + $0x50] sm:$0xff] %vm537_vm1, %v515_v53  ;;  %v518_v11 = vadd.f32 %v698_v45, %v421_v10 }
 0x127   :  { %549 = vst.msk [vmem:[%s1023_s3 + $0x58] sm:$0xff] %vm537_vm1, %v518_v11 }

</bundles_post_ra>
